<compile_context>
chip_gen: v7x
topology: tpu7x:2x2x1
jax: 0.10.0
libtpu: 0.0.40
codegen_flags: <defaults>
</compile_context>

<pallas_src>
import functools

import jax
import jax.numpy as jnp
from jax.experimental import pallas as pl
from jax.experimental.pallas import tpu as pltpu

_VMEM_LIMIT = 32 * 1024 * 1024
_MAX_W_BLOCK_BYTES = 3 * 1024 * 1024


# ---------------------------------------------------------------------------
# Pallas kernels
# ---------------------------------------------------------------------------

def _matmul_bt_kernel(x_ref, w_ref, s_ref, b_ref, o_ref, acc_ref, *, relu):
    """One (n, k) tile of out = act((x @ w.T) * s + b); w kept in (Nout, K) layout.

    w may be int8 (per-output-channel scales in s) or bf16 (s == 1); it is cast to
    bf16 in VMEM so the MXU path is identical on v5e / v6e / v7x.
    """
    k = pl.program_id(1)

    @pl.when(k == 0)
    def _():
        acc_ref[...] = jnp.zeros_like(acc_ref)

    acc_ref[...] += jax.lax.dot_general(
        x_ref[...], w_ref[...].astype(jnp.bfloat16),
        dimension_numbers=(((1,), (1,)), ((), ())),
        preferred_element_type=jnp.float32)

    @pl.when(k == pl.num_programs(1) - 1)
    def _():
        out = acc_ref[...] * s_ref[...] + b_ref[...]
        if relu:
            out = jnp.maximum(out, 0.0)
        o_ref[...] = out.astype(o_ref.dtype)


def _fc1_fc23_kernel(x_ref, w3_ref, s3_ref, b3_ref, w4_ref, b4_ref,
                     w5_ref, b5_ref, o_ref, acc_ref):
    """fc1 (int8 weights, K-tiled) + ReLU + fc2 + ReLU + fc3 fused (single-TC path).

    fc2/fc3 run in the k==last epilogue on the VMEM-resident accumulator.  The
    zero-padded batch rows compute relu(b3)-derived garbage that the caller slices
    off -- harmless and negligible.
    """
    k = pl.program_id(0)

    @pl.when(k == 0)
    def _():
        acc_ref[...] = jnp.zeros_like(acc_ref)

    acc_ref[...] += jax.lax.dot_general(
        x_ref[...], w3_ref[...].astype(jnp.bfloat16),
        dimension_numbers=(((1,), (1,)), ((), ())),
        preferred_element_type=jnp.float32)

    @pl.when(k == pl.num_programs(0) - 1)
    def _():
        h = jnp.maximum(acc_ref[...] * s3_ref[...] + b3_ref[...], 0.0)
        h = h.astype(jnp.bfloat16)
        h = jax.lax.dot_general(
            h, w4_ref[...],
            dimension_numbers=(((1,), (1,)), ((), ())),
            preferred_element_type=jnp.float32)
        h = jnp.maximum(h + b4_ref[...], 0.0).astype(jnp.bfloat16)
        o = jax.lax.dot_general(
            h, w5_ref[...],
            dimension_numbers=(((1,), (1,)), ((), ())),
            preferred_element_type=jnp.float32)
        o_ref[...] = (o + b5_ref[...]).astype(o_ref.dtype)


def _fc23_kernel(x_ref, w4_ref, b4_ref, w5_ref, b5_ref, o_ref):
    """Fused fc2 (ReLU) + fc3; both weights VMEM-resident (v7x path)."""
    h = jax.lax.dot_general(
        x_ref[...], w4_ref[...],
        dimension_numbers=(((1,), (1,)), ((), ())),
        preferred_element_type=jnp.float32)
    h = jnp.maximum(h + b4_ref[...], 0.0).astype(w5_ref.dtype)
    o = jax.lax.dot_general(
        h, w5_ref[...],
        dimension_numbers=(((1,), (1,)), ((), ())),
        preferred_element_type=jnp.float32)
    o_ref[...] = (o + b5_ref[...]).astype(o_ref.dtype)


def _conv1_relu_pool_kernel(x_ref, w_ref, b_ref, o_ref):
    """Fused 2x2 'same' conv (Cin=1) + ReLU + 2x2/2 max-pool (pure VPU).

    x_ref: (16, tm, 1) f32 -- tap index = 4*(2*dh+dw) + (2*ti+tj), rows = (n,ho,wo)
    w_ref: (4, Cout)    f32 -- row t = 2*ti+tj
    b_ref: (1, Cout)    f32
    o_ref: (tm, Cout)
    """
    b = b_ref[...]
    w_rows = [w_ref[t:t + 1, :] for t in range(4)]
    best = None
    for p in range(4):                       # pool position (dh, dw)
        acc = b
        for t in range(4):                   # conv tap (ti, tj)
            acc = acc + x_ref[4 * p + t] * w_rows[t]
        acc = jnp.maximum(acc, 0.0)          # ReLU before pool (matches module order)
        best = acc if best is None else jnp.maximum(best, acc)
    o_ref[...] = best.astype(o_ref.dtype)


# ---------------------------------------------------------------------------
# Helpers / wrappers
# ---------------------------------------------------------------------------

def _ceil_to(x, m):
    return ((x + m - 1) // m) * m


def _pick_tk(K, tn, w_itemsize, max_w_block_bytes):
    """Largest K-tile (multiple of 128, divides K) with weight block under budget."""
    nk = K // 128
    max_units = max(1, max_w_block_bytes // (128 * tn * w_itemsize))
    kc = max(d for d in range(1, nk + 1) if nk % d == 0 and d <= max_units)
    return 128 * kc


_POLICY_CACHE = {}


def _policy():
    """Chip-aware tiling policy (decided at trace time, outside the kernels)."""
    if "p" not in _POLICY_CACHE:
        try:
            kind = jax.devices()[0].device_kind.lower()
        except Exception:
            kind = ""
        is_v7 = ("v7" in kind) or ("7x" in kind)
        if is_v7:
            # 2 TensorCores: keep 2 output tiles on fc1 so the weight stream shards.
            _POLICY_CACHE["p"] = {"tn": 128, "fuse_fc23": False}
        else:
            # Single TC (v5e/v6e/unknown): one wide tile + fc2/fc3 fused in epilogue.
            _POLICY_CACHE["p"] = {"tn": 256, "fuse_fc23": True}
    return _POLICY_CACHE["p"]


def matmul_bt(x, w, s_row, b_row, *, relu, out_dtype, tn,
              max_w_block_bytes=_MAX_W_BLOCK_BYTES):
    """act((x @ w.T) * s + b). x: (M,K); w: (Nout,K) int8/bf16; s,b: (1,Nout) f32."""
    M, K = x.shape
    Nout, K2 = w.shape
    tn = min(tn, Nout)
    assert K == K2 and Nout % tn == 0 and K % 128 == 0

    Mp = _ceil_to(max(M, 8), 8)
    x_p = jnp.pad(x, ((0, Mp - M), (0, 0))).astype(jnp.bfloat16)

    w_isz = jnp.dtype(w.dtype).itemsize
    tk = _pick_tk(K, tn, w_isz, max_w_block_bytes)
    grid = (Nout // tn, K // tk)

    cost = pl.CostEstimate(
        flops=2 * Mp * K * Nout,
        transcendentals=0,
        bytes_accessed=(Nout * K * w_isz + Mp * K * 2
                        + Mp * Nout * jnp.dtype(out_dtype).itemsize + Nout * 8))

    return pl.pallas_call(
        functools.partial(_matmul_bt_kernel, relu=relu),
        out_shape=jax.ShapeDtypeStruct((Mp, Nout), out_dtype),
        grid_spec=pltpu.PrefetchScalarGridSpec(
            num_scalar_prefetch=0,
            grid=grid,
            in_specs=[
                pl.BlockSpec((Mp, tk), lambda n, k: (0, k)),
                pl.BlockSpec((tn, tk), lambda n, k: (n, k)),
                pl.BlockSpec((1, tn), lambda n, k: (0, n)),
                pl.BlockSpec((1, tn), lambda n, k: (0, n)),
            ],
            out_specs=pl.BlockSpec((Mp, tn), lambda n, k: (0, n)),
            scratch_shapes=[pltpu.VMEM((Mp, tn), jnp.float32)],
        ),
        compiler_params=pltpu.CompilerParams(
            dimension_semantics=("parallel", "arbitrary"),
            vmem_limit_bytes=_VMEM_LIMIT),
        cost_estimate=cost,
    )(x_p, w, s_row, b_row)        # (Mp, Nout); caller slices pad rows as needed


def fc1_fc23_fused(x, w3q, s3, b3_row, w4, b4_row, w5p, b5_row,
                   max_w_block_bytes=_MAX_W_BLOCK_BYTES):
    """Fused fc1(int8,+ReLU) + fc2(+ReLU) + fc3. Returns (Mp, 128) f32."""
    M, K = x.shape
    Nout = w3q.shape[0]           # 256
    Nh = w4.shape[0]              # 128
    No = w5p.shape[0]             # 128 (fc3 padded 2 -> 128)
    assert K % 128 == 0

    Mp = _ceil_to(max(M, 8), 8)
    x_p = jnp.pad(x, ((0, Mp - M), (0, 0))).astype(jnp.bfloat16)

    w_isz = jnp.dtype(w3q.dtype).itemsize
    tk = _pick_tk(K, Nout, w_isz, max_w_block_bytes)
    kt = K // tk

    cost = pl.CostEstimate(
        flops=2 * Mp * K * Nout + 2 * Mp * Nout * Nh + 2 * Mp * Nh * No,
        transcendentals=0,
        bytes_accessed=(Nout * K * w_isz + Mp * K * 2
                        + Nout * Nh * 2 + Nh * No * 2 + Mp * No * 4))

    return pl.pallas_call(
        _fc1_fc23_kernel,
        out_shape=jax.ShapeDtypeStruct((Mp, No), jnp.float32),
        grid_spec=pltpu.PrefetchScalarGridSpec(
            num_scalar_prefetch=0,
            grid=(kt,),
            in_specs=[
                pl.BlockSpec((Mp, tk), lambda k: (0, k)),
                pl.BlockSpec((Nout, tk), lambda k: (0, k)),
                pl.BlockSpec((1, Nout), lambda k: (0, 0)),
                pl.BlockSpec((1, Nout), lambda k: (0, 0)),
                pl.BlockSpec((Nh, Nout), lambda k: (0, 0)),
                pl.BlockSpec((1, Nh), lambda k: (0, 0)),
                pl.BlockSpec((No, Nh), lambda k: (0, 0)),
                pl.BlockSpec((1, No), lambda k: (0, 0)),
            ],
            out_specs=pl.BlockSpec((Mp, No), lambda k: (0, 0)),
            scratch_shapes=[pltpu.VMEM((Mp, Nout), jnp.float32)],
        ),
        compiler_params=pltpu.CompilerParams(
            dimension_semantics=("arbitrary",),
            vmem_limit_bytes=_VMEM_LIMIT),
        cost_estimate=cost,
    )(x_p, w3q, s3, b3_row, w4, b4_row, w5p, b5_row)


def fc23(h_padded, w4, b4_row, w5p, b5_row):
    """Separate fused fc2(+ReLU)+fc3 (used on v7x where fc1 keeps 2 output tiles)."""
    Mp = h_padded.shape[0]
    return pl.pallas_call(
        _fc23_kernel,
        out_shape=jax.ShapeDtypeStruct((Mp, w5p.shape[0]), jnp.float32),
        compiler_params=pltpu.CompilerParams(vmem_limit_bytes=_VMEM_LIMIT),
    )(h_padded, w4, b4_row, w5p, b5_row)


def conv1_relu_pool(x_nhwc, w_tap, b_row, *, tm=72):
    """Fused conv1(2x2 'same', Cin=1) + ReLU + 2x2/2 max-pool. Returns (N,H/2,W/2,Cout) bf16."""
    N, H, W, _ = x_nhwc.shape
    Ho, Wo = H // 2, W // 2
    Cout = w_tap.shape[1]
    xp = jnp.pad(x_nhwc, ((0, 0), (0, 1), (0, 1), (0, 0)))   # PyTorch 'same': pad right/bottom

    taps = []
    for dh in (0, 1):            # pool row offset
        for dw in (0, 1):        # pool col offset
            for ti in (0, 1):    # conv tap row
                for tj in (0, 1):
                    oh, ow = dh + ti, dw + tj
                    taps.append(xp[:, oh:oh + 2 * Ho - 1:2, ow:ow + 2 * Wo - 1:2, 0])
    Mo = N * Ho * Wo
    Mp = _ceil_to(Mo, tm)
    xt = jnp.stack(taps, axis=0).reshape(16, Mo, 1)
    xt = jnp.pad(xt, ((0, 0), (0, Mp - Mo), (0, 0)))

    out = pl.pallas_call(
        _conv1_relu_pool_kernel,
        out_shape=jax.ShapeDtypeStruct((Mp, Cout), jnp.bfloat16),
        grid_spec=pltpu.PrefetchScalarGridSpec(
            num_scalar_prefetch=0,
            grid=(Mp // tm,),
            in_specs=[
                pl.BlockSpec((16, tm, 1), lambda i: (0, i, 0)),
                pl.BlockSpec((4, Cout), lambda i: (0, 0)),
                pl.BlockSpec((1, Cout), lambda i: (0, 0)),
            ],
            out_specs=pl.BlockSpec((tm, Cout), lambda i: (i, 0)),
        ),
        compiler_params=pltpu.CompilerParams(
            dimension_semantics=("parallel",),
            vmem_limit_bytes=_VMEM_LIMIT),
    )(xt, w_tap, b_row)
    return out[:Mo].reshape(N, Ho, Wo, Cout)


def conv2x2_same_matmul(x_nhwc, w_mat, s_row, b_row, *, relu, out_dtype, tn):
    """2x2 stride-1 'same' conv as im2col matmul. w_mat: (Cout, 4*Cin) in (ki,kj,ci) order."""
    N, H, W, C = x_nhwc.shape
    xp = jnp.pad(x_nhwc, ((0, 0), (0, 1), (0, 1), (0, 0)))
    cols = jnp.concatenate(
        [xp[:, ki:ki + H, kj:kj + W, :] for ki in (0, 1) for kj in (0, 1)],
        axis=-1)
    a = cols.reshape(N * H * W, 4 * C)
    out = matmul_bt(a, w_mat, s_row, b_row, relu=relu, out_dtype=out_dtype, tn=tn)
    return out[:N * H * W]                     # (N*H*W, Cout), rows ordered (n, h, w)


# ---------------------------------------------------------------------------
# Parameters
# ---------------------------------------------------------------------------

def init_params(key):
    """Deterministic synthetic parameters matching the PyTorch module's shapes (f32)."""
    ks = jax.random.split(key, 10)

    def w_init(k, shape, fan_in):
        return (jax.random.normal(k, shape, jnp.float32)
                / jnp.sqrt(jnp.float32(fan_in)))

    def b_init(k, shape):
        return jax.random.normal(k, shape, jnp.float32) * 0.01

    return {
        "w1": w_init(ks[0], (128, 1, 2, 2), 1 * 2 * 2),
        "b1": b_init(ks[1], (128,)),
        "w2": w_init(ks[2], (256, 128, 2, 2), 128 * 2 * 2),
        "b2": b_init(ks[3], (256,)),
        "w3": w_init(ks[4], (256, 256 * 15 * 7), 256 * 15 * 7),
        "b3": b_init(ks[5], (256,)),
        "w4": w_init(ks[6], (128, 256), 256),
        "b4": b_init(ks[7], (128,)),
        "w5": w_init(ks[8], (2, 128), 128),
        "b5": b_init(ks[9], (2,)),
    }


def _quantize_rows_int8(w):
    """Symmetric per-output-channel (per-row) int8 quantization of an (Nout,K) weight."""
    amax = jnp.max(jnp.abs(w), axis=1, keepdims=True)
    scale = jnp.maximum(amax, 1e-12) / 127.0
    q = jnp.clip(jnp.round(w / scale), -127.0, 127.0).astype(jnp.int8)
    return q, scale.reshape(1, -1).astype(jnp.float32)


def prepare_params(p):
    """One-time (outside jit) layout/dtype prep: int8 fc1 weight, bf16 matmul weights."""
    bf16 = jnp.bfloat16
    # conv1: (Cout,1,2,2) -> tap-major (4, Cout); kept f32 (tiny, VPU kernel).
    w1t = jnp.transpose(p["w1"], (2, 3, 1, 0)).reshape(4, 128).astype(jnp.float32)
    b1r = p["b1"].reshape(1, 128).astype(jnp.float32)
    # conv2: (Cout,Cin,2,2) -> (Cout, (ki,kj,ci)) = (256, 512), bf16; unit scales.
    w2m = jnp.transpose(p["w2"], (0, 2, 3, 1)).reshape(256, 4 * 128).astype(bf16)
    s2 = jnp.ones((1, 256), jnp.float32)
    b2r = p["b2"].reshape(1, 256).astype(jnp.float32)
    # fc1: permute K columns from NCHW-flatten to NHWC-flatten order, then int8-quantize
    # per output channel (scale applied in the kernel epilogue).
    w3_nhwc = jnp.transpose(p["w3"].reshape(256, 256, 15, 7),
                            (0, 2, 3, 1)).reshape(256, 256 * 15 * 7)
    w3q, s3 = _quantize_rows_int8(w3_nhwc)
    b3r = p["b3"].reshape(1, 256).astype(jnp.float32)
    # fc2 / fc3: keep PyTorch (Nout, K) layout; pad fc3's Nout 2 -> 128 with zeros.
    w4m = p["w4"].astype(bf16)
    b4r = p["b4"].reshape(1, 128).astype(jnp.float32)
    w5p = jnp.pad(p["w5"], ((0, 126), (0, 0))).astype(bf16)
    b5r = jnp.pad(p["b5"], (0, 126)).reshape(1, 128).astype(jnp.float32)
    return {"w1t": w1t, "b1r": b1r, "w2m": w2m, "s2": s2, "b2r": b2r,
            "w3q": w3q, "s3": s3, "b3r": b3r, "w4m": w4m, "b4r": b4r,
            "w5p": w5p, "b5r": b5r}


# ---------------------------------------------------------------------------
# Model
# ---------------------------------------------------------------------------

@jax.jit
def cnn_forward(x_nchw, prep):
    pol = _policy()                                               # trace-time constant
    N, _, H, W = x_nchw.shape
    Ho, Wo = H // 2, W // 2
    x = jnp.transpose(x_nchw, (0, 2, 3, 1))                       # NCHW -> NHWC (N,30,14,1)

    # Conv1 + ReLU (+Dropout id) + MaxPool, fused into one Pallas kernel.
    h = conv1_relu_pool(x, prep["w1t"], prep["b1r"])              # (N,15,7,128) bf16

    # Conv2 + ReLU (+Dropout id) as im2col matmul.
    h = conv2x2_same_matmul(h, prep["w2m"], prep["s2"], prep["b2r"],
                            relu=True, out_dtype=jnp.bfloat16,
                            tn=pol["tn"])                         # (N*15*7, 256) bf16

    # Flatten. fc1's columns were pre-permuted to this NHWC order, so no transpose.
    h = h.reshape(N, Ho * Wo * 256)                               # (N, 26880)

    if pol["fuse_fc23"]:
        # fc1 (int8, +ReLU) + fc2 (+ReLU) + fc3 fused in one kernel (single-TC chips).
        out = fc1_fc23_fused(h, prep["w3q"], prep["s3"], prep["b3r"],
                             prep["w4m"], prep["b4r"], prep["w5p"], prep["b5r"])
    else:
        # v7x: fc1 keeps 2 output tiles so both TensorCores stream half the weight.
        h1 = matmul_bt(h, prep["w3q"], prep["s3"], prep["b3r"], relu=True,
                       out_dtype=jnp.bfloat16, tn=pol["tn"])      # (8, 256) bf16
        # Padded rows carry relu(b3) garbage; harmless, sliced off below.
        out = fc23(h1, prep["w4m"], prep["b4r"], prep["w5p"], prep["b5r"])

    return out[:N, :2]


if __name__ == "__main__":
    key = jax.random.PRNGKey(0)
    k_param, k_x = jax.random.split(key)
    params = init_params(k_param)
    prep = prepare_params(params)          # one-time layout/dtype/quant prep, outside jit

    # Input shape implied by Linear(256*15*7, ...): (N, 1, 30, 14); batch=2.
    x = jax.random.normal(k_x, (2, 1, 30, 14), jnp.float32)

    out = cnn_forward(x, prep)
    out = jax.block_until_ready(out)
    assert out.shape == (2, 2), out.shape
    assert bool(jnp.all(jnp.isfinite(out)))
    print("KERNEL_OK")
</pallas_src>

<mosaic_0001>
module attributes {stable_mosaic.version = 11 : i64} {
  func.func @_conv1_relu_pool_kernel(%arg0: i32, %arg1: memref<16x72x1xf32, #tpu.memory_space<vmem>>, %arg2: memref<4x128xf32, #tpu.memory_space<vmem>>, %arg3: memref<1x128xf32, #tpu.memory_space<vmem>>, %arg4: memref<72x128xbf16, #tpu.memory_space<vmem>>) attributes {dimension_semantics = [#tpu.dimension_semantics<parallel>], iteration_bounds = array<i64: 3>, scalar_prefetch = 0 : i64, scratch_operands = 0 : i64, tpu.core_type = #tpu.core_type<tc>, window_params = [{transform_indices = @transform_0, window_bounds = array<i64: 16, 72, 1>}, {pipeline_mode = #tpu.pipeline_mode<synchronous>, transform_indices = @transform_1, window_bounds = array<i64: 4, 128>}, {pipeline_mode = #tpu.pipeline_mode<synchronous>, transform_indices = @transform_2, window_bounds = array<i64: 1, 128>}, {transform_indices = @transform_3, window_bounds = array<i64: 72, 128>}]} {
    %c0 = arith.constant 0 : index
    %c0_0 = arith.constant 0 : index
    %0 = vector.load %arg3[%c0, %c0_0] : memref<1x128xf32, #tpu.memory_space<vmem>>, vector<1x128xf32>
    %c0_1 = arith.constant 0 : index
    %c0_2 = arith.constant 0 : index
    %1 = vector.load %arg2[%c0_1, %c0_2] : memref<4x128xf32, #tpu.memory_space<vmem>>, vector<1x128xf32>
    %c1 = arith.constant 1 : index
    %c0_3 = arith.constant 0 : index
    %2 = vector.load %arg2[%c1, %c0_3] : memref<4x128xf32, #tpu.memory_space<vmem>>, vector<1x128xf32>
    %c2 = arith.constant 2 : index
    %c0_4 = arith.constant 0 : index
    %3 = vector.load %arg2[%c2, %c0_4] : memref<4x128xf32, #tpu.memory_space<vmem>>, vector<1x128xf32>
    %c3 = arith.constant 3 : index
    %c0_5 = arith.constant 0 : index
    %4 = vector.load %arg2[%c3, %c0_5] : memref<4x128xf32, #tpu.memory_space<vmem>>, vector<1x128xf32>
    %c0_6 = arith.constant 0 : index
    %c0_7 = arith.constant 0 : index
    %c0_8 = arith.constant 0 : index
    %5 = vector.load %arg1[%c0_6, %c0_7, %c0_8] : memref<16x72x1xf32, #tpu.memory_space<vmem>>, vector<1x72x1xf32>
    %6 = vector.shape_cast %5 : vector<1x72x1xf32> to vector<72x1xf32>
    %7 = vector.broadcast %6 : vector<72x1xf32> to vector<72x128xf32>
    %8 = vector.broadcast %1 : vector<1x128xf32> to vector<72x128xf32>
    %9 = arith.mulf %7, %8 : vector<72x128xf32>
    %10 = vector.broadcast %0 : vector<1x128xf32> to vector<72x128xf32>
    %11 = arith.addf %10, %9 : vector<72x128xf32>
    %c1_9 = arith.constant 1 : index
    %c0_10 = arith.constant 0 : index
    %c0_11 = arith.constant 0 : index
    %12 = vector.load %arg1[%c1_9, %c0_10, %c0_11] : memref<16x72x1xf32, #tpu.memory_space<vmem>>, vector<1x72x1xf32>
    %13 = vector.shape_cast %12 : vector<1x72x1xf32> to vector<72x1xf32>
    %14 = vector.broadcast %13 : vector<72x1xf32> to vector<72x128xf32>
    %15 = vector.broadcast %2 : vector<1x128xf32> to vector<72x128xf32>
    %16 = arith.mulf %14, %15 : vector<72x128xf32>
    %17 = arith.addf %11, %16 : vector<72x128xf32>
    %c2_12 = arith.constant 2 : index
    %c0_13 = arith.constant 0 : index
    %c0_14 = arith.constant 0 : index
    %18 = vector.load %arg1[%c2_12, %c0_13, %c0_14] : memref<16x72x1xf32, #tpu.memory_space<vmem>>, vector<1x72x1xf32>
    %19 = vector.shape_cast %18 : vector<1x72x1xf32> to vector<72x1xf32>
    %20 = vector.broadcast %19 : vector<72x1xf32> to vector<72x128xf32>
    %21 = vector.broadcast %3 : vector<1x128xf32> to vector<72x128xf32>
    %22 = arith.mulf %20, %21 : vector<72x128xf32>
    %23 = arith.addf %17, %22 : vector<72x128xf32>
    %c3_15 = arith.constant 3 : index
    %c0_16 = arith.constant 0 : index
    %c0_17 = arith.constant 0 : index
    %24 = vector.load %arg1[%c3_15, %c0_16, %c0_17] : memref<16x72x1xf32, #tpu.memory_space<vmem>>, vector<1x72x1xf32>
    %25 = vector.shape_cast %24 : vector<1x72x1xf32> to vector<72x1xf32>
    %26 = vector.broadcast %25 : vector<72x1xf32> to vector<72x128xf32>
    %27 = vector.broadcast %4 : vector<1x128xf32> to vector<72x128xf32>
    %28 = arith.mulf %26, %27 : vector<72x128xf32>
    %29 = arith.addf %23, %28 : vector<72x128xf32>
    %cst = arith.constant 0.000000e+00 : f32
    %30 = vector.broadcast %cst : f32 to vector<72x128xf32>
    %31 = arith.maximumf %29, %30 : vector<72x128xf32>
    %c4 = arith.constant 4 : index
    %c0_18 = arith.constant 0 : index
    %c0_19 = arith.constant 0 : index
    %32 = vector.load %arg1[%c4, %c0_18, %c0_19] : memref<16x72x1xf32, #tpu.memory_space<vmem>>, vector<1x72x1xf32>
    %33 = vector.shape_cast %32 : vector<1x72x1xf32> to vector<72x1xf32>
    %34 = vector.broadcast %33 : vector<72x1xf32> to vector<72x128xf32>
    %35 = vector.broadcast %1 : vector<1x128xf32> to vector<72x128xf32>
    %36 = arith.mulf %34, %35 : vector<72x128xf32>
    %37 = vector.broadcast %0 : vector<1x128xf32> to vector<72x128xf32>
    %38 = arith.addf %37, %36 : vector<72x128xf32>
    %c5 = arith.constant 5 : index
    %c0_20 = arith.constant 0 : index
    %c0_21 = arith.constant 0 : index
    %39 = vector.load %arg1[%c5, %c0_20, %c0_21] : memref<16x72x1xf32, #tpu.memory_space<vmem>>, vector<1x72x1xf32>
    %40 = vector.shape_cast %39 : vector<1x72x1xf32> to vector<72x1xf32>
    %41 = vector.broadcast %40 : vector<72x1xf32> to vector<72x128xf32>
    %42 = vector.broadcast %2 : vector<1x128xf32> to vector<72x128xf32>
    %43 = arith.mulf %41, %42 : vector<72x128xf32>
    %44 = arith.addf %38, %43 : vector<72x128xf32>
    %c6 = arith.constant 6 : index
    %c0_22 = arith.constant 0 : index
    %c0_23 = arith.constant 0 : index
    %45 = vector.load %arg1[%c6, %c0_22, %c0_23] : memref<16x72x1xf32, #tpu.memory_space<vmem>>, vector<1x72x1xf32>
    %46 = vector.shape_cast %45 : vector<1x72x1xf32> to vector<72x1xf32>
    %47 = vector.broadcast %46 : vector<72x1xf32> to vector<72x128xf32>
    %48 = vector.broadcast %3 : vector<1x128xf32> to vector<72x128xf32>
    %49 = arith.mulf %47, %48 : vector<72x128xf32>
    %50 = arith.addf %44, %49 : vector<72x128xf32>
    %c7 = arith.constant 7 : index
    %c0_24 = arith.constant 0 : index
    %c0_25 = arith.constant 0 : index
    %51 = vector.load %arg1[%c7, %c0_24, %c0_25] : memref<16x72x1xf32, #tpu.memory_space<vmem>>, vector<1x72x1xf32>
    %52 = vector.shape_cast %51 : vector<1x72x1xf32> to vector<72x1xf32>
    %53 = vector.broadcast %52 : vector<72x1xf32> to vector<72x128xf32>
    %54 = vector.broadcast %4 : vector<1x128xf32> to vector<72x128xf32>
    %55 = arith.mulf %53, %54 : vector<72x128xf32>
    %56 = arith.addf %50, %55 : vector<72x128xf32>
    %cst_26 = arith.constant 0.000000e+00 : f32
    %57 = vector.broadcast %cst_26 : f32 to vector<72x128xf32>
    %58 = arith.maximumf %56, %57 : vector<72x128xf32>
    %59 = arith.maximumf %31, %58 : vector<72x128xf32>
    %c8 = arith.constant 8 : index
    %c0_27 = arith.constant 0 : index
    %c0_28 = arith.constant 0 : index
    %60 = vector.load %arg1[%c8, %c0_27, %c0_28] : memref<16x72x1xf32, #tpu.memory_space<vmem>>, vector<1x72x1xf32>
    %61 = vector.shape_cast %60 : vector<1x72x1xf32> to vector<72x1xf32>
    %62 = vector.broadcast %61 : vector<72x1xf32> to vector<72x128xf32>
    %63 = vector.broadcast %1 : vector<1x128xf32> to vector<72x128xf32>
    %64 = arith.mulf %62, %63 : vector<72x128xf32>
    %65 = vector.broadcast %0 : vector<1x128xf32> to vector<72x128xf32>
    %66 = arith.addf %65, %64 : vector<72x128xf32>
    %c9 = arith.constant 9 : index
    %c0_29 = arith.constant 0 : index
    %c0_30 = arith.constant 0 : index
    %67 = vector.load %arg1[%c9, %c0_29, %c0_30] : memref<16x72x1xf32, #tpu.memory_space<vmem>>, vector<1x72x1xf32>
    %68 = vector.shape_cast %67 : vector<1x72x1xf32> to vector<72x1xf32>
    %69 = vector.broadcast %68 : vector<72x1xf32> to vector<72x128xf32>
    %70 = vector.broadcast %2 : vector<1x128xf32> to vector<72x128xf32>
    %71 = arith.mulf %69, %70 : vector<72x128xf32>
    %72 = arith.addf %66, %71 : vector<72x128xf32>
    %c10 = arith.constant 10 : index
    %c0_31 = arith.constant 0 : index
    %c0_32 = arith.constant 0 : index
    %73 = vector.load %arg1[%c10, %c0_31, %c0_32] : memref<16x72x1xf32, #tpu.memory_space<vmem>>, vector<1x72x1xf32>
    %74 = vector.shape_cast %73 : vector<1x72x1xf32> to vector<72x1xf32>
    %75 = vector.broadcast %74 : vector<72x1xf32> to vector<72x128xf32>
    %76 = vector.broadcast %3 : vector<1x128xf32> to vector<72x128xf32>
    %77 = arith.mulf %75, %76 : vector<72x128xf32>
    %78 = arith.addf %72, %77 : vector<72x128xf32>
    %c11 = arith.constant 11 : index
    %c0_33 = arith.constant 0 : index
    %c0_34 = arith.constant 0 : index
    %79 = vector.load %arg1[%c11, %c0_33, %c0_34] : memref<16x72x1xf32, #tpu.memory_space<vmem>>, vector<1x72x1xf32>
    %80 = vector.shape_cast %79 : vector<1x72x1xf32> to vector<72x1xf32>
    %81 = vector.broadcast %80 : vector<72x1xf32> to vector<72x128xf32>
    %82 = vector.broadcast %4 : vector<1x128xf32> to vector<72x128xf32>
    %83 = arith.mulf %81, %82 : vector<72x128xf32>
    %84 = arith.addf %78, %83 : vector<72x128xf32>
    %cst_35 = arith.constant 0.000000e+00 : f32
    %85 = vector.broadcast %cst_35 : f32 to vector<72x128xf32>
    %86 = arith.maximumf %84, %85 : vector<72x128xf32>
    %87 = arith.maximumf %59, %86 : vector<72x128xf32>
    %c12 = arith.constant 12 : index
    %c0_36 = arith.constant 0 : index
    %c0_37 = arith.constant 0 : index
    %88 = vector.load %arg1[%c12, %c0_36, %c0_37] : memref<16x72x1xf32, #tpu.memory_space<vmem>>, vector<1x72x1xf32>
    %89 = vector.shape_cast %88 : vector<1x72x1xf32> to vector<72x1xf32>
    %90 = vector.broadcast %89 : vector<72x1xf32> to vector<72x128xf32>
    %91 = vector.broadcast %1 : vector<1x128xf32> to vector<72x128xf32>
    %92 = arith.mulf %90, %91 : vector<72x128xf32>
    %93 = vector.broadcast %0 : vector<1x128xf32> to vector<72x128xf32>
    %94 = arith.addf %93, %92 : vector<72x128xf32>
    %c13 = arith.constant 13 : index
    %c0_38 = arith.constant 0 : index
    %c0_39 = arith.constant 0 : index
    %95 = vector.load %arg1[%c13, %c0_38, %c0_39] : memref<16x72x1xf32, #tpu.memory_space<vmem>>, vector<1x72x1xf32>
    %96 = vector.shape_cast %95 : vector<1x72x1xf32> to vector<72x1xf32>
    %97 = vector.broadcast %96 : vector<72x1xf32> to vector<72x128xf32>
    %98 = vector.broadcast %2 : vector<1x128xf32> to vector<72x128xf32>
    %99 = arith.mulf %97, %98 : vector<72x128xf32>
    %100 = arith.addf %94, %99 : vector<72x128xf32>
    %c14 = arith.constant 14 : index
    %c0_40 = arith.constant 0 : index
    %c0_41 = arith.constant 0 : index
    %101 = vector.load %arg1[%c14, %c0_40, %c0_41] : memref<16x72x1xf32, #tpu.memory_space<vmem>>, vector<1x72x1xf32>
    %102 = vector.shape_cast %101 : vector<1x72x1xf32> to vector<72x1xf32>
    %103 = vector.broadcast %102 : vector<72x1xf32> to vector<72x128xf32>
    %104 = vector.broadcast %3 : vector<1x128xf32> to vector<72x128xf32>
    %105 = arith.mulf %103, %104 : vector<72x128xf32>
    %106 = arith.addf %100, %105 : vector<72x128xf32>
    %c15 = arith.constant 15 : index
    %c0_42 = arith.constant 0 : index
    %c0_43 = arith.constant 0 : index
    %107 = vector.load %arg1[%c15, %c0_42, %c0_43] : memref<16x72x1xf32, #tpu.memory_space<vmem>>, vector<1x72x1xf32>
    %108 = vector.shape_cast %107 : vector<1x72x1xf32> to vector<72x1xf32>
    %109 = vector.broadcast %108 : vector<72x1xf32> to vector<72x128xf32>
    %110 = vector.broadcast %4 : vector<1x128xf32> to vector<72x128xf32>
    %111 = arith.mulf %109, %110 : vector<72x128xf32>
    %112 = arith.addf %106, %111 : vector<72x128xf32>
    %cst_44 = arith.constant 0.000000e+00 : f32
    %113 = vector.broadcast %cst_44 : f32 to vector<72x128xf32>
    %114 = arith.maximumf %112, %113 : vector<72x128xf32>
    %115 = arith.maximumf %87, %114 : vector<72x128xf32>
    %116 = arith.truncf %115 : vector<72x128xf32> to vector<72x128xbf16>
    %c0_45 = arith.constant 0 : index
    %c0_46 = arith.constant 0 : index
    %117 = vector.load %arg4[%c0_45, %c0_46] : memref<72x128xbf16, #tpu.memory_space<vmem>>, vector<72x128xbf16>
    tpu.vector_store %arg4[%c0_45, %c0_46], %116 {strides = array<i32>} : memref<72x128xbf16, #tpu.memory_space<vmem>>, vector<72x128xbf16>,
    return
  }
  func.func @transform_0(%arg0: i32) -> (i32, i32, i32) {
    %c0_i32 = arith.constant 0 : i32
    %c0_i32_0 = arith.constant 0 : i32
    %c0_i32_1 = arith.constant 0 : i32
    return %c0_i32, %arg0, %c0_i32_0 : i32, i32, i32
  }
  func.func @transform_1(%arg0: i32) -> (i32, i32) {
    %c0_i32 = arith.constant 0 : i32
    %c0_i32_0 = arith.constant 0 : i32
    %c0_i32_1 = arith.constant 0 : i32
    return %c0_i32, %c0_i32_0 : i32, i32
  }
  func.func @transform_2(%arg0: i32) -> (i32, i32) {
    %c0_i32 = arith.constant 0 : i32
    %c0_i32_0 = arith.constant 0 : i32
    %c0_i32_1 = arith.constant 0 : i32
    return %c0_i32, %c0_i32_0 : i32, i32
  }
  func.func @transform_3(%arg0: i32) -> (i32, i32) {
    %c0_i32 = arith.constant 0 : i32
    %c0_i32_0 = arith.constant 0 : i32
    return %arg0, %c0_i32 : i32, i32
  }
}

module attributes {stable_mosaic.version = 11 : i64} {
  func.func @_matmul_bt_kernel(%arg0: i32, %arg1: i32, %arg2: memref<216x512xbf16, #tpu.memory_space<vmem>>, %arg3: memref<256x512xbf16, #tpu.memory_space<vmem>>, %arg4: memref<1x256xf32, #tpu.memory_space<vmem>>, %arg5: memref<1x256xf32, #tpu.memory_space<vmem>>, %arg6: memref<216x256xbf16, #tpu.memory_space<vmem>>, %arg7: memref<216x256xf32, #tpu.memory_space<vmem>>) attributes {dimension_semantics = [#tpu.dimension_semantics<parallel>, #tpu.dimension_semantics<arbitrary>], iteration_bounds = array<i64: 1, 1>, scalar_prefetch = 0 : i64, scratch_operands = 1 : i64, tpu.core_type = #tpu.core_type<tc>, window_params = [{transform_indices = @transform_0, window_bounds = array<i64: 216, 512>}, {transform_indices = @transform_1, window_bounds = array<i64: 256, 512>}, {transform_indices = @transform_2, window_bounds = array<i64: 1, 256>}, {transform_indices = @transform_3, window_bounds = array<i64: 1, 256>}, {transform_indices = @transform_4, window_bounds = array<i64: 216, 256>}]} {
    %c0_i32 = arith.constant 0 : i32
    %0 = arith.cmpi eq, %arg1, %c0_i32 : i32
    %1 = arith.extui %0 : i1 to i32
    %c0_i32_0 = arith.constant 0 : i32
    %2 = arith.cmpi ne, %1, %c0_i32_0 : i32
    scf.if %2 {
      %cst_10 = arith.constant 0.000000e+00 : f32
      %12 = vector.broadcast %cst_10 : f32 to vector<216x256xf32>
      %c0_11 = arith.constant 0 : index
      %c0_12 = arith.constant 0 : index
      %13 = vector.load %arg7[%c0_11, %c0_12] : memref<216x256xf32, #tpu.memory_space<vmem>>, vector<216x256xf32>
      tpu.vector_store %arg7[%c0_11, %c0_12], %12 {strides = array<i32>} : memref<216x256xf32, #tpu.memory_space<vmem>>, vector<216x256xf32>,
    } else {
    }
    %c0 = arith.constant 0 : index
    %c0_1 = arith.constant 0 : index
    %3 = vector.load %arg7[%c0, %c0_1] : memref<216x256xf32, #tpu.memory_space<vmem>>, vector<216x256xf32>
    %c0_2 = arith.constant 0 : index
    %c0_3 = arith.constant 0 : index
    %4 = vector.load %arg2[%c0_2, %c0_3] : memref<216x512xbf16, #tpu.memory_space<vmem>>, vector<216x512xbf16>
    %c0_4 = arith.constant 0 : index
    %c0_5 = arith.constant 0 : index
    %5 = vector.load %arg3[%c0_4, %c0_5] : memref<256x512xbf16, #tpu.memory_space<vmem>>, vector<256x512xbf16>
    %cst = arith.constant dense<0.000000e+00> : vector<216x256xf32>
    %6 = tpu.matmul %4, %5, %cst {dimension_numbers = #tpu.dot_dimension_numbers<[1], [1], [0], [0], [0, 0, 1, 0], [], []>} : vector<216x512xbf16>, vector<256x512xbf16>, vector<216x256xf32> -> vector<216x256xf32>
    %7 = arith.addf %3, %6 : vector<216x256xf32>
    %c0_6 = arith.constant 0 : index
    %c0_7 = arith.constant 0 : index
    %8 = vector.load %arg7[%c0_6, %c0_7] : memref<216x256xf32, #tpu.memory_space<vmem>>, vector<216x256xf32>
    tpu.vector_store %arg7[%c0_6, %c0_7], %7 {strides = array<i32>} : memref<216x256xf32, #tpu.memory_space<vmem>>, vector<216x256xf32>,
    %c0_i32_8 = arith.constant 0 : i32
    %9 = arith.cmpi eq, %arg1, %c0_i32_8 : i32
    %10 = arith.extui %9 : i1 to i32
    %c0_i32_9 = arith.constant 0 : i32
    %11 = arith.cmpi ne, %10, %c0_i32_9 : i32
    scf.if %11 {
      %c0_10 = arith.constant 0 : index
      %c0_11 = arith.constant 0 : index
      %12 = vector.load %arg7[%c0_10, %c0_11] : memref<216x256xf32, #tpu.memory_space<vmem>>, vector<216x256xf32>
      %c0_12 = arith.constant 0 : index
      %c0_13 = arith.constant 0 : index
      %13 = vector.load %arg4[%c0_12, %c0_13] : memref<1x256xf32, #tpu.memory_space<vmem>>, vector<1x256xf32>
      %14 = vector.broadcast %13 : vector<1x256xf32> to vector<216x256xf32>
      %15 = arith.mulf %12, %14 : vector<216x256xf32>
      %c0_14 = arith.constant 0 : index
      %c0_15 = arith.constant 0 : index
      %16 = vector.load %arg5[%c0_14, %c0_15] : memref<1x256xf32, #tpu.memory_space<vmem>>, vector<1x256xf32>
      %17 = vector.broadcast %16 : vector<1x256xf32> to vector<216x256xf32>
      %18 = arith.addf %15, %17 : vector<216x256xf32>
      %cst_16 = arith.constant 0.000000e+00 : f32
      %19 = vector.broadcast %cst_16 : f32 to vector<216x256xf32>
      %20 = arith.maximumf %18, %19 : vector<216x256xf32>
      %21 = arith.truncf %20 : vector<216x256xf32> to vector<216x256xbf16>
      %c0_17 = arith.constant 0 : index
      %c0_18 = arith.constant 0 : index
      %22 = vector.load %arg6[%c0_17, %c0_18] : memref<216x256xbf16, #tpu.memory_space<vmem>>, vector<216x256xbf16>
      tpu.vector_store %arg6[%c0_17, %c0_18], %21 {strides = array<i32>} : memref<216x256xbf16, #tpu.memory_space<vmem>>, vector<216x256xbf16>,
    } else {
    }
    return
  }
  func.func @transform_0(%arg0: i32, %arg1: i32) -> (i32, i32) {
    %c0_i32 = arith.constant 0 : i32
    %c0_i32_0 = arith.constant 0 : i32
    return %c0_i32, %arg1 : i32, i32
  }
  func.func @transform_1(%arg0: i32, %arg1: i32) -> (i32, i32) {
    %c0_i32 = arith.constant 0 : i32
    return %arg0, %arg1 : i32, i32
  }
  func.func @transform_2(%arg0: i32, %arg1: i32) -> (i32, i32) {
    %c0_i32 = arith.constant 0 : i32
    %c0_i32_0 = arith.constant 0 : i32
    return %c0_i32, %arg0 : i32, i32
  }
  func.func @transform_3(%arg0: i32, %arg1: i32) -> (i32, i32) {
    %c0_i32 = arith.constant 0 : i32
    %c0_i32_0 = arith.constant 0 : i32
    return %c0_i32, %arg0 : i32, i32
  }
  func.func @transform_4(%arg0: i32, %arg1: i32) -> (i32, i32) {
    %c0_i32 = arith.constant 0 : i32
    %c0_i32_0 = arith.constant 0 : i32
    return %c0_i32, %arg0 : i32, i32
  }
}

module attributes {stable_mosaic.version = 11 : i64} {
  func.func @_fc1_fc23_kernel(%arg0: i32, %arg1: memref<8x8960xbf16, #tpu.memory_space<vmem>>, %arg2: memref<256x8960xi8, #tpu.memory_space<vmem>>, %arg3: memref<1x256xf32, #tpu.memory_space<vmem>>, %arg4: memref<1x256xf32, #tpu.memory_space<vmem>>, %arg5: memref<128x256xbf16, #tpu.memory_space<vmem>>, %arg6: memref<1x128xf32, #tpu.memory_space<vmem>>, %arg7: memref<128x128xbf16, #tpu.memory_space<vmem>>, %arg8: memref<1x128xf32, #tpu.memory_space<vmem>>, %arg9: memref<8x128xf32, #tpu.memory_space<vmem>>, %arg10: memref<8x256xf32, #tpu.memory_space<vmem>>) attributes {dimension_semantics = [#tpu.dimension_semantics<arbitrary>], iteration_bounds = array<i64: 3>, scalar_prefetch = 0 : i64, scratch_operands = 1 : i64, tpu.core_type = #tpu.core_type<tc>, window_params = [{transform_indices = @transform_0, window_bounds = array<i64: 8, 8960>}, {transform_indices = @transform_1, window_bounds = array<i64: 256, 8960>}, {pipeline_mode = #tpu.pipeline_mode<synchronous>, transform_indices = @transform_2, window_bounds = array<i64: 1, 256>}, {pipeline_mode = #tpu.pipeline_mode<synchronous>, transform_indices = @transform_3, window_bounds = array<i64: 1, 256>}, {pipeline_mode = #tpu.pipeline_mode<synchronous>, transform_indices = @transform_4, window_bounds = array<i64: 128, 256>}, {pipeline_mode = #tpu.pipeline_mode<synchronous>, transform_indices = @transform_5, window_bounds = array<i64: 1, 128>}, {pipeline_mode = #tpu.pipeline_mode<synchronous>, transform_indices = @transform_6, window_bounds = array<i64: 128, 128>}, {pipeline_mode = #tpu.pipeline_mode<synchronous>, transform_indices = @transform_7, window_bounds = array<i64: 1, 128>}, {pipeline_mode = #tpu.pipeline_mode<synchronous>, transform_indices = @transform_8, window_bounds = array<i64: 8, 128>}]} {
    %c0_i32 = arith.constant 0 : i32
    %0 = arith.cmpi eq, %arg0, %c0_i32 : i32
    %1 = arith.extui %0 : i1 to i32
    %c0_i32_0 = arith.constant 0 : i32
    %2 = arith.cmpi ne, %1, %c0_i32_0 : i32
    scf.if %2 {
      %cst_9 = arith.constant 0.000000e+00 : f32
      %13 = vector.broadcast %cst_9 : f32 to vector<8x256xf32>
      %c0_10 = arith.constant 0 : index
      %c0_11 = arith.constant 0 : index
      %14 = vector.load %arg10[%c0_10, %c0_11] : memref<8x256xf32, #tpu.memory_space<vmem>>, vector<8x256xf32>
      tpu.vector_store %arg10[%c0_10, %c0_11], %13 {strides = array<i32>} : memref<8x256xf32, #tpu.memory_space<vmem>>, vector<8x256xf32>,
    } else {
    }
    %c0 = arith.constant 0 : index
    %c0_1 = arith.constant 0 : index
    %3 = vector.load %arg10[%c0, %c0_1] : memref<8x256xf32, #tpu.memory_space<vmem>>, vector<8x256xf32>
    %c0_2 = arith.constant 0 : index
    %c0_3 = arith.constant 0 : index
    %4 = vector.load %arg1[%c0_2, %c0_3] : memref<8x8960xbf16, #tpu.memory_space<vmem>>, vector<8x8960xbf16>
    %c0_4 = arith.constant 0 : index
    %c0_5 = arith.constant 0 : index
    %5 = vector.load %arg2[%c0_4, %c0_5] : memref<256x8960xi8, #tpu.memory_space<vmem>>, vector<256x8960xi8>
    %6 = arith.sitofp %5 : vector<256x8960xi8> to vector<256x8960xbf16>
    %cst = arith.constant dense<0.000000e+00> : vector<8x256xf32>
    %7 = tpu.matmul %4, %6, %cst {dimension_numbers = #tpu.dot_dimension_numbers<[1], [1], [0], [0], [0, 0, 1, 0], [], []>} : vector<8x8960xbf16>, vector<256x8960xbf16>, vector<8x256xf32> -> vector<8x256xf32>
    %8 = arith.addf %3, %7 : vector<8x256xf32>
    %c0_6 = arith.constant 0 : index
    %c0_7 = arith.constant 0 : index
    %9 = vector.load %arg10[%c0_6, %c0_7] : memref<8x256xf32, #tpu.memory_space<vmem>>, vector<8x256xf32>
    tpu.vector_store %arg10[%c0_6, %c0_7], %8 {strides = array<i32>} : memref<8x256xf32, #tpu.memory_space<vmem>>, vector<8x256xf32>,
    %c2_i32 = arith.constant 2 : i32
    %10 = arith.cmpi eq, %arg0, %c2_i32 : i32
    %11 = arith.extui %10 : i1 to i32
    %c0_i32_8 = arith.constant 0 : i32
    %12 = arith.cmpi ne, %11, %c0_i32_8 : i32
    scf.if %12 {
      %c0_9 = arith.constant 0 : index
      %c0_10 = arith.constant 0 : index
      %13 = vector.load %arg10[%c0_9, %c0_10] : memref<8x256xf32, #tpu.memory_space<vmem>>, vector<8x256xf32>
      %c0_11 = arith.constant 0 : index
      %c0_12 = arith.constant 0 : index
      %14 = vector.load %arg3[%c0_11, %c0_12] : memref<1x256xf32, #tpu.memory_space<vmem>>, vector<1x256xf32>
      %15 = vector.broadcast %14 : vector<1x256xf32> to vector<8x256xf32>
      %16 = arith.mulf %13, %15 : vector<8x256xf32>
      %c0_13 = arith.constant 0 : index
      %c0_14 = arith.constant 0 : index
      %17 = vector.load %arg4[%c0_13, %c0_14] : memref<1x256xf32, #tpu.memory_space<vmem>>, vector<1x256xf32>
      %18 = vector.broadcast %17 : vector<1x256xf32> to vector<8x256xf32>
      %19 = arith.addf %16, %18 : vector<8x256xf32>
      %cst_15 = arith.constant 0.000000e+00 : f32
      %20 = vector.broadcast %cst_15 : f32 to vector<8x256xf32>
      %21 = arith.maximumf %19, %20 : vector<8x256xf32>
      %22 = arith.truncf %21 : vector<8x256xf32> to vector<8x256xbf16>
      %c0_16 = arith.constant 0 : index
      %c0_17 = arith.constant 0 : index
      %23 = vector.load %arg5[%c0_16, %c0_17] : memref<128x256xbf16, #tpu.memory_space<vmem>>, vector<128x256xbf16>
      %cst_18 = arith.constant dense<0.000000e+00> : vector<8x128xf32>
      %24 = tpu.matmul %22, %23, %cst_18 {dimension_numbers = #tpu.dot_dimension_numbers<[1], [1], [0], [0], [0, 0, 1, 0], [], []>} : vector<8x256xbf16>, vector<128x256xbf16>, vector<8x128xf32> -> vector<8x128xf32>
      %c0_19 = arith.constant 0 : index
      %c0_20 = arith.constant 0 : index
      %25 = vector.load %arg6[%c0_19, %c0_20] : memref<1x128xf32, #tpu.memory_space<vmem>>, vector<1x128xf32>
      %26 = vector.broadcast %25 : vector<1x128xf32> to vector<8x128xf32>
      %27 = arith.addf %24, %26 : vector<8x128xf32>
      %cst_21 = arith.constant 0.000000e+00 : f32
      %28 = vector.broadcast %cst_21 : f32 to vector<8x128xf32>
      %29 = arith.maximumf %27, %28 : vector<8x128xf32>
      %30 = arith.truncf %29 : vector<8x128xf32> to vector<8x128xbf16>
      %c0_22 = arith.constant 0 : index
      %c0_23 = arith.constant 0 : index
      %31 = vector.load %arg7[%c0_22, %c0_23] : memref<128x128xbf16, #tpu.memory_space<vmem>>, vector<128x128xbf16>
      %cst_24 = arith.constant dense<0.000000e+00> : vector<8x128xf32>
      %32 = tpu.matmul %30, %31, %cst_24 {dimension_numbers = #tpu.dot_dimension_numbers<[1], [1], [0], [0], [0, 0, 1, 0], [], []>} : vector<8x128xbf16>, vector<128x128xbf16>, vector<8x128xf32> -> vector<8x128xf32>
      %c0_25 = arith.constant 0 : index
      %c0_26 = arith.constant 0 : index
      %33 = vector.load %arg8[%c0_25, %c0_26] : memref<1x128xf32, #tpu.memory_space<vmem>>, vector<1x128xf32>
      %34 = vector.broadcast %33 : vector<1x128xf32> to vector<8x128xf32>
      %35 = arith.addf %32, %34 : vector<8x128xf32>
      %c0_27 = arith.constant 0 : index
      %c0_28 = arith.constant 0 : index
      %36 = vector.load %arg9[%c0_27, %c0_28] : memref<8x128xf32, #tpu.memory_space<vmem>>, vector<8x128xf32>
      tpu.vector_store %arg9[%c0_27, %c0_28], %35 {strides = array<i32>} : memref<8x128xf32, #tpu.memory_space<vmem>>, vector<8x128xf32>,
    } else {
    }
    return
  }
  func.func @transform_0(%arg0: i32) -> (i32, i32) {
    %c0_i32 = arith.constant 0 : i32
    %c0_i32_0 = arith.constant 0 : i32
    return %c0_i32, %arg0 : i32, i32
  }
  func.func @transform_1(%arg0: i32) -> (i32, i32) {
    %c0_i32 = arith.constant 0 : i32
    %c0_i32_0 = arith.constant 0 : i32
    return %c0_i32, %arg0 : i32, i32
  }
  func.func @transform_2(%arg0: i32) -> (i32, i32) {
    %c0_i32 = arith.constant 0 : i32
    %c0_i32_0 = arith.constant 0 : i32
    %c0_i32_1 = arith.constant 0 : i32
    return %c0_i32, %c0_i32_0 : i32, i32
  }
  func.func @transform_3(%arg0: i32) -> (i32, i32) {
    %c0_i32 = arith.constant 0 : i32
    %c0_i32_0 = arith.constant 0 : i32
    %c0_i32_1 = arith.constant 0 : i32
    return %c0_i32, %c0_i32_0 : i32, i32
  }
  func.func @transform_4(%arg0: i32) -> (i32, i32) {
    %c0_i32 = arith.constant 0 : i32
    %c0_i32_0 = arith.constant 0 : i32
    %c0_i32_1 = arith.constant 0 : i32
    return %c0_i32, %c0_i32_0 : i32, i32
  }
  func.func @transform_5(%arg0: i32) -> (i32, i32) {
    %c0_i32 = arith.constant 0 : i32
    %c0_i32_0 = arith.constant 0 : i32
    %c0_i32_1 = arith.constant 0 : i32
    return %c0_i32, %c0_i32_0 : i32, i32
  }
  func.func @transform_6(%arg0: i32) -> (i32, i32) {
    %c0_i32 = arith.constant 0 : i32
    %c0_i32_0 = arith.constant 0 : i32
    %c0_i32_1 = arith.constant 0 : i32
    return %c0_i32, %c0_i32_0 : i32, i32
  }
  func.func @transform_7(%arg0: i32) -> (i32, i32) {
    %c0_i32 = arith.constant 0 : i32
    %c0_i32_0 = arith.constant 0 : i32
    %c0_i32_1 = arith.constant 0 : i32
    return %c0_i32, %c0_i32_0 : i32, i32
  }
  func.func @transform_8(%arg0: i32) -> (i32, i32) {
    %c0_i32 = arith.constant 0 : i32
    %c0_i32_0 = arith.constant 0 : i32
    %c0_i32_1 = arith.constant 0 : i32
    return %c0_i32, %c0_i32_0 : i32, i32
  }
}

</mosaic_0001>

<bundles_post_ra>
// kernel: cnn_forward.3
= control target key start
LH: loop header
LB: loop body
LE: loop exit
PB: predicated region body
PF: predicated region fallthrough
CT: control target
= control target key end

     0   :  { %s2410_s12 = smov 0   ;;  %s2412_s13 = smov 0   ;;  %s3370_s0 = inlined_call_operand.vmem [shape: f32[16,216,1], index: 0, kind: input, shape index: {}]   ;;  %s3371_s1 = inlined_call_operand.vmem [shape: f32[4,128], index: 1, kind: input, shape index: {}]   ;;  %s3372_s2 = inlined_call_operand.vmem [shape: f32[1,128], index: 2, kind: input, shape index: {}]   ;;  %s3373_s3 = inlined_call_operand.vmem [shape: bf16[216,128], index: 3, kind: output, shape index: {}]  }
   0x1   :  { %s2414_s14 = smov 0  }
   0x2 LB: > { %s2145_s15 = sadd.s32 4294967295, %s2387_s14   ;;  %s2427_s16 = sadd.s32 1, %s2387_s14   ;;  %s2387_s14 = sphi %s2414_s14, %s3394_s14   ;;  %s2383_s13 = sphi %s2412_s13, %s3393_s13   ;;  %s2379_s12 = sphi %s2410_s12, %s3392_s12  }
   0x3   : > { %s17_s17 = ssub.s32 %s2387_s14, %s2427_s16  ;;  %s20_s18 = sadd.s32 1, %s2383_s13 }
   0x4   : > { %p18_p0 = scmp.eq.s32.totalorder %s17_s17, 0  ;;  %p27_p1 = scmp.ne.s32.totalorder %s2383_s13, %s2379_s12 }
   0x5   : > { %p28_p2 = scmp.eq.s32.totalorder %s2387_s14, 0  ;;  %p2148_p4 = scmp.ge.s32.totalorder %s2387_s14, 3 }
   0x6   : > { %s2436_s19 = scalar_select %p18_p0, %s2383_s13, %s20_s18  }
   0x7   : > { %p29_p3 = por %p28_p2, %p27_p1  ;;  %127 = sbr.rel (%p2148_p4) target bundleno = 91 (0x5b), region = 24 }
   0xe   : > { %130 = sbr.rel (!%p29_p3) target bundleno = 91 (0x5b), region = 28  ;;  %s132_s20 = sand.u32 (%p29_p3), 1, %s2383_s13  }
   0xf   : > { %s2303_s21 = smul.u32 (%p29_p3), 72, %s2387_s14 }
  0x10   : > { %s2336_s22 = smul.u32 (%p29_p3), 1152, %s132_s20 }
  0x11   : > { %s2444_s25 = scalar_lea.vmem (%p29_p3), %s3370_s0, %s2303_s21 }
  0x12   : > { %v451_v0 = vld [vmem:[%s2444_s25] sm:$0xff] (%p29_p3)  ;;  %v453_v1 = vld [vmem:[%s2444_s25 + $0x8] sm:$0xff] (%p29_p3)  ;;  %v455_v2 = vld [vmem:[%s2444_s25 + $0x10] sm:$0xff] (%p29_p3)  ;;  %s2449_s26 = scalar_lea.vmem (%p29_p3), [#allocation2], %s2336_s22 }
  0x13   : > { %452 = vst [vmem:[%s2449_s26] sm:$0xff] (%p29_p3), %v451_v0  ;;  %454 = vst [vmem:[%s2449_s26 + $0x8] sm:$0xff] (%p29_p3), %v453_v1  ;;  %v457_v3 = vld [vmem:[%s2444_s25 + $0x18] sm:$0xff] (%p29_p3)  ;;  %v459_v4 = vld [vmem:[%s2444_s25 + $0x20] sm:$0xff] (%p29_p3) }
  0x14   : > { %456 = vst [vmem:[%s2449_s26 + $0x10] sm:$0xff] (%p29_p3), %v455_v2  ;;  %v461_v5 = vld [vmem:[%s2444_s25 + $0x28] sm:$0xff] (%p29_p3)  ;;  %458 = vst [vmem:[%s2449_s26 + $0x18] sm:$0xff] (%p29_p3), %v457_v3  ;;  %v463_v6 = vld [vmem:[%s2444_s25 + $0x30] sm:$0xff] (%p29_p3) }
  0x15   : > { %460 = vst [vmem:[%s2449_s26 + $0x20] sm:$0xff] %v459_v4  ;;  %462 = vst [vmem:[%s2449_s26 + $0x28] sm:$0xff] %v461_v5  ;;  %v465_v7 = vld [vmem:[%s2444_s25 + $0x38] sm:$0xff]  ;;  %v467_v8 = vld [vmem:[%s2444_s25 + $0x40] sm:$0xff] }
  0x16   : > { %464 = vst [vmem:[%s2449_s26 + $0x30] sm:$0xff] %v463_v6  ;;  %466 = vst [vmem:[%s2449_s26 + $0x38] sm:$0xff] %v465_v7  ;;  %v469_v9 = vld [vmem:[%s2444_s25 + $0xd8] sm:$0xff]  ;;  %v471_v10 = vld [vmem:[%s2444_s25 + $0xe0] sm:$0xff] }
  0x17   : > { %468 = vst [vmem:[%s2449_s26 + $0x40] sm:$0xff] %v467_v8  ;;  %v473_v11 = vld [vmem:[%s2444_s25 + $0xe8] sm:$0xff]  ;;  %470 = vst [vmem:[%s2449_s26 + $0x48] sm:$0xff] %v469_v9  ;;  %v475_v12 = vld [vmem:[%s2444_s25 + $0xf0] sm:$0xff] }
  0x18   : > { %472 = vst [vmem:[%s2449_s26 + $0x50] sm:$0xff] %v471_v10  ;;  %474 = vst [vmem:[%s2449_s26 + $0x58] sm:$0xff] %v473_v11  ;;  %v477_v13 = vld [vmem:[%s2444_s25 + $0xf8] sm:$0xff]  ;;  %v479_v14 = vld [vmem:[%s2444_s25 + $0x100] sm:$0xff] }
  0x19   : > { %476 = vst [vmem:[%s2449_s26 + $0x60] sm:$0xff] %v475_v12  ;;  %478 = vst [vmem:[%s2449_s26 + $0x68] sm:$0xff] %v477_v13  ;;  %v481_v15 = vld [vmem:[%s2444_s25 + $0x108] sm:$0xff]  ;;  %v483_v16 = vld [vmem:[%s2444_s25 + $0x110] sm:$0xff] }
  0x1a   : > { %480 = vst [vmem:[%s2449_s26 + $0x70] sm:$0xff] %v479_v14  ;;  %v485_v17 = vld [vmem:[%s2444_s25 + $0x118] sm:$0xff]  ;;  %482 = vst [vmem:[%s2449_s26 + $0x78] sm:$0xff] %v481_v15  ;;  %v487_v18 = vld [vmem:[%s2444_s25 + $0x1b0] sm:$0xff] }
  0x1b   : > { %484 = vst [vmem:[%s2449_s26 + $0x80] sm:$0xff] %v483_v16  ;;  %486 = vst [vmem:[%s2449_s26 + $0x88] sm:$0xff] %v485_v17  ;;  %v489_v19 = vld [vmem:[%s2444_s25 + $0x1b8] sm:$0xff]  ;;  %v491_v20 = vld [vmem:[%s2444_s25 + $0x1c0] sm:$0xff] }
  0x1c   : > { %488 = vst [vmem:[%s2449_s26 + $0x90] sm:$0xff] %v487_v18  ;;  %490 = vst [vmem:[%s2449_s26 + $0x98] sm:$0xff] %v489_v19  ;;  %v493_v21 = vld [vmem:[%s2444_s25 + $0x1c8] sm:$0xff]  ;;  %v495_v22 = vld [vmem:[%s2444_s25 + $0x1d0] sm:$0xff] }
  0x1d   : > { %492 = vst [vmem:[%s2449_s26 + $0xa0] sm:$0xff] %v491_v20  ;;  %v497_v23 = vld [vmem:[%s2444_s25 + $0x1d8] sm:$0xff]  ;;  %494 = vst [vmem:[%s2449_s26 + $0xa8] sm:$0xff] %v493_v21  ;;  %v499_v24 = vld [vmem:[%s2444_s25 + $0x1e0] sm:$0xff] }
  0x1e   : > { %496 = vst [vmem:[%s2449_s26 + $0xb0] sm:$0xff] %v495_v22  ;;  %498 = vst [vmem:[%s2449_s26 + $0xb8] sm:$0xff] %v497_v23  ;;  %v501_v25 = vld [vmem:[%s2444_s25 + $0x1e8] sm:$0xff]  ;;  %v503_v26 = vld [vmem:[%s2444_s25 + $0x1f0] sm:$0xff] }
  0x1f   : > { %500 = vst [vmem:[%s2449_s26 + $0xc0] sm:$0xff] %v499_v24  ;;  %502 = vst [vmem:[%s2449_s26 + $0xc8] sm:$0xff] %v501_v25  ;;  %v505_v27 = vld [vmem:[%s2444_s25 + $0x288] sm:$0xff]  ;;  %v507_v28 = vld [vmem:[%s2444_s25 + $0x290] sm:$0xff] }
  0x20   : > { %504 = vst [vmem:[%s2449_s26 + $0xd0] sm:$0xff] %v503_v26  ;;  %v509_v29 = vld [vmem:[%s2444_s25 + $0x298] sm:$0xff]  ;;  %506 = vst [vmem:[%s2449_s26 + $0xd8] sm:$0xff] %v505_v27  ;;  %v511_v30 = vld [vmem:[%s2444_s25 + $0x2a0] sm:$0xff] }
  0x21   : > { %508 = vst [vmem:[%s2449_s26 + $0xe0] sm:$0xff] %v507_v28  ;;  %510 = vst [vmem:[%s2449_s26 + $0xe8] sm:$0xff] %v509_v29  ;;  %v513_v31 = vld [vmem:[%s2444_s25 + $0x2a8] sm:$0xff]  ;;  %v515_v32 = vld [vmem:[%s2444_s25 + $0x2b0] sm:$0xff] }
  0x22   : > { %512 = vst [vmem:[%s2449_s26 + $0xf0] sm:$0xff] %v511_v30  ;;  %514 = vst [vmem:[%s2449_s26 + $0xf8] sm:$0xff] %v513_v31  ;;  %v517_v33 = vld [vmem:[%s2444_s25 + $0x2b8] sm:$0xff]  ;;  %v519_v34 = vld [vmem:[%s2444_s25 + $0x2c0] sm:$0xff] }
  0x23   : > { %516 = vst [vmem:[%s2449_s26 + $0x100] sm:$0xff] %v515_v32  ;;  %v521_v35 = vld [vmem:[%s2444_s25 + $0x2c8] sm:$0xff]  ;;  %518 = vst [vmem:[%s2449_s26 + $0x108] sm:$0xff] %v517_v33  ;;  %v523_v36 = vld [vmem:[%s2444_s25 + $0x360] sm:$0xff] }
  0x24   : > { %520 = vst [vmem:[%s2449_s26 + $0x110] sm:$0xff] %v519_v34  ;;  %522 = vst [vmem:[%s2449_s26 + $0x118] sm:$0xff] %v521_v35  ;;  %v525_v37 = vld [vmem:[%s2444_s25 + $0x368] sm:$0xff]  ;;  %v527_v38 = vld [vmem:[%s2444_s25 + $0x370] sm:$0xff] }
  0x25   : > { %524 = vst [vmem:[%s2449_s26 + $0x120] sm:$0xff] %v523_v36  ;;  %526 = vst [vmem:[%s2449_s26 + $0x128] sm:$0xff] %v525_v37  ;;  %v529_v39 = vld [vmem:[%s2444_s25 + $0x378] sm:$0xff]  ;;  %v531_v40 = vld [vmem:[%s2444_s25 + $0x380] sm:$0xff] }
  0x26   : > { %528 = vst [vmem:[%s2449_s26 + $0x130] sm:$0xff] %v527_v38  ;;  %v533_v41 = vld [vmem:[%s2444_s25 + $0x388] sm:$0xff]  ;;  %530 = vst [vmem:[%s2449_s26 + $0x138] sm:$0xff] %v529_v39  ;;  %v535_v42 = vld [vmem:[%s2444_s25 + $0x390] sm:$0xff] }
  0x27   : > { %532 = vst [vmem:[%s2449_s26 + $0x140] sm:$0xff] %v531_v40  ;;  %534 = vst [vmem:[%s2449_s26 + $0x148] sm:$0xff] %v533_v41  ;;  %v537_v43 = vld [vmem:[%s2444_s25 + $0x398] sm:$0xff]  ;;  %v539_v44 = vld [vmem:[%s2444_s25 + $0x3a0] sm:$0xff] }
  0x28   : > { %536 = vst [vmem:[%s2449_s26 + $0x150] sm:$0xff] %v535_v42  ;;  %538 = vst [vmem:[%s2449_s26 + $0x158] sm:$0xff] %v537_v43  ;;  %v541_v45 = vld [vmem:[%s2444_s25 + $0x438] sm:$0xff]  ;;  %v543_v46 = vld [vmem:[%s2444_s25 + $0x440] sm:$0xff] }
  0x29   : > { %540 = vst [vmem:[%s2449_s26 + $0x160] sm:$0xff] %v539_v44  ;;  %v545_v47 = vld [vmem:[%s2444_s25 + $0x448] sm:$0xff]  ;;  %542 = vst [vmem:[%s2449_s26 + $0x168] sm:$0xff] %v541_v45  ;;  %v547_v48 = vld [vmem:[%s2444_s25 + $0x450] sm:$0xff] }
  0x2a   : > { %544 = vst [vmem:[%s2449_s26 + $0x170] sm:$0xff] %v543_v46  ;;  %546 = vst [vmem:[%s2449_s26 + $0x178] sm:$0xff] %v545_v47  ;;  %v549_v49 = vld [vmem:[%s2444_s25 + $0x458] sm:$0xff]  ;;  %v551_v50 = vld [vmem:[%s2444_s25 + $0x460] sm:$0xff] }
  0x2b   : > { %548 = vst [vmem:[%s2449_s26 + $0x180] sm:$0xff] %v547_v48  ;;  %550 = vst [vmem:[%s2449_s26 + $0x188] sm:$0xff] %v549_v49  ;;  %v553_v51 = vld [vmem:[%s2444_s25 + $0x468] sm:$0xff]  ;;  %v555_v52 = vld [vmem:[%s2444_s25 + $0x470] sm:$0xff] }
  0x2c   : > { %552 = vst [vmem:[%s2449_s26 + $0x190] sm:$0xff] %v551_v50  ;;  %v557_v53 = vld [vmem:[%s2444_s25 + $0x478] sm:$0xff]  ;;  %554 = vst [vmem:[%s2449_s26 + $0x198] sm:$0xff] %v553_v51  ;;  %v559_v54 = vld [vmem:[%s2444_s25 + $0x510] sm:$0xff] }
  0x2d   : > { %556 = vst [vmem:[%s2449_s26 + $0x1a0] sm:$0xff] %v555_v52  ;;  %558 = vst [vmem:[%s2449_s26 + $0x1a8] sm:$0xff] %v557_v53  ;;  %v561_v55 = vld [vmem:[%s2444_s25 + $0x518] sm:$0xff]  ;;  %v563_v56 = vld [vmem:[%s2444_s25 + $0x520] sm:$0xff] }
  0x2e   : > { %560 = vst [vmem:[%s2449_s26 + $0x1b0] sm:$0xff] %v559_v54  ;;  %562 = vst [vmem:[%s2449_s26 + $0x1b8] sm:$0xff] %v561_v55  ;;  %v565_v57 = vld [vmem:[%s2444_s25 + $0x528] sm:$0xff]  ;;  %v567_v58 = vld [vmem:[%s2444_s25 + $0x530] sm:$0xff] }
  0x2f   : > { %564 = vst [vmem:[%s2449_s26 + $0x1c0] sm:$0xff] %v563_v56  ;;  %v569_v59 = vld [vmem:[%s2444_s25 + $0x538] sm:$0xff]  ;;  %566 = vst [vmem:[%s2449_s26 + $0x1c8] sm:$0xff] %v565_v57  ;;  %v571_v60 = vld [vmem:[%s2444_s25 + $0x540] sm:$0xff] }
  0x30   : > { %568 = vst [vmem:[%s2449_s26 + $0x1d0] sm:$0xff] %v567_v58  ;;  %570 = vst [vmem:[%s2449_s26 + $0x1d8] sm:$0xff] %v569_v59  ;;  %v573_v61 = vld [vmem:[%s2444_s25 + $0x548] sm:$0xff]  ;;  %v575_v62 = vld [vmem:[%s2444_s25 + $0x550] sm:$0xff] }
  0x31   : > { %572 = vst [vmem:[%s2449_s26 + $0x1e0] sm:$0xff] %v571_v60  ;;  %574 = vst [vmem:[%s2449_s26 + $0x1e8] sm:$0xff] %v573_v61  ;;  %v577_v63 = vld [vmem:[%s2444_s25 + $0x5e8] sm:$0xff]  ;;  %v579_v0 = vld [vmem:[%s2444_s25 + $0x5f0] sm:$0xff] }
  0x32   : > { %576 = vst [vmem:[%s2449_s26 + $0x1f0] sm:$0xff] %v575_v62  ;;  %v581_v1 = vld [vmem:[%s2444_s25 + $0x5f8] sm:$0xff]  ;;  %578 = vst [vmem:[%s2449_s26 + $0x1f8] sm:$0xff] %v577_v63  ;;  %v583_v2 = vld [vmem:[%s2444_s25 + $0x600] sm:$0xff] }
  0x33   : > { %580 = vst [vmem:[%s2449_s26 + $0x200] sm:$0xff] %v579_v0  ;;  %582 = vst [vmem:[%s2449_s26 + $0x208] sm:$0xff] %v581_v1  ;;  %v585_v3 = vld [vmem:[%s2444_s25 + $0x608] sm:$0xff]  ;;  %v587_v4 = vld [vmem:[%s2444_s25 + $0x610] sm:$0xff] }
  0x34   : > { %584 = vst [vmem:[%s2449_s26 + $0x210] sm:$0xff] %v583_v2  ;;  %586 = vst [vmem:[%s2449_s26 + $0x218] sm:$0xff] %v585_v3  ;;  %v589_v5 = vld [vmem:[%s2444_s25 + $0x618] sm:$0xff]  ;;  %v591_v6 = vld [vmem:[%s2444_s25 + $0x620] sm:$0xff] }
  0x35   : > { %588 = vst [vmem:[%s2449_s26 + $0x220] sm:$0xff] %v587_v4  ;;  %v593_v7 = vld [vmem:[%s2444_s25 + $0x628] sm:$0xff]  ;;  %590 = vst [vmem:[%s2449_s26 + $0x228] sm:$0xff] %v589_v5  ;;  %v595_v8 = vld [vmem:[%s2444_s25 + $0x6c0] sm:$0xff] }
  0x36   : > { %592 = vst [vmem:[%s2449_s26 + $0x230] sm:$0xff] %v591_v6  ;;  %594 = vst [vmem:[%s2449_s26 + $0x238] sm:$0xff] %v593_v7  ;;  %v597_v9 = vld [vmem:[%s2444_s25 + $0x6c8] sm:$0xff]  ;;  %v599_v10 = vld [vmem:[%s2444_s25 + $0x6d0] sm:$0xff] }
  0x37   : > { %596 = vst [vmem:[%s2449_s26 + $0x240] sm:$0xff] %v595_v8  ;;  %598 = vst [vmem:[%s2449_s26 + $0x248] sm:$0xff] %v597_v9  ;;  %v601_v11 = vld [vmem:[%s2444_s25 + $0x6d8] sm:$0xff]  ;;  %v603_v12 = vld [vmem:[%s2444_s25 + $0x6e0] sm:$0xff] }
  0x38   : > { %600 = vst [vmem:[%s2449_s26 + $0x250] sm:$0xff] %v599_v10  ;;  %v605_v13 = vld [vmem:[%s2444_s25 + $0x6e8] sm:$0xff]  ;;  %602 = vst [vmem:[%s2449_s26 + $0x258] sm:$0xff] %v601_v11  ;;  %v607_v14 = vld [vmem:[%s2444_s25 + $0x6f0] sm:$0xff] }
  0x39   : > { %604 = vst [vmem:[%s2449_s26 + $0x260] sm:$0xff] %v603_v12  ;;  %606 = vst [vmem:[%s2449_s26 + $0x268] sm:$0xff] %v605_v13  ;;  %v609_v15 = vld [vmem:[%s2444_s25 + $0x6f8] sm:$0xff]  ;;  %v611_v16 = vld [vmem:[%s2444_s25 + $0x700] sm:$0xff] }
  0x3a   : > { %608 = vst [vmem:[%s2449_s26 + $0x270] sm:$0xff] %v607_v14  ;;  %610 = vst [vmem:[%s2449_s26 + $0x278] sm:$0xff] %v609_v15  ;;  %v613_v17 = vld [vmem:[%s2444_s25 + $0x798] sm:$0xff]  ;;  %v615_v18 = vld [vmem:[%s2444_s25 + $0x7a0] sm:$0xff] }
  0x3b   : > { %612 = vst [vmem:[%s2449_s26 + $0x280] sm:$0xff] %v611_v16  ;;  %v617_v19 = vld [vmem:[%s2444_s25 + $0x7a8] sm:$0xff]  ;;  %614 = vst [vmem:[%s2449_s26 + $0x288] sm:$0xff] %v613_v17  ;;  %v619_v20 = vld [vmem:[%s2444_s25 + $0x7b0] sm:$0xff] }
  0x3c   : > { %616 = vst [vmem:[%s2449_s26 + $0x290] sm:$0xff] %v615_v18  ;;  %618 = vst [vmem:[%s2449_s26 + $0x298] sm:$0xff] %v617_v19  ;;  %v621_v21 = vld [vmem:[%s2444_s25 + $0x7b8] sm:$0xff]  ;;  %v623_v22 = vld [vmem:[%s2444_s25 + $0x7c0] sm:$0xff] }
  0x3d   : > { %620 = vst [vmem:[%s2449_s26 + $0x2a0] sm:$0xff] %v619_v20  ;;  %622 = vst [vmem:[%s2449_s26 + $0x2a8] sm:$0xff] %v621_v21  ;;  %v625_v23 = vld [vmem:[%s2444_s25 + $0x7c8] sm:$0xff]  ;;  %v627_v24 = vld [vmem:[%s2444_s25 + $0x7d0] sm:$0xff] }
  0x3e   : > { %624 = vst [vmem:[%s2449_s26 + $0x2b0] sm:$0xff] %v623_v22  ;;  %v629_v25 = vld [vmem:[%s2444_s25 + $0x7d8] sm:$0xff]  ;;  %626 = vst [vmem:[%s2449_s26 + $0x2b8] sm:$0xff] %v625_v23  ;;  %v631_v26 = vld [vmem:[%s2444_s25 + $0x870] sm:$0xff] }
  0x3f   : > { %628 = vst [vmem:[%s2449_s26 + $0x2c0] sm:$0xff] %v627_v24  ;;  %630 = vst [vmem:[%s2449_s26 + $0x2c8] sm:$0xff] %v629_v25  ;;  %v633_v27 = vld [vmem:[%s2444_s25 + $0x878] sm:$0xff]  ;;  %v635_v28 = vld [vmem:[%s2444_s25 + $0x880] sm:$0xff] }
  0x40   : > { %632 = vst [vmem:[%s2449_s26 + $0x2d0] sm:$0xff] %v631_v26  ;;  %634 = vst [vmem:[%s2449_s26 + $0x2d8] sm:$0xff] %v633_v27  ;;  %v637_v29 = vld [vmem:[%s2444_s25 + $0x888] sm:$0xff]  ;;  %v639_v30 = vld [vmem:[%s2444_s25 + $0x890] sm:$0xff] }
  0x41   : > { %636 = vst [vmem:[%s2449_s26 + $0x2e0] sm:$0xff] %v635_v28  ;;  %v641_v31 = vld [vmem:[%s2444_s25 + $0x898] sm:$0xff]  ;;  %638 = vst [vmem:[%s2449_s26 + $0x2e8] sm:$0xff] %v637_v29  ;;  %v643_v32 = vld [vmem:[%s2444_s25 + $0x8a0] sm:$0xff] }
  0x42   : > { %640 = vst [vmem:[%s2449_s26 + $0x2f0] sm:$0xff] %v639_v30  ;;  %642 = vst [vmem:[%s2449_s26 + $0x2f8] sm:$0xff] %v641_v31  ;;  %v645_v33 = vld [vmem:[%s2444_s25 + $0x8a8] sm:$0xff]  ;;  %v647_v34 = vld [vmem:[%s2444_s25 + $0x8b0] sm:$0xff] }
  0x43   : > { %644 = vst [vmem:[%s2449_s26 + $0x300] sm:$0xff] %v643_v32  ;;  %646 = vst [vmem:[%s2449_s26 + $0x308] sm:$0xff] %v645_v33  ;;  %v649_v35 = vld [vmem:[%s2444_s25 + $0x948] sm:$0xff]  ;;  %v651_v36 = vld [vmem:[%s2444_s25 + $0x950] sm:$0xff] }
  0x44   : > { %648 = vst [vmem:[%s2449_s26 + $0x310] sm:$0xff] %v647_v34  ;;  %v653_v37 = vld [vmem:[%s2444_s25 + $0x958] sm:$0xff]  ;;  %650 = vst [vmem:[%s2449_s26 + $0x318] sm:$0xff] %v649_v35  ;;  %v655_v38 = vld [vmem:[%s2444_s25 + $0x960] sm:$0xff] }
  0x45   : > { %652 = vst [vmem:[%s2449_s26 + $0x320] sm:$0xff] %v651_v36  ;;  %654 = vst [vmem:[%s2449_s26 + $0x328] sm:$0xff] %v653_v37  ;;  %v657_v39 = vld [vmem:[%s2444_s25 + $0x968] sm:$0xff]  ;;  %v659_v40 = vld [vmem:[%s2444_s25 + $0x970] sm:$0xff] }
  0x46   : > { %656 = vst [vmem:[%s2449_s26 + $0x330] sm:$0xff] %v655_v38  ;;  %658 = vst [vmem:[%s2449_s26 + $0x338] sm:$0xff] %v657_v39  ;;  %v661_v41 = vld [vmem:[%s2444_s25 + $0x978] sm:$0xff]  ;;  %v663_v42 = vld [vmem:[%s2444_s25 + $0x980] sm:$0xff] }
  0x47   : > { %660 = vst [vmem:[%s2449_s26 + $0x340] sm:$0xff] %v659_v40  ;;  %v665_v43 = vld [vmem:[%s2444_s25 + $0x988] sm:$0xff]  ;;  %662 = vst [vmem:[%s2449_s26 + $0x348] sm:$0xff] %v661_v41  ;;  %v667_v44 = vld [vmem:[%s2444_s25 + $0xa20] sm:$0xff] }
  0x48   : > { %664 = vst [vmem:[%s2449_s26 + $0x350] sm:$0xff] %v663_v42  ;;  %666 = vst [vmem:[%s2449_s26 + $0x358] sm:$0xff] %v665_v43  ;;  %v669_v45 = vld [vmem:[%s2444_s25 + $0xa28] sm:$0xff]  ;;  %v671_v46 = vld [vmem:[%s2444_s25 + $0xa30] sm:$0xff] }
  0x49   : > { %668 = vst [vmem:[%s2449_s26 + $0x360] sm:$0xff] %v667_v44  ;;  %670 = vst [vmem:[%s2449_s26 + $0x368] sm:$0xff] %v669_v45  ;;  %v673_v47 = vld [vmem:[%s2444_s25 + $0xa38] sm:$0xff]  ;;  %v675_v48 = vld [vmem:[%s2444_s25 + $0xa40] sm:$0xff] }
  0x4a   : > { %672 = vst [vmem:[%s2449_s26 + $0x370] sm:$0xff] %v671_v46  ;;  %v677_v49 = vld [vmem:[%s2444_s25 + $0xa48] sm:$0xff]  ;;  %674 = vst [vmem:[%s2449_s26 + $0x378] sm:$0xff] %v673_v47  ;;  %v679_v50 = vld [vmem:[%s2444_s25 + $0xa50] sm:$0xff] }
  0x4b   : > { %676 = vst [vmem:[%s2449_s26 + $0x380] sm:$0xff] %v675_v48  ;;  %678 = vst [vmem:[%s2449_s26 + $0x388] sm:$0xff] %v677_v49  ;;  %v681_v51 = vld [vmem:[%s2444_s25 + $0xa58] sm:$0xff]  ;;  %v683_v52 = vld [vmem:[%s2444_s25 + $0xa60] sm:$0xff] }
  0x4c   : > { %680 = vst [vmem:[%s2449_s26 + $0x390] sm:$0xff] %v679_v50  ;;  %682 = vst [vmem:[%s2449_s26 + $0x398] sm:$0xff] %v681_v51  ;;  %v685_v53 = vld [vmem:[%s2444_s25 + $0xaf8] sm:$0xff]  ;;  %v687_v54 = vld [vmem:[%s2444_s25 + $0xb00] sm:$0xff] }
  0x4d   : > { %684 = vst [vmem:[%s2449_s26 + $0x3a0] sm:$0xff] %v683_v52  ;;  %v689_v55 = vld [vmem:[%s2444_s25 + $0xb08] sm:$0xff]  ;;  %686 = vst [vmem:[%s2449_s26 + $0x3a8] sm:$0xff] %v685_v53  ;;  %v691_v56 = vld [vmem:[%s2444_s25 + $0xb10] sm:$0xff] }
  0x4e   : > { %688 = vst [vmem:[%s2449_s26 + $0x3b0] sm:$0xff] %v687_v54  ;;  %690 = vst [vmem:[%s2449_s26 + $0x3b8] sm:$0xff] %v689_v55  ;;  %v693_v57 = vld [vmem:[%s2444_s25 + $0xb18] sm:$0xff]  ;;  %v695_v58 = vld [vmem:[%s2444_s25 + $0xb20] sm:$0xff] }
  0x4f   : > { %692 = vst [vmem:[%s2449_s26 + $0x3c0] sm:$0xff] %v691_v56  ;;  %694 = vst [vmem:[%s2449_s26 + $0x3c8] sm:$0xff] %v693_v57  ;;  %v697_v59 = vld [vmem:[%s2444_s25 + $0xb28] sm:$0xff]  ;;  %v699_v60 = vld [vmem:[%s2444_s25 + $0xb30] sm:$0xff] }
  0x50   : > { %696 = vst [vmem:[%s2449_s26 + $0x3d0] sm:$0xff] %v695_v58  ;;  %v701_v61 = vld [vmem:[%s2444_s25 + $0xb38] sm:$0xff]  ;;  %698 = vst [vmem:[%s2449_s26 + $0x3d8] sm:$0xff] %v697_v59  ;;  %v703_v62 = vld [vmem:[%s2444_s25 + $0xbd0] sm:$0xff] }
  0x51   : > { %700 = vst [vmem:[%s2449_s26 + $0x3e0] sm:$0xff] %v699_v60  ;;  %702 = vst [vmem:[%s2449_s26 + $0x3e8] sm:$0xff] %v701_v61  ;;  %v705_v63 = vld [vmem:[%s2444_s25 + $0xbd8] sm:$0xff]  ;;  %v707_v0 = vld [vmem:[%s2444_s25 + $0xbe0] sm:$0xff] }
  0x52   : > { %704 = vst [vmem:[%s2449_s26 + $0x3f0] sm:$0xff] %v703_v62  ;;  %706 = vst [vmem:[%s2449_s26 + $0x3f8] sm:$0xff] %v705_v63  ;;  %v709_v1 = vld [vmem:[%s2444_s25 + $0xbe8] sm:$0xff]  ;;  %v711_v2 = vld [vmem:[%s2444_s25 + $0xbf0] sm:$0xff] }
  0x53   : > { %708 = vst [vmem:[%s2449_s26 + $0x400] sm:$0xff] %v707_v0  ;;  %v713_v3 = vld [vmem:[%s2444_s25 + $0xbf8] sm:$0xff]  ;;  %710 = vst [vmem:[%s2449_s26 + $0x408] sm:$0xff] %v709_v1  ;;  %v715_v4 = vld [vmem:[%s2444_s25 + $0xc00] sm:$0xff] }
  0x54   : > { %712 = vst [vmem:[%s2449_s26 + $0x410] sm:$0xff] %v711_v2  ;;  %714 = vst [vmem:[%s2449_s26 + $0x418] sm:$0xff] %v713_v3  ;;  %v717_v5 = vld [vmem:[%s2444_s25 + $0xc08] sm:$0xff]  ;;  %v719_v6 = vld [vmem:[%s2444_s25 + $0xc10] sm:$0xff] }
  0x55   : > { %716 = vst [vmem:[%s2449_s26 + $0x420] sm:$0xff] %v715_v4  ;;  %718 = vst [vmem:[%s2449_s26 + $0x428] sm:$0xff] %v717_v5  ;;  %v721_v7 = vld [vmem:[%s2444_s25 + $0xca8] sm:$0xff]  ;;  %v723_v8 = vld [vmem:[%s2444_s25 + $0xcb0] sm:$0xff] }
  0x56   : > { %720 = vst [vmem:[%s2449_s26 + $0x430] sm:$0xff] %v719_v6  ;;  %v725_v9 = vld [vmem:[%s2444_s25 + $0xcb8] sm:$0xff]  ;;  %722 = vst [vmem:[%s2449_s26 + $0x438] sm:$0xff] %v721_v7  ;;  %v727_v10 = vld [vmem:[%s2444_s25 + $0xcc0] sm:$0xff] }
  0x57   : > { %724 = vst [vmem:[%s2449_s26 + $0x440] sm:$0xff] %v723_v8  ;;  %726 = vst [vmem:[%s2449_s26 + $0x448] sm:$0xff] %v725_v9  ;;  %v729_v11 = vld [vmem:[%s2444_s25 + $0xcc8] sm:$0xff]  ;;  %v731_v12 = vld [vmem:[%s2444_s25 + $0xcd0] sm:$0xff] }
  0x58   : > { %728 = vst [vmem:[%s2449_s26 + $0x450] sm:$0xff] %v727_v10  ;;  %730 = vst [vmem:[%s2449_s26 + $0x458] sm:$0xff] %v729_v11  ;;  %v733_v13 = vld [vmem:[%s2444_s25 + $0xcd8] sm:$0xff]  ;;  %v735_v14 = vld [vmem:[%s2444_s25 + $0xce0] sm:$0xff] }
  0x59   : > { %732 = vst [vmem:[%s2449_s26 + $0x460] sm:$0xff] %v731_v12  ;;  %v737_v15 = vld [vmem:[%s2444_s25 + $0xce8] sm:$0xff]  ;;  %734 = vst [vmem:[%s2449_s26 + $0x468] sm:$0xff] %v733_v13 }
  0x5a   : > { %736 = vst [vmem:[%s2449_s26 + $0x470] sm:$0xff] %v735_v14  ;;  %738 = vst [vmem:[%s2449_s26 + $0x478] sm:$0xff] %v737_v15 }
  0x5b PF: > { %p2150_p5 = scmp.ge.s32.totalorder %s2387_s14, 1  ;;  %p743_p6 = scmp.lt.s32.totalorder %s2387_s14, 4 }
  0x5d   : > { %p744_p7 = pnand %p2150_p5, %p743_p6 }
  0x5f   : > { %747 = sbr.rel (%p744_p7) target bundleno = 530 (0x212), region = 66 }
  0x66   : > { %s750_s27 = sand.u32 1, %s2379_s12   ;;  %v2389_v16 = vmov 0   ;;  %s3289_s17 = smul.u32 9, %s2145_s15 }
  0x67   : > { %2364 = vset.pattern.permute.xlu1 %v2389_v16  ;;  %2363 = vset.pattern.permute.xlu0 %v2389_v16  ;;  %s2337_s28 = smul.u32 1152, %s750_s27 }
  0x68   : > { %p775_p8 = scmp.lt.s32.totalorder %s3289_s17, 26 }
  0x69   : > { %s2739_s29 = scalar_lea.vmem [#allocation2], %s2337_s28 }
  0x6a   : > { %v787_v17 = vld [vmem:[%s2739_s29 + $0x10] sm:$0xff]  ;;  %v785_v18 = vld [vmem:[%s2739_s29] sm:$0xff]  ;;  %v788_v19 = vld [vmem:[%s2739_s29 + $0x18] sm:$0xff]  ;;  %s3396_s17 = smov (!%p775_p8, %s3289_s17), 26 }
  0x6b   : > { %806 = vperm.xlu1 %2364, %v787_v17   ;;  %796 = vperm.xlu0 %2363, %v785_v18   ;;  %v786_v20 = vld [vmem:[%s2739_s29 + $0x8] sm:$0xff]  ;;  %v789_v22 = vld [vmem:[%s2739_s29 + $0x20] sm:$0xff]  ;;  %v792_v23 = vld [vmem:[%s2739_s29 + $0x38] sm:$0xff]  ;;  %s2151_s14 = sshll.u32 %s3396_s17, 2 }
  0x6c   : > { %v790_v21 = vld [vmem:[%s2739_s29 + $0x28] sm:$0xff]  ;;  %v791_v24 = vld [vmem:[%s2739_s29 + $0x30] sm:$0xff]  ;;  %v793_v26 = vld [vmem:[%s2739_s29 + $0x40] sm:$0xff]  ;;  %s3341_s20 = scalar_lea.vmem %s3373_s3, %s2151_s14 }
  0x6d   : > { %v2154_v25 = vld [vmem:[%s2739_s29 + $0x48] sm:$0xff]  ;;  %v2156_v27 = vld [vmem:[%s2739_s29 + $0x58] sm:$0xff]  ;;  %v2155_v28 = vld [vmem:[%s2739_s29 + $0x50] sm:$0xff] }
  0x6e   : > { %v2158_v29 = vld [vmem:[%s2739_s29 + $0x68] sm:$0xff]  ;;  %v2157_v30 = vld [vmem:[%s2739_s29 + $0x60] sm:$0xff]  ;;  %v2160_v31 = vld [vmem:[%s2739_s29 + $0x78] sm:$0xff] }
  0x6f   : > { %811 = vperm.xlu1 %2364, %v788_v19   ;;  %801 = vperm.xlu0 %2363, %v786_v20   ;;  %v2159_v32 = vld [vmem:[%s2739_s29 + $0x70] sm:$0xff]  ;;  %v2162_v33 = vld [vmem:[%s2739_s29 + $0x88] sm:$0xff]  ;;  %v2161_v34 = vld [vmem:[%s2739_s29 + $0x80] sm:$0xff] }
  0x70   : > { %v2165_v35 = vld [vmem:[%s2739_s29 + $0x98] sm:$0xff]  ;;  %v2164_v36 = vld [vmem:[%s2739_s29 + $0x90] sm:$0xff]  ;;  %v2167_v37 = vld [vmem:[%s2739_s29 + $0xa8] sm:$0xff] }
  0x71   : > { %v2166_v38 = vld [vmem:[%s2739_s29 + $0xa0] sm:$0xff]  ;;  %v2169_v39 = vld [vmem:[%s2739_s29 + $0xb8] sm:$0xff]  ;;  %v2168_v40 = vld [vmem:[%s2739_s29 + $0xb0] sm:$0xff] }
  0x72   : > { %v2171_v41 = vld [vmem:[%s2739_s29 + $0xc8] sm:$0xff]  ;;  %v2170_v42 = vld [vmem:[%s2739_s29 + $0xc0] sm:$0xff]  ;;  %v2174_v43 = vld [vmem:[%s2739_s29 + $0xd8] sm:$0xff] }
  0x73   : > { %821 = vperm.xlu1 %2364, %v790_v21   ;;  %816 = vperm.xlu0 %2363, %v789_v22   ;;  %v2172_v44 = vld [vmem:[%s2739_s29 + $0xd0] sm:$0xff]  ;;  %v2176_v45 = vld [vmem:[%s2739_s29 + $0xe8] sm:$0xff]  ;;  %v2175_v46 = vld [vmem:[%s2739_s29 + $0xe0] sm:$0xff] }
  0x74   : > { %v2178_v47 = vld [vmem:[%s2739_s29 + $0xf8] sm:$0xff]  ;;  %v2177_v48 = vld [vmem:[%s2739_s29 + $0xf0] sm:$0xff]  ;;  %v2180_v49 = vld [vmem:[%s2739_s29 + $0x108] sm:$0xff] }
  0x75   : > { %v2179_v50 = vld [vmem:[%s2739_s29 + $0x100] sm:$0xff]  ;;  %v2182_v51 = vld [vmem:[%s2739_s29 + $0x118] sm:$0xff]  ;;  %v2181_v52 = vld [vmem:[%s2739_s29 + $0x110] sm:$0xff] }
  0x76   : > { %v2185_v53 = vld [vmem:[%s2739_s29 + $0x128] sm:$0xff]  ;;  %v2184_v54 = vld [vmem:[%s2739_s29 + $0x120] sm:$0xff]  ;;  %v2187_v55 = vld [vmem:[%s2739_s29 + $0x138] sm:$0xff] }
  0x77   : > { %831 = vperm.xlu1 %2364, %v792_v23   ;;  %826 = vperm.xlu0 %2363, %v791_v24   ;;  %v2186_v56 = vld [vmem:[%s2739_s29 + $0x130] sm:$0xff]  ;;  %v2189_v57 = vld [vmem:[%s2739_s29 + $0x148] sm:$0xff]  ;;  %v2188_v58 = vld [vmem:[%s2739_s29 + $0x140] sm:$0xff] }
  0x78   : > { %v2191_v59 = vld [vmem:[%s2739_s29 + $0x158] sm:$0xff]  ;;  %v2190_v60 = vld [vmem:[%s2739_s29 + $0x150] sm:$0xff]  ;;  %v2193_v61 = vld [vmem:[%s2739_s29 + $0x168] sm:$0xff] }
  0x79   : > { %v2192_v62 = vld [vmem:[%s2739_s29 + $0x160] sm:$0xff]  ;;  %v2195_v63 = vld [vmem:[%s2739_s29 + $0x178] sm:$0xff]  ;;  %v2194_v0 = vld [vmem:[%s2739_s29 + $0x170] sm:$0xff] }
  0x7a   : > { %v2197_v1 = vld [vmem:[%s2739_s29 + $0x188] sm:$0xff]  ;;  %v2196_v2 = vld [vmem:[%s2739_s29 + $0x180] sm:$0xff]  ;;  %v2199_v3 = vld [vmem:[%s2739_s29 + $0x198] sm:$0xff] }
  0x7b   : > { %879 = vperm.xlu1 %2364, %v2154_v25   ;;  %836 = vperm.xlu0 %2363, %v793_v26   ;;  %v2198_v4 = vld [vmem:[%s2739_s29 + $0x190] sm:$0xff]  ;;  %v2201_v5 = vld [vmem:[%s2739_s29 + $0x1a8] sm:$0xff]  ;;  %v2200_v6 = vld [vmem:[%s2739_s29 + $0x1a0] sm:$0xff] }
  0x7c   : > { %v2203_v7 = vld [vmem:[%s2739_s29 + $0x1b8] sm:$0xff]  ;;  %v2202_v8 = vld [vmem:[%s2739_s29 + $0x1b0] sm:$0xff]  ;;  %v2205_v9 = vld [vmem:[%s2739_s29 + $0x1c8] sm:$0xff] }
  0x7d   : > { %v2204_v10 = vld [vmem:[%s2739_s29 + $0x1c0] sm:$0xff]  ;;  %v2207_v11 = vld [vmem:[%s2739_s29 + $0x1d8] sm:$0xff]  ;;  %v2206_v12 = vld [vmem:[%s2739_s29 + $0x1d0] sm:$0xff] }
  0x7e   : > { %v2209_v13 = vld [vmem:[%s2739_s29 + $0x1e8] sm:$0xff]  ;;  %v2208_v14 = vld [vmem:[%s2739_s29 + $0x1e0] sm:$0xff]  ;;  %v2211_v15 = vld [vmem:[%s2739_s29 + $0x1f8] sm:$0xff] }
  0x7f   : > { %889 = vperm.xlu1 %2364, %v2156_v27   ;;  %884 = vperm.xlu0 %2363, %v2155_v28   ;;  %v2210_v16 = vld [vmem:[%s2739_s29 + $0x1f0] sm:$0xff]  ;;  %v2213_v17 = vld [vmem:[%s2739_s29 + $0x208] sm:$0xff]  ;;  %v2212_v18 = vld [vmem:[%s2739_s29 + $0x200] sm:$0xff] }
  0x80   : > { %v2215_v21 = vld [vmem:[%s2739_s29 + $0x218] sm:$0xff]  ;;  %v2214_v22 = vld [vmem:[%s2739_s29 + $0x210] sm:$0xff]  ;;  %v2217_v25 = vld [vmem:[%s2739_s29 + $0x228] sm:$0xff] }
  0x81   : > { %v2216_v26 = vld [vmem:[%s2739_s29 + $0x220] sm:$0xff] }
  0x83   : > { %899 = vperm.xlu1 %2364, %v2158_v29   ;;  %894 = vperm.xlu0 %2363, %v2157_v30   ;;  %v2219_v29 = vld [vmem:[%s2739_s29 + $0x238] sm:$0xff]  ;;  %v2218_v30 = vld [vmem:[%s2739_s29 + $0x230] sm:$0xff] }
  0x87   : > { %909 = vperm.xlu1 %2364, %v2160_v31   ;;  %904 = vperm.xlu0 %2363, %v2159_v32  }
  0x8b   : > { %919 = vperm.xlu1 %2364, %v2162_v33   ;;  %914 = vperm.xlu0 %2363, %v2161_v34   ;;  %v2221_v33 = vld [vmem:[%s2739_s29 + $0x248] sm:$0xff]  ;;  %v2220_v34 = vld [vmem:[%s2739_s29 + $0x240] sm:$0xff] }
  0x8f   : > { %961 = vperm.xlu1 %2364, %v2165_v35   ;;  %956 = vperm.xlu0 %2363, %v2164_v36  }
  0x93   : > { %971 = vperm.xlu1 %2364, %v2167_v37   ;;  %966 = vperm.xlu0 %2363, %v2166_v38   ;;  %v2223_v37 = vld [vmem:[%s2739_s29 + $0x258] sm:$0xff]  ;;  %v2222_v38 = vld [vmem:[%s2739_s29 + $0x250] sm:$0xff] }
  0x97   : > { %981 = vperm.xlu1 %2364, %v2169_v39   ;;  %976 = vperm.xlu0 %2363, %v2168_v40  }
  0x9b   : > { %991 = vperm.xlu1 %2364, %v2171_v41   ;;  %986 = vperm.xlu0 %2363, %v2170_v42   ;;  %v2225_v41 = vld [vmem:[%s2739_s29 + $0x268] sm:$0xff]  ;;  %v2224_v42 = vld [vmem:[%s2739_s29 + $0x260] sm:$0xff] }
  0x9f   : > { %1033 = vperm.xlu1 %2364, %v2174_v43   ;;  %996 = vperm.xlu0 %2363, %v2172_v44  }
  0xa3   : > { %1043 = vperm.xlu1 %2364, %v2176_v45   ;;  %1038 = vperm.xlu0 %2363, %v2175_v46   ;;  %v2227_v45 = vld [vmem:[%s2739_s29 + $0x278] sm:$0xff]  ;;  %v2226_v46 = vld [vmem:[%s2739_s29 + $0x270] sm:$0xff] }
  0xa7   : > { %1053 = vperm.xlu1 %2364, %v2178_v47   ;;  %1048 = vperm.xlu0 %2363, %v2177_v48  }
  0xab   : > { %1063 = vperm.xlu1 %2364, %v2180_v49   ;;  %1058 = vperm.xlu0 %2363, %v2179_v50   ;;  %v2229_v49 = vld [vmem:[%s2739_s29 + $0x288] sm:$0xff]  ;;  %v2228_v50 = vld [vmem:[%s2739_s29 + $0x280] sm:$0xff] }
  0xaf   : > { %1073 = vperm.xlu1 %2364, %v2182_v51   ;;  %1068 = vperm.xlu0 %2363, %v2181_v52  }
  0xb3   : > { %1124 = vperm.xlu1 %2364, %v2185_v53   ;;  %1119 = vperm.xlu0 %2363, %v2184_v54   ;;  %v2231_v53 = vld [vmem:[%s2739_s29 + $0x298] sm:$0xff]  ;;  %v2230_v54 = vld [vmem:[%s2739_s29 + $0x290] sm:$0xff] }
  0xb7   : > { %1134 = vperm.xlu1 %2364, %v2187_v55   ;;  %1129 = vperm.xlu0 %2363, %v2186_v56  }
  0xbb   : > { %1144 = vperm.xlu1 %2364, %v2189_v57   ;;  %1139 = vperm.xlu0 %2363, %v2188_v58   ;;  %v2233_v57 = vld [vmem:[%s2739_s29 + $0x2a8] sm:$0xff]  ;;  %v2232_v58 = vld [vmem:[%s2739_s29 + $0x2a0] sm:$0xff] }
  0xbf   : > { %1154 = vperm.xlu1 %2364, %v2191_v59   ;;  %1149 = vperm.xlu0 %2363, %v2190_v60  }
  0xc3   : > { %1192 = vperm.xlu1 %2364, %v2193_v61   ;;  %1159 = vperm.xlu0 %2363, %v2192_v62   ;;  %v2235_v61 = vld [vmem:[%s2739_s29 + $0x2b8] sm:$0xff]  ;;  %v2234_v62 = vld [vmem:[%s2739_s29 + $0x2b0] sm:$0xff] }
  0xc7   : > { %1202 = vperm.xlu1 %2364, %v2195_v63   ;;  %1197 = vperm.xlu0 %2363, %v2194_v0  }
  0xcb   : > { %1212 = vperm.xlu1 %2364, %v2197_v1   ;;  %1207 = vperm.xlu0 %2363, %v2196_v2   ;;  %v2237_v1 = vld [vmem:[%s2739_s29 + $0x2c8] sm:$0xff]  ;;  %v2236_v2 = vld [vmem:[%s2739_s29 + $0x2c0] sm:$0xff] }
  0xcf   : > { %1222 = vperm.xlu1 %2364, %v2199_v3   ;;  %1217 = vperm.xlu0 %2363, %v2198_v4  }
  0xd3   : > { %1232 = vperm.xlu1 %2364, %v2201_v5   ;;  %1227 = vperm.xlu0 %2363, %v2200_v6   ;;  %v2239_v5 = vld [vmem:[%s2739_s29 + $0x2d8] sm:$0xff]  ;;  %v2238_v6 = vld [vmem:[%s2739_s29 + $0x2d0] sm:$0xff] }
  0xd7   : > { %1270 = vperm.xlu1 %2364, %v2203_v7   ;;  %1265 = vperm.xlu0 %2363, %v2202_v8  }
  0xdb   : > { %1280 = vperm.xlu1 %2364, %v2205_v9   ;;  %1275 = vperm.xlu0 %2363, %v2204_v10   ;;  %v2241_v9 = vld [vmem:[%s2739_s29 + $0x2e8] sm:$0xff]  ;;  %v2240_v10 = vld [vmem:[%s2739_s29 + $0x2e0] sm:$0xff] }
  0xdf   : > { %1290 = vperm.xlu1 %2364, %v2207_v11   ;;  %1285 = vperm.xlu0 %2363, %v2206_v12  }
  0xe3   : > { %1300 = vperm.xlu1 %2364, %v2209_v13   ;;  %1295 = vperm.xlu0 %2363, %v2208_v14   ;;  %v2243_v13 = vld [vmem:[%s2739_s29 + $0x2f8] sm:$0xff]  ;;  %v2242_v14 = vld [vmem:[%s2739_s29 + $0x2f0] sm:$0xff] }
  0xe7   : > { %1338 = vperm.xlu1 %2364, %v2211_v15   ;;  %1305 = vperm.xlu0 %2363, %v2210_v16  }
  0xea   : > { %v2807_v19 = vpop.permute.xlu1 %806  ;;  %v2809_v20 = vpop.permute.xlu0 %796 }
  0xeb   : > { %1348 = vperm.xlu1 %2364, %v2213_v17   ;;  %1343 = vperm.xlu0 %2363, %v2212_v18   ;;  %v2245_v17 = vld [vmem:[%s2739_s29 + $0x308] sm:$0xff]  ;;  %v2244_v18 = vld [vmem:[%s2739_s29 + $0x300] sm:$0xff] }
  0xee   : > { %v2813_v23 = vpop.permute.xlu1 %811  ;;  %v2815_v24 = vpop.permute.xlu0 %801 }
  0xef   : > { %1358 = vperm.xlu1 %2364, %v2215_v21   ;;  %1353 = vperm.xlu0 %2363, %v2214_v22  }
  0xf2   : > { %v2819_v27 = vpop.permute.xlu1 %821  ;;  %v2821_v28 = vpop.permute.xlu0 %816 }
  0xf3   : > { %1368 = vperm.xlu1 %2364, %v2217_v25   ;;  %1363 = vperm.xlu0 %2363, %v2216_v26   ;;  %v2247_v25 = vld [vmem:[%s2739_s29 + $0x318] sm:$0xff]  ;;  %v2246_v26 = vld [vmem:[%s2739_s29 + $0x310] sm:$0xff] }
  0xf6   : > { %v2825_v31 = vpop.permute.xlu1 %831  ;;  %v2827_v32 = vpop.permute.xlu0 %826 }
  0xf7   : > { %1378 = vperm.xlu1 %2364, %v2219_v29   ;;  %1373 = vperm.xlu0 %2363, %v2218_v30  }
  0xfa   : > { %v2831_v35 = vpop.permute.xlu1 %879  ;;  %v2833_v36 = vpop.permute.xlu0 %836 }
  0xfb   : > { %1434 = vperm.xlu1 %2364, %v2221_v33   ;;  %1429 = vperm.xlu0 %2363, %v2220_v34   ;;  %v2249_v33 = vld [vmem:[%s2739_s29 + $0x328] sm:$0xff]  ;;  %v2248_v34 = vld [vmem:[%s2739_s29 + $0x320] sm:$0xff] }
  0xfe   : > { %v2837_v39 = vpop.permute.xlu1 %889  ;;  %v2839_v40 = vpop.permute.xlu0 %884 }
  0xff   : > { %1444 = vperm.xlu1 %2364, %v2223_v37   ;;  %1439 = vperm.xlu0 %2363, %v2222_v38  }
 0x102   : > { %v2843_v43 = vpop.permute.xlu1 %899  ;;  %v2845_v44 = vpop.permute.xlu0 %894 }
 0x103   : > { %1454 = vperm.xlu1 %2364, %v2225_v41   ;;  %1449 = vperm.xlu0 %2363, %v2224_v42   ;;  %v2251_v41 = vld [vmem:[%s2739_s29 + $0x338] sm:$0xff]  ;;  %v2250_v42 = vld [vmem:[%s2739_s29 + $0x330] sm:$0xff] }
 0x106   : > { %v2849_v47 = vpop.permute.xlu1 %909  ;;  %v2851_v48 = vpop.permute.xlu0 %904 }
 0x107   : > { %1464 = vperm.xlu1 %2364, %v2227_v45   ;;  %1459 = vperm.xlu0 %2363, %v2226_v46  }
 0x10a   : > { %v2855_v51 = vpop.permute.xlu1 %919  ;;  %v2857_v52 = vpop.permute.xlu0 %914 }
 0x10b   : > { %1502 = vperm.xlu1 %2364, %v2229_v49   ;;  %1469 = vperm.xlu0 %2363, %v2228_v50   ;;  %v2253_v49 = vld [vmem:[%s2739_s29 + $0x348] sm:$0xff]  ;;  %v2252_v50 = vld [vmem:[%s2739_s29 + $0x340] sm:$0xff] }
 0x10e   : > { %v2861_v55 = vpop.permute.xlu1 %961  ;;  %v2863_v56 = vpop.permute.xlu0 %956 }
 0x10f   : > { %1512 = vperm.xlu1 %2364, %v2231_v53   ;;  %1507 = vperm.xlu0 %2363, %v2230_v54  }
 0x112   : > { %v2867_v59 = vpop.permute.xlu1 %971  ;;  %v2869_v60 = vpop.permute.xlu0 %966 }
 0x113   : > { %1522 = vperm.xlu1 %2364, %v2233_v57   ;;  %1517 = vperm.xlu0 %2363, %v2232_v58   ;;  %v2255_v57 = vld [vmem:[%s2739_s29 + $0x358] sm:$0xff]  ;;  %v2254_v58 = vld [vmem:[%s2739_s29 + $0x350] sm:$0xff] }
 0x116   : > { %v2873_v63 = vpop.permute.xlu1 %981  ;;  %v2875_v0 = vpop.permute.xlu0 %976 }
 0x117   : > { %1532 = vperm.xlu1 %2364, %v2235_v61   ;;  %1527 = vperm.xlu0 %2363, %v2234_v62  }
 0x11a   : > { %v2879_v3 = vpop.permute.xlu1 %991  ;;  %v2881_v4 = vpop.permute.xlu0 %986 }
 0x11b   : > { %1542 = vperm.xlu1 %2364, %v2237_v1   ;;  %1537 = vperm.xlu0 %2363, %v2236_v2   ;;  %v2257_v1 = vld [vmem:[%s2739_s29 + $0x368] sm:$0xff]  ;;  %v2256_v2 = vld [vmem:[%s2739_s29 + $0x360] sm:$0xff] }
 0x11e   : > { %v2885_v7 = vpop.permute.xlu1 %1033  ;;  %v2887_v8 = vpop.permute.xlu0 %996 }
 0x11f   : > { %3374 = vst [vmem:[#allocation3_spill] sm:$0xff] %v2887_v8  ;;  %1580 = vperm.xlu1 %2364, %v2239_v5   ;;  %1575 = vperm.xlu0 %2363, %v2238_v6  }
 0x122   : > { %v2891_v11 = vpop.permute.xlu1 %1043  ;;  %v2893_v12 = vpop.permute.xlu0 %1038 }
 0x123   : > { %3375 = vst [vmem:[#allocation4_spill] sm:$0xff] %v2893_v12  ;;  %1590 = vperm.xlu1 %2364, %v2241_v9   ;;  %1585 = vperm.xlu0 %2363, %v2240_v10   ;;  %v2259_v9 = vld [vmem:[%s2739_s29 + $0x378] sm:$0xff]  ;;  %v2258_v10 = vld [vmem:[%s2739_s29 + $0x370] sm:$0xff] }
 0x126   : > { %v2897_v15 = vpop.permute.xlu1 %1053  ;;  %v2899_v16 = vpop.permute.xlu0 %1048 }
 0x127   : > { %3376 = vst [vmem:[#allocation5_spill] sm:$0xff] %v2897_v15  ;;  %3377 = vst [vmem:[#allocation6_spill] sm:$0xff] %v2899_v16  ;;  %1600 = vperm.xlu1 %2364, %v2243_v13   ;;  %1595 = vperm.xlu0 %2363, %v2242_v14   ;;  %v2269_v16 = vld [vmem:[%s2739_s29 + $0x3c8] sm:$0xff]  ;;  %v2268_v15 = vld [vmem:[%s2739_s29 + $0x3c0] sm:$0xff] }
 0x12a   : > { %v2903_v21 = vpop.permute.xlu1 %1063  ;;  %v2905_v22 = vpop.permute.xlu0 %1058 }
 0x12b   : > { %3378 = vst [vmem:[#allocation7_spill] sm:$0xff] %v2903_v21  ;;  %3379 = vst [vmem:[#allocation8_spill] sm:$0xff] %v2905_v22  ;;  %1610 = vperm.xlu1 %2364, %v2245_v17   ;;  %1605 = vperm.xlu0 %2363, %v2244_v18   ;;  %v2261_v17 = vld [vmem:[%s2739_s29 + $0x388] sm:$0xff]  ;;  %v2260_v18 = vld [vmem:[%s2739_s29 + $0x380] sm:$0xff] }
 0x12e   : > { %v2909_v29 = vpop.permute.xlu1 %1073  ;;  %v2911_v30 = vpop.permute.xlu0 %1068 }
 0x12f   : > { %3380 = vst [vmem:[#allocation9_spill] sm:$0xff] %v2909_v29  ;;  %3381 = vst [vmem:[#allocation10_spill] sm:$0xff] %v2911_v30  ;;  %1648 = vperm.xlu1 %2364, %v2247_v25   ;;  %1615 = vperm.xlu0 %2363, %v2246_v26  }
 0x132   : > { %v1125_v37 = vpop.permute.xlu1 %1124  ;;  %v2915_v38 = vpop.permute.xlu0 %1119 }
 0x133   : > { %1658 = vperm.xlu1 %2364, %v2249_v33   ;;  %1653 = vperm.xlu0 %2363, %v2248_v34   ;;  %v2263_v33 = vld [vmem:[%s2739_s29 + $0x398] sm:$0xff]  ;;  %v2262_v34 = vld [vmem:[%s2739_s29 + $0x390] sm:$0xff] }
 0x136   : > { %v1135_v45 = vpop.permute.xlu1 %1134  ;;  %v1130_v46 = vpop.permute.xlu0 %1129 }
 0x137   : > { %1668 = vperm.xlu1 %2364, %v2251_v41   ;;  %1663 = vperm.xlu0 %2363, %v2250_v42  }
 0x13a   : > { %v2921_v53 = vpop.permute.xlu1 %1144  ;;  %v1140_v54 = vpop.permute.xlu0 %1139 }
 0x13b   : > { %1678 = vperm.xlu1 %2364, %v2253_v49   ;;  %1673 = vperm.xlu0 %2363, %v2252_v50   ;;  %v2944_v49 = vld [vmem:[%s3371_s1] ss:$0 sm:$0xff]  ;;  %v2265_v50 = vld [vmem:[%s2739_s29 + $0x3a8] sm:$0xff] }
 0x13c   : > { %v1166_v8 = vmul.f32 %v2944_v49, %v1140_v54 }
 0x13e   : > { %v2925_v61 = vpop.permute.xlu1 %1154  ;;  %v2927_v62 = vpop.permute.xlu0 %1149 }
 0x13f   : > { %1688 = vperm.xlu1 %2364, %v2255_v57   ;;  %1683 = vperm.xlu0 %2363, %v2254_v58   ;;  %v2264_v57 = vld [vmem:[%s2739_s29 + $0x3a0] sm:$0xff]  ;;  %v1163_v58 = vmul.f32 %v2944_v49, %v1125_v37  ;;  %v1164_v37 = vmul.f32 %v2944_v49, %v1130_v46 }
 0x142   : > { %v2931_v5 = vpop.permute.xlu1 %1192  ;;  %v2933_v6 = vpop.permute.xlu0 %1159 }
 0x143   : > { %1744 = vperm.xlu1 %2364, %v2257_v1   ;;  %1739 = vperm.xlu0 %2363, %v2256_v2   ;;  %v2952_v1 = vld [vmem:[%s3371_s1 + $0x1] ss:$0 sm:$0xff] }
 0x146   : > { %v1203_v13 = vpop.permute.xlu1 %1202  ;;  %v1198_v14 = vpop.permute.xlu0 %1197 }
 0x147   : > { %1754 = vperm.xlu1 %2364, %v2259_v9   ;;  %1749 = vperm.xlu0 %2363, %v2258_v10   ;;  %v1236_v10 = vmul.f32 %v2952_v1, %v1198_v14  ;;  %v2970_v14 = vld [vmem:[%s3371_s1 + $0x2] ss:$0 sm:$0xff] }
 0x14a   : > { %v1213_v25 = vpop.permute.xlu1 %1212  ;;  %v1208_v26 = vpop.permute.xlu0 %1207 }
 0x14b   : > { %1764 = vperm.xlu1 %2364, %v2261_v17   ;;  %1759 = vperm.xlu0 %2363, %v2260_v18   ;;  %v2960_v17 = vld [vmem:[%s3372_s2] ss:$0 sm:$0xff]  ;;  %v1165_v18 = vmul.f32 %v2944_v49, %v1135_v45 }
 0x14c   : > { %v1172_v30 = vadd.f32 %v2960_v17, %v1163_v58  ;;  %v1173_v58 = vadd.f32 %v2960_v17, %v1164_v37  ;;  %v1175_v12 = vadd.f32 %v2960_v17, %v1166_v8 }
 0x14d   : > { %v1174_v21 = vadd.f32 %v2960_v17, %v1165_v18 }
 0x14e   : > { %v1223_v41 = vpop.permute.xlu1 %1222  ;;  %v1218_v42 = vpop.permute.xlu0 %1217  ;;  %v1245_v45 = vadd.f32 %v1236_v10, %v1172_v30 }
 0x14f   : > { %1774 = vperm.xlu1 %2364, %v2263_v33   ;;  %1769 = vperm.xlu0 %2363, %v2262_v34   ;;  %v2267_v33 = vld [vmem:[%s2739_s29 + $0x3b8] sm:$0xff]  ;;  %v2266_v34 = vld [vmem:[%s2739_s29 + $0x3b0] sm:$0xff]  ;;  %v1240_v18 = vmul.f32 %v2952_v1, %v1218_v42  ;;  %v1241_v8 = vmul.f32 %v2952_v1, %v1223_v41  ;;  %v2272_v41 = vld [vmem:[%s2739_s29 + $0x3e0] sm:$0xff] }
 0x152   : > { %v2954_v2 = vpop.permute.xlu1 %1232  ;;  %v1228_v9 = vpop.permute.xlu0 %1227 }
 0x153   : > { %1812 = vperm.xlu1 %2364, %v2265_v50   ;;  %1779 = vperm.xlu0 %2363, %v2264_v57   ;;  %v1237_v50 = vmul.f32 %v2952_v1, %v1203_v13  ;;  %v1238_v57 = vmul.f32 %v2952_v1, %v1208_v26  ;;  %v1167_v13 = vmul.f32 %v2944_v49, %v2921_v53 }
 0x154   : > { %v1169_v53 = vmul.f32 %v2944_v49, %v2925_v61  ;;  %v1242_v61 = vmul.f32 %v2952_v1, %v1228_v9  ;;  %v1235_v9 = vmul.f32 %v2952_v1, %v2931_v5 }
 0x155   : > { %v1246_v30 = vadd.f32 %v1237_v50, %v1173_v58  ;;  %v1247_v10 = vadd.f32 %v1238_v57, %v1174_v21  ;;  %v1168_v50 = vmul.f32 %v2944_v49, %v2927_v62  ;;  %v2270_v21 = vld [vmem:[%s2739_s29 + $0x3d0] sm:$0xff]  ;;  %v1176_v57 = vadd.f32 %v2960_v17, %v1167_v13 }
 0x156   : > { %v1271_v29 = vpop.permute.xlu1 %1270  ;;  %v1266_v22 = vpop.permute.xlu0 %1265 }
 0x157   : > { %v1309_v46 = vmul.f32 %v2970_v14, %v1271_v29  ;;  %1822 = vperm.xlu1 %2364, %v2267_v33   ;;  %1817 = vperm.xlu0 %2363, %v2266_v34   ;;  %v1239_v29 = vmul.f32 %v2952_v1, %v1213_v25  ;;  %v2271_v25 = vld [vmem:[%s2739_s29 + $0x3d8] sm:$0xff]  ;;  %v1249_v62 = vadd.f32 %v1240_v18, %v1176_v57 }
 0x159   : > { %v2982_v26 = vadd.f32 %v1309_v46, %v1245_v45 }
 0x15a   : > { %v1281_v33 = vpop.permute.xlu1 %1280  ;;  %v1276_v34 = vpop.permute.xlu0 %1275 }
 0x15b   : > { %v1311_v37 = vmul.f32 %v2970_v14, %v1281_v33  ;;  %v1310_v54 = vmul.f32 %v2970_v14, %v1276_v34  ;;  %1832 = vperm.xlu1 %2364, %v2269_v16   ;;  %1827 = vperm.xlu0 %2363, %v2268_v15   ;;  %v1162_v15 = vmul.f32 %v2944_v49, %v2915_v38  ;;  %v2273_v38 = vld [vmem:[%s2739_s29 + $0x3e8] sm:$0xff] }
 0x15c   : > { %v1248_v16 = vadd.f32 %v1239_v29, %v1175_v12  ;;  %v1170_v12 = vmul.f32 %v2944_v49, %v2933_v6  ;;  %v1308_v6 = vmul.f32 %v2970_v14, %v1266_v22 }
 0x15d   : > { %v2996_v45 = vadd.f32 %v1311_v37, %v1247_v10  ;;  %v1319_v42 = vadd.f32 %v1310_v54, %v1246_v30  ;;  %v1178_v30 = vadd.f32 %v2960_v17, %v1169_v53  ;;  %v1177_v10 = vadd.f32 %v2960_v17, %v1168_v50 }
 0x15e   : > { %v1291_v46 = vpop.permute.xlu1 %1290  ;;  %v1286_v58 = vpop.permute.xlu0 %1285  ;;  %v1171_v18 = vadd.f32 %v2960_v17, %v1162_v15  ;;  %v1243_v54 = vmul.f32 %v2952_v1, %v2954_v2  ;;  %v1179_v5 = vadd.f32 %v2960_v17, %v1170_v12  ;;  %v2275_v15 = vld [vmem:[%s2739_s29 + $0x3f8] sm:$0xff]  ;;  %v2276_v12 = vld [vmem:[%s2739_s29 + $0x400] sm:$0xff] }
 0x15f   : > { %v1313_v33 = vmul.f32 %v2970_v14, %v1291_v46  ;;  %v1312_v13 = vmul.f32 %v2970_v14, %v1286_v58  ;;  %1842 = vperm.xlu1 %2364, %v2271_v25   ;;  %1837 = vperm.xlu0 %2363, %v2270_v21   ;;  %v1250_v37 = vadd.f32 %v1241_v8, %v1177_v10  ;;  %v2277_v10 = vld [vmem:[%s2739_s29 + $0x408] sm:$0xff] }
 0x160   : > { %v1251_v53 = vadd.f32 %v1242_v61, %v1178_v30  ;;  %v1244_v8 = vadd.f32 %v1235_v9, %v1171_v18  ;;  %v3024_v61 = vld [vmem:[%s3371_s1 + $0x3] ss:$0 sm:$0xff]  ;;  %v1252_v22 = vadd.f32 %v1243_v54, %v1179_v5 }
 0x161   : > { %v1322_v29 = vadd.f32 %v1313_v33, %v1249_v62  ;;  %v1321_v34 = vadd.f32 %v1312_v13, %v1248_v16  ;;  %v2274_v16 = vld [vmem:[%s2739_s29 + $0x3f0] sm:$0xff] }
 0x162   : > { %v1301_v50 = vpop.permute.xlu1 %1300  ;;  %v1296_v25 = vpop.permute.xlu0 %1295  ;;  %v1317_v33 = vadd.f32 %v1308_v6, %v1244_v8  ;;  %v2280_v8 = vld [vmem:[%s2739_s29 + $0x420] sm:$0xff] }
 0x163   : > { %v1315_v21 = vmul.f32 %v2970_v14, %v1301_v50  ;;  %v1314_v57 = vmul.f32 %v2970_v14, %v1296_v25  ;;  %1852 = vperm.xlu1 %2364, %v2273_v38   ;;  %1847 = vperm.xlu0 %2363, %v2272_v41   ;;  %v2278_v50 = vld [vmem:[%s2739_s29 + $0x410] sm:$0xff] }
 0x165   : > { %v1324_v46 = vadd.f32 %v1315_v21, %v1251_v53  ;;  %v1323_v2 = vadd.f32 %v1314_v57, %v1250_v37  ;;  %v2279_v53 = vld [vmem:[%s2739_s29 + $0x418] sm:$0xff] }
 0x166   : > { %v1339_v58 = vpop.permute.xlu1 %1338  ;;  %v1306_v62 = vpop.permute.xlu0 %1305 }
 0x167   : > { %v1381_v13 = vmul.f32 %v3024_v61, %v1339_v58  ;;  %v1316_v30 = vmul.f32 %v2970_v14, %v1306_v62  ;;  %1890 = vperm.xlu1 %2364, %v2275_v15   ;;  %1885 = vperm.xlu0 %2363, %v2274_v16   ;;  %v2281_v16 = vld [vmem:[%s2739_s29 + $0x428] sm:$0xff] }
 0x169   : > { %v3030_v38 = vadd.f32 %v1381_v13, %v1317_v33  ;;  %v1325_v41 = vadd.f32 %v1316_v30, %v1252_v22  ;;  %v2283_v13 = vld [vmem:[%s2739_s29 + $0x438] sm:$0xff]  ;;  %v2282_v30 = vld [vmem:[%s2739_s29 + $0x430] sm:$0xff] }
 0x16a   : > { %v1349_v9 = vpop.permute.xlu1 %1348  ;;  %v1344_v18 = vpop.permute.xlu0 %1343 }
 0x16b   : > { %v1383_v37 = vmul.f32 %v3024_v61, %v1349_v9  ;;  %v1382_v54 = vmul.f32 %v3024_v61, %v1344_v18  ;;  %1900 = vperm.xlu1 %2364, %v2277_v10   ;;  %1895 = vperm.xlu0 %2363, %v2276_v12  }
 0x16d   : > { %v3036_v25 = vadd.f32 %v1383_v37, %v1319_v42  ;;  %v3039_v6 = vadd.f32 %v1382_v54, %v2982_v26  ;;  %v2285_v37 = vld [vmem:[%s2739_s29 + $0x448] sm:$0xff]  ;;  %v2284_v54 = vld [vmem:[%s2739_s29 + $0x440] sm:$0xff] }
 0x16e   : > { %v1359_v21 = vpop.permute.xlu1 %1358  ;;  %v1354_v57 = vpop.permute.xlu0 %1353 }
 0x16f   : > { %v1385_v5 = vmul.f32 %v3024_v61, %v1359_v21  ;;  %v1384_v15 = vmul.f32 %v3024_v61, %v1354_v57  ;;  %1910 = vperm.xlu1 %2364, %v2279_v53   ;;  %1905 = vperm.xlu0 %2363, %v2278_v50   ;;  %v2287_v21 = vld [vmem:[%s2739_s29 + $0x458] sm:$0xff]  ;;  %v2286_v57 = vld [vmem:[%s2739_s29 + $0x450] sm:$0xff] }
 0x171   : > { %v3045_v22 = vadd.f32 %v1385_v5, %v1321_v34  ;;  %v3048_v42 = vadd.f32 %v1384_v15, %v2996_v45 }
 0x172   : > { %v1369_v58 = vpop.permute.xlu1 %1368  ;;  %v1364_v26 = vpop.permute.xlu0 %1363 }
 0x173   : > { %v1387_v62 = vmul.f32 %v3024_v61, %v1369_v58  ;;  %v1386_v33 = vmul.f32 %v3024_v61, %v1364_v26  ;;  %1920 = vperm.xlu1 %2364, %v2281_v16   ;;  %1915 = vperm.xlu0 %2363, %v2280_v8   ;;  %v2289_v16 = vld [vmem:[%s2739_s29 + $0x468] sm:$0xff]  ;;  %v2288_v8 = vld [vmem:[%s2739_s29 + $0x460] sm:$0xff] }
 0x175   : > { %v3054_v10 = vadd.f32 %v1387_v62, %v1323_v2  ;;  %v3056_v34 = vadd.f32 %v1386_v33, %v1322_v29 }
 0x176   : > { %v1379_v45 = vpop.permute.xlu1 %1378  ;;  %v1374_v12 = vpop.permute.xlu0 %1373 }
 0x177   : > { %v1389_v9 = vmul.f32 %v3024_v61, %v1379_v45  ;;  %v1388_v18 = vmul.f32 %v3024_v61, %v1374_v12  ;;  %1958 = vperm.xlu1 %2364, %v2283_v13   ;;  %1925 = vperm.xlu0 %2363, %v2282_v30  }
 0x179   : > { %v3062_v53 = vadd.f32 %v1389_v9, %v1325_v41  ;;  %v3064_v2 = vadd.f32 %v1388_v18, %v1324_v46  ;;  %v2291_v46 = vld [vmem:[%s2739_s29 + $0x478] sm:$0xff]  ;;  %v2290_v41 = vld [vmem:[%s2739_s29 + $0x470] sm:$0xff] }
 0x17a   : > { %v1435_v50 = vpop.permute.xlu1 %1434  ;;  %v1430_v29 = vpop.permute.xlu0 %1429 }
 0x17b   : > { %3382 = vst [vmem:[#allocation11_spill] sm:$0xff] %v3064_v2  ;;  %1968 = vperm.xlu1 %2364, %v2285_v37   ;;  %1963 = vperm.xlu0 %2363, %v2284_v54   ;;  %v1472_v13 = vmul.f32 %v2944_v49, %v1430_v29  ;;  %v1473_v30 = vmul.f32 %v2944_v49, %v1435_v50 }
 0x17d   : > { %v1481_v9 = vadd.f32 %v2960_v17, %v1472_v13 }
 0x17e   : > { %v1445_v5 = vpop.permute.xlu1 %1444  ;;  %v1440_v15 = vpop.permute.xlu0 %1439 }
 0x17f   : > { %1978 = vperm.xlu1 %2364, %v2287_v21   ;;  %1973 = vperm.xlu0 %2363, %v2286_v57   ;;  %v1474_v18 = vmul.f32 %v2944_v49, %v1440_v15  ;;  %v1482_v21 = vadd.f32 %v2960_v17, %v1473_v30  ;;  %v1475_v57 = vmul.f32 %v2944_v49, %v1445_v5 }
 0x181   : > { %v1483_v29 = vadd.f32 %v2960_v17, %v1474_v18 }
 0x182   : > { %v1455_v58 = vpop.permute.xlu1 %1454  ;;  %v1450_v26 = vpop.permute.xlu0 %1449 }
 0x183   : > { %1988 = vperm.xlu1 %2364, %v2289_v16   ;;  %1983 = vperm.xlu0 %2363, %v2288_v8  }
 0x186   : > { %v1465_v62 = vpop.permute.xlu1 %1464  ;;  %v1460_v33 = vpop.permute.xlu0 %1459 }
 0x187   : > { %1998 = vperm.xlu1 %2364, %v2291_v46   ;;  %1993 = vperm.xlu0 %2363, %v2290_v41   ;;  %v1476_v46 = vmul.f32 %v2944_v49, %v1450_v26  ;;  %v1478_v2 = vmul.f32 %v2944_v49, %v1460_v33 }
 0x189   : > { %v1485_v5 = vadd.f32 %v2960_v17, %v1476_v46 }
 0x18a   : > { %v1503_v45 = vpop.permute.xlu1 %1502  ;;  %v1470_v12 = vpop.permute.xlu0 %1469 }
 0x18b   : > { %v1545_v37 = vmul.f32 %v2952_v1, %v1503_v45  ;;  %v1484_v45 = vadd.f32 %v2960_v17, %v1475_v57 }
 0x18d   : > { %v1554_v54 = vadd.f32 %v1545_v37, %v1481_v9  ;;  %v1477_v9 = vmul.f32 %v2944_v49, %v1455_v58  ;;  %v1487_v58 = vadd.f32 %v2960_v17, %v1478_v2 }
 0x18e   : > { %v1513_v16 = vpop.permute.xlu1 %1512  ;;  %v1508_v8 = vpop.permute.xlu0 %1507 }
 0x18f   : > { %v1547_v50 = vmul.f32 %v2952_v1, %v1513_v16  ;;  %v1546_v41 = vmul.f32 %v2952_v1, %v1508_v8 }
 0x191   : > { %v3083_v13 = vadd.f32 %v1547_v50, %v1483_v29  ;;  %v1555_v15 = vadd.f32 %v1546_v41, %v1482_v21  ;;  %v1486_v29 = vadd.f32 %v2960_v17, %v1477_v9  ;;  %v1479_v21 = vmul.f32 %v2944_v49, %v1465_v62 }
 0x192   : > { %v1523_v30 = vpop.permute.xlu1 %1522  ;;  %v1518_v37 = vpop.permute.xlu0 %1517  ;;  %v1480_v41 = vmul.f32 %v2944_v49, %v1470_v12  ;;  %v843_v62 = vmul.f32 %v2944_v49, %v2809_v20  ;;  %v847_v20 = vmul.f32 %v2944_v49, %v2821_v28 }
 0x193   : > { %v1549_v18 = vmul.f32 %v2952_v1, %v1523_v30  ;;  %v1548_v26 = vmul.f32 %v2952_v1, %v1518_v37  ;;  %v1488_v2 = vadd.f32 %v2960_v17, %v1479_v21  ;;  %v850_v21 = vmul.f32 %v2944_v49, %v2825_v31 }
 0x194   : > { %v1489_v12 = vadd.f32 %v2960_v17, %v1480_v41 }
 0x195   : > { %v3091_v16 = vadd.f32 %v1549_v18, %v1485_v5  ;;  %v1557_v8 = vadd.f32 %v1548_v26, %v1484_v45  ;;  %v845_v45 = vmul.f32 %v2944_v49, %v2807_v19  ;;  %v848_v19 = vmul.f32 %v2944_v49, %v2819_v27 }
 0x196   : > { %v1533_v57 = vpop.permute.xlu1 %1532  ;;  %v1528_v50 = vpop.permute.xlu0 %1527  ;;  %v926_v27 = vmul.f32 %v2952_v1, %v2831_v35 }
 0x197   : > { %v1551_v46 = vmul.f32 %v2952_v1, %v1533_v57  ;;  %v1550_v33 = vmul.f32 %v2952_v1, %v1528_v50  ;;  %v844_v57 = vmul.f32 %v2944_v49, %v2815_v24  ;;  %v860_v41 = vadd.f32 %v2960_v17, %v845_v45 }
 0x198   : > { %v863_v45 = vadd.f32 %v2960_v17, %v848_v19 }
 0x199   : > { %v3099_v30 = vadd.f32 %v1551_v46, %v1487_v58  ;;  %v3101_v37 = vadd.f32 %v1550_v33, %v1486_v29  ;;  %v846_v29 = vmul.f32 %v2944_v49, %v2813_v23  ;;  %v849_v23 = vmul.f32 %v2944_v49, %v2827_v32 }
 0x19a   : > { %v1543_v9 = vpop.permute.xlu1 %1542  ;;  %v1538_v5 = vpop.permute.xlu0 %1537  ;;  %v858_v33 = vadd.f32 %v2960_v17, %v843_v62  ;;  %v865_v32 = vadd.f32 %v2960_v17, %v850_v21  ;;  %v851_v62 = vmul.f32 %v2944_v49, %v2833_v36  ;;  %v929_v36 = vmul.f32 %v2952_v1, %v2845_v44 }
 0x19b   : > { %v1553_v18 = vmul.f32 %v2952_v1, %v1543_v9  ;;  %v1552_v26 = vmul.f32 %v2952_v1, %v1538_v5  ;;  %v861_v9 = vadd.f32 %v2960_v17, %v846_v29  ;;  %v859_v5 = vadd.f32 %v2960_v17, %v844_v57 }
 0x19c   : > { %v927_v29 = vmul.f32 %v2952_v1, %v2839_v40  ;;  %v930_v57 = vmul.f32 %v2952_v1, %v2843_v43  ;;  %v935_v21 = vadd.f32 %v926_v27, %v858_v33  ;;  %v934_v40 = vmul.f32 %v2952_v1, %v2855_v51 }
 0x19d   : > { %v3121_v50 = vadd.f32 %v1553_v18, %v1489_v12  ;;  %v3123_v58 = vadd.f32 %v1552_v26, %v1488_v2  ;;  %v862_v2 = vadd.f32 %v2960_v17, %v847_v20  ;;  %v864_v18 = vadd.f32 %v2960_v17, %v849_v23 }
 0x19e   : > { %v1581_v46 = vpop.permute.xlu1 %1580  ;;  %v1576_v24 = vpop.permute.xlu0 %1575  ;;  %v928_v26 = vmul.f32 %v2952_v1, %v2837_v39  ;;  %v932_v23 = vmul.f32 %v2952_v1, %v2849_v47  ;;  %v931_v39 = vmul.f32 %v2952_v1, %v2851_v48  ;;  %v933_v43 = vmul.f32 %v2952_v1, %v2857_v52 }
 0x19f   : > { %v1619_v28 = vmul.f32 %v2970_v14, %v1581_v46  ;;  %v1618_v31 = vmul.f32 %v2970_v14, %v1576_v24  ;;  %v866_v46 = vadd.f32 %v2960_v17, %v851_v62  ;;  %v1004_v44 = vmul.f32 %v2970_v14, %v2861_v55 }
 0x1a0   : > { %v937_v47 = vadd.f32 %v928_v26, %v860_v41  ;;  %v936_v27 = vadd.f32 %v927_v29, %v859_v5  ;;  %v1003_v48 = vmul.f32 %v2970_v14, %v2863_v56  ;;  %v1005_v52 = vmul.f32 %v2970_v14, %v2869_v60 }
 0x1a1   : > { %v3140_v12 = vadd.f32 %v1619_v28, %v1555_v15  ;;  %v3142_v35 = vadd.f32 %v1618_v31, %v1554_v54  ;;  %v939_v28 = vadd.f32 %v930_v57, %v862_v2  ;;  %v1080_v5 = vmul.f32 %v3024_v61, %v2885_v7 }
 0x1a2   : > { %v1591_v19 = vpop.permute.xlu1 %1590  ;;  %v1586_v20 = vpop.permute.xlu0 %1585  ;;  %v1013_v41 = vadd.f32 %v1004_v44, %v936_v27  ;;  %v1012_v2 = vadd.f32 %v1003_v48, %v935_v21  ;;  %v1006_v60 = vmul.f32 %v2970_v14, %v2867_v59  ;;  %v1014_v29 = vadd.f32 %v1005_v52, %v937_v47 }
 0x1a3   : > { %v1621_v54 = vmul.f32 %v2970_v14, %v1591_v19  ;;  %v1620_v15 = vmul.f32 %v2970_v14, %v1586_v20  ;;  %v938_v19 = vadd.f32 %v929_v36, %v861_v9  ;;  %v940_v20 = vadd.f32 %v931_v39, %v863_v45 }
 0x1a4   : > { %v1082_v45 = vmul.f32 %v3024_v61, %v2891_v11  ;;  %v1008_v7 = vmul.f32 %v2970_v14, %v2873_v63  ;;  %v1010_v57 = vmul.f32 %v2970_v14, %v2879_v3  ;;  %v1009_v59 = vmul.f32 %v2970_v14, %v2881_v4  ;;  %v3384_v11 = vld [vmem:[#allocation5_spill] sm:$0xff] }
 0x1a5   : > { %v3166_v24 = vadd.f32 %v1621_v54, %v1557_v8  ;;  %v3169_v33 = vadd.f32 %v1620_v15, %v3083_v13  ;;  %v941_v8 = vadd.f32 %v932_v23, %v864_v18  ;;  %v943_v13 = vadd.f32 %v934_v40, %v866_v46  ;;  %v3385_v23 = vld [vmem:[#allocation6_spill] sm:$0xff]  ;;  %v3386_v46 = vld [vmem:[#allocation3_spill] sm:$0xff] }
 0x1a6   : > { %v1601_v51 = vpop.permute.xlu1 %1600  ;;  %v1596_v31 = vpop.permute.xlu0 %1595  ;;  %v942_v54 = vadd.f32 %v933_v43, %v865_v32  ;;  %v1007_v18 = vmul.f32 %v2970_v14, %v2875_v0  ;;  %v3383_v0 = vld [vmem:[#allocation4_spill] sm:$0xff]  ;;  %v1084_v36 = vmul.f32 %v3024_v61, %v3384_v11  ;;  %v1089_v15 = vadd.f32 %v1080_v5, %v1012_v2 }
 0x1a7   : > { %v1623_v62 = vmul.f32 %v2970_v14, %v1601_v51  ;;  %v1622_v55 = vmul.f32 %v2970_v14, %v1596_v31  ;;  %v1081_v21 = vmul.f32 %v3024_v61, %v3383_v0  ;;  %v1083_v63 = vmul.f32 %v3024_v61, %v3385_v23 }
 0x1a8   : > { %v1015_v3 = vadd.f32 %v1006_v60, %v938_v19  ;;  %v1016_v43 = vadd.f32 %v1007_v18, %v939_v28  ;;  %v1011_v4 = vmul.f32 %v2970_v14, %v3386_v46  ;;  %v1091_v44 = vadd.f32 %v1082_v45, %v1014_v29 }
 0x1a9   : > { %v3180_v56 = vadd.f32 %v1623_v62, %v3101_v37  ;;  %v3183_v9 = vadd.f32 %v1622_v55, %v3091_v16  ;;  %v1017_v48 = vadd.f32 %v1008_v7, %v940_v20  ;;  %v1399_v51 = vmax.f32 %v3030_v38, 0.0 }
 0x1aa   : > { %v1611_v32 = vpop.permute.xlu1 %1610  ;;  %v1606_v26 = vpop.permute.xlu0 %1605  ;;  %v1018_v62 = vadd.f32 %v1009_v59, %v941_v8  ;;  %v1090_v55 = vadd.f32 %v1081_v21, %v1013_v41  ;;  %v1098_v5 = vmax.f32 %v1089_v15, 0.0  ;;  %v1092_v19 = vadd.f32 %v1083_v63, %v1015_v3 }
 0x1ab   : > { %v1625_v37 = vmul.f32 %v2970_v14, %v1611_v32  ;;  %v1624_v16 = vmul.f32 %v2970_v14, %v1606_v26  ;;  %v1020_v60 = vadd.f32 %v1011_v4, %v943_v13  ;;  %v1100_v18 = vmax.f32 %v1091_v44, 0.0  ;;  %v3389_v44 = vld [vmem:[#allocation9_spill] sm:$0xff] }
 0x1ac   : > { %v1401_v20 = vmax.f32 %v3036_v25, 0.0  ;;  %v1400_v38 = vmax.f32 %v3039_v6, 0.0  ;;  %v1408_v26 = vmax.f32 %v1098_v5, %v1399_v51  ;;  %v1099_v29 = vmax.f32 %v1090_v55, 0.0 }
 0x1ad   : > { %v3206_v39 = vadd.f32 %v1625_v37, %v3123_v58  ;;  %v3209_v40 = vadd.f32 %v1624_v16, %v3099_v30  ;;  %v1019_v58 = vadd.f32 %v1010_v57, %v942_v54  ;;  %v1093_v30 = vadd.f32 %v1084_v36, %v1016_v43  ;;  %v3388_v37 = vld [vmem:[#allocation8_spill] sm:$0xff] }
 0x1ae   : > { %v1649_v47 = vpop.permute.xlu1 %1648  ;;  %v1616_v27 = vpop.permute.xlu0 %1615  ;;  %v1085_v13 = vmul.f32 %v3024_v61, %v3388_v37  ;;  %v1101_v16 = vmax.f32 %v1092_v19, 0.0  ;;  %v1410_v59 = vmax.f32 %v1100_v18, %v1401_v20  ;;  %v1409_v0 = vmax.f32 %v1099_v29, %v1400_v38 }
 0x1af   : > { %v1691_v31 = vmul.f32 %v3024_v61, %v1649_v47  ;;  %v1626_v52 = vmul.f32 %v2970_v14, %v1616_v27  ;;  %v1102_v7 = vmax.f32 %v1093_v30, 0.0  ;;  %v1403_v21 = vmax.f32 %v3045_v22, 0.0 }
 0x1b0   : > { %v1402_v11 = vmax.f32 %v3048_v42, 0.0  ;;  %v1094_v4 = vadd.f32 %v1085_v13, %v1017_v48  ;;  %v1405_v55 = vmax.f32 %v3054_v10, 0.0  ;;  %v1404_v48 = vmax.f32 %v3056_v34, 0.0 }
 0x1b1   : > { %v1700_v28 = vadd.f32 %v1691_v31, %v3142_v35  ;;  %v3218_v2 = vadd.f32 %v1626_v52, %v3121_v50  ;;  %v3387_v35 = vld [vmem:[#allocation7_spill] sm:$0xff]  ;;  %v1412_v31 = vmax.f32 %v1102_v7, %v1403_v21 }
 0x1b2   : > { %v1659_v45 = vpop.permute.xlu1 %1658  ;;  %v1654_v32 = vpop.permute.xlu0 %1653  ;;  %v1086_v50 = vmul.f32 %v3024_v61, %v3387_v35  ;;  %v1411_v52 = vmax.f32 %v1101_v16, %v1402_v11  ;;  %v1103_v38 = vmax.f32 %v1094_v4, 0.0 }
 0x1b3   : > { %v1709_v54 = vmax.f32 %v1700_v28, 0.0  ;;  %v1693_v8 = vmul.f32 %v3024_v61, %v1659_v45  ;;  %v1692_v41 = vmul.f32 %v3024_v61, %v1654_v32 }
 0x1b4   : > { %v1095_v46 = vadd.f32 %v1086_v50, %v1018_v62 }
 0x1b5   : > { %v3228_v25 = vmax.f32 %v1408_v26, %v1709_v54  ;;  %v1702_v6 = vadd.f32 %v1693_v8, %v3169_v33  ;;  %v1701_v57 = vadd.f32 %v1692_v41, %v3140_v12  ;;  %v1088_v33 = vmul.f32 %v3024_v61, %v3389_v44  ;;  %v3390_v12 = vld [vmem:[#allocation10_spill] sm:$0xff]  ;;  %v3391_v41 = vld [vmem:[#allocation11_spill] sm:$0xff] }
 0x1b6   : > { %v1669_v36 = vpop.permute.xlu1 %1668  ;;  %v1664_v15 = vpop.permute.xlu0 %1663  ;;  %v1087_v47 = vmul.f32 %v3024_v61, %v3390_v12  ;;  %v1104_v20 = vmax.f32 %v1095_v46, 0.0  ;;  %v1413_v54 = vmax.f32 %v1103_v38, %v1404_v48  ;;  %v1407_v8 = vmax.f32 %v3062_v53, 0.0 }
 0x1b7   : > { %v1711_v23 = vmax.f32 %v1702_v6, 0.0  ;;  %v1710_v63 = vmax.f32 %v1701_v57, 0.0  ;;  %v1695_v3 = vmul.f32 %v3024_v61, %v1669_v36  ;;  %v1694_v43 = vmul.f32 %v3024_v61, %v1664_v15 }
 0x1b8   : > { %v1097_v45 = vadd.f32 %v1088_v33, %v1020_v60  ;;  %v1414_v26 = vmax.f32 %v1104_v20, %v1405_v55  ;;  %v1406_v29 = vmax.f32 %v3391_v41, 0.0 }
 0x1b9   : > { %v3240_v27 = vmax.f32 %v1410_v59, %v1711_v23  ;;  %v3242_v22 = vmax.f32 %v1409_v0, %v1710_v63  ;;  %v1704_v42 = vadd.f32 %v1695_v3, %v3183_v9  ;;  %v1703_v51 = vadd.f32 %v1694_v43, %v3166_v24 }
 0x1ba   : > { %v1679_v62 = vpop.permute.xlu1 %1678  ;;  %v1674_v30 = vpop.permute.xlu0 %1673  ;;  %v1096_v9 = vadd.f32 %v1087_v47, %v1019_v58  ;;  %v1106_v13 = vmax.f32 %v1097_v45, 0.0 }
 0x1bb   : > { %v1713_v5 = vmax.f32 %v1704_v42, 0.0  ;;  %v1712_v19 = vmax.f32 %v1703_v51, 0.0  ;;  %v1697_v28 = vmul.f32 %v3024_v61, %v1679_v62  ;;  %v1696_v18 = vmul.f32 %v3024_v61, %v1674_v30 }
 0x1bc   : > { %v1105_v16 = vmax.f32 %v1096_v9, 0.0  ;;  %v1416_v0 = vmax.f32 %v1106_v13, %v1407_v8 }
 0x1bd   : > { %v3250_v32 = vmax.f32 %v1412_v31, %v1713_v5  ;;  %v3252_v24 = vmax.f32 %v1411_v52, %v1712_v19  ;;  %v1706_v10 = vadd.f32 %v1697_v28, %v3209_v40  ;;  %v1705_v34 = vadd.f32 %v1696_v18, %v3180_v56 }
 0x1be   : > { %v1689_v7 = vpop.permute.xlu1 %1688  ;;  %v1684_v35 = vpop.permute.xlu0 %1683  ;;  %v1415_v21 = vmax.f32 %v1105_v16, %v1406_v29 }
 0x1bf   : > { %v1715_v50 = vmax.f32 %v1706_v10, 0.0  ;;  %v1714_v37 = vmax.f32 %v1705_v34, 0.0  ;;  %v1699_v58 = vmul.f32 %v3024_v61, %v1689_v7  ;;  %v1698_v60 = vmul.f32 %v3024_v61, %v1684_v35 }
 0x1c1   : > { %v3260_v6 = vmax.f32 %v1414_v26, %v1715_v50  ;;  %v3262_v40 = vmax.f32 %v1413_v54, %v1714_v37  ;;  %v1708_v56 = vadd.f32 %v1699_v58, %v3218_v2  ;;  %v1707_v53 = vadd.f32 %v1698_v60, %v3206_v39 }
 0x1c2   : > { %v1745_v57 = vpop.permute.xlu1 %1744  ;;  %v1740_v59 = vpop.permute.xlu0 %1739 }
 0x1c3   : > { %v1717_v11 = vmax.f32 %v1708_v56, 0.0  ;;  %v1716_v36 = vmax.f32 %v1707_v53, 0.0  ;;  %v1782_v18 = vmul.f32 %v2944_v49, %v1740_v59  ;;  %v1783_v38 = vmul.f32 %v2944_v49, %v1745_v57 }
 0x1c5   : > { %v3266_v15 = vmax.f32 %v1416_v0, %v1717_v11  ;;  %v3268_v23 = vmax.f32 %v1415_v21, %v1716_v36  ;;  %v1791_v34 = vadd.f32 %v2960_v17, %v1782_v18  ;;  %v1792_v35 = vadd.f32 %v2960_v17, %v1783_v38 }
 0x1c6   : > { %v1755_v63 = vpop.permute.xlu1 %1754  ;;  %v1750_v3 = vpop.permute.xlu0 %1749 }
 0x1c7   : > { %v1785_v45 = vmul.f32 %v2944_v49, %v1755_v63  ;;  %v1784_v26 = vmul.f32 %v2944_v49, %v1750_v3 }
 0x1c9   : > { %v1794_v50 = vadd.f32 %v2960_v17, %v1785_v45  ;;  %v1793_v16 = vadd.f32 %v2960_v17, %v1784_v26 }
 0x1ca   : > { %v1765_v43 = vpop.permute.xlu1 %1764  ;;  %v1760_v46 = vpop.permute.xlu0 %1759 }
 0x1cb   : > { %v1787_v41 = vmul.f32 %v2944_v49, %v1765_v43  ;;  %v1786_v37 = vmul.f32 %v2944_v49, %v1760_v46 }
 0x1cd   : > { %v1796_v36 = vadd.f32 %v2960_v17, %v1787_v41  ;;  %v1795_v46 = vadd.f32 %v2960_v17, %v1786_v37 }
 0x1ce   : > { %v1775_v4 = vpop.permute.xlu1 %1774  ;;  %v1770_v44 = vpop.permute.xlu0 %1769 }
 0x1cf   : > { %v1789_v59 = vmul.f32 %v2944_v49, %v1775_v4  ;;  %v1788_v0 = vmul.f32 %v2944_v49, %v1770_v44 }
 0x1d2   : > { %v1813_v33 = vpop.permute.xlu1 %1812  ;;  %v1780_v2 = vpop.permute.xlu0 %1779 }
 0x1d3   : > { %v1855_v20 = vmul.f32 %v2952_v1, %v1813_v33  ;;  %v1790_v21 = vmul.f32 %v2944_v49, %v1780_v2 }
 0x1d5   : > { %v1864_v29 = vadd.f32 %v1855_v20, %v1791_v34 }
 0x1d6   : > { %v1823_v12 = vpop.permute.xlu1 %1822  ;;  %v1818_v39 = vpop.permute.xlu0 %1817 }
 0x1d7   : > { %v1856_v8 = vmul.f32 %v2952_v1, %v1818_v39  ;;  %v1857_v7 = vmul.f32 %v2952_v1, %v1823_v12 }
 0x1d9   : > { %v1865_v11 = vadd.f32 %v1856_v8, %v1792_v35  ;;  %v1866_v63 = vadd.f32 %v1857_v7, %v1793_v16 }
 0x1da   : > { %v1833_v47 = vpop.permute.xlu1 %1832  ;;  %v1828_v42 = vpop.permute.xlu0 %1827 }
 0x1db   : > { %v1858_v3 = vmul.f32 %v2952_v1, %v1828_v42  ;;  %v1859_v33 = vmul.f32 %v2952_v1, %v1833_v47  ;;  %v1798_v42 = vadd.f32 %v2960_v17, %v1789_v59  ;;  %v1797_v47 = vadd.f32 %v2960_v17, %v1788_v0 }
 0x1dd   : > { %v1867_v18 = vadd.f32 %v1858_v3, %v1794_v50  ;;  %v1868_v45 = vadd.f32 %v1859_v33, %v1795_v46 }
 0x1de   : > { %v1843_v51 = vpop.permute.xlu1 %1842  ;;  %v3270_v31 = vpop.permute.xlu0 %1837 }
 0x1df   : > { %v1861_v12 = vmul.f32 %v2952_v1, %v1843_v51  ;;  %v1799_v51 = vadd.f32 %v2960_v17, %v1790_v21  ;;  %v1860_v26 = vmul.f32 %v2952_v1, %v3270_v31 }
 0x1e1   : > { %v1870_v34 = vadd.f32 %v1861_v12, %v1797_v47 }
 0x1e2   : > { %v3272_v52 = vpop.permute.xlu1 %1852  ;;  %v3274_v55 = vpop.permute.xlu0 %1847 }
 0x1e3   : > { %v1863_v35 = vmul.f32 %v2952_v1, %v3272_v52  ;;  %v1862_v50 = vmul.f32 %v2952_v1, %v3274_v55 }
 0x1e5   : > { %v1871_v0 = vadd.f32 %v1862_v50, %v1798_v42 }
 0x1e6   : > { %v1891_v48 = vpop.permute.xlu1 %1890  ;;  %v1886_v62 = vpop.permute.xlu0 %1885 }
 0x1e7   : > { %v1928_v54 = vmul.f32 %v2970_v14, %v1886_v62  ;;  %v1929_v58 = vmul.f32 %v2970_v14, %v1891_v48 }
 0x1e9   : > { %v1937_v56 = vadd.f32 %v1928_v54, %v1864_v29  ;;  %v1938_v4 = vadd.f32 %v1929_v58, %v1865_v11  ;;  %v1872_v11 = vadd.f32 %v1863_v35, %v1799_v51 }
 0x1ea   : > { %v1901_v30 = vpop.permute.xlu1 %1900  ;;  %v1896_v5 = vpop.permute.xlu0 %1895 }
 0x1eb   : > { %v1930_v53 = vmul.f32 %v2970_v14, %v1896_v5  ;;  %v1931_v48 = vmul.f32 %v2970_v14, %v1901_v30 }
 0x1ed   : > { %v1939_v62 = vadd.f32 %v1930_v53, %v1866_v63  ;;  %v1940_v29 = vadd.f32 %v1931_v48, %v1867_v18 }
 0x1ee   : > { %v3276_v19 = vpop.permute.xlu1 %1910  ;;  %v1906_v28 = vpop.permute.xlu0 %1905 }
 0x1ef   : > { %v1932_v5 = vmul.f32 %v2970_v14, %v1906_v28  ;;  %v1933_v31 = vmul.f32 %v2970_v14, %v3276_v19 }
 0x1f1   : > { %v1941_v37 = vadd.f32 %v1932_v5, %v1868_v45 }
 0x1f2   : > { %v3282_v9 = vpop.permute.xlu1 %1920  ;;  %v1916_v10 = vpop.permute.xlu0 %1915 }
 0x1f3   : > { %v1934_v54 = vmul.f32 %v2970_v14, %v1916_v10  ;;  %v1935_v53 = vmul.f32 %v2970_v14, %v3282_v9 }
 0x1f6   : > { %v1959_v60 = vpop.permute.xlu1 %1958  ;;  %v1926_v13 = vpop.permute.xlu0 %1925 }
 0x1f7   : > { %v2001_v57 = vmul.f32 %v3024_v61, %v1959_v60 }
 0x1f9   : > { %v2010_v43 = vadd.f32 %v2001_v57, %v1937_v56  ;;  %v1869_v56 = vadd.f32 %v1860_v26, %v1796_v36  ;;  %v1943_v57 = vadd.f32 %v1934_v54, %v1870_v34 }
 0x1fa   : > { %v1969_v39 = vpop.permute.xlu1 %1968  ;;  %v1964_v44 = vpop.permute.xlu0 %1963 }
 0x1fb   : > { %v2003_v49 = vmul.f32 %v3024_v61, %v1969_v39  ;;  %v2002_v2 = vmul.f32 %v3024_v61, %v1964_v44  ;;  %v2019_v20 = vmax.f32 %v2010_v43, 0.0  ;;  %v1942_v21 = vadd.f32 %v1933_v31, %v1869_v56 }
 0x1fc   : > { %v1944_v43 = vadd.f32 %v1935_v53, %v1871_v0 }
 0x1fd   : > { %v2012_v30 = vadd.f32 %v2003_v49, %v1939_v62  ;;  %v2011_v38 = vadd.f32 %v2002_v2, %v1938_v4  ;;  %v2028_v10 = vmax.f32 %v3228_v25, %v2019_v20  ;;  %v1936_v25 = vmul.f32 %v2970_v14, %v1926_v13 }
 0x1fe   : > { %v1979_v8 = vpop.permute.xlu1 %1978  ;;  %v1974_v41 = vpop.permute.xlu0 %1973 }
 0x1ff   : > { %v2020_v7 = vmax.f32 %v2011_v38, 0.0  ;;  %v2005_v17 = vmul.f32 %v3024_v61, %v1979_v8  ;;  %v2004_v28 = vmul.f32 %v3024_v61, %v1974_v41  ;;  %v2021_v58 = vmax.f32 %v2012_v30, 0.0 }
 0x200   : > { %v1945_v12 = vadd.f32 %v1936_v25, %v1872_v11 }
 0x201   : > { %v2029_v60 = vmax.f32 %v3242_v22, %v2020_v7  ;;  %v2013_v16 = vadd.f32 %v2004_v28, %v1940_v29  ;;  %v2014_v1 = vadd.f32 %v2005_v17, %v1941_v37  ;;  %v2030_v36 = vmax.f32 %v3240_v27, %v2021_v58 }
 0x202   : > { %v1989_v52 = vpop.permute.xlu1 %1988  ;;  %v1984_v55 = vpop.permute.xlu0 %1983 }
 0x203   : > { %v2316_v19 = vpack.c.bf16 %v2029_v60, %v2028_v10  ;;  %v2022_v59 = vmax.f32 %v2013_v16, 0.0  ;;  %v2007_v22 = vmul.f32 %v3024_v61, %v1989_v52  ;;  %v2006_v9 = vmul.f32 %v3024_v61, %v1984_v55 }
 0x204   : > { %v2023_v46 = vmax.f32 %v2014_v1, 0.0 }
 0x205   : > { %2317 = vst [vmem:[%s3341_s20] sm:$0xff] %v2316_v19   ;;  %v2031_v63 = vmax.f32 %v3252_v24, %v2022_v59  ;;  %v2016_v3 = vadd.f32 %v2007_v22, %v1943_v57  ;;  %v2015_v33 = vadd.f32 %v2006_v9, %v1942_v21 }
 0x206   : > { %v1999_v14 = vpop.permute.xlu1 %1998  ;;  %v1994_v13 = vpop.permute.xlu0 %1993  ;;  %v2032_v49 = vmax.f32 %v3250_v32, %v2023_v46 }
 0x207   : > { %v2321_v4 = vpack.c.bf16 %v2031_v63, %v2030_v36  ;;  %v2009_v39 = vmul.f32 %v3024_v61, %v1999_v14  ;;  %v2008_v44 = vmul.f32 %v3024_v61, %v1994_v13  ;;  %v2024_v48 = vmax.f32 %v2015_v33, 0.0 }
 0x208   : > { %v2025_v27 = vmax.f32 %v2016_v3, 0.0 }
 0x209   : > { %2333 = vst [vmem:[%s3341_s20 + $0x8] sm:$0xff] %v2321_v4   ;;  %v2018_v62 = vadd.f32 %v2009_v39, %v1945_v12  ;;  %v2017_v24 = vadd.f32 %v2008_v44, %v1944_v43  ;;  %v2033_v2 = vmax.f32 %v3262_v40, %v2024_v48 }
 0x20a   : > { %v2034_v5 = vmax.f32 %v3260_v6, %v2025_v27 }
 0x20b   : > { %v2027_v42 = vmax.f32 %v2018_v62, 0.0  ;;  %v2026_v47 = vmax.f32 %v2017_v24, 0.0  ;;  %v2326_v51 = vpack.c.bf16 %v2033_v2, %v2032_v49 }
 0x20d   : > { %v2036_v18 = vmax.f32 %v3266_v15, %v2027_v42  ;;  %v2035_v61 = vmax.f32 %v3268_v23, %v2026_v47  ;;  %2334 = vst [vmem:[%s3341_s20 + $0x10] sm:$0xff] %v2326_v51  }
 0x20f   : > { %v2312_v20 = vpack.c.bf16 %v2036_v18, %v2036_v18  ;;  %v2331_v30 = vpack.c.bf16 %v2035_v61, %v2034_v5 }
 0x211   : > { %2082 = vst [vmem:[%s3341_s20 + $0x20] sm:$0xf] %v2312_v20  ;;  %2335 = vst [vmem:[%s3341_s20 + $0x18] sm:$0xff] %v2331_v30  }
 0x212 PF: > { %p10_p9 = scmp.ge.s32.totalorder %s2427_s16, 5   ;;  %s3392_s12 = smov %s2383_s13 }
 0x213   : > { %s3393_s13 = smov %s2436_s19  ;;  %s3394_s14 = smov %s2427_s16 }
 0x214   :  { %12 = sbr.rel (!%p10_p9) target bundleno = 2 (0x2), region = 120 }

// kernel: cnn_forward.4
= control target key start
LH: loop header
LB: loop body
LE: loop exit
PB: predicated region body
PF: predicated region fallthrough
CT: control target
= control target key end

     0   :  { %s2717_s1 = inlined_call_operand.vmem [shape: bf16[256,512], index: 1, kind: input, shape index: {}]   ;;  %s2718_s0 = inlined_call_operand.vmem [shape: bf16[216,512], index: 0, kind: input, shape index: {}]   ;;  %s2719_s2 = inlined_call_operand.vmem [shape: f32[1,256], index: 2, kind: input, shape index: {}]   ;;  %s2720_s3 = inlined_call_operand.vmem [shape: f32[1,256], index: 3, kind: input, shape index: {}]   ;;  %s2721_s4 = inlined_call_operand.vmem [shape: bf16[216,256], index: 4, kind: output, shape index: {}]  }
   0x1   :  { %v1957_v0 = vld [vmem:[%s2717_s1 + $0x4] ss:$16 sps:$4 sm:$0xff]   ;;  %v1959_v1 = vld [vmem:[%s2717_s1 + $0xc] ss:$16 sps:$4 sm:$0xff]   ;;  %v1961_v2 = vld [vmem:[%s2717_s1] ss:$16 sps:$4 sm:$0xff]  }
   0x2   :  { %841 = vmatprep.subr.bf16.mxu1 %v1957_v0  ;;  %v1962_v3 = vld [vmem:[%s2717_s1 + $0x8] ss:$16 sps:$4 sm:$0xff]   ;;  %1012 = vmatprep.subr.bf16.mxu0 %v1959_v1  ;;  %v1963_v4 = vld [vmem:[%s2717_s1 + $0x24] ss:$16 sps:$4 sm:$0xff]   ;;  %v1965_v5 = vld [vmem:[%s2717_s1 + $0x2c] ss:$16 sps:$4 sm:$0xff]  }
   0x3   :  { %842 = vmatpush1.bf16.xpose.msra.mxu1 %v1961_v2  ;;  %1013 = vmatpush1.bf16.xpose.msra.mxu0 %v1962_v3  ;;  %v1967_v6 = vld [vmem:[%s2717_s1 + $0x20] ss:$16 sps:$4 sm:$0xff]   ;;  %v1968_v7 = vld [vmem:[%s2717_s1 + $0x28] ss:$16 sps:$4 sm:$0xff]   ;;  %v1969_v8 = vld [vmem:[%s2717_s1 + $0x44] ss:$16 sps:$4 sm:$0xff]  }
   0x4   :  { %843 = vmatprep.subr.bf16.mxu1 %v1963_v4  ;;  %1014 = vmatprep.subr.bf16.mxu0 %v1965_v5  ;;  %v1971_v9 = vld [vmem:[%s2717_s1 + $0x4c] ss:$16 sps:$4 sm:$0xff]   ;;  %v1973_v10 = vld [vmem:[%s2717_s1 + $0x40] ss:$16 sps:$4 sm:$0xff]   ;;  %v1974_v11 = vld [vmem:[%s2717_s1 + $0x48] ss:$16 sps:$4 sm:$0xff]  }
   0x5   :  { %v1975_v12 = vld [vmem:[%s2717_s1 + $0x64] ss:$16 sps:$4 sm:$0xff]   ;;  %v1977_v13 = vld [vmem:[%s2717_s1 + $0x6c] ss:$16 sps:$4 sm:$0xff]   ;;  %v1979_v14 = vld [vmem:[%s2717_s1 + $0x60] ss:$16 sps:$4 sm:$0xff]  }
   0x6   :  { %v1980_v15 = vld [vmem:[%s2717_s1 + $0x68] ss:$16 sps:$4 sm:$0xff]   ;;  %v1981_v16 = vld [vmem:[%s2717_s1 + $0x84] ss:$16 sps:$4 sm:$0xff]   ;;  %v1983_v17 = vld [vmem:[%s2717_s1 + $0x8c] ss:$16 sps:$4 sm:$0xff]  }
   0x7   :  { %v1985_v18 = vld [vmem:[%s2717_s1 + $0x80] ss:$16 sps:$4 sm:$0xff]   ;;  %v1986_v19 = vld [vmem:[%s2717_s1 + $0x88] ss:$16 sps:$4 sm:$0xff]   ;;  %v1987_v20 = vld [vmem:[%s2717_s1 + $0xa4] ss:$16 sps:$4 sm:$0xff]  }
   0x8   :  { %v1989_v21 = vld [vmem:[%s2717_s1 + $0xac] ss:$16 sps:$4 sm:$0xff]   ;;  %v1991_v22 = vld [vmem:[%s2717_s1 + $0xa0] ss:$16 sps:$4 sm:$0xff]   ;;  %v1992_v23 = vld [vmem:[%s2717_s1 + $0xa8] ss:$16 sps:$4 sm:$0xff]  }
   0x9   :  { %v1993_v24 = vld [vmem:[%s2717_s1 + $0xc4] ss:$16 sps:$4 sm:$0xff]   ;;  %v1995_v25 = vld [vmem:[%s2717_s1 + $0xcc] ss:$16 sps:$4 sm:$0xff]   ;;  %v1997_v28 = vld [vmem:[%s2717_s1 + $0xc0] ss:$16 sps:$4 sm:$0xff]  }
   0xa   :  { %v2055_v26 = vld [vmem:[%s2718_s0 + $0x4] ss:$16 sps:$4 sm:$0xff]   ;;  %v2058_v27 = vld [vmem:[%s2718_s0 + $0xc] ss:$16 sps:$4 sm:$0xff]   ;;  %v1998_v29 = vld [vmem:[%s2717_s1 + $0xc8] ss:$16 sps:$4 sm:$0xff]  }
   0xb   :  { %844 = vmatpush1.bf16.xpose.msra.mxu1 %v1967_v6  ;;  %1015 = vmatpush1.bf16.xpose.msra.mxu0 %v1968_v7  ;;  %v1999_v30 = vld [vmem:[%s2717_s1 + $0xe4] ss:$16 sps:$4 sm:$0xff]   ;;  %v2001_v31 = vld [vmem:[%s2717_s1 + $0xec] ss:$16 sps:$4 sm:$0xff]   ;;  %v2003_v32 = vld [vmem:[%s2717_s1 + $0xe0] ss:$16 sps:$4 sm:$0xff]  }
   0xc   :  { %845 = vmatprep.subr.bf16.mxu1 %v1969_v8  ;;  %1016 = vmatprep.subr.bf16.mxu0 %v1971_v9  ;;  %v2004_v33 = vld [vmem:[%s2717_s1 + $0xe8] ss:$16 sps:$4 sm:$0xff]   ;;  %v2005_v34 = vld [vmem:[%s2717_s1 + $0x104] ss:$16 sps:$4 sm:$0xff]   ;;  %v2007_v35 = vld [vmem:[%s2717_s1 + $0x10c] ss:$16 sps:$4 sm:$0xff]  }
   0xd   :  { %873 = vmatprep.mubr.bf16.mxu1 %v2055_v26  ;;  %1044 = vmatprep.mubr.bf16.mxu0 %v2058_v27  ;;  %v2009_v36 = vld [vmem:[%s2717_s1 + $0x100] ss:$16 sps:$4 sm:$0xff]   ;;  %v2010_v37 = vld [vmem:[%s2717_s1 + $0x108] ss:$16 sps:$4 sm:$0xff]   ;;  %v2011_v38 = vld [vmem:[%s2717_s1 + $0x124] ss:$16 sps:$4 sm:$0xff]  }
   0xe   :  { %v2013_v39 = vld [vmem:[%s2717_s1 + $0x12c] ss:$16 sps:$4 sm:$0xff]   ;;  %v2015_v40 = vld [vmem:[%s2717_s1 + $0x120] ss:$16 sps:$4 sm:$0xff]   ;;  %v2016_v41 = vld [vmem:[%s2717_s1 + $0x128] ss:$16 sps:$4 sm:$0xff]  }
   0xf   :  { %v2017_v42 = vld [vmem:[%s2717_s1 + $0x144] ss:$16 sps:$4 sm:$0xff]   ;;  %v2019_v43 = vld [vmem:[%s2717_s1 + $0x14c] ss:$16 sps:$4 sm:$0xff]   ;;  %v2021_v44 = vld [vmem:[%s2717_s1 + $0x140] ss:$16 sps:$4 sm:$0xff]  }
  0x10   :  { %v2022_v45 = vld [vmem:[%s2717_s1 + $0x148] ss:$16 sps:$4 sm:$0xff]   ;;  %v2023_v46 = vld [vmem:[%s2717_s1 + $0x164] ss:$16 sps:$4 sm:$0xff]   ;;  %v2025_v47 = vld [vmem:[%s2717_s1 + $0x16c] ss:$16 sps:$4 sm:$0xff]  }
  0x11   :  { %v2027_v48 = vld [vmem:[%s2717_s1 + $0x160] ss:$16 sps:$4 sm:$0xff]   ;;  %v2028_v49 = vld [vmem:[%s2717_s1 + $0x168] ss:$16 sps:$4 sm:$0xff]   ;;  %v2029_v50 = vld [vmem:[%s2717_s1 + $0x184] ss:$16 sps:$4 sm:$0xff]  }
  0x12   :  { %v2031_v51 = vld [vmem:[%s2717_s1 + $0x18c] ss:$16 sps:$4 sm:$0xff]   ;;  %v2033_v52 = vld [vmem:[%s2717_s1 + $0x180] ss:$16 sps:$4 sm:$0xff]   ;;  %v2034_v53 = vld [vmem:[%s2717_s1 + $0x188] ss:$16 sps:$4 sm:$0xff]  }
  0x13   :  { %846 = vmatpush1.bf16.xpose.msra.mxu1 %v1973_v10  ;;  %1017 = vmatpush1.bf16.xpose.msra.mxu0 %v1974_v11  ;;  %v2035_v54 = vld [vmem:[%s2717_s1 + $0x1a4] ss:$16 sps:$4 sm:$0xff]   ;;  %v2037_v55 = vld [vmem:[%s2717_s1 + $0x1ac] ss:$16 sps:$4 sm:$0xff]   ;;  %v2039_v56 = vld [vmem:[%s2717_s1 + $0x1a0] ss:$16 sps:$4 sm:$0xff]  }
  0x14   :  { %847 = vmatprep.subr.bf16.mxu1 %v1975_v12  ;;  %1018 = vmatprep.subr.bf16.mxu0 %v1977_v13  ;;  %v2040_v57 = vld [vmem:[%s2717_s1 + $0x1a8] ss:$16 sps:$4 sm:$0xff]   ;;  %v2041_v58 = vld [vmem:[%s2717_s1 + $0x1c4] ss:$16 sps:$4 sm:$0xff]   ;;  %v2043_v59 = vld [vmem:[%s2717_s1 + $0x1cc] ss:$16 sps:$4 sm:$0xff]  }
  0x15   :  { %v2045_v60 = vld [vmem:[%s2717_s1 + $0x1c0] ss:$16 sps:$4 sm:$0xff]   ;;  %v2046_v61 = vld [vmem:[%s2717_s1 + $0x1c8] ss:$16 sps:$4 sm:$0xff]   ;;  %v2047_v62 = vld [vmem:[%s2717_s1 + $0x1e4] ss:$16 sps:$4 sm:$0xff]  }
  0x16   :  { %v2049_v63 = vld [vmem:[%s2717_s1 + $0x1ec] ss:$16 sps:$4 sm:$0xff]   ;;  %v2051_v0 = vld [vmem:[%s2717_s1 + $0x1e0] ss:$16 sps:$4 sm:$0xff]   ;;  %v2052_v1 = vld [vmem:[%s2717_s1 + $0x1e8] ss:$16 sps:$4 sm:$0xff]  }
  0x17   :  { %v2053_v2 = vld [vmem:[%s2718_s0] ss:$16 sps:$4 sm:$0xff]   ;;  %v2056_v3 = vld [vmem:[%s2718_s0 + $0x8] ss:$16 sps:$4 sm:$0xff]   ;;  %v2059_v4 = vld [vmem:[%s2718_s0 + $0x24] ss:$16 sps:$4 sm:$0xff]  }
  0x18   :  { %v2061_v5 = vld [vmem:[%s2718_s0 + $0x2c] ss:$16 sps:$4 sm:$0xff]   ;;  %v2063_v6 = vld [vmem:[%s2718_s0 + $0x20] ss:$16 sps:$4 sm:$0xff]   ;;  %v2064_v7 = vld [vmem:[%s2718_s0 + $0x28] ss:$16 sps:$4 sm:$0xff]  }
  0x19   :  { %v2065_v8 = vld [vmem:[%s2718_s0 + $0x44] ss:$16 sps:$4 sm:$0xff]   ;;  %v2067_v9 = vld [vmem:[%s2718_s0 + $0x4c] ss:$16 sps:$4 sm:$0xff]   ;;  %v2069_v10 = vld [vmem:[%s2718_s0 + $0x40] ss:$16 sps:$4 sm:$0xff]  }
  0x1a   :  { %v2070_v11 = vld [vmem:[%s2718_s0 + $0x48] ss:$16 sps:$4 sm:$0xff]   ;;  %v2071_v12 = vld [vmem:[%s2718_s0 + $0x64] ss:$16 sps:$4 sm:$0xff]   ;;  %v2073_v13 = vld [vmem:[%s2718_s0 + $0x6c] ss:$16 sps:$4 sm:$0xff]  }
  0x1b   :  { %848 = vmatpush1.bf16.xpose.msra.mxu1 %v1979_v14  ;;  %1019 = vmatpush1.bf16.xpose.msra.mxu0 %v1980_v15  ;;  %v2075_v14 = vld [vmem:[%s2718_s0 + $0x60] ss:$16 sps:$4 sm:$0xff]   ;;  %v2076_v15 = vld [vmem:[%s2718_s0 + $0x68] ss:$16 sps:$4 sm:$0xff]  }
  0x1c   :  { %849 = vmatprep.subr.bf16.mxu1 %v1981_v16  ;;  %1020 = vmatprep.subr.bf16.mxu0 %v1983_v17  ;;  %v2077_v16 = vld [vmem:[%s2718_s0 + $0x84] ss:$16 sps:$4 sm:$0xff]   ;;  %v2079_v17 = vld [vmem:[%s2718_s0 + $0x8c] ss:$16 sps:$4 sm:$0xff]   ;;  %v2093_v26 = vld [vmem:[%s2718_s0 + $0xc0] ss:$16 sps:$4 sm:$0xff]  }
  0x1d   :  { %v2094_v27 = vld [vmem:[%s2718_s0 + $0xc8] ss:$16 sps:$4 sm:$0xff]  }
  0x23   :  { %850 = vmatpush1.bf16.xpose.msra.mxu1 %v1985_v18  ;;  %1021 = vmatpush1.bf16.xpose.msra.mxu0 %v1986_v19  ;;  %v2081_v18 = vld [vmem:[%s2718_s0 + $0x80] ss:$16 sps:$4 sm:$0xff]   ;;  %v2082_v19 = vld [vmem:[%s2718_s0 + $0x88] ss:$16 sps:$4 sm:$0xff]  }
  0x24   :  { %851 = vmatprep.subr.bf16.mxu1 %v1987_v20  ;;  %1022 = vmatprep.subr.bf16.mxu0 %v1989_v21  ;;  %v2083_v20 = vld [vmem:[%s2718_s0 + $0xa4] ss:$16 sps:$4 sm:$0xff]   ;;  %v2085_v21 = vld [vmem:[%s2718_s0 + $0xac] ss:$16 sps:$4 sm:$0xff]  }
  0x2b   :  { %852 = vmatpush1.bf16.xpose.msra.mxu1 %v1991_v22  ;;  %1023 = vmatpush1.bf16.xpose.msra.mxu0 %v1992_v23  ;;  %v2087_v22 = vld [vmem:[%s2718_s0 + $0xa0] ss:$16 sps:$4 sm:$0xff]   ;;  %v2088_v23 = vld [vmem:[%s2718_s0 + $0xa8] ss:$16 sps:$4 sm:$0xff]  }
  0x2c   :  { %853 = vmatprep.subr.bf16.mxu1 %v1993_v24  ;;  %1024 = vmatprep.subr.bf16.mxu0 %v1995_v25  ;;  %v2089_v24 = vld [vmem:[%s2718_s0 + $0xc4] ss:$16 sps:$4 sm:$0xff]   ;;  %v2091_v25 = vld [vmem:[%s2718_s0 + $0xcc] ss:$16 sps:$4 sm:$0xff]  }
  0x33   :  { %854 = vmatpush1.bf16.xpose.msra.mxu1 %v1997_v28  ;;  %1025 = vmatpush1.bf16.xpose.msra.mxu0 %v1998_v29  ;;  %v2095_v28 = vld [vmem:[%s2718_s0 + $0xe4] ss:$16 sps:$4 sm:$0xff]   ;;  %v2097_v29 = vld [vmem:[%s2718_s0 + $0xec] ss:$16 sps:$4 sm:$0xff]  }
  0x34   :  { %855 = vmatprep.subr.bf16.mxu1 %v1999_v30  ;;  %1026 = vmatprep.subr.bf16.mxu0 %v2001_v31  ;;  %v2099_v30 = vld [vmem:[%s2718_s0 + $0xe0] ss:$16 sps:$4 sm:$0xff]   ;;  %v2100_v31 = vld [vmem:[%s2718_s0 + $0xe8] ss:$16 sps:$4 sm:$0xff]  }
  0x3b   :  { %856 = vmatpush1.bf16.xpose.msra.mxu1 %v2003_v32  ;;  %1027 = vmatpush1.bf16.xpose.msra.mxu0 %v2004_v33  ;;  %v2101_v32 = vld [vmem:[%s2718_s0 + $0x104] ss:$16 sps:$4 sm:$0xff]   ;;  %v2103_v33 = vld [vmem:[%s2718_s0 + $0x10c] ss:$16 sps:$4 sm:$0xff]  }
  0x3c   :  { %857 = vmatprep.subr.bf16.mxu1 %v2005_v34  ;;  %1028 = vmatprep.subr.bf16.mxu0 %v2007_v35  ;;  %v2105_v34 = vld [vmem:[%s2718_s0 + $0x100] ss:$16 sps:$4 sm:$0xff]   ;;  %v2106_v35 = vld [vmem:[%s2718_s0 + $0x108] ss:$16 sps:$4 sm:$0xff]  }
  0x43   :  { %858 = vmatpush1.bf16.xpose.msra.mxu1 %v2009_v36  ;;  %1029 = vmatpush1.bf16.xpose.msra.mxu0 %v2010_v37  ;;  %v2107_v36 = vld [vmem:[%s2718_s0 + $0x124] ss:$16 sps:$4 sm:$0xff]   ;;  %v2109_v37 = vld [vmem:[%s2718_s0 + $0x12c] ss:$16 sps:$4 sm:$0xff]  }
  0x44   :  { %859 = vmatprep.subr.bf16.mxu1 %v2011_v38  ;;  %1030 = vmatprep.subr.bf16.mxu0 %v2013_v39  ;;  %v2111_v38 = vld [vmem:[%s2718_s0 + $0x120] ss:$16 sps:$4 sm:$0xff]   ;;  %v2112_v39 = vld [vmem:[%s2718_s0 + $0x128] ss:$16 sps:$4 sm:$0xff]  }
  0x4b   :  { %860 = vmatpush1.bf16.xpose.msra.mxu1 %v2015_v40  ;;  %1031 = vmatpush1.bf16.xpose.msra.mxu0 %v2016_v41  ;;  %v2113_v40 = vld [vmem:[%s2718_s0 + $0x144] ss:$16 sps:$4 sm:$0xff]   ;;  %v2115_v41 = vld [vmem:[%s2718_s0 + $0x14c] ss:$16 sps:$4 sm:$0xff]  }
  0x4c   :  { %861 = vmatprep.subr.bf16.mxu1 %v2017_v42  ;;  %1032 = vmatprep.subr.bf16.mxu0 %v2019_v43  ;;  %v2117_v42 = vld [vmem:[%s2718_s0 + $0x140] ss:$16 sps:$4 sm:$0xff]   ;;  %v2118_v43 = vld [vmem:[%s2718_s0 + $0x148] ss:$16 sps:$4 sm:$0xff]  }
  0x53   :  { %862 = vmatpush1.bf16.xpose.msra.mxu1 %v2021_v44  ;;  %1033 = vmatpush1.bf16.xpose.msra.mxu0 %v2022_v45  ;;  %v2119_v44 = vld [vmem:[%s2718_s0 + $0x164] ss:$16 sps:$4 sm:$0xff]   ;;  %v2121_v45 = vld [vmem:[%s2718_s0 + $0x16c] ss:$16 sps:$4 sm:$0xff]  }
  0x54   :  { %863 = vmatprep.subr.bf16.mxu1 %v2023_v46  ;;  %1034 = vmatprep.subr.bf16.mxu0 %v2025_v47  ;;  %v2123_v46 = vld [vmem:[%s2718_s0 + $0x160] ss:$16 sps:$4 sm:$0xff]   ;;  %v2124_v47 = vld [vmem:[%s2718_s0 + $0x168] ss:$16 sps:$4 sm:$0xff]  }
  0x5b   :  { %864 = vmatpush1.bf16.xpose.msra.mxu1 %v2027_v48  ;;  %1035 = vmatpush1.bf16.xpose.msra.mxu0 %v2028_v49  ;;  %v2125_v48 = vld [vmem:[%s2718_s0 + $0x184] ss:$16 sps:$4 sm:$0xff]   ;;  %v2127_v49 = vld [vmem:[%s2718_s0 + $0x18c] ss:$16 sps:$4 sm:$0xff]  }
  0x5c   :  { %865 = vmatprep.subr.bf16.mxu1 %v2029_v50  ;;  %1036 = vmatprep.subr.bf16.mxu0 %v2031_v51  ;;  %v181_v50 = vld [vmem:[%s2718_s0 + $0x1a0] sm:$0xff]  ;;  %v182_v51 = vld [vmem:[%s2718_s0 + $0x1a8] sm:$0xff] }
  0x63   :  { %866 = vmatpush1.bf16.xpose.msra.mxu1 %v2033_v52  ;;  %1037 = vmatpush1.bf16.xpose.msra.mxu0 %v2034_v53  ;;  %v2129_v52 = vld [vmem:[%s2718_s0 + $0x180] ss:$16 sps:$4 sm:$0xff]   ;;  %v2130_v53 = vld [vmem:[%s2718_s0 + $0x188] ss:$16 sps:$4 sm:$0xff]  }
  0x64   :  { %867 = vmatprep.subr.bf16.mxu1 %v2035_v54  ;;  %1038 = vmatprep.subr.bf16.mxu0 %v2037_v55  ;;  %v1782_v54 = vcombine.high %v181_v50, %v181_v50  ;;  %v1784_v55 = vcombine.high %v182_v51, %v182_v51 }
  0x6b   :  { %868 = vmatpush1.bf16.xpose.msra.mxu1 %v2039_v56  ;;  %1039 = vmatpush1.bf16.xpose.msra.mxu0 %v2040_v57  ;;  %v1781_v56 = vcombine.low %v181_v50, %v181_v50  ;;  %v1783_v57 = vcombine.low %v182_v51, %v182_v51 }
  0x6c   :  { %869 = vmatprep.subr.bf16.mxu1 %v2041_v58  ;;  %1040 = vmatprep.subr.bf16.mxu0 %v2043_v59  ;;  %v1350_v58 = vlaneseq }
  0x6e   :  { %v1351_v59 = vshrl.u32 %v1350_v58, 7 }
  0x73   :  { %870 = vmatpush1.bf16.xpose.msra.mxu1 %v2045_v60  ;;  %1041 = vmatpush1.bf16.xpose.msra.mxu0 %v2046_v61  ;;  %v1352_v60 = vsub.s32 0, %v1351_v59  ;;  %v1348_v61 = vld [vmem:[%s2719_s2] sm:$0x3] }
  0x74   :  { %871 = vmatprep.subr.bf16.mxu1 %v2047_v62  ;;  %1042 = vmatprep.subr.bf16.mxu0 %v2049_v63  ;;  %v1356_v62 = vsub.s32 1, %v1351_v59  ;;  %v1414_v63 = vld [vmem:[%s2720_s3] sm:$0x3] }
  0x7b   :  { %872 = vmatpush1.bf16.xpose.msra.mxu1 %v2051_v0  ;;  %1043 = vmatpush1.bf16.xpose.msra.mxu0 %v2052_v1  ;;  %v2520_v0 = vrot.slane %v1348_v61, %v1352_v60 }
  0x82   :  { %874 = vmatmul.mubr.bf16.vlgmr.msra.gmra.mrb[0].mxu1 %v2053_v2  ;;  %1045 = vmatmul.mubr.bf16.vlgmr.msra.gmra.mrb[0].mxu0 %v2056_v3  ;;  %v2522_v3 = vrot.slane %v1348_v61, %v1356_v62 }
  0x83   :  { %883 = vmatprep.mubr.bf16.mxu1 %v2059_v4  ;;  %1054 = vmatprep.mubr.bf16.mxu0 %v2061_v5  ;;  %v2524_v5 = vrot.slane %v1414_v63, %v1352_v60 }
  0x8a   :  { %884 = vmatmul.mubr.bf16.gmra.mrb[4].mxu1 %v2063_v6  ;;  %1055 = vmatmul.mubr.bf16.gmra.mrb[4].mxu0 %v2064_v7 }
  0x8b   :  { %893 = vmatprep.mubr.bf16.mxu1 %v2065_v8  ;;  %1064 = vmatprep.mubr.bf16.mxu0 %v2067_v9  ;;  %v2526_v9 = vrot.slane %v1414_v63, %v1356_v62 }
  0x92   :  { %894 = vmatmul.mubr.bf16.gmra.mrb[8].mxu1 %v2069_v10  ;;  %1065 = vmatmul.mubr.bf16.gmra.mrb[8].mxu0 %v2070_v11 }
  0x93   :  { %903 = vmatprep.mubr.bf16.mxu1 %v2071_v12  ;;  %1074 = vmatprep.mubr.bf16.mxu0 %v2073_v13 }
  0x9a   :  { %904 = vmatmul.mubr.bf16.gmra.mrb[12].mxu1 %v2075_v14  ;;  %1075 = vmatmul.mubr.bf16.gmra.mrb[12].mxu0 %v2076_v15 }
  0x9b   :  { %913 = vmatprep.mubr.bf16.mxu1 %v2077_v16  ;;  %1084 = vmatprep.mubr.bf16.mxu0 %v2079_v17 }
  0xa2   :  { %914 = vmatmul.mubr.bf16.gmra.mrb[16].mxu1 %v2081_v18  ;;  %1085 = vmatmul.mubr.bf16.gmra.mrb[16].mxu0 %v2082_v19 }
  0xa3   :  { %923 = vmatprep.mubr.bf16.mxu1 %v2083_v20  ;;  %1094 = vmatprep.mubr.bf16.mxu0 %v2085_v21 }
  0xaa   :  { %924 = vmatmul.mubr.bf16.gmra.mrb[20].mxu1 %v2087_v22  ;;  %1095 = vmatmul.mubr.bf16.gmra.mrb[20].mxu0 %v2088_v23 }
  0xab   :  { %933 = vmatprep.mubr.bf16.mxu1 %v2089_v24  ;;  %1104 = vmatprep.mubr.bf16.mxu0 %v2091_v25 }
  0xb2   :  { %934 = vmatmul.mubr.bf16.gmra.mrb[24].mxu1 %v2093_v26  ;;  %1105 = vmatmul.mubr.bf16.gmra.mrb[24].mxu0 %v2094_v27 }
  0xb3   :  { %943 = vmatprep.mubr.bf16.mxu1 %v2095_v28  ;;  %1114 = vmatprep.mubr.bf16.mxu0 %v2097_v29 }
  0xba   :  { %944 = vmatmul.mubr.bf16.gmra.mrb[28].mxu1 %v2099_v30  ;;  %1115 = vmatmul.mubr.bf16.gmra.mrb[28].mxu0 %v2100_v31 }
  0xbb   :  { %953 = vmatprep.mubr.bf16.mxu1 %v2101_v32  ;;  %1124 = vmatprep.mubr.bf16.mxu0 %v2103_v33 }
  0xc2   :  { %954 = vmatmul.mubr.bf16.gmra.mrb[32].mxu1 %v2105_v34  ;;  %1125 = vmatmul.mubr.bf16.gmra.mrb[32].mxu0 %v2106_v35 }
  0xc3   :  { %963 = vmatprep.mubr.bf16.mxu1 %v2107_v36  ;;  %1134 = vmatprep.mubr.bf16.mxu0 %v2109_v37 }
  0xca   :  { %964 = vmatmul.mubr.bf16.gmra.mrb[36].mxu1 %v2111_v38  ;;  %1135 = vmatmul.mubr.bf16.gmra.mrb[36].mxu0 %v2112_v39 }
  0xcb   :  { %973 = vmatprep.mubr.bf16.mxu1 %v2113_v40  ;;  %1144 = vmatprep.mubr.bf16.mxu0 %v2115_v41 }
  0xd2   :  { %974 = vmatmul.mubr.bf16.gmra.mrb[40].mxu1 %v2117_v42  ;;  %1145 = vmatmul.mubr.bf16.gmra.mrb[40].mxu0 %v2118_v43 }
  0xd3   :  { %983 = vmatprep.mubr.bf16.mxu1 %v2119_v44  ;;  %1154 = vmatprep.mubr.bf16.mxu0 %v2121_v45 }
  0xda   :  { %984 = vmatmul.mubr.bf16.gmra.mrb[44].mxu1 %v2123_v46  ;;  %1155 = vmatmul.mubr.bf16.gmra.mrb[44].mxu0 %v2124_v47 }
  0xdb   :  { %993 = vmatprep.mubr.bf16.mxu1 %v2125_v48  ;;  %1164 = vmatprep.mubr.bf16.mxu0 %v2127_v49 }
  0xe2   :  { %994 = vmatmul.mubr.bf16.gmra.mrb[48].mxu1 %v2129_v52  ;;  %1165 = vmatmul.mubr.bf16.gmra.mrb[48].mxu0 %v2130_v53 }
  0xe3   :  { %1003 = vmatprep.mubr.bf16.mxu1 %v1782_v54  ;;  %1174 = vmatprep.mubr.bf16.mxu0 %v1784_v55 }
  0xea   :  { %1004 = vmatmul.mubr.bf16.gmra.mrb[52].mxu1 %v1781_v56  ;;  %1175 = vmatmul.mubr.bf16.gmra.mrb[52].mxu0 %v1783_v57 }
 0x155   :  { %v875_v1 = vpop.f32.mrb[0].mxu1  ;;  %v1046_v2 = vpop.f32.mrb[0].mxu0 }
 0x156   :  { %v1047_v4 = vadd.f32 %v1046_v2, %v875_v1  ;;  %v877_v6 = vpop.f32.mrb[1].mxu1  ;;  %v1048_v7 = vpop.f32.mrb[1].mxu0 }
 0x157   :  { %v1049_v8 = vadd.f32 %v1048_v7, %v877_v6  ;;  %v879_v10 = vpop.f32.mrb[2].mxu1  ;;  %v1050_v11 = vpop.f32.mrb[2].mxu0 }
 0x158   :  { %v1360_v12 = vmul.f32 %v2520_v0, %v1047_v4  ;;  %v1051_v13 = vadd.f32 %v1050_v11, %v879_v10  ;;  %v881_v14 = vpop.f32.mrb[3].mxu1  ;;  %v1052_v15 = vpop.f32.mrb[3].mxu0 }
 0x159   :  { %v1361_v16 = vmul.f32 %v2522_v3, %v1049_v8  ;;  %v1053_v17 = vadd.f32 %v1052_v15, %v881_v14 }
 0x15a   :  { %v1426_v18 = vadd.f32 %v2524_v5, %v1360_v12  ;;  %v1362_v19 = vmul.f32 %v2520_v0, %v1051_v13 }
 0x15b   :  { %v1427_v20 = vadd.f32 %v2526_v9, %v1361_v16  ;;  %v1363_v21 = vmul.f32 %v2522_v3, %v1053_v17 }
 0x15c   :  { %v1480_v22 = vmax.f32 %v1426_v18, 0.0  ;;  %v1428_v23 = vadd.f32 %v2524_v5, %v1362_v19 }
 0x15d   :  { %v1481_v24 = vmax.f32 %v1427_v20, 0.0  ;;  %v1429_v25 = vadd.f32 %v2526_v9, %v1363_v21  ;;  %v885_v26 = vpop.f32.mrb[4].mxu1  ;;  %v1056_v27 = vpop.f32.mrb[4].mxu0 }
 0x15e   :  { %v1482_v28 = vmax.f32 %v1428_v23, 0.0  ;;  %v1057_v29 = vadd.f32 %v1056_v27, %v885_v26  ;;  %v887_v30 = vpop.f32.mrb[5].mxu1  ;;  %v1058_v31 = vpop.f32.mrb[5].mxu0 }
 0x15f   :  { %v1876_v32 = vpack.c.bf16 %v1481_v24, %v1480_v22  ;;  %v1483_v33 = vmax.f32 %v1429_v25, 0.0  ;;  %v1059_v34 = vadd.f32 %v1058_v31, %v887_v30  ;;  %v889_v35 = vpop.f32.mrb[6].mxu1  ;;  %v1060_v36 = vpop.f32.mrb[6].mxu0 }
 0x160   :  { %v1364_v37 = vmul.f32 %v2520_v0, %v1057_v29  ;;  %v1061_v38 = vadd.f32 %v1060_v36, %v889_v35  ;;  %v891_v39 = vpop.f32.mrb[7].mxu1  ;;  %v1062_v40 = vpop.f32.mrb[7].mxu0 }
 0x161   :  { %1698 = vst [vmem:[%s2721_s4] sm:$0xff] %v1876_v32  ;;  %v1877_v41 = vpack.c.bf16 %v1483_v33, %v1482_v28  ;;  %v1365_v42 = vmul.f32 %v2522_v3, %v1059_v34  ;;  %v1063_v43 = vadd.f32 %v1062_v40, %v891_v39 }
 0x162   :  { %v1430_v44 = vadd.f32 %v2524_v5, %v1364_v37  ;;  %v1366_v45 = vmul.f32 %v2520_v0, %v1061_v38 }
 0x163   :  { %1699 = vst [vmem:[%s2721_s4 + $0x8] sm:$0xff] %v1877_v41  ;;  %v1431_v46 = vadd.f32 %v2526_v9, %v1365_v42  ;;  %v1367_v47 = vmul.f32 %v2522_v3, %v1063_v43 }
 0x164   :  { %v1484_v48 = vmax.f32 %v1430_v44, 0.0  ;;  %v1432_v49 = vadd.f32 %v2524_v5, %v1366_v45 }
 0x165   :  { %v1485_v50 = vmax.f32 %v1431_v46, 0.0  ;;  %v1433_v51 = vadd.f32 %v2526_v9, %v1367_v47  ;;  %v895_v52 = vpop.f32.mrb[8].mxu1  ;;  %v1066_v53 = vpop.f32.mrb[8].mxu0 }
 0x166   :  { %v1486_v54 = vmax.f32 %v1432_v49, 0.0  ;;  %v1067_v55 = vadd.f32 %v1066_v53, %v895_v52  ;;  %v897_v56 = vpop.f32.mrb[9].mxu1  ;;  %v1068_v57 = vpop.f32.mrb[9].mxu0 }
 0x167   :  { %v1878_v58 = vpack.c.bf16 %v1485_v50, %v1484_v48  ;;  %v1487_v59 = vmax.f32 %v1433_v51, 0.0  ;;  %v1069_v60 = vadd.f32 %v1068_v57, %v897_v56  ;;  %v899_v61 = vpop.f32.mrb[10].mxu1  ;;  %v1070_v62 = vpop.f32.mrb[10].mxu0 }
 0x168   :  { %v1368_v63 = vmul.f32 %v2520_v0, %v1067_v55  ;;  %v1071_v1 = vadd.f32 %v1070_v62, %v899_v61  ;;  %v901_v2 = vpop.f32.mrb[11].mxu1  ;;  %v1072_v4 = vpop.f32.mrb[11].mxu0 }
 0x169   :  { %1700 = vst [vmem:[%s2721_s4 + $0x10] sm:$0xff] %v1878_v58  ;;  %v1879_v6 = vpack.c.bf16 %v1487_v59, %v1486_v54  ;;  %v1369_v7 = vmul.f32 %v2522_v3, %v1069_v60  ;;  %v1073_v8 = vadd.f32 %v1072_v4, %v901_v2 }
 0x16a   :  { %v1434_v10 = vadd.f32 %v2524_v5, %v1368_v63  ;;  %v1370_v11 = vmul.f32 %v2520_v0, %v1071_v1 }
 0x16b   :  { %1701 = vst [vmem:[%s2721_s4 + $0x18] sm:$0xff] %v1879_v6  ;;  %v1435_v12 = vadd.f32 %v2526_v9, %v1369_v7  ;;  %v1371_v13 = vmul.f32 %v2522_v3, %v1073_v8 }
 0x16c   :  { %v1488_v14 = vmax.f32 %v1434_v10, 0.0  ;;  %v1436_v15 = vadd.f32 %v2524_v5, %v1370_v11 }
 0x16d   :  { %v1489_v16 = vmax.f32 %v1435_v12, 0.0  ;;  %v1437_v17 = vadd.f32 %v2526_v9, %v1371_v13  ;;  %v905_v18 = vpop.f32.mrb[12].mxu1  ;;  %v1076_v19 = vpop.f32.mrb[12].mxu0 }
 0x16e   :  { %v1490_v20 = vmax.f32 %v1436_v15, 0.0  ;;  %v1077_v21 = vadd.f32 %v1076_v19, %v905_v18  ;;  %v907_v22 = vpop.f32.mrb[13].mxu1  ;;  %v1078_v23 = vpop.f32.mrb[13].mxu0 }
 0x16f   :  { %v1880_v24 = vpack.c.bf16 %v1489_v16, %v1488_v14  ;;  %v1491_v25 = vmax.f32 %v1437_v17, 0.0  ;;  %v1079_v26 = vadd.f32 %v1078_v23, %v907_v22  ;;  %v909_v27 = vpop.f32.mrb[14].mxu1  ;;  %v1080_v28 = vpop.f32.mrb[14].mxu0 }
 0x170   :  { %v1372_v29 = vmul.f32 %v2520_v0, %v1077_v21  ;;  %v1081_v30 = vadd.f32 %v1080_v28, %v909_v27  ;;  %v911_v31 = vpop.f32.mrb[15].mxu1  ;;  %v1082_v32 = vpop.f32.mrb[15].mxu0 }
 0x171   :  { %1702 = vst [vmem:[%s2721_s4 + $0x20] sm:$0xff] %v1880_v24  ;;  %v1881_v33 = vpack.c.bf16 %v1491_v25, %v1490_v20  ;;  %v1373_v34 = vmul.f32 %v2522_v3, %v1079_v26  ;;  %v1083_v35 = vadd.f32 %v1082_v32, %v911_v31 }
 0x172   :  { %v1438_v36 = vadd.f32 %v2524_v5, %v1372_v29  ;;  %v1374_v37 = vmul.f32 %v2520_v0, %v1081_v30 }
 0x173   :  { %1703 = vst [vmem:[%s2721_s4 + $0x28] sm:$0xff] %v1881_v33  ;;  %v1439_v38 = vadd.f32 %v2526_v9, %v1373_v34  ;;  %v1375_v39 = vmul.f32 %v2522_v3, %v1083_v35 }
 0x174   :  { %v1492_v40 = vmax.f32 %v1438_v36, 0.0  ;;  %v1440_v41 = vadd.f32 %v2524_v5, %v1374_v37 }
 0x175   :  { %v1493_v42 = vmax.f32 %v1439_v38, 0.0  ;;  %v1441_v43 = vadd.f32 %v2526_v9, %v1375_v39  ;;  %v915_v44 = vpop.f32.mrb[16].mxu1  ;;  %v1086_v45 = vpop.f32.mrb[16].mxu0 }
 0x176   :  { %v1494_v46 = vmax.f32 %v1440_v41, 0.0  ;;  %v1087_v47 = vadd.f32 %v1086_v45, %v915_v44  ;;  %v917_v48 = vpop.f32.mrb[17].mxu1  ;;  %v1088_v49 = vpop.f32.mrb[17].mxu0 }
 0x177   :  { %v1882_v50 = vpack.c.bf16 %v1493_v42, %v1492_v40  ;;  %v1495_v51 = vmax.f32 %v1441_v43, 0.0  ;;  %v1089_v52 = vadd.f32 %v1088_v49, %v917_v48  ;;  %v919_v53 = vpop.f32.mrb[18].mxu1  ;;  %v1090_v54 = vpop.f32.mrb[18].mxu0 }
 0x178   :  { %v1376_v55 = vmul.f32 %v2520_v0, %v1087_v47  ;;  %v1091_v56 = vadd.f32 %v1090_v54, %v919_v53  ;;  %v921_v57 = vpop.f32.mrb[19].mxu1  ;;  %v1092_v58 = vpop.f32.mrb[19].mxu0 }
 0x179   :  { %1704 = vst [vmem:[%s2721_s4 + $0x30] sm:$0xff] %v1882_v50  ;;  %v1883_v59 = vpack.c.bf16 %v1495_v51, %v1494_v46  ;;  %v1377_v60 = vmul.f32 %v2522_v3, %v1089_v52  ;;  %v1093_v61 = vadd.f32 %v1092_v58, %v921_v57 }
 0x17a   :  { %v1442_v62 = vadd.f32 %v2524_v5, %v1376_v55  ;;  %v1378_v63 = vmul.f32 %v2520_v0, %v1091_v56 }
 0x17b   :  { %1705 = vst [vmem:[%s2721_s4 + $0x38] sm:$0xff] %v1883_v59  ;;  %v1443_v1 = vadd.f32 %v2526_v9, %v1377_v60  ;;  %v1379_v2 = vmul.f32 %v2522_v3, %v1093_v61 }
 0x17c   :  { %v1496_v4 = vmax.f32 %v1442_v62, 0.0  ;;  %v1444_v6 = vadd.f32 %v2524_v5, %v1378_v63 }
 0x17d   :  { %v1497_v7 = vmax.f32 %v1443_v1, 0.0  ;;  %v1445_v8 = vadd.f32 %v2526_v9, %v1379_v2  ;;  %v925_v10 = vpop.f32.mrb[20].mxu1  ;;  %v1096_v11 = vpop.f32.mrb[20].mxu0 }
 0x17e   :  { %v1498_v12 = vmax.f32 %v1444_v6, 0.0  ;;  %v1097_v13 = vadd.f32 %v1096_v11, %v925_v10  ;;  %v927_v14 = vpop.f32.mrb[21].mxu1  ;;  %v1098_v15 = vpop.f32.mrb[21].mxu0 }
 0x17f   :  { %v1884_v16 = vpack.c.bf16 %v1497_v7, %v1496_v4  ;;  %v1499_v17 = vmax.f32 %v1445_v8, 0.0  ;;  %v1099_v18 = vadd.f32 %v1098_v15, %v927_v14  ;;  %v929_v19 = vpop.f32.mrb[22].mxu1  ;;  %v1100_v20 = vpop.f32.mrb[22].mxu0 }
 0x180   :  { %v1380_v21 = vmul.f32 %v2520_v0, %v1097_v13  ;;  %v1101_v22 = vadd.f32 %v1100_v20, %v929_v19  ;;  %v931_v23 = vpop.f32.mrb[23].mxu1  ;;  %v1102_v24 = vpop.f32.mrb[23].mxu0 }
 0x181   :  { %1706 = vst [vmem:[%s2721_s4 + $0x40] sm:$0xff] %v1884_v16  ;;  %v1885_v25 = vpack.c.bf16 %v1499_v17, %v1498_v12  ;;  %v1381_v26 = vmul.f32 %v2522_v3, %v1099_v18  ;;  %v1103_v27 = vadd.f32 %v1102_v24, %v931_v23 }
 0x182   :  { %v1446_v28 = vadd.f32 %v2524_v5, %v1380_v21  ;;  %v1382_v29 = vmul.f32 %v2520_v0, %v1101_v22 }
 0x183   :  { %1707 = vst [vmem:[%s2721_s4 + $0x48] sm:$0xff] %v1885_v25  ;;  %v1447_v30 = vadd.f32 %v2526_v9, %v1381_v26  ;;  %v1383_v31 = vmul.f32 %v2522_v3, %v1103_v27 }
 0x184   :  { %v1500_v32 = vmax.f32 %v1446_v28, 0.0  ;;  %v1448_v33 = vadd.f32 %v2524_v5, %v1382_v29 }
 0x185   :  { %v1501_v34 = vmax.f32 %v1447_v30, 0.0  ;;  %v1449_v35 = vadd.f32 %v2526_v9, %v1383_v31  ;;  %v935_v36 = vpop.f32.mrb[24].mxu1  ;;  %v1106_v37 = vpop.f32.mrb[24].mxu0 }
 0x186   :  { %v1502_v38 = vmax.f32 %v1448_v33, 0.0  ;;  %v1107_v39 = vadd.f32 %v1106_v37, %v935_v36  ;;  %v937_v40 = vpop.f32.mrb[25].mxu1  ;;  %v1108_v41 = vpop.f32.mrb[25].mxu0 }
 0x187   :  { %v1886_v42 = vpack.c.bf16 %v1501_v34, %v1500_v32  ;;  %v1503_v43 = vmax.f32 %v1449_v35, 0.0  ;;  %v1109_v44 = vadd.f32 %v1108_v41, %v937_v40  ;;  %v939_v45 = vpop.f32.mrb[26].mxu1  ;;  %v1110_v46 = vpop.f32.mrb[26].mxu0 }
 0x188   :  { %v1384_v47 = vmul.f32 %v2520_v0, %v1107_v39  ;;  %v1111_v48 = vadd.f32 %v1110_v46, %v939_v45  ;;  %v941_v49 = vpop.f32.mrb[27].mxu1  ;;  %v1112_v50 = vpop.f32.mrb[27].mxu0 }
 0x189   :  { %1708 = vst [vmem:[%s2721_s4 + $0x50] sm:$0xff] %v1886_v42  ;;  %v1887_v51 = vpack.c.bf16 %v1503_v43, %v1502_v38  ;;  %v1385_v52 = vmul.f32 %v2522_v3, %v1109_v44  ;;  %v1113_v53 = vadd.f32 %v1112_v50, %v941_v49 }
 0x18a   :  { %v1450_v54 = vadd.f32 %v2524_v5, %v1384_v47  ;;  %v1386_v55 = vmul.f32 %v2520_v0, %v1111_v48 }
 0x18b   :  { %1709 = vst [vmem:[%s2721_s4 + $0x58] sm:$0xff] %v1887_v51  ;;  %v1451_v56 = vadd.f32 %v2526_v9, %v1385_v52  ;;  %v1387_v57 = vmul.f32 %v2522_v3, %v1113_v53 }
 0x18c   :  { %v1504_v58 = vmax.f32 %v1450_v54, 0.0  ;;  %v1452_v59 = vadd.f32 %v2524_v5, %v1386_v55 }
 0x18d   :  { %v1505_v60 = vmax.f32 %v1451_v56, 0.0  ;;  %v1453_v61 = vadd.f32 %v2526_v9, %v1387_v57  ;;  %v945_v62 = vpop.f32.mrb[28].mxu1  ;;  %v1116_v63 = vpop.f32.mrb[28].mxu0 }
 0x18e   :  { %v1506_v1 = vmax.f32 %v1452_v59, 0.0  ;;  %v1117_v2 = vadd.f32 %v1116_v63, %v945_v62  ;;  %v947_v4 = vpop.f32.mrb[29].mxu1  ;;  %v1118_v6 = vpop.f32.mrb[29].mxu0 }
 0x18f   :  { %v1888_v7 = vpack.c.bf16 %v1505_v60, %v1504_v58  ;;  %v1507_v8 = vmax.f32 %v1453_v61, 0.0  ;;  %v1119_v10 = vadd.f32 %v1118_v6, %v947_v4  ;;  %v949_v11 = vpop.f32.mrb[30].mxu1  ;;  %v1120_v12 = vpop.f32.mrb[30].mxu0 }
 0x190   :  { %v1388_v13 = vmul.f32 %v2520_v0, %v1117_v2  ;;  %v1121_v14 = vadd.f32 %v1120_v12, %v949_v11  ;;  %v951_v15 = vpop.f32.mrb[31].mxu1  ;;  %v1122_v16 = vpop.f32.mrb[31].mxu0 }
 0x191   :  { %1710 = vst [vmem:[%s2721_s4 + $0x60] sm:$0xff] %v1888_v7  ;;  %v1889_v17 = vpack.c.bf16 %v1507_v8, %v1506_v1  ;;  %v1389_v18 = vmul.f32 %v2522_v3, %v1119_v10  ;;  %v1123_v19 = vadd.f32 %v1122_v16, %v951_v15 }
 0x192   :  { %v1454_v20 = vadd.f32 %v2524_v5, %v1388_v13  ;;  %v1390_v21 = vmul.f32 %v2520_v0, %v1121_v14 }
 0x193   :  { %1711 = vst [vmem:[%s2721_s4 + $0x68] sm:$0xff] %v1889_v17  ;;  %v1455_v22 = vadd.f32 %v2526_v9, %v1389_v18  ;;  %v1391_v23 = vmul.f32 %v2522_v3, %v1123_v19 }
 0x194   :  { %v1508_v24 = vmax.f32 %v1454_v20, 0.0  ;;  %v1456_v25 = vadd.f32 %v2524_v5, %v1390_v21 }
 0x195   :  { %v1509_v26 = vmax.f32 %v1455_v22, 0.0  ;;  %v1457_v27 = vadd.f32 %v2526_v9, %v1391_v23  ;;  %v955_v28 = vpop.f32.mrb[32].mxu1  ;;  %v1126_v29 = vpop.f32.mrb[32].mxu0 }
 0x196   :  { %v1510_v30 = vmax.f32 %v1456_v25, 0.0  ;;  %v1127_v31 = vadd.f32 %v1126_v29, %v955_v28  ;;  %v957_v32 = vpop.f32.mrb[33].mxu1  ;;  %v1128_v33 = vpop.f32.mrb[33].mxu0 }
 0x197   :  { %v1890_v34 = vpack.c.bf16 %v1509_v26, %v1508_v24  ;;  %v1511_v35 = vmax.f32 %v1457_v27, 0.0  ;;  %v1129_v36 = vadd.f32 %v1128_v33, %v957_v32  ;;  %v959_v37 = vpop.f32.mrb[34].mxu1  ;;  %v1130_v38 = vpop.f32.mrb[34].mxu0 }
 0x198   :  { %v1392_v39 = vmul.f32 %v2520_v0, %v1127_v31  ;;  %v1131_v40 = vadd.f32 %v1130_v38, %v959_v37  ;;  %v961_v41 = vpop.f32.mrb[35].mxu1  ;;  %v1132_v42 = vpop.f32.mrb[35].mxu0 }
 0x199   :  { %1712 = vst [vmem:[%s2721_s4 + $0x70] sm:$0xff] %v1890_v34  ;;  %v1891_v43 = vpack.c.bf16 %v1511_v35, %v1510_v30  ;;  %v1393_v44 = vmul.f32 %v2522_v3, %v1129_v36  ;;  %v1133_v45 = vadd.f32 %v1132_v42, %v961_v41 }
 0x19a   :  { %v1458_v46 = vadd.f32 %v2524_v5, %v1392_v39  ;;  %v1394_v47 = vmul.f32 %v2520_v0, %v1131_v40 }
 0x19b   :  { %1713 = vst [vmem:[%s2721_s4 + $0x78] sm:$0xff] %v1891_v43  ;;  %v1459_v48 = vadd.f32 %v2526_v9, %v1393_v44  ;;  %v1395_v49 = vmul.f32 %v2522_v3, %v1133_v45 }
 0x19c   :  { %v1512_v50 = vmax.f32 %v1458_v46, 0.0  ;;  %v1460_v51 = vadd.f32 %v2524_v5, %v1394_v47 }
 0x19d   :  { %v1513_v52 = vmax.f32 %v1459_v48, 0.0  ;;  %v1461_v53 = vadd.f32 %v2526_v9, %v1395_v49  ;;  %v965_v54 = vpop.f32.mrb[36].mxu1  ;;  %v1136_v55 = vpop.f32.mrb[36].mxu0 }
 0x19e   :  { %v1514_v56 = vmax.f32 %v1460_v51, 0.0  ;;  %v1137_v57 = vadd.f32 %v1136_v55, %v965_v54  ;;  %v967_v58 = vpop.f32.mrb[37].mxu1  ;;  %v1138_v59 = vpop.f32.mrb[37].mxu0 }
 0x19f   :  { %v1892_v60 = vpack.c.bf16 %v1513_v52, %v1512_v50  ;;  %v1515_v61 = vmax.f32 %v1461_v53, 0.0  ;;  %v1139_v62 = vadd.f32 %v1138_v59, %v967_v58  ;;  %v969_v63 = vpop.f32.mrb[38].mxu1  ;;  %v1140_v1 = vpop.f32.mrb[38].mxu0 }
 0x1a0   :  { %v1396_v2 = vmul.f32 %v2520_v0, %v1137_v57  ;;  %v1141_v4 = vadd.f32 %v1140_v1, %v969_v63  ;;  %v971_v6 = vpop.f32.mrb[39].mxu1  ;;  %v1142_v7 = vpop.f32.mrb[39].mxu0 }
 0x1a1   :  { %1714 = vst [vmem:[%s2721_s4 + $0x80] sm:$0xff] %v1892_v60  ;;  %v1893_v8 = vpack.c.bf16 %v1515_v61, %v1514_v56  ;;  %v1397_v10 = vmul.f32 %v2522_v3, %v1139_v62  ;;  %v1143_v11 = vadd.f32 %v1142_v7, %v971_v6 }
 0x1a2   :  { %v1462_v12 = vadd.f32 %v2524_v5, %v1396_v2  ;;  %v1398_v13 = vmul.f32 %v2520_v0, %v1141_v4 }
 0x1a3   :  { %1715 = vst [vmem:[%s2721_s4 + $0x88] sm:$0xff] %v1893_v8  ;;  %v1463_v14 = vadd.f32 %v2526_v9, %v1397_v10  ;;  %v1399_v15 = vmul.f32 %v2522_v3, %v1143_v11 }
 0x1a4   :  { %v1516_v16 = vmax.f32 %v1462_v12, 0.0  ;;  %v1464_v17 = vadd.f32 %v2524_v5, %v1398_v13 }
 0x1a5   :  { %v1517_v18 = vmax.f32 %v1463_v14, 0.0  ;;  %v1465_v19 = vadd.f32 %v2526_v9, %v1399_v15  ;;  %v975_v20 = vpop.f32.mrb[40].mxu1  ;;  %v1146_v21 = vpop.f32.mrb[40].mxu0 }
 0x1a6   :  { %v1518_v22 = vmax.f32 %v1464_v17, 0.0  ;;  %v1147_v23 = vadd.f32 %v1146_v21, %v975_v20  ;;  %v977_v24 = vpop.f32.mrb[41].mxu1  ;;  %v1148_v25 = vpop.f32.mrb[41].mxu0 }
 0x1a7   :  { %v1894_v26 = vpack.c.bf16 %v1517_v18, %v1516_v16  ;;  %v1519_v27 = vmax.f32 %v1465_v19, 0.0  ;;  %v1149_v28 = vadd.f32 %v1148_v25, %v977_v24  ;;  %v979_v29 = vpop.f32.mrb[42].mxu1  ;;  %v1150_v30 = vpop.f32.mrb[42].mxu0 }
 0x1a8   :  { %v1400_v31 = vmul.f32 %v2520_v0, %v1147_v23  ;;  %v1151_v32 = vadd.f32 %v1150_v30, %v979_v29  ;;  %v981_v33 = vpop.f32.mrb[43].mxu1  ;;  %v1152_v34 = vpop.f32.mrb[43].mxu0 }
 0x1a9   :  { %1716 = vst [vmem:[%s2721_s4 + $0x90] sm:$0xff] %v1894_v26  ;;  %v1895_v35 = vpack.c.bf16 %v1519_v27, %v1518_v22  ;;  %v1401_v36 = vmul.f32 %v2522_v3, %v1149_v28  ;;  %v1153_v37 = vadd.f32 %v1152_v34, %v981_v33 }
 0x1aa   :  { %v1466_v38 = vadd.f32 %v2524_v5, %v1400_v31  ;;  %v1402_v39 = vmul.f32 %v2520_v0, %v1151_v32 }
 0x1ab   :  { %1717 = vst [vmem:[%s2721_s4 + $0x98] sm:$0xff] %v1895_v35  ;;  %v1467_v40 = vadd.f32 %v2526_v9, %v1401_v36  ;;  %v1403_v41 = vmul.f32 %v2522_v3, %v1153_v37 }
 0x1ac   :  { %v1520_v42 = vmax.f32 %v1466_v38, 0.0  ;;  %v1468_v43 = vadd.f32 %v2524_v5, %v1402_v39 }
 0x1ad   :  { %v1521_v44 = vmax.f32 %v1467_v40, 0.0  ;;  %v1469_v45 = vadd.f32 %v2526_v9, %v1403_v41  ;;  %v985_v46 = vpop.f32.mrb[44].mxu1  ;;  %v1156_v47 = vpop.f32.mrb[44].mxu0 }
 0x1ae   :  { %v1522_v48 = vmax.f32 %v1468_v43, 0.0  ;;  %v1157_v49 = vadd.f32 %v1156_v47, %v985_v46  ;;  %v987_v50 = vpop.f32.mrb[45].mxu1  ;;  %v1158_v51 = vpop.f32.mrb[45].mxu0 }
 0x1af   :  { %v1896_v52 = vpack.c.bf16 %v1521_v44, %v1520_v42  ;;  %v1523_v53 = vmax.f32 %v1469_v45, 0.0  ;;  %v1159_v54 = vadd.f32 %v1158_v51, %v987_v50  ;;  %v989_v55 = vpop.f32.mrb[46].mxu1  ;;  %v1160_v56 = vpop.f32.mrb[46].mxu0 }
 0x1b0   :  { %v1404_v57 = vmul.f32 %v2520_v0, %v1157_v49  ;;  %v1161_v58 = vadd.f32 %v1160_v56, %v989_v55  ;;  %v991_v59 = vpop.f32.mrb[47].mxu1  ;;  %v1162_v60 = vpop.f32.mrb[47].mxu0 }
 0x1b1   :  { %1718 = vst [vmem:[%s2721_s4 + $0xa0] sm:$0xff] %v1896_v52  ;;  %v1897_v61 = vpack.c.bf16 %v1523_v53, %v1522_v48  ;;  %v1405_v62 = vmul.f32 %v2522_v3, %v1159_v54  ;;  %v1163_v63 = vadd.f32 %v1162_v60, %v991_v59 }
 0x1b2   :  { %v1470_v1 = vadd.f32 %v2524_v5, %v1404_v57  ;;  %v1406_v2 = vmul.f32 %v2520_v0, %v1161_v58 }
 0x1b3   :  { %1719 = vst [vmem:[%s2721_s4 + $0xa8] sm:$0xff] %v1897_v61  ;;  %v1471_v4 = vadd.f32 %v2526_v9, %v1405_v62  ;;  %v1407_v6 = vmul.f32 %v2522_v3, %v1163_v63 }
 0x1b4   :  { %v1524_v7 = vmax.f32 %v1470_v1, 0.0  ;;  %v1472_v8 = vadd.f32 %v2524_v5, %v1406_v2 }
 0x1b5   :  { %v1525_v10 = vmax.f32 %v1471_v4, 0.0  ;;  %v1473_v11 = vadd.f32 %v2526_v9, %v1407_v6  ;;  %v995_v12 = vpop.f32.mrb[48].mxu1  ;;  %v1166_v13 = vpop.f32.mrb[48].mxu0 }
 0x1b6   :  { %v1526_v14 = vmax.f32 %v1472_v8, 0.0  ;;  %v1167_v15 = vadd.f32 %v1166_v13, %v995_v12  ;;  %v997_v16 = vpop.f32.mrb[49].mxu1  ;;  %v1168_v17 = vpop.f32.mrb[49].mxu0 }
 0x1b7   :  { %v1898_v18 = vpack.c.bf16 %v1525_v10, %v1524_v7  ;;  %v1527_v19 = vmax.f32 %v1473_v11, 0.0  ;;  %v1169_v20 = vadd.f32 %v1168_v17, %v997_v16  ;;  %v999_v21 = vpop.f32.mrb[50].mxu1  ;;  %v1170_v22 = vpop.f32.mrb[50].mxu0 }
 0x1b8   :  { %v1408_v23 = vmul.f32 %v2520_v0, %v1167_v15  ;;  %v1171_v24 = vadd.f32 %v1170_v22, %v999_v21  ;;  %v1001_v25 = vpop.f32.mrb[51].mxu1  ;;  %v1172_v26 = vpop.f32.mrb[51].mxu0 }
 0x1b9   :  { %1720 = vst [vmem:[%s2721_s4 + $0xb0] sm:$0xff] %v1898_v18  ;;  %v1899_v27 = vpack.c.bf16 %v1527_v19, %v1526_v14  ;;  %v1409_v28 = vmul.f32 %v2522_v3, %v1169_v20  ;;  %v1173_v29 = vadd.f32 %v1172_v26, %v1001_v25 }
 0x1ba   :  { %v1474_v30 = vadd.f32 %v2524_v5, %v1408_v23  ;;  %v1410_v31 = vmul.f32 %v2520_v0, %v1171_v24 }
 0x1bb   :  { %1721 = vst [vmem:[%s2721_s4 + $0xb8] sm:$0xff] %v1899_v27  ;;  %v1475_v32 = vadd.f32 %v2526_v9, %v1409_v28  ;;  %v1411_v33 = vmul.f32 %v2522_v3, %v1173_v29 }
 0x1bc   :  { %v1528_v34 = vmax.f32 %v1474_v30, 0.0  ;;  %v1476_v35 = vadd.f32 %v2524_v5, %v1410_v31 }
 0x1bd   :  { %v1529_v36 = vmax.f32 %v1475_v32, 0.0  ;;  %v1477_v37 = vadd.f32 %v2526_v9, %v1411_v33  ;;  %v1005_v38 = vpop.f32.mrb[52].mxu1  ;;  %v1176_v39 = vpop.f32.mrb[52].mxu0 }
 0x1be   :  { %v1530_v40 = vmax.f32 %v1476_v35, 0.0  ;;  %v1177_v41 = vadd.f32 %v1176_v39, %v1005_v38  ;;  %v1007_v42 = vpop.f32.mrb[53].mxu1  ;;  %v1178_v43 = vpop.f32.mrb[53].mxu0 }
 0x1bf   :  { %v1900_v44 = vpack.c.bf16 %v1529_v36, %v1528_v34  ;;  %v1531_v45 = vmax.f32 %v1477_v37, 0.0  ;;  %v1179_v46 = vadd.f32 %v1178_v43, %v1007_v42  ;;  %v1009_v47 = vpop.f32.mrb[54].mxu1  ;;  %v1180_v48 = vpop.f32.mrb[54].mxu0 }
 0x1c0   :  { %v1412_v49 = vmul.f32 %v2520_v0, %v1177_v41  ;;  %v1010_v50 = vpop.f32.mrb[55].mxu1  ;;  %v1181_v51 = vpop.f32.mrb[55].mxu0 }
 0x1c1   :  { %1722 = vst [vmem:[%s2721_s4 + $0xc0] sm:$0xff] %v1900_v44  ;;  %v1901_v52 = vpack.c.bf16 %v1531_v45, %v1530_v40  ;;  %v1413_v53 = vmul.f32 %v2522_v3, %v1179_v46 }
 0x1c2   :  { %v1478_v54 = vadd.f32 %v2524_v5, %v1412_v49 }
 0x1c3   :  { %1723 = vst [vmem:[%s2721_s4 + $0xc8] sm:$0xff] %v1901_v52  ;;  %v1479_v55 = vadd.f32 %v2526_v9, %v1413_v53 }
 0x1c4   :  { %v1532_v56 = vmax.f32 %v1478_v54, 0.0 }
 0x1c5   :  { %v1533_v57 = vmax.f32 %v1479_v55, 0.0 }
 0x1c7   :  { %v1902_v0 = vpack.c.bf16 %v1533_v57, %v1532_v56 }
 0x1c9   :  { %1724 = vst [vmem:[%s2721_s4 + $0xd0] sm:$0xff] %v1902_v0 }

// kernel: cnn_forward.5
= control target key start
LH: loop header
LB: loop body
LE: loop exit
PB: predicated region body
PF: predicated region fallthrough
CT: control target
= control target key end

     0   :  { %s5540_s27 = smov 0   ;;  %s5542_s28 = smov 0   ;;  %s7714_s0 = inlined_call_operand.vmem [shape: bf16[8,26880], index: 0, kind: input, shape index: {}]   ;;  %s7715_s1 = inlined_call_operand.vmem [shape: s8[256,26880], index: 1, kind: input, shape index: {}]   ;;  %s7716_s2 = inlined_call_operand.vmem [shape: f32[1,256], index: 2, kind: input, shape index: {}]   ;;  %s7717_s3 = inlined_call_operand.vmem [shape: f32[1,256], index: 3, kind: input, shape index: {}]   ;;  %s7718_s4 = inlined_call_operand.vmem [shape: bf16[128,256], index: 4, kind: input, shape index: {}]   ;;  %s7719_s5 = inlined_call_operand.vmem [shape: f32[1,128], index: 5, kind: input, shape index: {}]   ;;  %s7720_s6 = inlined_call_operand.vmem [shape: bf16[128,128], index: 6, kind: input, shape index: {}]   ;;  %s7721_s7 = inlined_call_operand.vmem [shape: f32[1,128], index: 7, kind: input, shape index: {}]   ;;  %s7722_s8 = inlined_call_operand.vmem [shape: f32[8,128], index: 8, kind: output, shape index: {}]  }
   0x1   :  { %s5544_s29 = smov 0  }
   0x2 LB: > { %s5556_s30 = sadd.s32 4294967295, %s5490_s29   ;;  %s5559_s9 = sadd.s32 1, %s5490_s29   ;;  %s5490_s29 = sphi %s5544_s29, %s7725_s29   ;;  %s5486_s28 = sphi %s5542_s28, %s7724_s28   ;;  %s5482_s27 = sphi %s5540_s27, %s7723_s27  }
   0x3   : > { %s48_s10 = ssub.s32 %s5490_s29, %s5559_s9  ;;  %s51_s11 = sadd.s32 1, %s5486_s28 }
   0x4   : > { %p49_p0 = scmp.eq.s32.totalorder %s48_s10, 0  ;;  %p58_p1 = scmp.ne.s32.totalorder %s5486_s28, %s5482_s27 }
   0x5   : > { %p59_p2 = scmp.eq.s32.totalorder %s5490_s29, 0  ;;  %p5203_p4 = scmp.ge.s32.totalorder %s5490_s29, 3 }
   0x6   : > { %s5568_s12 = scalar_select %p49_p0, %s5486_s28, %s51_s11  }
   0x7   : > { %p60_p3 = por %p59_p2, %p58_p1  ;;  %249 = sbr.rel (%p5203_p4) target bundleno = 299 (0x12b), region = 40 }
   0xe   : > { %261 = sbr.rel (!%p60_p3) target bundleno = 299 (0x12b), region = 48  ;;  %s263_s13 = sand.u32 (%p60_p3), 1, %s5486_s28  }
   0xf   : > { %s5307_s14 = smul.u32 (%p60_p3), 560, %s5490_s29 }
  0x10   : > { %s5337_s15 = smul.u32 (%p60_p3), 4480, %s263_s13 }
  0x11   : > { %s5576_s18 = scalar_lea.vmem (%p60_p3), %s7715_s1, %s5307_s14 }
  0x12   : > { %v281_v0 = vld [vmem:[%s5576_s18] sm:$0xff] (%p60_p3)  ;;  %v283_v1 = vld [vmem:[%s5576_s18 + $0x8] sm:$0xff] (%p60_p3)  ;;  %v285_v2 = vld [vmem:[%s5576_s18 + $0x10] sm:$0xff] (%p60_p3)  ;;  %s5581_s19 = scalar_lea.vmem (%p60_p3), [#allocation3], %s5337_s15 }
  0x13   : > { %282 = vst [vmem:[%s5581_s19] sm:$0xff] (%p60_p3), %v281_v0  ;;  %284 = vst [vmem:[%s5581_s19 + $0x8] sm:$0xff] (%p60_p3), %v283_v1  ;;  %v287_v3 = vld [vmem:[%s5576_s18 + $0x18] sm:$0xff] (%p60_p3)  ;;  %v289_v4 = vld [vmem:[%s5576_s18 + $0x20] sm:$0xff] (%p60_p3) }
  0x14   : > { %286 = vst [vmem:[%s5581_s19 + $0x10] sm:$0xff] (%p60_p3), %v285_v2  ;;  %v291_v5 = vld [vmem:[%s5576_s18 + $0x28] sm:$0xff] (%p60_p3)  ;;  %288 = vst [vmem:[%s5581_s19 + $0x18] sm:$0xff] (%p60_p3), %v287_v3  ;;  %v293_v6 = vld [vmem:[%s5576_s18 + $0x30] sm:$0xff] (%p60_p3) }
  0x15   : > { %290 = vst [vmem:[%s5581_s19 + $0x20] sm:$0xff] %v289_v4  ;;  %292 = vst [vmem:[%s5581_s19 + $0x28] sm:$0xff] %v291_v5  ;;  %v295_v7 = vld [vmem:[%s5576_s18 + $0x38] sm:$0xff]  ;;  %v297_v8 = vld [vmem:[%s5576_s18 + $0x40] sm:$0xff] }
  0x16   : > { %294 = vst [vmem:[%s5581_s19 + $0x30] sm:$0xff] %v293_v6  ;;  %296 = vst [vmem:[%s5581_s19 + $0x38] sm:$0xff] %v295_v7  ;;  %v299_v9 = vld [vmem:[%s5576_s18 + $0x48] sm:$0xff]  ;;  %v301_v10 = vld [vmem:[%s5576_s18 + $0x50] sm:$0xff] }
  0x17   : > { %298 = vst [vmem:[%s5581_s19 + $0x40] sm:$0xff] %v297_v8  ;;  %v303_v11 = vld [vmem:[%s5576_s18 + $0x58] sm:$0xff]  ;;  %300 = vst [vmem:[%s5581_s19 + $0x48] sm:$0xff] %v299_v9  ;;  %v305_v12 = vld [vmem:[%s5576_s18 + $0x60] sm:$0xff] }
  0x18   : > { %302 = vst [vmem:[%s5581_s19 + $0x50] sm:$0xff] %v301_v10  ;;  %304 = vst [vmem:[%s5581_s19 + $0x58] sm:$0xff] %v303_v11  ;;  %v307_v13 = vld [vmem:[%s5576_s18 + $0x68] sm:$0xff]  ;;  %v309_v14 = vld [vmem:[%s5576_s18 + $0x70] sm:$0xff] }
  0x19   : > { %306 = vst [vmem:[%s5581_s19 + $0x60] sm:$0xff] %v305_v12  ;;  %308 = vst [vmem:[%s5581_s19 + $0x68] sm:$0xff] %v307_v13  ;;  %v311_v15 = vld [vmem:[%s5576_s18 + $0x78] sm:$0xff]  ;;  %v313_v16 = vld [vmem:[%s5576_s18 + $0x80] sm:$0xff] }
  0x1a   : > { %310 = vst [vmem:[%s5581_s19 + $0x70] sm:$0xff] %v309_v14  ;;  %v315_v17 = vld [vmem:[%s5576_s18 + $0x88] sm:$0xff]  ;;  %312 = vst [vmem:[%s5581_s19 + $0x78] sm:$0xff] %v311_v15  ;;  %v317_v18 = vld [vmem:[%s5576_s18 + $0x90] sm:$0xff] }
  0x1b   : > { %314 = vst [vmem:[%s5581_s19 + $0x80] sm:$0xff] %v313_v16  ;;  %316 = vst [vmem:[%s5581_s19 + $0x88] sm:$0xff] %v315_v17  ;;  %v319_v19 = vld [vmem:[%s5576_s18 + $0x98] sm:$0xff]  ;;  %v321_v20 = vld [vmem:[%s5576_s18 + $0xa0] sm:$0xff] }
  0x1c   : > { %318 = vst [vmem:[%s5581_s19 + $0x90] sm:$0xff] %v317_v18  ;;  %320 = vst [vmem:[%s5581_s19 + $0x98] sm:$0xff] %v319_v19  ;;  %v323_v21 = vld [vmem:[%s5576_s18 + $0xa8] sm:$0xff]  ;;  %v325_v22 = vld [vmem:[%s5576_s18 + $0xb0] sm:$0xff] }
  0x1d   : > { %322 = vst [vmem:[%s5581_s19 + $0xa0] sm:$0xff] %v321_v20  ;;  %v327_v23 = vld [vmem:[%s5576_s18 + $0xb8] sm:$0xff]  ;;  %324 = vst [vmem:[%s5581_s19 + $0xa8] sm:$0xff] %v323_v21  ;;  %v329_v24 = vld [vmem:[%s5576_s18 + $0xc0] sm:$0xff] }
  0x1e   : > { %326 = vst [vmem:[%s5581_s19 + $0xb0] sm:$0xff] %v325_v22  ;;  %328 = vst [vmem:[%s5581_s19 + $0xb8] sm:$0xff] %v327_v23  ;;  %v331_v25 = vld [vmem:[%s5576_s18 + $0xc8] sm:$0xff]  ;;  %v333_v26 = vld [vmem:[%s5576_s18 + $0xd0] sm:$0xff] }
  0x1f   : > { %330 = vst [vmem:[%s5581_s19 + $0xc0] sm:$0xff] %v329_v24  ;;  %332 = vst [vmem:[%s5581_s19 + $0xc8] sm:$0xff] %v331_v25  ;;  %v335_v27 = vld [vmem:[%s5576_s18 + $0xd8] sm:$0xff]  ;;  %v337_v28 = vld [vmem:[%s5576_s18 + $0xe0] sm:$0xff] }
  0x20   : > { %334 = vst [vmem:[%s5581_s19 + $0xd0] sm:$0xff] %v333_v26  ;;  %v339_v29 = vld [vmem:[%s5576_s18 + $0xe8] sm:$0xff]  ;;  %336 = vst [vmem:[%s5581_s19 + $0xd8] sm:$0xff] %v335_v27  ;;  %v341_v30 = vld [vmem:[%s5576_s18 + $0xf0] sm:$0xff] }
  0x21   : > { %338 = vst [vmem:[%s5581_s19 + $0xe0] sm:$0xff] %v337_v28  ;;  %340 = vst [vmem:[%s5581_s19 + $0xe8] sm:$0xff] %v339_v29  ;;  %v343_v31 = vld [vmem:[%s5576_s18 + $0xf8] sm:$0xff]  ;;  %v345_v32 = vld [vmem:[%s5576_s18 + $0x100] sm:$0xff] }
  0x22   : > { %342 = vst [vmem:[%s5581_s19 + $0xf0] sm:$0xff] %v341_v30  ;;  %344 = vst [vmem:[%s5581_s19 + $0xf8] sm:$0xff] %v343_v31  ;;  %v347_v33 = vld [vmem:[%s5576_s18 + $0x108] sm:$0xff]  ;;  %v349_v34 = vld [vmem:[%s5576_s18 + $0x110] sm:$0xff] }
  0x23   : > { %346 = vst [vmem:[%s5581_s19 + $0x100] sm:$0xff] %v345_v32  ;;  %v351_v35 = vld [vmem:[%s5576_s18 + $0x118] sm:$0xff]  ;;  %348 = vst [vmem:[%s5581_s19 + $0x108] sm:$0xff] %v347_v33  ;;  %v353_v36 = vld [vmem:[%s5576_s18 + $0x120] sm:$0xff] }
  0x24   : > { %350 = vst [vmem:[%s5581_s19 + $0x110] sm:$0xff] %v349_v34  ;;  %352 = vst [vmem:[%s5581_s19 + $0x118] sm:$0xff] %v351_v35  ;;  %v355_v37 = vld [vmem:[%s5576_s18 + $0x128] sm:$0xff]  ;;  %v357_v38 = vld [vmem:[%s5576_s18 + $0x130] sm:$0xff] }
  0x25   : > { %354 = vst [vmem:[%s5581_s19 + $0x120] sm:$0xff] %v353_v36  ;;  %356 = vst [vmem:[%s5581_s19 + $0x128] sm:$0xff] %v355_v37  ;;  %v359_v39 = vld [vmem:[%s5576_s18 + $0x138] sm:$0xff]  ;;  %v361_v40 = vld [vmem:[%s5576_s18 + $0x140] sm:$0xff] }
  0x26   : > { %358 = vst [vmem:[%s5581_s19 + $0x130] sm:$0xff] %v357_v38  ;;  %v363_v41 = vld [vmem:[%s5576_s18 + $0x148] sm:$0xff]  ;;  %360 = vst [vmem:[%s5581_s19 + $0x138] sm:$0xff] %v359_v39  ;;  %v365_v42 = vld [vmem:[%s5576_s18 + $0x150] sm:$0xff] }
  0x27   : > { %362 = vst [vmem:[%s5581_s19 + $0x140] sm:$0xff] %v361_v40  ;;  %364 = vst [vmem:[%s5581_s19 + $0x148] sm:$0xff] %v363_v41  ;;  %v367_v43 = vld [vmem:[%s5576_s18 + $0x158] sm:$0xff]  ;;  %v369_v44 = vld [vmem:[%s5576_s18 + $0x160] sm:$0xff] }
  0x28   : > { %366 = vst [vmem:[%s5581_s19 + $0x150] sm:$0xff] %v365_v42  ;;  %368 = vst [vmem:[%s5581_s19 + $0x158] sm:$0xff] %v367_v43  ;;  %v371_v45 = vld [vmem:[%s5576_s18 + $0x168] sm:$0xff]  ;;  %v373_v46 = vld [vmem:[%s5576_s18 + $0x170] sm:$0xff] }
  0x29   : > { %370 = vst [vmem:[%s5581_s19 + $0x160] sm:$0xff] %v369_v44  ;;  %v375_v47 = vld [vmem:[%s5576_s18 + $0x178] sm:$0xff]  ;;  %372 = vst [vmem:[%s5581_s19 + $0x168] sm:$0xff] %v371_v45  ;;  %v377_v48 = vld [vmem:[%s5576_s18 + $0x180] sm:$0xff] }
  0x2a   : > { %374 = vst [vmem:[%s5581_s19 + $0x170] sm:$0xff] %v373_v46  ;;  %376 = vst [vmem:[%s5581_s19 + $0x178] sm:$0xff] %v375_v47  ;;  %v379_v49 = vld [vmem:[%s5576_s18 + $0x188] sm:$0xff]  ;;  %v381_v50 = vld [vmem:[%s5576_s18 + $0x190] sm:$0xff] }
  0x2b   : > { %378 = vst [vmem:[%s5581_s19 + $0x180] sm:$0xff] %v377_v48  ;;  %380 = vst [vmem:[%s5581_s19 + $0x188] sm:$0xff] %v379_v49  ;;  %v383_v51 = vld [vmem:[%s5576_s18 + $0x198] sm:$0xff]  ;;  %v385_v52 = vld [vmem:[%s5576_s18 + $0x1a0] sm:$0xff] }
  0x2c   : > { %382 = vst [vmem:[%s5581_s19 + $0x190] sm:$0xff] %v381_v50  ;;  %v387_v53 = vld [vmem:[%s5576_s18 + $0x1a8] sm:$0xff]  ;;  %384 = vst [vmem:[%s5581_s19 + $0x198] sm:$0xff] %v383_v51  ;;  %v389_v54 = vld [vmem:[%s5576_s18 + $0x1b0] sm:$0xff] }
  0x2d   : > { %386 = vst [vmem:[%s5581_s19 + $0x1a0] sm:$0xff] %v385_v52  ;;  %388 = vst [vmem:[%s5581_s19 + $0x1a8] sm:$0xff] %v387_v53  ;;  %v391_v55 = vld [vmem:[%s5576_s18 + $0x1b8] sm:$0xff]  ;;  %v393_v56 = vld [vmem:[%s5576_s18 + $0x1c0] sm:$0xff] }
  0x2e   : > { %390 = vst [vmem:[%s5581_s19 + $0x1b0] sm:$0xff] %v389_v54  ;;  %392 = vst [vmem:[%s5581_s19 + $0x1b8] sm:$0xff] %v391_v55  ;;  %v395_v57 = vld [vmem:[%s5576_s18 + $0x1c8] sm:$0xff]  ;;  %v397_v58 = vld [vmem:[%s5576_s18 + $0x1d0] sm:$0xff] }
  0x2f   : > { %394 = vst [vmem:[%s5581_s19 + $0x1c0] sm:$0xff] %v393_v56  ;;  %v399_v59 = vld [vmem:[%s5576_s18 + $0x1d8] sm:$0xff]  ;;  %396 = vst [vmem:[%s5581_s19 + $0x1c8] sm:$0xff] %v395_v57  ;;  %v401_v60 = vld [vmem:[%s5576_s18 + $0x1e0] sm:$0xff] }
  0x30   : > { %398 = vst [vmem:[%s5581_s19 + $0x1d0] sm:$0xff] %v397_v58  ;;  %400 = vst [vmem:[%s5581_s19 + $0x1d8] sm:$0xff] %v399_v59  ;;  %v403_v61 = vld [vmem:[%s5576_s18 + $0x1e8] sm:$0xff]  ;;  %v405_v62 = vld [vmem:[%s5576_s18 + $0x1f0] sm:$0xff] }
  0x31   : > { %402 = vst [vmem:[%s5581_s19 + $0x1e0] sm:$0xff] %v401_v60  ;;  %404 = vst [vmem:[%s5581_s19 + $0x1e8] sm:$0xff] %v403_v61  ;;  %v407_v63 = vld [vmem:[%s5576_s18 + $0x1f8] sm:$0xff]  ;;  %v409_v0 = vld [vmem:[%s5576_s18 + $0x200] sm:$0xff] }
  0x32   : > { %406 = vst [vmem:[%s5581_s19 + $0x1f0] sm:$0xff] %v405_v62  ;;  %v411_v1 = vld [vmem:[%s5576_s18 + $0x208] sm:$0xff]  ;;  %408 = vst [vmem:[%s5581_s19 + $0x1f8] sm:$0xff] %v407_v63  ;;  %v413_v2 = vld [vmem:[%s5576_s18 + $0x210] sm:$0xff] }
  0x33   : > { %410 = vst [vmem:[%s5581_s19 + $0x200] sm:$0xff] %v409_v0  ;;  %412 = vst [vmem:[%s5581_s19 + $0x208] sm:$0xff] %v411_v1  ;;  %v415_v3 = vld [vmem:[%s5576_s18 + $0x218] sm:$0xff]  ;;  %v417_v4 = vld [vmem:[%s5576_s18 + $0x220] sm:$0xff] }
  0x34   : > { %414 = vst [vmem:[%s5581_s19 + $0x210] sm:$0xff] %v413_v2  ;;  %416 = vst [vmem:[%s5581_s19 + $0x218] sm:$0xff] %v415_v3  ;;  %v419_v5 = vld [vmem:[%s5576_s18 + $0x228] sm:$0xff]  ;;  %v421_v6 = vld [vmem:[%s5576_s18 + $0x690] sm:$0xff] }
  0x35   : > { %418 = vst [vmem:[%s5581_s19 + $0x220] sm:$0xff] %v417_v4  ;;  %v423_v7 = vld [vmem:[%s5576_s18 + $0x698] sm:$0xff]  ;;  %420 = vst [vmem:[%s5581_s19 + $0x228] sm:$0xff] %v419_v5  ;;  %v425_v8 = vld [vmem:[%s5576_s18 + $0x6a0] sm:$0xff] }
  0x36   : > { %422 = vst [vmem:[%s5581_s19 + $0x230] sm:$0xff] %v421_v6  ;;  %424 = vst [vmem:[%s5581_s19 + $0x238] sm:$0xff] %v423_v7  ;;  %v427_v9 = vld [vmem:[%s5576_s18 + $0x6a8] sm:$0xff]  ;;  %v429_v10 = vld [vmem:[%s5576_s18 + $0x6b0] sm:$0xff] }
  0x37   : > { %426 = vst [vmem:[%s5581_s19 + $0x240] sm:$0xff] %v425_v8  ;;  %428 = vst [vmem:[%s5581_s19 + $0x248] sm:$0xff] %v427_v9  ;;  %v431_v11 = vld [vmem:[%s5576_s18 + $0x6b8] sm:$0xff]  ;;  %v433_v12 = vld [vmem:[%s5576_s18 + $0x6c0] sm:$0xff] }
  0x38   : > { %430 = vst [vmem:[%s5581_s19 + $0x250] sm:$0xff] %v429_v10  ;;  %v435_v13 = vld [vmem:[%s5576_s18 + $0x6c8] sm:$0xff]  ;;  %432 = vst [vmem:[%s5581_s19 + $0x258] sm:$0xff] %v431_v11  ;;  %v437_v14 = vld [vmem:[%s5576_s18 + $0x6d0] sm:$0xff] }
  0x39   : > { %434 = vst [vmem:[%s5581_s19 + $0x260] sm:$0xff] %v433_v12  ;;  %436 = vst [vmem:[%s5581_s19 + $0x268] sm:$0xff] %v435_v13  ;;  %v439_v15 = vld [vmem:[%s5576_s18 + $0x6d8] sm:$0xff]  ;;  %v441_v16 = vld [vmem:[%s5576_s18 + $0x6e0] sm:$0xff] }
  0x3a   : > { %438 = vst [vmem:[%s5581_s19 + $0x270] sm:$0xff] %v437_v14  ;;  %440 = vst [vmem:[%s5581_s19 + $0x278] sm:$0xff] %v439_v15  ;;  %v443_v17 = vld [vmem:[%s5576_s18 + $0x6e8] sm:$0xff]  ;;  %v445_v18 = vld [vmem:[%s5576_s18 + $0x6f0] sm:$0xff] }
  0x3b   : > { %442 = vst [vmem:[%s5581_s19 + $0x280] sm:$0xff] %v441_v16  ;;  %v447_v19 = vld [vmem:[%s5576_s18 + $0x6f8] sm:$0xff]  ;;  %444 = vst [vmem:[%s5581_s19 + $0x288] sm:$0xff] %v443_v17  ;;  %v449_v20 = vld [vmem:[%s5576_s18 + $0x700] sm:$0xff] }
  0x3c   : > { %446 = vst [vmem:[%s5581_s19 + $0x290] sm:$0xff] %v445_v18  ;;  %448 = vst [vmem:[%s5581_s19 + $0x298] sm:$0xff] %v447_v19  ;;  %v451_v21 = vld [vmem:[%s5576_s18 + $0x708] sm:$0xff]  ;;  %v453_v22 = vld [vmem:[%s5576_s18 + $0x710] sm:$0xff] }
  0x3d   : > { %450 = vst [vmem:[%s5581_s19 + $0x2a0] sm:$0xff] %v449_v20  ;;  %452 = vst [vmem:[%s5581_s19 + $0x2a8] sm:$0xff] %v451_v21  ;;  %v455_v23 = vld [vmem:[%s5576_s18 + $0x718] sm:$0xff]  ;;  %v457_v24 = vld [vmem:[%s5576_s18 + $0x720] sm:$0xff] }
  0x3e   : > { %454 = vst [vmem:[%s5581_s19 + $0x2b0] sm:$0xff] %v453_v22  ;;  %v459_v25 = vld [vmem:[%s5576_s18 + $0x728] sm:$0xff]  ;;  %456 = vst [vmem:[%s5581_s19 + $0x2b8] sm:$0xff] %v455_v23  ;;  %v461_v26 = vld [vmem:[%s5576_s18 + $0x730] sm:$0xff] }
  0x3f   : > { %458 = vst [vmem:[%s5581_s19 + $0x2c0] sm:$0xff] %v457_v24  ;;  %460 = vst [vmem:[%s5581_s19 + $0x2c8] sm:$0xff] %v459_v25  ;;  %v463_v27 = vld [vmem:[%s5576_s18 + $0x738] sm:$0xff]  ;;  %v465_v28 = vld [vmem:[%s5576_s18 + $0x740] sm:$0xff] }
  0x40   : > { %462 = vst [vmem:[%s5581_s19 + $0x2d0] sm:$0xff] %v461_v26  ;;  %464 = vst [vmem:[%s5581_s19 + $0x2d8] sm:$0xff] %v463_v27  ;;  %v467_v29 = vld [vmem:[%s5576_s18 + $0x748] sm:$0xff]  ;;  %v469_v30 = vld [vmem:[%s5576_s18 + $0x750] sm:$0xff] }
  0x41   : > { %466 = vst [vmem:[%s5581_s19 + $0x2e0] sm:$0xff] %v465_v28  ;;  %v471_v31 = vld [vmem:[%s5576_s18 + $0x758] sm:$0xff]  ;;  %468 = vst [vmem:[%s5581_s19 + $0x2e8] sm:$0xff] %v467_v29  ;;  %v473_v32 = vld [vmem:[%s5576_s18 + $0x760] sm:$0xff] }
  0x42   : > { %470 = vst [vmem:[%s5581_s19 + $0x2f0] sm:$0xff] %v469_v30  ;;  %472 = vst [vmem:[%s5581_s19 + $0x2f8] sm:$0xff] %v471_v31  ;;  %v475_v33 = vld [vmem:[%s5576_s18 + $0x768] sm:$0xff]  ;;  %v477_v34 = vld [vmem:[%s5576_s18 + $0x770] sm:$0xff] }
  0x43   : > { %474 = vst [vmem:[%s5581_s19 + $0x300] sm:$0xff] %v473_v32  ;;  %476 = vst [vmem:[%s5581_s19 + $0x308] sm:$0xff] %v475_v33  ;;  %v479_v35 = vld [vmem:[%s5576_s18 + $0x778] sm:$0xff]  ;;  %v481_v36 = vld [vmem:[%s5576_s18 + $0x780] sm:$0xff] }
  0x44   : > { %478 = vst [vmem:[%s5581_s19 + $0x310] sm:$0xff] %v477_v34  ;;  %v483_v37 = vld [vmem:[%s5576_s18 + $0x788] sm:$0xff]  ;;  %480 = vst [vmem:[%s5581_s19 + $0x318] sm:$0xff] %v479_v35  ;;  %v485_v38 = vld [vmem:[%s5576_s18 + $0x790] sm:$0xff] }
  0x45   : > { %482 = vst [vmem:[%s5581_s19 + $0x320] sm:$0xff] %v481_v36  ;;  %484 = vst [vmem:[%s5581_s19 + $0x328] sm:$0xff] %v483_v37  ;;  %v487_v39 = vld [vmem:[%s5576_s18 + $0x798] sm:$0xff]  ;;  %v489_v40 = vld [vmem:[%s5576_s18 + $0x7a0] sm:$0xff] }
  0x46   : > { %486 = vst [vmem:[%s5581_s19 + $0x330] sm:$0xff] %v485_v38  ;;  %488 = vst [vmem:[%s5581_s19 + $0x338] sm:$0xff] %v487_v39  ;;  %v491_v41 = vld [vmem:[%s5576_s18 + $0x7a8] sm:$0xff]  ;;  %v493_v42 = vld [vmem:[%s5576_s18 + $0x7b0] sm:$0xff] }
  0x47   : > { %490 = vst [vmem:[%s5581_s19 + $0x340] sm:$0xff] %v489_v40  ;;  %v495_v43 = vld [vmem:[%s5576_s18 + $0x7b8] sm:$0xff]  ;;  %492 = vst [vmem:[%s5581_s19 + $0x348] sm:$0xff] %v491_v41  ;;  %v497_v44 = vld [vmem:[%s5576_s18 + $0x7c0] sm:$0xff] }
  0x48   : > { %494 = vst [vmem:[%s5581_s19 + $0x350] sm:$0xff] %v493_v42  ;;  %496 = vst [vmem:[%s5581_s19 + $0x358] sm:$0xff] %v495_v43  ;;  %v499_v45 = vld [vmem:[%s5576_s18 + $0x7c8] sm:$0xff]  ;;  %v501_v46 = vld [vmem:[%s5576_s18 + $0x7d0] sm:$0xff] }
  0x49   : > { %498 = vst [vmem:[%s5581_s19 + $0x360] sm:$0xff] %v497_v44  ;;  %500 = vst [vmem:[%s5581_s19 + $0x368] sm:$0xff] %v499_v45  ;;  %v503_v47 = vld [vmem:[%s5576_s18 + $0x7d8] sm:$0xff]  ;;  %v505_v48 = vld [vmem:[%s5576_s18 + $0x7e0] sm:$0xff] }
  0x4a   : > { %502 = vst [vmem:[%s5581_s19 + $0x370] sm:$0xff] %v501_v46  ;;  %v507_v49 = vld [vmem:[%s5576_s18 + $0x7e8] sm:$0xff]  ;;  %504 = vst [vmem:[%s5581_s19 + $0x378] sm:$0xff] %v503_v47  ;;  %v509_v50 = vld [vmem:[%s5576_s18 + $0x7f0] sm:$0xff] }
  0x4b   : > { %506 = vst [vmem:[%s5581_s19 + $0x380] sm:$0xff] %v505_v48  ;;  %508 = vst [vmem:[%s5581_s19 + $0x388] sm:$0xff] %v507_v49  ;;  %v511_v51 = vld [vmem:[%s5576_s18 + $0x7f8] sm:$0xff]  ;;  %v513_v52 = vld [vmem:[%s5576_s18 + $0x800] sm:$0xff] }
  0x4c   : > { %510 = vst [vmem:[%s5581_s19 + $0x390] sm:$0xff] %v509_v50  ;;  %512 = vst [vmem:[%s5581_s19 + $0x398] sm:$0xff] %v511_v51  ;;  %v515_v53 = vld [vmem:[%s5576_s18 + $0x808] sm:$0xff]  ;;  %v517_v54 = vld [vmem:[%s5576_s18 + $0x810] sm:$0xff] }
  0x4d   : > { %514 = vst [vmem:[%s5581_s19 + $0x3a0] sm:$0xff] %v513_v52  ;;  %v519_v55 = vld [vmem:[%s5576_s18 + $0x818] sm:$0xff]  ;;  %516 = vst [vmem:[%s5581_s19 + $0x3a8] sm:$0xff] %v515_v53  ;;  %v521_v56 = vld [vmem:[%s5576_s18 + $0x820] sm:$0xff] }
  0x4e   : > { %518 = vst [vmem:[%s5581_s19 + $0x3b0] sm:$0xff] %v517_v54  ;;  %520 = vst [vmem:[%s5581_s19 + $0x3b8] sm:$0xff] %v519_v55  ;;  %v523_v57 = vld [vmem:[%s5576_s18 + $0x828] sm:$0xff]  ;;  %v525_v58 = vld [vmem:[%s5576_s18 + $0x830] sm:$0xff] }
  0x4f   : > { %522 = vst [vmem:[%s5581_s19 + $0x3c0] sm:$0xff] %v521_v56  ;;  %524 = vst [vmem:[%s5581_s19 + $0x3c8] sm:$0xff] %v523_v57  ;;  %v527_v59 = vld [vmem:[%s5576_s18 + $0x838] sm:$0xff]  ;;  %v529_v60 = vld [vmem:[%s5576_s18 + $0x840] sm:$0xff] }
  0x50   : > { %526 = vst [vmem:[%s5581_s19 + $0x3d0] sm:$0xff] %v525_v58  ;;  %v531_v61 = vld [vmem:[%s5576_s18 + $0x848] sm:$0xff]  ;;  %528 = vst [vmem:[%s5581_s19 + $0x3d8] sm:$0xff] %v527_v59  ;;  %v533_v62 = vld [vmem:[%s5576_s18 + $0x850] sm:$0xff] }
  0x51   : > { %530 = vst [vmem:[%s5581_s19 + $0x3e0] sm:$0xff] %v529_v60  ;;  %532 = vst [vmem:[%s5581_s19 + $0x3e8] sm:$0xff] %v531_v61  ;;  %v535_v63 = vld [vmem:[%s5576_s18 + $0x858] sm:$0xff]  ;;  %v537_v0 = vld [vmem:[%s5576_s18 + $0x860] sm:$0xff] }
  0x52   : > { %534 = vst [vmem:[%s5581_s19 + $0x3f0] sm:$0xff] %v533_v62  ;;  %536 = vst [vmem:[%s5581_s19 + $0x3f8] sm:$0xff] %v535_v63  ;;  %v539_v1 = vld [vmem:[%s5576_s18 + $0x868] sm:$0xff]  ;;  %v541_v2 = vld [vmem:[%s5576_s18 + $0x870] sm:$0xff] }
  0x53   : > { %538 = vst [vmem:[%s5581_s19 + $0x400] sm:$0xff] %v537_v0  ;;  %v543_v3 = vld [vmem:[%s5576_s18 + $0x878] sm:$0xff]  ;;  %540 = vst [vmem:[%s5581_s19 + $0x408] sm:$0xff] %v539_v1  ;;  %v545_v4 = vld [vmem:[%s5576_s18 + $0x880] sm:$0xff] }
  0x54   : > { %542 = vst [vmem:[%s5581_s19 + $0x410] sm:$0xff] %v541_v2  ;;  %544 = vst [vmem:[%s5581_s19 + $0x418] sm:$0xff] %v543_v3  ;;  %v547_v5 = vld [vmem:[%s5576_s18 + $0x888] sm:$0xff]  ;;  %v549_v6 = vld [vmem:[%s5576_s18 + $0x890] sm:$0xff] }
  0x55   : > { %546 = vst [vmem:[%s5581_s19 + $0x420] sm:$0xff] %v545_v4  ;;  %548 = vst [vmem:[%s5581_s19 + $0x428] sm:$0xff] %v547_v5  ;;  %v551_v7 = vld [vmem:[%s5576_s18 + $0x898] sm:$0xff]  ;;  %v553_v8 = vld [vmem:[%s5576_s18 + $0x8a0] sm:$0xff] }
  0x56   : > { %550 = vst [vmem:[%s5581_s19 + $0x430] sm:$0xff] %v549_v6  ;;  %v555_v9 = vld [vmem:[%s5576_s18 + $0x8a8] sm:$0xff]  ;;  %552 = vst [vmem:[%s5581_s19 + $0x438] sm:$0xff] %v551_v7  ;;  %v557_v10 = vld [vmem:[%s5576_s18 + $0x8b0] sm:$0xff] }
  0x57   : > { %554 = vst [vmem:[%s5581_s19 + $0x440] sm:$0xff] %v553_v8  ;;  %556 = vst [vmem:[%s5581_s19 + $0x448] sm:$0xff] %v555_v9  ;;  %v559_v11 = vld [vmem:[%s5576_s18 + $0x8b8] sm:$0xff]  ;;  %v561_v12 = vld [vmem:[%s5576_s18 + $0xd20] sm:$0xff] }
  0x58   : > { %558 = vst [vmem:[%s5581_s19 + $0x450] sm:$0xff] %v557_v10  ;;  %560 = vst [vmem:[%s5581_s19 + $0x458] sm:$0xff] %v559_v11  ;;  %v563_v13 = vld [vmem:[%s5576_s18 + $0xd28] sm:$0xff]  ;;  %v565_v14 = vld [vmem:[%s5576_s18 + $0xd30] sm:$0xff] }
  0x59   : > { %562 = vst [vmem:[%s5581_s19 + $0x460] sm:$0xff] %v561_v12  ;;  %v567_v15 = vld [vmem:[%s5576_s18 + $0xd38] sm:$0xff]  ;;  %564 = vst [vmem:[%s5581_s19 + $0x468] sm:$0xff] %v563_v13  ;;  %v569_v16 = vld [vmem:[%s5576_s18 + $0xd40] sm:$0xff] }
  0x5a   : > { %566 = vst [vmem:[%s5581_s19 + $0x470] sm:$0xff] %v565_v14  ;;  %568 = vst [vmem:[%s5581_s19 + $0x478] sm:$0xff] %v567_v15  ;;  %v571_v17 = vld [vmem:[%s5576_s18 + $0xd48] sm:$0xff]  ;;  %v573_v18 = vld [vmem:[%s5576_s18 + $0xd50] sm:$0xff] }
  0x5b   : > { %570 = vst [vmem:[%s5581_s19 + $0x480] sm:$0xff] %v569_v16  ;;  %572 = vst [vmem:[%s5581_s19 + $0x488] sm:$0xff] %v571_v17  ;;  %v575_v19 = vld [vmem:[%s5576_s18 + $0xd58] sm:$0xff]  ;;  %v577_v20 = vld [vmem:[%s5576_s18 + $0xd60] sm:$0xff] }
  0x5c   : > { %574 = vst [vmem:[%s5581_s19 + $0x490] sm:$0xff] %v573_v18  ;;  %v579_v21 = vld [vmem:[%s5576_s18 + $0xd68] sm:$0xff]  ;;  %576 = vst [vmem:[%s5581_s19 + $0x498] sm:$0xff] %v575_v19  ;;  %v581_v22 = vld [vmem:[%s5576_s18 + $0xd70] sm:$0xff] }
  0x5d   : > { %578 = vst [vmem:[%s5581_s19 + $0x4a0] sm:$0xff] %v577_v20  ;;  %580 = vst [vmem:[%s5581_s19 + $0x4a8] sm:$0xff] %v579_v21  ;;  %v583_v23 = vld [vmem:[%s5576_s18 + $0xd78] sm:$0xff]  ;;  %v585_v24 = vld [vmem:[%s5576_s18 + $0xd80] sm:$0xff] }
  0x5e   : > { %582 = vst [vmem:[%s5581_s19 + $0x4b0] sm:$0xff] %v581_v22  ;;  %584 = vst [vmem:[%s5581_s19 + $0x4b8] sm:$0xff] %v583_v23  ;;  %v587_v25 = vld [vmem:[%s5576_s18 + $0xd88] sm:$0xff]  ;;  %v589_v26 = vld [vmem:[%s5576_s18 + $0xd90] sm:$0xff] }
  0x5f   : > { %586 = vst [vmem:[%s5581_s19 + $0x4c0] sm:$0xff] %v585_v24  ;;  %v591_v27 = vld [vmem:[%s5576_s18 + $0xd98] sm:$0xff]  ;;  %588 = vst [vmem:[%s5581_s19 + $0x4c8] sm:$0xff] %v587_v25  ;;  %v593_v28 = vld [vmem:[%s5576_s18 + $0xda0] sm:$0xff] }
  0x60   : > { %590 = vst [vmem:[%s5581_s19 + $0x4d0] sm:$0xff] %v589_v26  ;;  %592 = vst [vmem:[%s5581_s19 + $0x4d8] sm:$0xff] %v591_v27  ;;  %v595_v29 = vld [vmem:[%s5576_s18 + $0xda8] sm:$0xff]  ;;  %v597_v30 = vld [vmem:[%s5576_s18 + $0xdb0] sm:$0xff] }
  0x61   : > { %594 = vst [vmem:[%s5581_s19 + $0x4e0] sm:$0xff] %v593_v28  ;;  %596 = vst [vmem:[%s5581_s19 + $0x4e8] sm:$0xff] %v595_v29  ;;  %v599_v31 = vld [vmem:[%s5576_s18 + $0xdb8] sm:$0xff]  ;;  %v601_v32 = vld [vmem:[%s5576_s18 + $0xdc0] sm:$0xff] }
  0x62   : > { %598 = vst [vmem:[%s5581_s19 + $0x4f0] sm:$0xff] %v597_v30  ;;  %v603_v33 = vld [vmem:[%s5576_s18 + $0xdc8] sm:$0xff]  ;;  %600 = vst [vmem:[%s5581_s19 + $0x4f8] sm:$0xff] %v599_v31  ;;  %v605_v34 = vld [vmem:[%s5576_s18 + $0xdd0] sm:$0xff] }
  0x63   : > { %602 = vst [vmem:[%s5581_s19 + $0x500] sm:$0xff] %v601_v32  ;;  %604 = vst [vmem:[%s5581_s19 + $0x508] sm:$0xff] %v603_v33  ;;  %v607_v35 = vld [vmem:[%s5576_s18 + $0xdd8] sm:$0xff]  ;;  %v609_v36 = vld [vmem:[%s5576_s18 + $0xde0] sm:$0xff] }
  0x64   : > { %606 = vst [vmem:[%s5581_s19 + $0x510] sm:$0xff] %v605_v34  ;;  %608 = vst [vmem:[%s5581_s19 + $0x518] sm:$0xff] %v607_v35  ;;  %v611_v37 = vld [vmem:[%s5576_s18 + $0xde8] sm:$0xff]  ;;  %v613_v38 = vld [vmem:[%s5576_s18 + $0xdf0] sm:$0xff] }
  0x65   : > { %610 = vst [vmem:[%s5581_s19 + $0x520] sm:$0xff] %v609_v36  ;;  %v615_v39 = vld [vmem:[%s5576_s18 + $0xdf8] sm:$0xff]  ;;  %612 = vst [vmem:[%s5581_s19 + $0x528] sm:$0xff] %v611_v37  ;;  %v617_v40 = vld [vmem:[%s5576_s18 + $0xe00] sm:$0xff] }
  0x66   : > { %614 = vst [vmem:[%s5581_s19 + $0x530] sm:$0xff] %v613_v38  ;;  %616 = vst [vmem:[%s5581_s19 + $0x538] sm:$0xff] %v615_v39  ;;  %v619_v41 = vld [vmem:[%s5576_s18 + $0xe08] sm:$0xff]  ;;  %v621_v42 = vld [vmem:[%s5576_s18 + $0xe10] sm:$0xff] }
  0x67   : > { %618 = vst [vmem:[%s5581_s19 + $0x540] sm:$0xff] %v617_v40  ;;  %620 = vst [vmem:[%s5581_s19 + $0x548] sm:$0xff] %v619_v41  ;;  %v623_v43 = vld [vmem:[%s5576_s18 + $0xe18] sm:$0xff]  ;;  %v625_v44 = vld [vmem:[%s5576_s18 + $0xe20] sm:$0xff] }
  0x68   : > { %622 = vst [vmem:[%s5581_s19 + $0x550] sm:$0xff] %v621_v42  ;;  %v627_v45 = vld [vmem:[%s5576_s18 + $0xe28] sm:$0xff]  ;;  %624 = vst [vmem:[%s5581_s19 + $0x558] sm:$0xff] %v623_v43  ;;  %v629_v46 = vld [vmem:[%s5576_s18 + $0xe30] sm:$0xff] }
  0x69   : > { %626 = vst [vmem:[%s5581_s19 + $0x560] sm:$0xff] %v625_v44  ;;  %628 = vst [vmem:[%s5581_s19 + $0x568] sm:$0xff] %v627_v45  ;;  %v631_v47 = vld [vmem:[%s5576_s18 + $0xe38] sm:$0xff]  ;;  %v633_v48 = vld [vmem:[%s5576_s18 + $0xe40] sm:$0xff] }
  0x6a   : > { %630 = vst [vmem:[%s5581_s19 + $0x570] sm:$0xff] %v629_v46  ;;  %632 = vst [vmem:[%s5581_s19 + $0x578] sm:$0xff] %v631_v47  ;;  %v635_v49 = vld [vmem:[%s5576_s18 + $0xe48] sm:$0xff]  ;;  %v637_v50 = vld [vmem:[%s5576_s18 + $0xe50] sm:$0xff] }
  0x6b   : > { %634 = vst [vmem:[%s5581_s19 + $0x580] sm:$0xff] %v633_v48  ;;  %v639_v51 = vld [vmem:[%s5576_s18 + $0xe58] sm:$0xff]  ;;  %636 = vst [vmem:[%s5581_s19 + $0x588] sm:$0xff] %v635_v49  ;;  %v641_v52 = vld [vmem:[%s5576_s18 + $0xe60] sm:$0xff] }
  0x6c   : > { %638 = vst [vmem:[%s5581_s19 + $0x590] sm:$0xff] %v637_v50  ;;  %640 = vst [vmem:[%s5581_s19 + $0x598] sm:$0xff] %v639_v51  ;;  %v643_v53 = vld [vmem:[%s5576_s18 + $0xe68] sm:$0xff]  ;;  %v645_v54 = vld [vmem:[%s5576_s18 + $0xe70] sm:$0xff] }
  0x6d   : > { %642 = vst [vmem:[%s5581_s19 + $0x5a0] sm:$0xff] %v641_v52  ;;  %644 = vst [vmem:[%s5581_s19 + $0x5a8] sm:$0xff] %v643_v53  ;;  %v647_v55 = vld [vmem:[%s5576_s18 + $0xe78] sm:$0xff]  ;;  %v649_v56 = vld [vmem:[%s5576_s18 + $0xe80] sm:$0xff] }
  0x6e   : > { %646 = vst [vmem:[%s5581_s19 + $0x5b0] sm:$0xff] %v645_v54  ;;  %v651_v57 = vld [vmem:[%s5576_s18 + $0xe88] sm:$0xff]  ;;  %648 = vst [vmem:[%s5581_s19 + $0x5b8] sm:$0xff] %v647_v55  ;;  %v653_v58 = vld [vmem:[%s5576_s18 + $0xe90] sm:$0xff] }
  0x6f   : > { %650 = vst [vmem:[%s5581_s19 + $0x5c0] sm:$0xff] %v649_v56  ;;  %652 = vst [vmem:[%s5581_s19 + $0x5c8] sm:$0xff] %v651_v57  ;;  %v655_v59 = vld [vmem:[%s5576_s18 + $0xe98] sm:$0xff]  ;;  %v657_v60 = vld [vmem:[%s5576_s18 + $0xea0] sm:$0xff] }
  0x70   : > { %654 = vst [vmem:[%s5581_s19 + $0x5d0] sm:$0xff] %v653_v58  ;;  %656 = vst [vmem:[%s5581_s19 + $0x5d8] sm:$0xff] %v655_v59  ;;  %v659_v61 = vld [vmem:[%s5576_s18 + $0xea8] sm:$0xff]  ;;  %v661_v62 = vld [vmem:[%s5576_s18 + $0xeb0] sm:$0xff] }
  0x71   : > { %658 = vst [vmem:[%s5581_s19 + $0x5e0] sm:$0xff] %v657_v60  ;;  %v663_v63 = vld [vmem:[%s5576_s18 + $0xeb8] sm:$0xff]  ;;  %660 = vst [vmem:[%s5581_s19 + $0x5e8] sm:$0xff] %v659_v61  ;;  %v665_v0 = vld [vmem:[%s5576_s18 + $0xec0] sm:$0xff] }
  0x72   : > { %662 = vst [vmem:[%s5581_s19 + $0x5f0] sm:$0xff] %v661_v62  ;;  %664 = vst [vmem:[%s5581_s19 + $0x5f8] sm:$0xff] %v663_v63  ;;  %v667_v1 = vld [vmem:[%s5576_s18 + $0xec8] sm:$0xff]  ;;  %v669_v2 = vld [vmem:[%s5576_s18 + $0xed0] sm:$0xff] }
  0x73   : > { %666 = vst [vmem:[%s5581_s19 + $0x600] sm:$0xff] %v665_v0  ;;  %668 = vst [vmem:[%s5581_s19 + $0x608] sm:$0xff] %v667_v1  ;;  %v671_v3 = vld [vmem:[%s5576_s18 + $0xed8] sm:$0xff]  ;;  %v673_v4 = vld [vmem:[%s5576_s18 + $0xee0] sm:$0xff] }
  0x74   : > { %670 = vst [vmem:[%s5581_s19 + $0x610] sm:$0xff] %v669_v2  ;;  %v675_v5 = vld [vmem:[%s5576_s18 + $0xee8] sm:$0xff]  ;;  %672 = vst [vmem:[%s5581_s19 + $0x618] sm:$0xff] %v671_v3  ;;  %v677_v6 = vld [vmem:[%s5576_s18 + $0xef0] sm:$0xff] }
  0x75   : > { %674 = vst [vmem:[%s5581_s19 + $0x620] sm:$0xff] %v673_v4  ;;  %676 = vst [vmem:[%s5581_s19 + $0x628] sm:$0xff] %v675_v5  ;;  %v679_v7 = vld [vmem:[%s5576_s18 + $0xef8] sm:$0xff]  ;;  %v681_v8 = vld [vmem:[%s5576_s18 + $0xf00] sm:$0xff] }
  0x76   : > { %678 = vst [vmem:[%s5581_s19 + $0x630] sm:$0xff] %v677_v6  ;;  %680 = vst [vmem:[%s5581_s19 + $0x638] sm:$0xff] %v679_v7  ;;  %v683_v9 = vld [vmem:[%s5576_s18 + $0xf08] sm:$0xff]  ;;  %v685_v10 = vld [vmem:[%s5576_s18 + $0xf10] sm:$0xff] }
  0x77   : > { %682 = vst [vmem:[%s5581_s19 + $0x640] sm:$0xff] %v681_v8  ;;  %v687_v11 = vld [vmem:[%s5576_s18 + $0xf18] sm:$0xff]  ;;  %684 = vst [vmem:[%s5581_s19 + $0x648] sm:$0xff] %v683_v9  ;;  %v689_v12 = vld [vmem:[%s5576_s18 + $0xf20] sm:$0xff] }
  0x78   : > { %686 = vst [vmem:[%s5581_s19 + $0x650] sm:$0xff] %v685_v10  ;;  %688 = vst [vmem:[%s5581_s19 + $0x658] sm:$0xff] %v687_v11  ;;  %v691_v13 = vld [vmem:[%s5576_s18 + $0xf28] sm:$0xff]  ;;  %v693_v14 = vld [vmem:[%s5576_s18 + $0xf30] sm:$0xff] }
  0x79   : > { %690 = vst [vmem:[%s5581_s19 + $0x660] sm:$0xff] %v689_v12  ;;  %692 = vst [vmem:[%s5581_s19 + $0x668] sm:$0xff] %v691_v13  ;;  %v695_v15 = vld [vmem:[%s5576_s18 + $0xf38] sm:$0xff]  ;;  %v697_v16 = vld [vmem:[%s5576_s18 + $0xf40] sm:$0xff] }
  0x7a   : > { %694 = vst [vmem:[%s5581_s19 + $0x670] sm:$0xff] %v693_v14  ;;  %v699_v17 = vld [vmem:[%s5576_s18 + $0xf48] sm:$0xff]  ;;  %696 = vst [vmem:[%s5581_s19 + $0x678] sm:$0xff] %v695_v15  ;;  %v701_v18 = vld [vmem:[%s5576_s18 + $0x13b0] sm:$0xff] }
  0x7b   : > { %698 = vst [vmem:[%s5581_s19 + $0x680] sm:$0xff] %v697_v16  ;;  %700 = vst [vmem:[%s5581_s19 + $0x688] sm:$0xff] %v699_v17  ;;  %v703_v19 = vld [vmem:[%s5576_s18 + $0x13b8] sm:$0xff]  ;;  %v705_v20 = vld [vmem:[%s5576_s18 + $0x13c0] sm:$0xff] }
  0x7c   : > { %702 = vst [vmem:[%s5581_s19 + $0x690] sm:$0xff] %v701_v18  ;;  %704 = vst [vmem:[%s5581_s19 + $0x698] sm:$0xff] %v703_v19  ;;  %v707_v21 = vld [vmem:[%s5576_s18 + $0x13c8] sm:$0xff]  ;;  %v709_v22 = vld [vmem:[%s5576_s18 + $0x13d0] sm:$0xff] }
  0x7d   : > { %706 = vst [vmem:[%s5581_s19 + $0x6a0] sm:$0xff] %v705_v20  ;;  %v711_v23 = vld [vmem:[%s5576_s18 + $0x13d8] sm:$0xff]  ;;  %708 = vst [vmem:[%s5581_s19 + $0x6a8] sm:$0xff] %v707_v21  ;;  %v713_v24 = vld [vmem:[%s5576_s18 + $0x13e0] sm:$0xff] }
  0x7e   : > { %710 = vst [vmem:[%s5581_s19 + $0x6b0] sm:$0xff] %v709_v22  ;;  %712 = vst [vmem:[%s5581_s19 + $0x6b8] sm:$0xff] %v711_v23  ;;  %v715_v25 = vld [vmem:[%s5576_s18 + $0x13e8] sm:$0xff]  ;;  %v717_v26 = vld [vmem:[%s5576_s18 + $0x13f0] sm:$0xff] }
  0x7f   : > { %714 = vst [vmem:[%s5581_s19 + $0x6c0] sm:$0xff] %v713_v24  ;;  %716 = vst [vmem:[%s5581_s19 + $0x6c8] sm:$0xff] %v715_v25  ;;  %v719_v27 = vld [vmem:[%s5576_s18 + $0x13f8] sm:$0xff]  ;;  %v721_v28 = vld [vmem:[%s5576_s18 + $0x1400] sm:$0xff] }
  0x80   : > { %718 = vst [vmem:[%s5581_s19 + $0x6d0] sm:$0xff] %v717_v26  ;;  %v723_v29 = vld [vmem:[%s5576_s18 + $0x1408] sm:$0xff]  ;;  %720 = vst [vmem:[%s5581_s19 + $0x6d8] sm:$0xff] %v719_v27  ;;  %v725_v30 = vld [vmem:[%s5576_s18 + $0x1410] sm:$0xff] }
  0x81   : > { %722 = vst [vmem:[%s5581_s19 + $0x6e0] sm:$0xff] %v721_v28  ;;  %724 = vst [vmem:[%s5581_s19 + $0x6e8] sm:$0xff] %v723_v29  ;;  %v727_v31 = vld [vmem:[%s5576_s18 + $0x1418] sm:$0xff]  ;;  %v729_v32 = vld [vmem:[%s5576_s18 + $0x1420] sm:$0xff] }
  0x82   : > { %726 = vst [vmem:[%s5581_s19 + $0x6f0] sm:$0xff] %v725_v30  ;;  %728 = vst [vmem:[%s5581_s19 + $0x6f8] sm:$0xff] %v727_v31  ;;  %v731_v33 = vld [vmem:[%s5576_s18 + $0x1428] sm:$0xff]  ;;  %v733_v34 = vld [vmem:[%s5576_s18 + $0x1430] sm:$0xff] }
  0x83   : > { %730 = vst [vmem:[%s5581_s19 + $0x700] sm:$0xff] %v729_v32  ;;  %v735_v35 = vld [vmem:[%s5576_s18 + $0x1438] sm:$0xff]  ;;  %732 = vst [vmem:[%s5581_s19 + $0x708] sm:$0xff] %v731_v33  ;;  %v737_v36 = vld [vmem:[%s5576_s18 + $0x1440] sm:$0xff] }
  0x84   : > { %734 = vst [vmem:[%s5581_s19 + $0x710] sm:$0xff] %v733_v34  ;;  %736 = vst [vmem:[%s5581_s19 + $0x718] sm:$0xff] %v735_v35  ;;  %v739_v37 = vld [vmem:[%s5576_s18 + $0x1448] sm:$0xff]  ;;  %v741_v38 = vld [vmem:[%s5576_s18 + $0x1450] sm:$0xff] }
  0x85   : > { %738 = vst [vmem:[%s5581_s19 + $0x720] sm:$0xff] %v737_v36  ;;  %740 = vst [vmem:[%s5581_s19 + $0x728] sm:$0xff] %v739_v37  ;;  %v743_v39 = vld [vmem:[%s5576_s18 + $0x1458] sm:$0xff]  ;;  %v745_v40 = vld [vmem:[%s5576_s18 + $0x1460] sm:$0xff] }
  0x86   : > { %742 = vst [vmem:[%s5581_s19 + $0x730] sm:$0xff] %v741_v38  ;;  %v747_v41 = vld [vmem:[%s5576_s18 + $0x1468] sm:$0xff]  ;;  %744 = vst [vmem:[%s5581_s19 + $0x738] sm:$0xff] %v743_v39  ;;  %v749_v42 = vld [vmem:[%s5576_s18 + $0x1470] sm:$0xff] }
  0x87   : > { %746 = vst [vmem:[%s5581_s19 + $0x740] sm:$0xff] %v745_v40  ;;  %748 = vst [vmem:[%s5581_s19 + $0x748] sm:$0xff] %v747_v41  ;;  %v751_v43 = vld [vmem:[%s5576_s18 + $0x1478] sm:$0xff]  ;;  %v753_v44 = vld [vmem:[%s5576_s18 + $0x1480] sm:$0xff] }
  0x88   : > { %750 = vst [vmem:[%s5581_s19 + $0x750] sm:$0xff] %v749_v42  ;;  %752 = vst [vmem:[%s5581_s19 + $0x758] sm:$0xff] %v751_v43  ;;  %v755_v45 = vld [vmem:[%s5576_s18 + $0x1488] sm:$0xff]  ;;  %v757_v46 = vld [vmem:[%s5576_s18 + $0x1490] sm:$0xff] }
  0x89   : > { %754 = vst [vmem:[%s5581_s19 + $0x760] sm:$0xff] %v753_v44  ;;  %v759_v47 = vld [vmem:[%s5576_s18 + $0x1498] sm:$0xff]  ;;  %756 = vst [vmem:[%s5581_s19 + $0x768] sm:$0xff] %v755_v45  ;;  %v761_v48 = vld [vmem:[%s5576_s18 + $0x14a0] sm:$0xff] }
  0x8a   : > { %758 = vst [vmem:[%s5581_s19 + $0x770] sm:$0xff] %v757_v46  ;;  %760 = vst [vmem:[%s5581_s19 + $0x778] sm:$0xff] %v759_v47  ;;  %v763_v49 = vld [vmem:[%s5576_s18 + $0x14a8] sm:$0xff]  ;;  %v765_v50 = vld [vmem:[%s5576_s18 + $0x14b0] sm:$0xff] }
  0x8b   : > { %762 = vst [vmem:[%s5581_s19 + $0x780] sm:$0xff] %v761_v48  ;;  %764 = vst [vmem:[%s5581_s19 + $0x788] sm:$0xff] %v763_v49  ;;  %v767_v51 = vld [vmem:[%s5576_s18 + $0x14b8] sm:$0xff]  ;;  %v769_v52 = vld [vmem:[%s5576_s18 + $0x14c0] sm:$0xff] }
  0x8c   : > { %766 = vst [vmem:[%s5581_s19 + $0x790] sm:$0xff] %v765_v50  ;;  %v771_v53 = vld [vmem:[%s5576_s18 + $0x14c8] sm:$0xff]  ;;  %768 = vst [vmem:[%s5581_s19 + $0x798] sm:$0xff] %v767_v51  ;;  %v773_v54 = vld [vmem:[%s5576_s18 + $0x14d0] sm:$0xff] }
  0x8d   : > { %770 = vst [vmem:[%s5581_s19 + $0x7a0] sm:$0xff] %v769_v52  ;;  %772 = vst [vmem:[%s5581_s19 + $0x7a8] sm:$0xff] %v771_v53  ;;  %v775_v55 = vld [vmem:[%s5576_s18 + $0x14d8] sm:$0xff]  ;;  %v777_v56 = vld [vmem:[%s5576_s18 + $0x14e0] sm:$0xff] }
  0x8e   : > { %774 = vst [vmem:[%s5581_s19 + $0x7b0] sm:$0xff] %v773_v54  ;;  %776 = vst [vmem:[%s5581_s19 + $0x7b8] sm:$0xff] %v775_v55  ;;  %v779_v57 = vld [vmem:[%s5576_s18 + $0x14e8] sm:$0xff]  ;;  %v781_v58 = vld [vmem:[%s5576_s18 + $0x14f0] sm:$0xff] }
  0x8f   : > { %778 = vst [vmem:[%s5581_s19 + $0x7c0] sm:$0xff] %v777_v56  ;;  %v783_v59 = vld [vmem:[%s5576_s18 + $0x14f8] sm:$0xff]  ;;  %780 = vst [vmem:[%s5581_s19 + $0x7c8] sm:$0xff] %v779_v57  ;;  %v785_v60 = vld [vmem:[%s5576_s18 + $0x1500] sm:$0xff] }
  0x90   : > { %782 = vst [vmem:[%s5581_s19 + $0x7d0] sm:$0xff] %v781_v58  ;;  %784 = vst [vmem:[%s5581_s19 + $0x7d8] sm:$0xff] %v783_v59  ;;  %v787_v61 = vld [vmem:[%s5576_s18 + $0x1508] sm:$0xff]  ;;  %v789_v62 = vld [vmem:[%s5576_s18 + $0x1510] sm:$0xff] }
  0x91   : > { %786 = vst [vmem:[%s5581_s19 + $0x7e0] sm:$0xff] %v785_v60  ;;  %788 = vst [vmem:[%s5581_s19 + $0x7e8] sm:$0xff] %v787_v61  ;;  %v791_v63 = vld [vmem:[%s5576_s18 + $0x1518] sm:$0xff]  ;;  %v793_v0 = vld [vmem:[%s5576_s18 + $0x1520] sm:$0xff] }
  0x92   : > { %790 = vst [vmem:[%s5581_s19 + $0x7f0] sm:$0xff] %v789_v62  ;;  %v795_v1 = vld [vmem:[%s5576_s18 + $0x1528] sm:$0xff]  ;;  %792 = vst [vmem:[%s5581_s19 + $0x7f8] sm:$0xff] %v791_v63  ;;  %v797_v2 = vld [vmem:[%s5576_s18 + $0x1530] sm:$0xff] }
  0x93   : > { %794 = vst [vmem:[%s5581_s19 + $0x800] sm:$0xff] %v793_v0  ;;  %796 = vst [vmem:[%s5581_s19 + $0x808] sm:$0xff] %v795_v1  ;;  %v799_v3 = vld [vmem:[%s5576_s18 + $0x1538] sm:$0xff]  ;;  %v801_v4 = vld [vmem:[%s5576_s18 + $0x1540] sm:$0xff] }
  0x94   : > { %798 = vst [vmem:[%s5581_s19 + $0x810] sm:$0xff] %v797_v2  ;;  %800 = vst [vmem:[%s5581_s19 + $0x818] sm:$0xff] %v799_v3  ;;  %v803_v5 = vld [vmem:[%s5576_s18 + $0x1548] sm:$0xff]  ;;  %v805_v6 = vld [vmem:[%s5576_s18 + $0x1550] sm:$0xff] }
  0x95   : > { %802 = vst [vmem:[%s5581_s19 + $0x820] sm:$0xff] %v801_v4  ;;  %v807_v7 = vld [vmem:[%s5576_s18 + $0x1558] sm:$0xff]  ;;  %804 = vst [vmem:[%s5581_s19 + $0x828] sm:$0xff] %v803_v5  ;;  %v809_v8 = vld [vmem:[%s5576_s18 + $0x1560] sm:$0xff] }
  0x96   : > { %806 = vst [vmem:[%s5581_s19 + $0x830] sm:$0xff] %v805_v6  ;;  %808 = vst [vmem:[%s5581_s19 + $0x838] sm:$0xff] %v807_v7  ;;  %v811_v9 = vld [vmem:[%s5576_s18 + $0x1568] sm:$0xff]  ;;  %v813_v10 = vld [vmem:[%s5576_s18 + $0x1570] sm:$0xff] }
  0x97   : > { %810 = vst [vmem:[%s5581_s19 + $0x840] sm:$0xff] %v809_v8  ;;  %812 = vst [vmem:[%s5581_s19 + $0x848] sm:$0xff] %v811_v9  ;;  %v815_v11 = vld [vmem:[%s5576_s18 + $0x1578] sm:$0xff]  ;;  %v817_v12 = vld [vmem:[%s5576_s18 + $0x1580] sm:$0xff] }
  0x98   : > { %814 = vst [vmem:[%s5581_s19 + $0x850] sm:$0xff] %v813_v10  ;;  %v819_v13 = vld [vmem:[%s5576_s18 + $0x1588] sm:$0xff]  ;;  %816 = vst [vmem:[%s5581_s19 + $0x858] sm:$0xff] %v815_v11  ;;  %v821_v14 = vld [vmem:[%s5576_s18 + $0x1590] sm:$0xff] }
  0x99   : > { %818 = vst [vmem:[%s5581_s19 + $0x860] sm:$0xff] %v817_v12  ;;  %820 = vst [vmem:[%s5581_s19 + $0x868] sm:$0xff] %v819_v13  ;;  %v823_v15 = vld [vmem:[%s5576_s18 + $0x1598] sm:$0xff]  ;;  %v825_v16 = vld [vmem:[%s5576_s18 + $0x15a0] sm:$0xff] }
  0x9a   : > { %822 = vst [vmem:[%s5581_s19 + $0x870] sm:$0xff] %v821_v14  ;;  %824 = vst [vmem:[%s5581_s19 + $0x878] sm:$0xff] %v823_v15  ;;  %v827_v17 = vld [vmem:[%s5576_s18 + $0x15a8] sm:$0xff]  ;;  %v829_v18 = vld [vmem:[%s5576_s18 + $0x15b0] sm:$0xff] }
  0x9b   : > { %826 = vst [vmem:[%s5581_s19 + $0x880] sm:$0xff] %v825_v16  ;;  %v831_v19 = vld [vmem:[%s5576_s18 + $0x15b8] sm:$0xff]  ;;  %828 = vst [vmem:[%s5581_s19 + $0x888] sm:$0xff] %v827_v17  ;;  %v833_v20 = vld [vmem:[%s5576_s18 + $0x15c0] sm:$0xff] }
  0x9c   : > { %830 = vst [vmem:[%s5581_s19 + $0x890] sm:$0xff] %v829_v18  ;;  %832 = vst [vmem:[%s5581_s19 + $0x898] sm:$0xff] %v831_v19  ;;  %v835_v21 = vld [vmem:[%s5576_s18 + $0x15c8] sm:$0xff]  ;;  %v837_v22 = vld [vmem:[%s5576_s18 + $0x15d0] sm:$0xff] }
  0x9d   : > { %834 = vst [vmem:[%s5581_s19 + $0x8a0] sm:$0xff] %v833_v20  ;;  %836 = vst [vmem:[%s5581_s19 + $0x8a8] sm:$0xff] %v835_v21  ;;  %v839_v23 = vld [vmem:[%s5576_s18 + $0x15d8] sm:$0xff]  ;;  %v841_v24 = vld [vmem:[%s5576_s18 + $0x1a40] sm:$0xff] }
  0x9e   : > { %838 = vst [vmem:[%s5581_s19 + $0x8b0] sm:$0xff] %v837_v22  ;;  %v843_v25 = vld [vmem:[%s5576_s18 + $0x1a48] sm:$0xff]  ;;  %840 = vst [vmem:[%s5581_s19 + $0x8b8] sm:$0xff] %v839_v23  ;;  %v845_v26 = vld [vmem:[%s5576_s18 + $0x1a50] sm:$0xff] }
  0x9f   : > { %842 = vst [vmem:[%s5581_s19 + $0x8c0] sm:$0xff] %v841_v24  ;;  %844 = vst [vmem:[%s5581_s19 + $0x8c8] sm:$0xff] %v843_v25  ;;  %v847_v27 = vld [vmem:[%s5576_s18 + $0x1a58] sm:$0xff]  ;;  %v849_v28 = vld [vmem:[%s5576_s18 + $0x1a60] sm:$0xff] }
  0xa0   : > { %846 = vst [vmem:[%s5581_s19 + $0x8d0] sm:$0xff] %v845_v26  ;;  %848 = vst [vmem:[%s5581_s19 + $0x8d8] sm:$0xff] %v847_v27  ;;  %v851_v29 = vld [vmem:[%s5576_s18 + $0x1a68] sm:$0xff]  ;;  %v853_v30 = vld [vmem:[%s5576_s18 + $0x1a70] sm:$0xff] }
  0xa1   : > { %850 = vst [vmem:[%s5581_s19 + $0x8e0] sm:$0xff] %v849_v28  ;;  %v855_v31 = vld [vmem:[%s5576_s18 + $0x1a78] sm:$0xff]  ;;  %852 = vst [vmem:[%s5581_s19 + $0x8e8] sm:$0xff] %v851_v29  ;;  %v857_v32 = vld [vmem:[%s5576_s18 + $0x1a80] sm:$0xff] }
  0xa2   : > { %854 = vst [vmem:[%s5581_s19 + $0x8f0] sm:$0xff] %v853_v30  ;;  %856 = vst [vmem:[%s5581_s19 + $0x8f8] sm:$0xff] %v855_v31  ;;  %v859_v33 = vld [vmem:[%s5576_s18 + $0x1a88] sm:$0xff]  ;;  %v861_v34 = vld [vmem:[%s5576_s18 + $0x1a90] sm:$0xff] }
  0xa3   : > { %858 = vst [vmem:[%s5581_s19 + $0x900] sm:$0xff] %v857_v32  ;;  %860 = vst [vmem:[%s5581_s19 + $0x908] sm:$0xff] %v859_v33  ;;  %v863_v35 = vld [vmem:[%s5576_s18 + $0x1a98] sm:$0xff]  ;;  %v865_v36 = vld [vmem:[%s5576_s18 + $0x1aa0] sm:$0xff] }
  0xa4   : > { %862 = vst [vmem:[%s5581_s19 + $0x910] sm:$0xff] %v861_v34  ;;  %v867_v37 = vld [vmem:[%s5576_s18 + $0x1aa8] sm:$0xff]  ;;  %864 = vst [vmem:[%s5581_s19 + $0x918] sm:$0xff] %v863_v35  ;;  %v869_v38 = vld [vmem:[%s5576_s18 + $0x1ab0] sm:$0xff] }
  0xa5   : > { %866 = vst [vmem:[%s5581_s19 + $0x920] sm:$0xff] %v865_v36  ;;  %868 = vst [vmem:[%s5581_s19 + $0x928] sm:$0xff] %v867_v37  ;;  %v871_v39 = vld [vmem:[%s5576_s18 + $0x1ab8] sm:$0xff]  ;;  %v873_v40 = vld [vmem:[%s5576_s18 + $0x1ac0] sm:$0xff] }
  0xa6   : > { %870 = vst [vmem:[%s5581_s19 + $0x930] sm:$0xff] %v869_v38  ;;  %872 = vst [vmem:[%s5581_s19 + $0x938] sm:$0xff] %v871_v39  ;;  %v875_v41 = vld [vmem:[%s5576_s18 + $0x1ac8] sm:$0xff]  ;;  %v877_v42 = vld [vmem:[%s5576_s18 + $0x1ad0] sm:$0xff] }
  0xa7   : > { %874 = vst [vmem:[%s5581_s19 + $0x940] sm:$0xff] %v873_v40  ;;  %v879_v43 = vld [vmem:[%s5576_s18 + $0x1ad8] sm:$0xff]  ;;  %876 = vst [vmem:[%s5581_s19 + $0x948] sm:$0xff] %v875_v41  ;;  %v881_v44 = vld [vmem:[%s5576_s18 + $0x1ae0] sm:$0xff] }
  0xa8   : > { %878 = vst [vmem:[%s5581_s19 + $0x950] sm:$0xff] %v877_v42  ;;  %880 = vst [vmem:[%s5581_s19 + $0x958] sm:$0xff] %v879_v43  ;;  %v883_v45 = vld [vmem:[%s5576_s18 + $0x1ae8] sm:$0xff]  ;;  %v885_v46 = vld [vmem:[%s5576_s18 + $0x1af0] sm:$0xff] }
  0xa9   : > { %882 = vst [vmem:[%s5581_s19 + $0x960] sm:$0xff] %v881_v44  ;;  %884 = vst [vmem:[%s5581_s19 + $0x968] sm:$0xff] %v883_v45  ;;  %v887_v47 = vld [vmem:[%s5576_s18 + $0x1af8] sm:$0xff]  ;;  %v889_v48 = vld [vmem:[%s5576_s18 + $0x1b00] sm:$0xff] }
  0xaa   : > { %886 = vst [vmem:[%s5581_s19 + $0x970] sm:$0xff] %v885_v46  ;;  %v891_v49 = vld [vmem:[%s5576_s18 + $0x1b08] sm:$0xff]  ;;  %888 = vst [vmem:[%s5581_s19 + $0x978] sm:$0xff] %v887_v47  ;;  %v893_v50 = vld [vmem:[%s5576_s18 + $0x1b10] sm:$0xff] }
  0xab   : > { %890 = vst [vmem:[%s5581_s19 + $0x980] sm:$0xff] %v889_v48  ;;  %892 = vst [vmem:[%s5581_s19 + $0x988] sm:$0xff] %v891_v49  ;;  %v895_v51 = vld [vmem:[%s5576_s18 + $0x1b18] sm:$0xff]  ;;  %v897_v52 = vld [vmem:[%s5576_s18 + $0x1b20] sm:$0xff] }
  0xac   : > { %894 = vst [vmem:[%s5581_s19 + $0x990] sm:$0xff] %v893_v50  ;;  %896 = vst [vmem:[%s5581_s19 + $0x998] sm:$0xff] %v895_v51  ;;  %v899_v53 = vld [vmem:[%s5576_s18 + $0x1b28] sm:$0xff]  ;;  %v901_v54 = vld [vmem:[%s5576_s18 + $0x1b30] sm:$0xff] }
  0xad   : > { %898 = vst [vmem:[%s5581_s19 + $0x9a0] sm:$0xff] %v897_v52  ;;  %v903_v55 = vld [vmem:[%s5576_s18 + $0x1b38] sm:$0xff]  ;;  %900 = vst [vmem:[%s5581_s19 + $0x9a8] sm:$0xff] %v899_v53  ;;  %v905_v56 = vld [vmem:[%s5576_s18 + $0x1b40] sm:$0xff] }
  0xae   : > { %902 = vst [vmem:[%s5581_s19 + $0x9b0] sm:$0xff] %v901_v54  ;;  %904 = vst [vmem:[%s5581_s19 + $0x9b8] sm:$0xff] %v903_v55  ;;  %v907_v57 = vld [vmem:[%s5576_s18 + $0x1b48] sm:$0xff]  ;;  %v909_v58 = vld [vmem:[%s5576_s18 + $0x1b50] sm:$0xff] }
  0xaf   : > { %906 = vst [vmem:[%s5581_s19 + $0x9c0] sm:$0xff] %v905_v56  ;;  %908 = vst [vmem:[%s5581_s19 + $0x9c8] sm:$0xff] %v907_v57  ;;  %v911_v59 = vld [vmem:[%s5576_s18 + $0x1b58] sm:$0xff]  ;;  %v913_v60 = vld [vmem:[%s5576_s18 + $0x1b60] sm:$0xff] }
  0xb0   : > { %910 = vst [vmem:[%s5581_s19 + $0x9d0] sm:$0xff] %v909_v58  ;;  %v915_v61 = vld [vmem:[%s5576_s18 + $0x1b68] sm:$0xff]  ;;  %912 = vst [vmem:[%s5581_s19 + $0x9d8] sm:$0xff] %v911_v59  ;;  %v917_v62 = vld [vmem:[%s5576_s18 + $0x1b70] sm:$0xff] }
  0xb1   : > { %914 = vst [vmem:[%s5581_s19 + $0x9e0] sm:$0xff] %v913_v60  ;;  %916 = vst [vmem:[%s5581_s19 + $0x9e8] sm:$0xff] %v915_v61  ;;  %v919_v63 = vld [vmem:[%s5576_s18 + $0x1b78] sm:$0xff]  ;;  %v921_v0 = vld [vmem:[%s5576_s18 + $0x1b80] sm:$0xff] }
  0xb2   : > { %918 = vst [vmem:[%s5581_s19 + $0x9f0] sm:$0xff] %v917_v62  ;;  %920 = vst [vmem:[%s5581_s19 + $0x9f8] sm:$0xff] %v919_v63  ;;  %v923_v1 = vld [vmem:[%s5576_s18 + $0x1b88] sm:$0xff]  ;;  %v925_v2 = vld [vmem:[%s5576_s18 + $0x1b90] sm:$0xff] }
  0xb3   : > { %922 = vst [vmem:[%s5581_s19 + $0xa00] sm:$0xff] %v921_v0  ;;  %v927_v3 = vld [vmem:[%s5576_s18 + $0x1b98] sm:$0xff]  ;;  %924 = vst [vmem:[%s5581_s19 + $0xa08] sm:$0xff] %v923_v1  ;;  %v929_v4 = vld [vmem:[%s5576_s18 + $0x1ba0] sm:$0xff] }
  0xb4   : > { %926 = vst [vmem:[%s5581_s19 + $0xa10] sm:$0xff] %v925_v2  ;;  %928 = vst [vmem:[%s5581_s19 + $0xa18] sm:$0xff] %v927_v3  ;;  %v931_v5 = vld [vmem:[%s5576_s18 + $0x1ba8] sm:$0xff]  ;;  %v933_v6 = vld [vmem:[%s5576_s18 + $0x1bb0] sm:$0xff] }
  0xb5   : > { %930 = vst [vmem:[%s5581_s19 + $0xa20] sm:$0xff] %v929_v4  ;;  %932 = vst [vmem:[%s5581_s19 + $0xa28] sm:$0xff] %v931_v5  ;;  %v935_v7 = vld [vmem:[%s5576_s18 + $0x1bb8] sm:$0xff]  ;;  %v937_v8 = vld [vmem:[%s5576_s18 + $0x1bc0] sm:$0xff] }
  0xb6   : > { %934 = vst [vmem:[%s5581_s19 + $0xa30] sm:$0xff] %v933_v6  ;;  %v939_v9 = vld [vmem:[%s5576_s18 + $0x1bc8] sm:$0xff]  ;;  %936 = vst [vmem:[%s5581_s19 + $0xa38] sm:$0xff] %v935_v7  ;;  %v941_v10 = vld [vmem:[%s5576_s18 + $0x1bd0] sm:$0xff] }
  0xb7   : > { %938 = vst [vmem:[%s5581_s19 + $0xa40] sm:$0xff] %v937_v8  ;;  %940 = vst [vmem:[%s5581_s19 + $0xa48] sm:$0xff] %v939_v9  ;;  %v943_v11 = vld [vmem:[%s5576_s18 + $0x1bd8] sm:$0xff]  ;;  %v945_v12 = vld [vmem:[%s5576_s18 + $0x1be0] sm:$0xff] }
  0xb8   : > { %942 = vst [vmem:[%s5581_s19 + $0xa50] sm:$0xff] %v941_v10  ;;  %944 = vst [vmem:[%s5581_s19 + $0xa58] sm:$0xff] %v943_v11  ;;  %v947_v13 = vld [vmem:[%s5576_s18 + $0x1be8] sm:$0xff]  ;;  %v949_v14 = vld [vmem:[%s5576_s18 + $0x1bf0] sm:$0xff] }
  0xb9   : > { %946 = vst [vmem:[%s5581_s19 + $0xa60] sm:$0xff] %v945_v12  ;;  %v951_v15 = vld [vmem:[%s5576_s18 + $0x1bf8] sm:$0xff]  ;;  %948 = vst [vmem:[%s5581_s19 + $0xa68] sm:$0xff] %v947_v13  ;;  %v953_v16 = vld [vmem:[%s5576_s18 + $0x1c00] sm:$0xff] }
  0xba   : > { %950 = vst [vmem:[%s5581_s19 + $0xa70] sm:$0xff] %v949_v14  ;;  %952 = vst [vmem:[%s5581_s19 + $0xa78] sm:$0xff] %v951_v15  ;;  %v955_v17 = vld [vmem:[%s5576_s18 + $0x1c08] sm:$0xff]  ;;  %v957_v18 = vld [vmem:[%s5576_s18 + $0x1c10] sm:$0xff] }
  0xbb   : > { %954 = vst [vmem:[%s5581_s19 + $0xa80] sm:$0xff] %v953_v16  ;;  %956 = vst [vmem:[%s5581_s19 + $0xa88] sm:$0xff] %v955_v17  ;;  %v959_v19 = vld [vmem:[%s5576_s18 + $0x1c18] sm:$0xff]  ;;  %v961_v20 = vld [vmem:[%s5576_s18 + $0x1c20] sm:$0xff] }
  0xbc   : > { %958 = vst [vmem:[%s5581_s19 + $0xa90] sm:$0xff] %v957_v18  ;;  %v963_v21 = vld [vmem:[%s5576_s18 + $0x1c28] sm:$0xff]  ;;  %960 = vst [vmem:[%s5581_s19 + $0xa98] sm:$0xff] %v959_v19  ;;  %v965_v22 = vld [vmem:[%s5576_s18 + $0x1c30] sm:$0xff] }
  0xbd   : > { %962 = vst [vmem:[%s5581_s19 + $0xaa0] sm:$0xff] %v961_v20  ;;  %964 = vst [vmem:[%s5581_s19 + $0xaa8] sm:$0xff] %v963_v21  ;;  %v967_v23 = vld [vmem:[%s5576_s18 + $0x1c38] sm:$0xff]  ;;  %v969_v24 = vld [vmem:[%s5576_s18 + $0x1c40] sm:$0xff] }
  0xbe   : > { %966 = vst [vmem:[%s5581_s19 + $0xab0] sm:$0xff] %v965_v22  ;;  %968 = vst [vmem:[%s5581_s19 + $0xab8] sm:$0xff] %v967_v23  ;;  %v971_v25 = vld [vmem:[%s5576_s18 + $0x1c48] sm:$0xff]  ;;  %v973_v26 = vld [vmem:[%s5576_s18 + $0x1c50] sm:$0xff] }
  0xbf   : > { %970 = vst [vmem:[%s5581_s19 + $0xac0] sm:$0xff] %v969_v24  ;;  %v975_v27 = vld [vmem:[%s5576_s18 + $0x1c58] sm:$0xff]  ;;  %972 = vst [vmem:[%s5581_s19 + $0xac8] sm:$0xff] %v971_v25  ;;  %v977_v28 = vld [vmem:[%s5576_s18 + $0x1c60] sm:$0xff] }
  0xc0   : > { %974 = vst [vmem:[%s5581_s19 + $0xad0] sm:$0xff] %v973_v26  ;;  %976 = vst [vmem:[%s5581_s19 + $0xad8] sm:$0xff] %v975_v27  ;;  %v979_v29 = vld [vmem:[%s5576_s18 + $0x1c68] sm:$0xff]  ;;  %v981_v30 = vld [vmem:[%s5576_s18 + $0x20d0] sm:$0xff] }
  0xc1   : > { %978 = vst [vmem:[%s5581_s19 + $0xae0] sm:$0xff] %v977_v28  ;;  %980 = vst [vmem:[%s5581_s19 + $0xae8] sm:$0xff] %v979_v29  ;;  %v983_v31 = vld [vmem:[%s5576_s18 + $0x20d8] sm:$0xff]  ;;  %v985_v32 = vld [vmem:[%s5576_s18 + $0x20e0] sm:$0xff] }
  0xc2   : > { %982 = vst [vmem:[%s5581_s19 + $0xaf0] sm:$0xff] %v981_v30  ;;  %v987_v33 = vld [vmem:[%s5576_s18 + $0x20e8] sm:$0xff]  ;;  %984 = vst [vmem:[%s5581_s19 + $0xaf8] sm:$0xff] %v983_v31  ;;  %v989_v34 = vld [vmem:[%s5576_s18 + $0x20f0] sm:$0xff] }
  0xc3   : > { %986 = vst [vmem:[%s5581_s19 + $0xb00] sm:$0xff] %v985_v32  ;;  %988 = vst [vmem:[%s5581_s19 + $0xb08] sm:$0xff] %v987_v33  ;;  %v991_v35 = vld [vmem:[%s5576_s18 + $0x20f8] sm:$0xff]  ;;  %v993_v36 = vld [vmem:[%s5576_s18 + $0x2100] sm:$0xff] }
  0xc4   : > { %990 = vst [vmem:[%s5581_s19 + $0xb10] sm:$0xff] %v989_v34  ;;  %992 = vst [vmem:[%s5581_s19 + $0xb18] sm:$0xff] %v991_v35  ;;  %v995_v37 = vld [vmem:[%s5576_s18 + $0x2108] sm:$0xff]  ;;  %v997_v38 = vld [vmem:[%s5576_s18 + $0x2110] sm:$0xff] }
  0xc5   : > { %994 = vst [vmem:[%s5581_s19 + $0xb20] sm:$0xff] %v993_v36  ;;  %v999_v39 = vld [vmem:[%s5576_s18 + $0x2118] sm:$0xff]  ;;  %996 = vst [vmem:[%s5581_s19 + $0xb28] sm:$0xff] %v995_v37  ;;  %v1001_v40 = vld [vmem:[%s5576_s18 + $0x2120] sm:$0xff] }
  0xc6   : > { %998 = vst [vmem:[%s5581_s19 + $0xb30] sm:$0xff] %v997_v38  ;;  %1000 = vst [vmem:[%s5581_s19 + $0xb38] sm:$0xff] %v999_v39  ;;  %v1003_v41 = vld [vmem:[%s5576_s18 + $0x2128] sm:$0xff]  ;;  %v1005_v42 = vld [vmem:[%s5576_s18 + $0x2130] sm:$0xff] }
  0xc7   : > { %1002 = vst [vmem:[%s5581_s19 + $0xb40] sm:$0xff] %v1001_v40  ;;  %1004 = vst [vmem:[%s5581_s19 + $0xb48] sm:$0xff] %v1003_v41  ;;  %v1007_v43 = vld [vmem:[%s5576_s18 + $0x2138] sm:$0xff]  ;;  %v1009_v44 = vld [vmem:[%s5576_s18 + $0x2140] sm:$0xff] }
  0xc8   : > { %1006 = vst [vmem:[%s5581_s19 + $0xb50] sm:$0xff] %v1005_v42  ;;  %v1011_v45 = vld [vmem:[%s5576_s18 + $0x2148] sm:$0xff]  ;;  %1008 = vst [vmem:[%s5581_s19 + $0xb58] sm:$0xff] %v1007_v43  ;;  %v1013_v46 = vld [vmem:[%s5576_s18 + $0x2150] sm:$0xff] }
  0xc9   : > { %1010 = vst [vmem:[%s5581_s19 + $0xb60] sm:$0xff] %v1009_v44  ;;  %1012 = vst [vmem:[%s5581_s19 + $0xb68] sm:$0xff] %v1011_v45  ;;  %v1015_v47 = vld [vmem:[%s5576_s18 + $0x2158] sm:$0xff]  ;;  %v1017_v48 = vld [vmem:[%s5576_s18 + $0x2160] sm:$0xff] }
  0xca   : > { %1014 = vst [vmem:[%s5581_s19 + $0xb70] sm:$0xff] %v1013_v46  ;;  %1016 = vst [vmem:[%s5581_s19 + $0xb78] sm:$0xff] %v1015_v47  ;;  %v1019_v49 = vld [vmem:[%s5576_s18 + $0x2168] sm:$0xff]  ;;  %v1021_v50 = vld [vmem:[%s5576_s18 + $0x2170] sm:$0xff] }
  0xcb   : > { %1018 = vst [vmem:[%s5581_s19 + $0xb80] sm:$0xff] %v1017_v48  ;;  %v1023_v51 = vld [vmem:[%s5576_s18 + $0x2178] sm:$0xff]  ;;  %1020 = vst [vmem:[%s5581_s19 + $0xb88] sm:$0xff] %v1019_v49  ;;  %v1025_v52 = vld [vmem:[%s5576_s18 + $0x2180] sm:$0xff] }
  0xcc   : > { %1022 = vst [vmem:[%s5581_s19 + $0xb90] sm:$0xff] %v1021_v50  ;;  %1024 = vst [vmem:[%s5581_s19 + $0xb98] sm:$0xff] %v1023_v51  ;;  %v1027_v53 = vld [vmem:[%s5576_s18 + $0x2188] sm:$0xff]  ;;  %v1029_v54 = vld [vmem:[%s5576_s18 + $0x2190] sm:$0xff] }
  0xcd   : > { %1026 = vst [vmem:[%s5581_s19 + $0xba0] sm:$0xff] %v1025_v52  ;;  %1028 = vst [vmem:[%s5581_s19 + $0xba8] sm:$0xff] %v1027_v53  ;;  %v1031_v55 = vld [vmem:[%s5576_s18 + $0x2198] sm:$0xff]  ;;  %v1033_v56 = vld [vmem:[%s5576_s18 + $0x21a0] sm:$0xff] }
  0xce   : > { %1030 = vst [vmem:[%s5581_s19 + $0xbb0] sm:$0xff] %v1029_v54  ;;  %v1035_v57 = vld [vmem:[%s5576_s18 + $0x21a8] sm:$0xff]  ;;  %1032 = vst [vmem:[%s5581_s19 + $0xbb8] sm:$0xff] %v1031_v55  ;;  %v1037_v58 = vld [vmem:[%s5576_s18 + $0x21b0] sm:$0xff] }
  0xcf   : > { %1034 = vst [vmem:[%s5581_s19 + $0xbc0] sm:$0xff] %v1033_v56  ;;  %1036 = vst [vmem:[%s5581_s19 + $0xbc8] sm:$0xff] %v1035_v57  ;;  %v1039_v59 = vld [vmem:[%s5576_s18 + $0x21b8] sm:$0xff]  ;;  %v1041_v60 = vld [vmem:[%s5576_s18 + $0x21c0] sm:$0xff] }
  0xd0   : > { %1038 = vst [vmem:[%s5581_s19 + $0xbd0] sm:$0xff] %v1037_v58  ;;  %1040 = vst [vmem:[%s5581_s19 + $0xbd8] sm:$0xff] %v1039_v59  ;;  %v1043_v61 = vld [vmem:[%s5576_s18 + $0x21c8] sm:$0xff]  ;;  %v1045_v62 = vld [vmem:[%s5576_s18 + $0x21d0] sm:$0xff] }
  0xd1   : > { %1042 = vst [vmem:[%s5581_s19 + $0xbe0] sm:$0xff] %v1041_v60  ;;  %v1047_v63 = vld [vmem:[%s5576_s18 + $0x21d8] sm:$0xff]  ;;  %1044 = vst [vmem:[%s5581_s19 + $0xbe8] sm:$0xff] %v1043_v61  ;;  %v1049_v0 = vld [vmem:[%s5576_s18 + $0x21e0] sm:$0xff] }
  0xd2   : > { %1046 = vst [vmem:[%s5581_s19 + $0xbf0] sm:$0xff] %v1045_v62  ;;  %1048 = vst [vmem:[%s5581_s19 + $0xbf8] sm:$0xff] %v1047_v63  ;;  %v1051_v1 = vld [vmem:[%s5576_s18 + $0x21e8] sm:$0xff]  ;;  %v1053_v2 = vld [vmem:[%s5576_s18 + $0x21f0] sm:$0xff] }
  0xd3   : > { %1050 = vst [vmem:[%s5581_s19 + $0xc00] sm:$0xff] %v1049_v0  ;;  %1052 = vst [vmem:[%s5581_s19 + $0xc08] sm:$0xff] %v1051_v1  ;;  %v1055_v3 = vld [vmem:[%s5576_s18 + $0x21f8] sm:$0xff]  ;;  %v1057_v4 = vld [vmem:[%s5576_s18 + $0x2200] sm:$0xff] }
  0xd4   : > { %1054 = vst [vmem:[%s5581_s19 + $0xc10] sm:$0xff] %v1053_v2  ;;  %v1059_v5 = vld [vmem:[%s5576_s18 + $0x2208] sm:$0xff]  ;;  %1056 = vst [vmem:[%s5581_s19 + $0xc18] sm:$0xff] %v1055_v3  ;;  %v1061_v6 = vld [vmem:[%s5576_s18 + $0x2210] sm:$0xff] }
  0xd5   : > { %1058 = vst [vmem:[%s5581_s19 + $0xc20] sm:$0xff] %v1057_v4  ;;  %1060 = vst [vmem:[%s5581_s19 + $0xc28] sm:$0xff] %v1059_v5  ;;  %v1063_v7 = vld [vmem:[%s5576_s18 + $0x2218] sm:$0xff]  ;;  %v1065_v8 = vld [vmem:[%s5576_s18 + $0x2220] sm:$0xff] }
  0xd6   : > { %1062 = vst [vmem:[%s5581_s19 + $0xc30] sm:$0xff] %v1061_v6  ;;  %1064 = vst [vmem:[%s5581_s19 + $0xc38] sm:$0xff] %v1063_v7  ;;  %v1067_v9 = vld [vmem:[%s5576_s18 + $0x2228] sm:$0xff]  ;;  %v1069_v10 = vld [vmem:[%s5576_s18 + $0x2230] sm:$0xff] }
  0xd7   : > { %1066 = vst [vmem:[%s5581_s19 + $0xc40] sm:$0xff] %v1065_v8  ;;  %v1071_v11 = vld [vmem:[%s5576_s18 + $0x2238] sm:$0xff]  ;;  %1068 = vst [vmem:[%s5581_s19 + $0xc48] sm:$0xff] %v1067_v9  ;;  %v1073_v12 = vld [vmem:[%s5576_s18 + $0x2240] sm:$0xff] }
  0xd8   : > { %1070 = vst [vmem:[%s5581_s19 + $0xc50] sm:$0xff] %v1069_v10  ;;  %1072 = vst [vmem:[%s5581_s19 + $0xc58] sm:$0xff] %v1071_v11  ;;  %v1075_v13 = vld [vmem:[%s5576_s18 + $0x2248] sm:$0xff]  ;;  %v1077_v14 = vld [vmem:[%s5576_s18 + $0x2250] sm:$0xff] }
  0xd9   : > { %1074 = vst [vmem:[%s5581_s19 + $0xc60] sm:$0xff] %v1073_v12  ;;  %1076 = vst [vmem:[%s5581_s19 + $0xc68] sm:$0xff] %v1075_v13  ;;  %v1079_v15 = vld [vmem:[%s5576_s18 + $0x2258] sm:$0xff]  ;;  %v1081_v16 = vld [vmem:[%s5576_s18 + $0x2260] sm:$0xff] }
  0xda   : > { %1078 = vst [vmem:[%s5581_s19 + $0xc70] sm:$0xff] %v1077_v14  ;;  %v1083_v17 = vld [vmem:[%s5576_s18 + $0x2268] sm:$0xff]  ;;  %1080 = vst [vmem:[%s5581_s19 + $0xc78] sm:$0xff] %v1079_v15  ;;  %v1085_v18 = vld [vmem:[%s5576_s18 + $0x2270] sm:$0xff] }
  0xdb   : > { %1082 = vst [vmem:[%s5581_s19 + $0xc80] sm:$0xff] %v1081_v16  ;;  %1084 = vst [vmem:[%s5581_s19 + $0xc88] sm:$0xff] %v1083_v17  ;;  %v1087_v19 = vld [vmem:[%s5576_s18 + $0x2278] sm:$0xff]  ;;  %v1089_v20 = vld [vmem:[%s5576_s18 + $0x2280] sm:$0xff] }
  0xdc   : > { %1086 = vst [vmem:[%s5581_s19 + $0xc90] sm:$0xff] %v1085_v18  ;;  %1088 = vst [vmem:[%s5581_s19 + $0xc98] sm:$0xff] %v1087_v19  ;;  %v1091_v21 = vld [vmem:[%s5576_s18 + $0x2288] sm:$0xff]  ;;  %v1093_v22 = vld [vmem:[%s5576_s18 + $0x2290] sm:$0xff] }
  0xdd   : > { %1090 = vst [vmem:[%s5581_s19 + $0xca0] sm:$0xff] %v1089_v20  ;;  %v1095_v23 = vld [vmem:[%s5576_s18 + $0x2298] sm:$0xff]  ;;  %1092 = vst [vmem:[%s5581_s19 + $0xca8] sm:$0xff] %v1091_v21  ;;  %v1097_v24 = vld [vmem:[%s5576_s18 + $0x22a0] sm:$0xff] }
  0xde   : > { %1094 = vst [vmem:[%s5581_s19 + $0xcb0] sm:$0xff] %v1093_v22  ;;  %1096 = vst [vmem:[%s5581_s19 + $0xcb8] sm:$0xff] %v1095_v23  ;;  %v1099_v25 = vld [vmem:[%s5576_s18 + $0x22a8] sm:$0xff]  ;;  %v1101_v26 = vld [vmem:[%s5576_s18 + $0x22b0] sm:$0xff] }
  0xdf   : > { %1098 = vst [vmem:[%s5581_s19 + $0xcc0] sm:$0xff] %v1097_v24  ;;  %1100 = vst [vmem:[%s5581_s19 + $0xcc8] sm:$0xff] %v1099_v25  ;;  %v1103_v27 = vld [vmem:[%s5576_s18 + $0x22b8] sm:$0xff]  ;;  %v1105_v28 = vld [vmem:[%s5576_s18 + $0x22c0] sm:$0xff] }
  0xe0   : > { %1102 = vst [vmem:[%s5581_s19 + $0xcd0] sm:$0xff] %v1101_v26  ;;  %v1107_v29 = vld [vmem:[%s5576_s18 + $0x22c8] sm:$0xff]  ;;  %1104 = vst [vmem:[%s5581_s19 + $0xcd8] sm:$0xff] %v1103_v27  ;;  %v1109_v30 = vld [vmem:[%s5576_s18 + $0x22d0] sm:$0xff] }
  0xe1   : > { %1106 = vst [vmem:[%s5581_s19 + $0xce0] sm:$0xff] %v1105_v28  ;;  %1108 = vst [vmem:[%s5581_s19 + $0xce8] sm:$0xff] %v1107_v29  ;;  %v1111_v31 = vld [vmem:[%s5576_s18 + $0x22d8] sm:$0xff]  ;;  %v1113_v32 = vld [vmem:[%s5576_s18 + $0x22e0] sm:$0xff] }
  0xe2   : > { %1110 = vst [vmem:[%s5581_s19 + $0xcf0] sm:$0xff] %v1109_v30  ;;  %1112 = vst [vmem:[%s5581_s19 + $0xcf8] sm:$0xff] %v1111_v31  ;;  %v1115_v33 = vld [vmem:[%s5576_s18 + $0x22e8] sm:$0xff]  ;;  %v1117_v34 = vld [vmem:[%s5576_s18 + $0x22f0] sm:$0xff] }
  0xe3   : > { %1114 = vst [vmem:[%s5581_s19 + $0xd00] sm:$0xff] %v1113_v32  ;;  %v1119_v35 = vld [vmem:[%s5576_s18 + $0x22f8] sm:$0xff]  ;;  %1116 = vst [vmem:[%s5581_s19 + $0xd08] sm:$0xff] %v1115_v33  ;;  %v1121_v36 = vld [vmem:[%s5576_s18 + $0x2760] sm:$0xff] }
  0xe4   : > { %1118 = vst [vmem:[%s5581_s19 + $0xd10] sm:$0xff] %v1117_v34  ;;  %1120 = vst [vmem:[%s5581_s19 + $0xd18] sm:$0xff] %v1119_v35  ;;  %v1123_v37 = vld [vmem:[%s5576_s18 + $0x2768] sm:$0xff]  ;;  %v1125_v38 = vld [vmem:[%s5576_s18 + $0x2770] sm:$0xff] }
  0xe5   : > { %1122 = vst [vmem:[%s5581_s19 + $0xd20] sm:$0xff] %v1121_v36  ;;  %1124 = vst [vmem:[%s5581_s19 + $0xd28] sm:$0xff] %v1123_v37  ;;  %v1127_v39 = vld [vmem:[%s5576_s18 + $0x2778] sm:$0xff]  ;;  %v1129_v40 = vld [vmem:[%s5576_s18 + $0x2780] sm:$0xff] }
  0xe6   : > { %1126 = vst [vmem:[%s5581_s19 + $0xd30] sm:$0xff] %v1125_v38  ;;  %v1131_v41 = vld [vmem:[%s5576_s18 + $0x2788] sm:$0xff]  ;;  %1128 = vst [vmem:[%s5581_s19 + $0xd38] sm:$0xff] %v1127_v39  ;;  %v1133_v42 = vld [vmem:[%s5576_s18 + $0x2790] sm:$0xff] }
  0xe7   : > { %1130 = vst [vmem:[%s5581_s19 + $0xd40] sm:$0xff] %v1129_v40  ;;  %1132 = vst [vmem:[%s5581_s19 + $0xd48] sm:$0xff] %v1131_v41  ;;  %v1135_v43 = vld [vmem:[%s5576_s18 + $0x2798] sm:$0xff]  ;;  %v1137_v44 = vld [vmem:[%s5576_s18 + $0x27a0] sm:$0xff] }
  0xe8   : > { %1134 = vst [vmem:[%s5581_s19 + $0xd50] sm:$0xff] %v1133_v42  ;;  %1136 = vst [vmem:[%s5581_s19 + $0xd58] sm:$0xff] %v1135_v43  ;;  %v1139_v45 = vld [vmem:[%s5576_s18 + $0x27a8] sm:$0xff]  ;;  %v1141_v46 = vld [vmem:[%s5576_s18 + $0x27b0] sm:$0xff] }
  0xe9   : > { %1138 = vst [vmem:[%s5581_s19 + $0xd60] sm:$0xff] %v1137_v44  ;;  %v1143_v47 = vld [vmem:[%s5576_s18 + $0x27b8] sm:$0xff]  ;;  %1140 = vst [vmem:[%s5581_s19 + $0xd68] sm:$0xff] %v1139_v45  ;;  %v1145_v48 = vld [vmem:[%s5576_s18 + $0x27c0] sm:$0xff] }
  0xea   : > { %1142 = vst [vmem:[%s5581_s19 + $0xd70] sm:$0xff] %v1141_v46  ;;  %1144 = vst [vmem:[%s5581_s19 + $0xd78] sm:$0xff] %v1143_v47  ;;  %v1147_v49 = vld [vmem:[%s5576_s18 + $0x27c8] sm:$0xff]  ;;  %v1149_v50 = vld [vmem:[%s5576_s18 + $0x27d0] sm:$0xff] }
  0xeb   : > { %1146 = vst [vmem:[%s5581_s19 + $0xd80] sm:$0xff] %v1145_v48  ;;  %1148 = vst [vmem:[%s5581_s19 + $0xd88] sm:$0xff] %v1147_v49  ;;  %v1151_v51 = vld [vmem:[%s5576_s18 + $0x27d8] sm:$0xff]  ;;  %v1153_v52 = vld [vmem:[%s5576_s18 + $0x27e0] sm:$0xff] }
  0xec   : > { %1150 = vst [vmem:[%s5581_s19 + $0xd90] sm:$0xff] %v1149_v50  ;;  %v1155_v53 = vld [vmem:[%s5576_s18 + $0x27e8] sm:$0xff]  ;;  %1152 = vst [vmem:[%s5581_s19 + $0xd98] sm:$0xff] %v1151_v51  ;;  %v1157_v54 = vld [vmem:[%s5576_s18 + $0x27f0] sm:$0xff] }
  0xed   : > { %1154 = vst [vmem:[%s5581_s19 + $0xda0] sm:$0xff] %v1153_v52  ;;  %1156 = vst [vmem:[%s5581_s19 + $0xda8] sm:$0xff] %v1155_v53  ;;  %v1159_v55 = vld [vmem:[%s5576_s18 + $0x27f8] sm:$0xff]  ;;  %v1161_v56 = vld [vmem:[%s5576_s18 + $0x2800] sm:$0xff] }
  0xee   : > { %1158 = vst [vmem:[%s5581_s19 + $0xdb0] sm:$0xff] %v1157_v54  ;;  %1160 = vst [vmem:[%s5581_s19 + $0xdb8] sm:$0xff] %v1159_v55  ;;  %v1163_v57 = vld [vmem:[%s5576_s18 + $0x2808] sm:$0xff]  ;;  %v1165_v58 = vld [vmem:[%s5576_s18 + $0x2810] sm:$0xff] }
  0xef   : > { %1162 = vst [vmem:[%s5581_s19 + $0xdc0] sm:$0xff] %v1161_v56  ;;  %v1167_v59 = vld [vmem:[%s5576_s18 + $0x2818] sm:$0xff]  ;;  %1164 = vst [vmem:[%s5581_s19 + $0xdc8] sm:$0xff] %v1163_v57  ;;  %v1169_v60 = vld [vmem:[%s5576_s18 + $0x2820] sm:$0xff] }
  0xf0   : > { %1166 = vst [vmem:[%s5581_s19 + $0xdd0] sm:$0xff] %v1165_v58  ;;  %1168 = vst [vmem:[%s5581_s19 + $0xdd8] sm:$0xff] %v1167_v59  ;;  %v1171_v61 = vld [vmem:[%s5576_s18 + $0x2828] sm:$0xff]  ;;  %v1173_v62 = vld [vmem:[%s5576_s18 + $0x2830] sm:$0xff] }
  0xf1   : > { %1170 = vst [vmem:[%s5581_s19 + $0xde0] sm:$0xff] %v1169_v60  ;;  %1172 = vst [vmem:[%s5581_s19 + $0xde8] sm:$0xff] %v1171_v61  ;;  %v1175_v63 = vld [vmem:[%s5576_s18 + $0x2838] sm:$0xff]  ;;  %v1177_v0 = vld [vmem:[%s5576_s18 + $0x2840] sm:$0xff] }
  0xf2   : > { %1174 = vst [vmem:[%s5581_s19 + $0xdf0] sm:$0xff] %v1173_v62  ;;  %v1179_v1 = vld [vmem:[%s5576_s18 + $0x2848] sm:$0xff]  ;;  %1176 = vst [vmem:[%s5581_s19 + $0xdf8] sm:$0xff] %v1175_v63  ;;  %v1181_v2 = vld [vmem:[%s5576_s18 + $0x2850] sm:$0xff] }
  0xf3   : > { %1178 = vst [vmem:[%s5581_s19 + $0xe00] sm:$0xff] %v1177_v0  ;;  %1180 = vst [vmem:[%s5581_s19 + $0xe08] sm:$0xff] %v1179_v1  ;;  %v1183_v3 = vld [vmem:[%s5576_s18 + $0x2858] sm:$0xff]  ;;  %v1185_v4 = vld [vmem:[%s5576_s18 + $0x2860] sm:$0xff] }
  0xf4   : > { %1182 = vst [vmem:[%s5581_s19 + $0xe10] sm:$0xff] %v1181_v2  ;;  %1184 = vst [vmem:[%s5581_s19 + $0xe18] sm:$0xff] %v1183_v3  ;;  %v1187_v5 = vld [vmem:[%s5576_s18 + $0x2868] sm:$0xff]  ;;  %v1189_v6 = vld [vmem:[%s5576_s18 + $0x2870] sm:$0xff] }
  0xf5   : > { %1186 = vst [vmem:[%s5581_s19 + $0xe20] sm:$0xff] %v1185_v4  ;;  %v1191_v7 = vld [vmem:[%s5576_s18 + $0x2878] sm:$0xff]  ;;  %1188 = vst [vmem:[%s5581_s19 + $0xe28] sm:$0xff] %v1187_v5  ;;  %v1193_v8 = vld [vmem:[%s5576_s18 + $0x2880] sm:$0xff] }
  0xf6   : > { %1190 = vst [vmem:[%s5581_s19 + $0xe30] sm:$0xff] %v1189_v6  ;;  %1192 = vst [vmem:[%s5581_s19 + $0xe38] sm:$0xff] %v1191_v7  ;;  %v1195_v9 = vld [vmem:[%s5576_s18 + $0x2888] sm:$0xff]  ;;  %v1197_v10 = vld [vmem:[%s5576_s18 + $0x2890] sm:$0xff] }
  0xf7   : > { %1194 = vst [vmem:[%s5581_s19 + $0xe40] sm:$0xff] %v1193_v8  ;;  %1196 = vst [vmem:[%s5581_s19 + $0xe48] sm:$0xff] %v1195_v9  ;;  %v1199_v11 = vld [vmem:[%s5576_s18 + $0x2898] sm:$0xff]  ;;  %v1201_v12 = vld [vmem:[%s5576_s18 + $0x28a0] sm:$0xff] }
  0xf8   : > { %1198 = vst [vmem:[%s5581_s19 + $0xe50] sm:$0xff] %v1197_v10  ;;  %v1203_v13 = vld [vmem:[%s5576_s18 + $0x28a8] sm:$0xff]  ;;  %1200 = vst [vmem:[%s5581_s19 + $0xe58] sm:$0xff] %v1199_v11  ;;  %v1205_v14 = vld [vmem:[%s5576_s18 + $0x28b0] sm:$0xff] }
  0xf9   : > { %1202 = vst [vmem:[%s5581_s19 + $0xe60] sm:$0xff] %v1201_v12  ;;  %1204 = vst [vmem:[%s5581_s19 + $0xe68] sm:$0xff] %v1203_v13  ;;  %v1207_v15 = vld [vmem:[%s5576_s18 + $0x28b8] sm:$0xff]  ;;  %v1209_v16 = vld [vmem:[%s5576_s18 + $0x28c0] sm:$0xff] }
  0xfa   : > { %1206 = vst [vmem:[%s5581_s19 + $0xe70] sm:$0xff] %v1205_v14  ;;  %1208 = vst [vmem:[%s5581_s19 + $0xe78] sm:$0xff] %v1207_v15  ;;  %v1211_v17 = vld [vmem:[%s5576_s18 + $0x28c8] sm:$0xff]  ;;  %v1213_v18 = vld [vmem:[%s5576_s18 + $0x28d0] sm:$0xff] }
  0xfb   : > { %1210 = vst [vmem:[%s5581_s19 + $0xe80] sm:$0xff] %v1209_v16  ;;  %v1215_v19 = vld [vmem:[%s5576_s18 + $0x28d8] sm:$0xff]  ;;  %1212 = vst [vmem:[%s5581_s19 + $0xe88] sm:$0xff] %v1211_v17  ;;  %v1217_v20 = vld [vmem:[%s5576_s18 + $0x28e0] sm:$0xff] }
  0xfc   : > { %1214 = vst [vmem:[%s5581_s19 + $0xe90] sm:$0xff] %v1213_v18  ;;  %1216 = vst [vmem:[%s5581_s19 + $0xe98] sm:$0xff] %v1215_v19  ;;  %v1219_v21 = vld [vmem:[%s5576_s18 + $0x28e8] sm:$0xff]  ;;  %v1221_v22 = vld [vmem:[%s5576_s18 + $0x28f0] sm:$0xff] }
  0xfd   : > { %1218 = vst [vmem:[%s5581_s19 + $0xea0] sm:$0xff] %v1217_v20  ;;  %1220 = vst [vmem:[%s5581_s19 + $0xea8] sm:$0xff] %v1219_v21  ;;  %v1223_v23 = vld [vmem:[%s5576_s18 + $0x28f8] sm:$0xff]  ;;  %v1225_v24 = vld [vmem:[%s5576_s18 + $0x2900] sm:$0xff] }
  0xfe   : > { %1222 = vst [vmem:[%s5581_s19 + $0xeb0] sm:$0xff] %v1221_v22  ;;  %v1227_v25 = vld [vmem:[%s5576_s18 + $0x2908] sm:$0xff]  ;;  %1224 = vst [vmem:[%s5581_s19 + $0xeb8] sm:$0xff] %v1223_v23  ;;  %v1229_v26 = vld [vmem:[%s5576_s18 + $0x2910] sm:$0xff] }
  0xff   : > { %1226 = vst [vmem:[%s5581_s19 + $0xec0] sm:$0xff] %v1225_v24  ;;  %1228 = vst [vmem:[%s5581_s19 + $0xec8] sm:$0xff] %v1227_v25  ;;  %v1231_v27 = vld [vmem:[%s5576_s18 + $0x2918] sm:$0xff]  ;;  %v1233_v28 = vld [vmem:[%s5576_s18 + $0x2920] sm:$0xff] }
 0x100   : > { %1230 = vst [vmem:[%s5581_s19 + $0xed0] sm:$0xff] %v1229_v26  ;;  %1232 = vst [vmem:[%s5581_s19 + $0xed8] sm:$0xff] %v1231_v27  ;;  %v1235_v29 = vld [vmem:[%s5576_s18 + $0x2928] sm:$0xff]  ;;  %v1237_v30 = vld [vmem:[%s5576_s18 + $0x2930] sm:$0xff] }
 0x101   : > { %1234 = vst [vmem:[%s5581_s19 + $0xee0] sm:$0xff] %v1233_v28  ;;  %v1239_v31 = vld [vmem:[%s5576_s18 + $0x2938] sm:$0xff]  ;;  %1236 = vst [vmem:[%s5581_s19 + $0xee8] sm:$0xff] %v1235_v29  ;;  %v1241_v32 = vld [vmem:[%s5576_s18 + $0x2940] sm:$0xff] }
 0x102   : > { %1238 = vst [vmem:[%s5581_s19 + $0xef0] sm:$0xff] %v1237_v30  ;;  %1240 = vst [vmem:[%s5581_s19 + $0xef8] sm:$0xff] %v1239_v31  ;;  %v1243_v33 = vld [vmem:[%s5576_s18 + $0x2948] sm:$0xff]  ;;  %v1245_v34 = vld [vmem:[%s5576_s18 + $0x2950] sm:$0xff] }
 0x103   : > { %1242 = vst [vmem:[%s5581_s19 + $0xf00] sm:$0xff] %v1241_v32  ;;  %1244 = vst [vmem:[%s5581_s19 + $0xf08] sm:$0xff] %v1243_v33  ;;  %v1247_v35 = vld [vmem:[%s5576_s18 + $0x2958] sm:$0xff]  ;;  %v1249_v36 = vld [vmem:[%s5576_s18 + $0x2960] sm:$0xff] }
 0x104   : > { %1246 = vst [vmem:[%s5581_s19 + $0xf10] sm:$0xff] %v1245_v34  ;;  %v1251_v37 = vld [vmem:[%s5576_s18 + $0x2968] sm:$0xff]  ;;  %1248 = vst [vmem:[%s5581_s19 + $0xf18] sm:$0xff] %v1247_v35  ;;  %v1253_v38 = vld [vmem:[%s5576_s18 + $0x2970] sm:$0xff] }
 0x105   : > { %1250 = vst [vmem:[%s5581_s19 + $0xf20] sm:$0xff] %v1249_v36  ;;  %1252 = vst [vmem:[%s5581_s19 + $0xf28] sm:$0xff] %v1251_v37  ;;  %v1255_v39 = vld [vmem:[%s5576_s18 + $0x2978] sm:$0xff]  ;;  %v1257_v40 = vld [vmem:[%s5576_s18 + $0x2980] sm:$0xff] }
 0x106   : > { %1254 = vst [vmem:[%s5581_s19 + $0xf30] sm:$0xff] %v1253_v38  ;;  %1256 = vst [vmem:[%s5581_s19 + $0xf38] sm:$0xff] %v1255_v39  ;;  %v1259_v41 = vld [vmem:[%s5576_s18 + $0x2988] sm:$0xff]  ;;  %v1261_v42 = vld [vmem:[%s5576_s18 + $0x2df0] sm:$0xff] }
 0x107   : > { %1258 = vst [vmem:[%s5581_s19 + $0xf40] sm:$0xff] %v1257_v40  ;;  %v1263_v43 = vld [vmem:[%s5576_s18 + $0x2df8] sm:$0xff]  ;;  %1260 = vst [vmem:[%s5581_s19 + $0xf48] sm:$0xff] %v1259_v41  ;;  %v1265_v44 = vld [vmem:[%s5576_s18 + $0x2e00] sm:$0xff] }
 0x108   : > { %1262 = vst [vmem:[%s5581_s19 + $0xf50] sm:$0xff] %v1261_v42  ;;  %1264 = vst [vmem:[%s5581_s19 + $0xf58] sm:$0xff] %v1263_v43  ;;  %v1267_v45 = vld [vmem:[%s5576_s18 + $0x2e08] sm:$0xff]  ;;  %v1269_v46 = vld [vmem:[%s5576_s18 + $0x2e10] sm:$0xff] }
 0x109   : > { %1266 = vst [vmem:[%s5581_s19 + $0xf60] sm:$0xff] %v1265_v44  ;;  %1268 = vst [vmem:[%s5581_s19 + $0xf68] sm:$0xff] %v1267_v45  ;;  %v1271_v47 = vld [vmem:[%s5576_s18 + $0x2e18] sm:$0xff]  ;;  %v1273_v48 = vld [vmem:[%s5576_s18 + $0x2e20] sm:$0xff] }
 0x10a   : > { %1270 = vst [vmem:[%s5581_s19 + $0xf70] sm:$0xff] %v1269_v46  ;;  %v1275_v49 = vld [vmem:[%s5576_s18 + $0x2e28] sm:$0xff]  ;;  %1272 = vst [vmem:[%s5581_s19 + $0xf78] sm:$0xff] %v1271_v47  ;;  %v1277_v50 = vld [vmem:[%s5576_s18 + $0x2e30] sm:$0xff] }
 0x10b   : > { %1274 = vst [vmem:[%s5581_s19 + $0xf80] sm:$0xff] %v1273_v48  ;;  %1276 = vst [vmem:[%s5581_s19 + $0xf88] sm:$0xff] %v1275_v49  ;;  %v1279_v51 = vld [vmem:[%s5576_s18 + $0x2e38] sm:$0xff]  ;;  %v1281_v52 = vld [vmem:[%s5576_s18 + $0x2e40] sm:$0xff] }
 0x10c   : > { %1278 = vst [vmem:[%s5581_s19 + $0xf90] sm:$0xff] %v1277_v50  ;;  %1280 = vst [vmem:[%s5581_s19 + $0xf98] sm:$0xff] %v1279_v51  ;;  %v1283_v53 = vld [vmem:[%s5576_s18 + $0x2e48] sm:$0xff]  ;;  %v1285_v54 = vld [vmem:[%s5576_s18 + $0x2e50] sm:$0xff] }
 0x10d   : > { %1282 = vst [vmem:[%s5581_s19 + $0xfa0] sm:$0xff] %v1281_v52  ;;  %v1287_v55 = vld [vmem:[%s5576_s18 + $0x2e58] sm:$0xff]  ;;  %1284 = vst [vmem:[%s5581_s19 + $0xfa8] sm:$0xff] %v1283_v53  ;;  %v1289_v56 = vld [vmem:[%s5576_s18 + $0x2e60] sm:$0xff] }
 0x10e   : > { %1286 = vst [vmem:[%s5581_s19 + $0xfb0] sm:$0xff] %v1285_v54  ;;  %1288 = vst [vmem:[%s5581_s19 + $0xfb8] sm:$0xff] %v1287_v55  ;;  %v1291_v57 = vld [vmem:[%s5576_s18 + $0x2e68] sm:$0xff]  ;;  %v1293_v58 = vld [vmem:[%s5576_s18 + $0x2e70] sm:$0xff] }
 0x10f   : > { %1290 = vst [vmem:[%s5581_s19 + $0xfc0] sm:$0xff] %v1289_v56  ;;  %1292 = vst [vmem:[%s5581_s19 + $0xfc8] sm:$0xff] %v1291_v57  ;;  %v1295_v59 = vld [vmem:[%s5576_s18 + $0x2e78] sm:$0xff]  ;;  %v1297_v60 = vld [vmem:[%s5576_s18 + $0x2e80] sm:$0xff] }
 0x110   : > { %1294 = vst [vmem:[%s5581_s19 + $0xfd0] sm:$0xff] %v1293_v58  ;;  %v1299_v61 = vld [vmem:[%s5576_s18 + $0x2e88] sm:$0xff]  ;;  %1296 = vst [vmem:[%s5581_s19 + $0xfd8] sm:$0xff] %v1295_v59  ;;  %v1301_v62 = vld [vmem:[%s5576_s18 + $0x2e90] sm:$0xff] }
 0x111   : > { %1298 = vst [vmem:[%s5581_s19 + $0xfe0] sm:$0xff] %v1297_v60  ;;  %1300 = vst [vmem:[%s5581_s19 + $0xfe8] sm:$0xff] %v1299_v61  ;;  %v1303_v63 = vld [vmem:[%s5576_s18 + $0x2e98] sm:$0xff]  ;;  %v1305_v0 = vld [vmem:[%s5576_s18 + $0x2ea0] sm:$0xff] }
 0x112   : > { %1302 = vst [vmem:[%s5581_s19 + $0xff0] sm:$0xff] %v1301_v62  ;;  %1304 = vst [vmem:[%s5581_s19 + $0xff8] sm:$0xff] %v1303_v63  ;;  %v1307_v1 = vld [vmem:[%s5576_s18 + $0x2ea8] sm:$0xff]  ;;  %v1309_v2 = vld [vmem:[%s5576_s18 + $0x2eb0] sm:$0xff] }
 0x113   : > { %1306 = vst [vmem:[%s5581_s19 + $0x1000] sm:$0xff] %v1305_v0  ;;  %v1311_v3 = vld [vmem:[%s5576_s18 + $0x2eb8] sm:$0xff]  ;;  %1308 = vst [vmem:[%s5581_s19 + $0x1008] sm:$0xff] %v1307_v1  ;;  %v1313_v4 = vld [vmem:[%s5576_s18 + $0x2ec0] sm:$0xff] }
 0x114   : > { %1310 = vst [vmem:[%s5581_s19 + $0x1010] sm:$0xff] %v1309_v2  ;;  %1312 = vst [vmem:[%s5581_s19 + $0x1018] sm:$0xff] %v1311_v3  ;;  %v1315_v5 = vld [vmem:[%s5576_s18 + $0x2ec8] sm:$0xff]  ;;  %v1317_v6 = vld [vmem:[%s5576_s18 + $0x2ed0] sm:$0xff] }
 0x115   : > { %1314 = vst [vmem:[%s5581_s19 + $0x1020] sm:$0xff] %v1313_v4  ;;  %1316 = vst [vmem:[%s5581_s19 + $0x1028] sm:$0xff] %v1315_v5  ;;  %v1319_v7 = vld [vmem:[%s5576_s18 + $0x2ed8] sm:$0xff]  ;;  %v1321_v8 = vld [vmem:[%s5576_s18 + $0x2ee0] sm:$0xff] }
 0x116   : > { %1318 = vst [vmem:[%s5581_s19 + $0x1030] sm:$0xff] %v1317_v6  ;;  %v1323_v9 = vld [vmem:[%s5576_s18 + $0x2ee8] sm:$0xff]  ;;  %1320 = vst [vmem:[%s5581_s19 + $0x1038] sm:$0xff] %v1319_v7  ;;  %v1325_v10 = vld [vmem:[%s5576_s18 + $0x2ef0] sm:$0xff] }
 0x117   : > { %1322 = vst [vmem:[%s5581_s19 + $0x1040] sm:$0xff] %v1321_v8  ;;  %1324 = vst [vmem:[%s5581_s19 + $0x1048] sm:$0xff] %v1323_v9  ;;  %v1327_v11 = vld [vmem:[%s5576_s18 + $0x2ef8] sm:$0xff]  ;;  %v1329_v12 = vld [vmem:[%s5576_s18 + $0x2f00] sm:$0xff] }
 0x118   : > { %1326 = vst [vmem:[%s5581_s19 + $0x1050] sm:$0xff] %v1325_v10  ;;  %1328 = vst [vmem:[%s5581_s19 + $0x1058] sm:$0xff] %v1327_v11  ;;  %v1331_v13 = vld [vmem:[%s5576_s18 + $0x2f08] sm:$0xff]  ;;  %v1333_v14 = vld [vmem:[%s5576_s18 + $0x2f10] sm:$0xff] }
 0x119   : > { %1330 = vst [vmem:[%s5581_s19 + $0x1060] sm:$0xff] %v1329_v12  ;;  %v1335_v15 = vld [vmem:[%s5576_s18 + $0x2f18] sm:$0xff]  ;;  %1332 = vst [vmem:[%s5581_s19 + $0x1068] sm:$0xff] %v1331_v13  ;;  %v1337_v16 = vld [vmem:[%s5576_s18 + $0x2f20] sm:$0xff] }
 0x11a   : > { %1334 = vst [vmem:[%s5581_s19 + $0x1070] sm:$0xff] %v1333_v14  ;;  %1336 = vst [vmem:[%s5581_s19 + $0x1078] sm:$0xff] %v1335_v15  ;;  %v1339_v17 = vld [vmem:[%s5576_s18 + $0x2f28] sm:$0xff]  ;;  %v1341_v18 = vld [vmem:[%s5576_s18 + $0x2f30] sm:$0xff] }
 0x11b   : > { %1338 = vst [vmem:[%s5581_s19 + $0x1080] sm:$0xff] %v1337_v16  ;;  %1340 = vst [vmem:[%s5581_s19 + $0x1088] sm:$0xff] %v1339_v17  ;;  %v1343_v19 = vld [vmem:[%s5576_s18 + $0x2f38] sm:$0xff]  ;;  %v1345_v20 = vld [vmem:[%s5576_s18 + $0x2f40] sm:$0xff] }
 0x11c   : > { %1342 = vst [vmem:[%s5581_s19 + $0x1090] sm:$0xff] %v1341_v18  ;;  %v1347_v21 = vld [vmem:[%s5576_s18 + $0x2f48] sm:$0xff]  ;;  %1344 = vst [vmem:[%s5581_s19 + $0x1098] sm:$0xff] %v1343_v19  ;;  %v1349_v22 = vld [vmem:[%s5576_s18 + $0x2f50] sm:$0xff] }
 0x11d   : > { %1346 = vst [vmem:[%s5581_s19 + $0x10a0] sm:$0xff] %v1345_v20  ;;  %1348 = vst [vmem:[%s5581_s19 + $0x10a8] sm:$0xff] %v1347_v21  ;;  %v1351_v23 = vld [vmem:[%s5576_s18 + $0x2f58] sm:$0xff]  ;;  %v1353_v24 = vld [vmem:[%s5576_s18 + $0x2f60] sm:$0xff] }
 0x11e   : > { %1350 = vst [vmem:[%s5581_s19 + $0x10b0] sm:$0xff] %v1349_v22  ;;  %1352 = vst [vmem:[%s5581_s19 + $0x10b8] sm:$0xff] %v1351_v23  ;;  %v1355_v25 = vld [vmem:[%s5576_s18 + $0x2f68] sm:$0xff]  ;;  %v1357_v26 = vld [vmem:[%s5576_s18 + $0x2f70] sm:$0xff] }
 0x11f   : > { %1354 = vst [vmem:[%s5581_s19 + $0x10c0] sm:$0xff] %v1353_v24  ;;  %v1359_v27 = vld [vmem:[%s5576_s18 + $0x2f78] sm:$0xff]  ;;  %1356 = vst [vmem:[%s5581_s19 + $0x10c8] sm:$0xff] %v1355_v25  ;;  %v1361_v28 = vld [vmem:[%s5576_s18 + $0x2f80] sm:$0xff] }
 0x120   : > { %1358 = vst [vmem:[%s5581_s19 + $0x10d0] sm:$0xff] %v1357_v26  ;;  %1360 = vst [vmem:[%s5581_s19 + $0x10d8] sm:$0xff] %v1359_v27  ;;  %v1363_v29 = vld [vmem:[%s5576_s18 + $0x2f88] sm:$0xff]  ;;  %v1365_v30 = vld [vmem:[%s5576_s18 + $0x2f90] sm:$0xff] }
 0x121   : > { %1362 = vst [vmem:[%s5581_s19 + $0x10e0] sm:$0xff] %v1361_v28  ;;  %1364 = vst [vmem:[%s5581_s19 + $0x10e8] sm:$0xff] %v1363_v29  ;;  %v1367_v31 = vld [vmem:[%s5576_s18 + $0x2f98] sm:$0xff]  ;;  %v1369_v32 = vld [vmem:[%s5576_s18 + $0x2fa0] sm:$0xff] }
 0x122   : > { %1366 = vst [vmem:[%s5581_s19 + $0x10f0] sm:$0xff] %v1365_v30  ;;  %v1371_v33 = vld [vmem:[%s5576_s18 + $0x2fa8] sm:$0xff]  ;;  %1368 = vst [vmem:[%s5581_s19 + $0x10f8] sm:$0xff] %v1367_v31  ;;  %v1373_v34 = vld [vmem:[%s5576_s18 + $0x2fb0] sm:$0xff] }
 0x123   : > { %1370 = vst [vmem:[%s5581_s19 + $0x1100] sm:$0xff] %v1369_v32  ;;  %1372 = vst [vmem:[%s5581_s19 + $0x1108] sm:$0xff] %v1371_v33  ;;  %v1375_v35 = vld [vmem:[%s5576_s18 + $0x2fb8] sm:$0xff]  ;;  %v1377_v36 = vld [vmem:[%s5576_s18 + $0x2fc0] sm:$0xff] }
 0x124   : > { %1374 = vst [vmem:[%s5581_s19 + $0x1110] sm:$0xff] %v1373_v34  ;;  %1376 = vst [vmem:[%s5581_s19 + $0x1118] sm:$0xff] %v1375_v35  ;;  %v1379_v37 = vld [vmem:[%s5576_s18 + $0x2fc8] sm:$0xff]  ;;  %v1381_v38 = vld [vmem:[%s5576_s18 + $0x2fd0] sm:$0xff] }
 0x125   : > { %1378 = vst [vmem:[%s5581_s19 + $0x1120] sm:$0xff] %v1377_v36  ;;  %v1383_v39 = vld [vmem:[%s5576_s18 + $0x2fd8] sm:$0xff]  ;;  %1380 = vst [vmem:[%s5581_s19 + $0x1128] sm:$0xff] %v1379_v37  ;;  %v1385_v40 = vld [vmem:[%s5576_s18 + $0x2fe0] sm:$0xff] }
 0x126   : > { %1382 = vst [vmem:[%s5581_s19 + $0x1130] sm:$0xff] %v1381_v38  ;;  %1384 = vst [vmem:[%s5581_s19 + $0x1138] sm:$0xff] %v1383_v39  ;;  %v1387_v41 = vld [vmem:[%s5576_s18 + $0x2fe8] sm:$0xff]  ;;  %v1389_v42 = vld [vmem:[%s5576_s18 + $0x2ff0] sm:$0xff] }
 0x127   : > { %1386 = vst [vmem:[%s5581_s19 + $0x1140] sm:$0xff] %v1385_v40  ;;  %1388 = vst [vmem:[%s5581_s19 + $0x1148] sm:$0xff] %v1387_v41  ;;  %v1391_v43 = vld [vmem:[%s5576_s18 + $0x2ff8] sm:$0xff]  ;;  %v1393_v44 = vld [vmem:[%s5576_s18 + $0x3000] sm:$0xff] }
 0x128   : > { %1390 = vst [vmem:[%s5581_s19 + $0x1150] sm:$0xff] %v1389_v42  ;;  %v1395_v45 = vld [vmem:[%s5576_s18 + $0x3008] sm:$0xff]  ;;  %1392 = vst [vmem:[%s5581_s19 + $0x1158] sm:$0xff] %v1391_v43  ;;  %v1397_v46 = vld [vmem:[%s5576_s18 + $0x3010] sm:$0xff] }
 0x129   : > { %1394 = vst [vmem:[%s5581_s19 + $0x1160] sm:$0xff] %v1393_v44  ;;  %1396 = vst [vmem:[%s5581_s19 + $0x1168] sm:$0xff] %v1395_v45  ;;  %v1399_v47 = vld [vmem:[%s5576_s18 + $0x3018] sm:$0xff] }
 0x12a   : > { %1398 = vst [vmem:[%s5581_s19 + $0x1170] sm:$0xff] %v1397_v46  ;;  %1400 = vst [vmem:[%s5581_s19 + $0x1178] sm:$0xff] %v1399_v47 }
 0x12b PF: > { %p5205_p5 = scmp.ge.s32.totalorder %s5490_s29, 1  ;;  %p1405_p6 = scmp.lt.s32.totalorder %s5490_s29, 4 }
 0x12d   : > { %p1406_p7 = pnand %p5205_p5, %p1405_p6 }
 0x12e   : > { %s1412_s20 = sand.u32 (!%p1406_p7), 1, %s5482_s27   ;;  %s1445_s21 = smul.u32 (!%p1406_p7), 70, %s5556_s30 }
 0x12f   : > { %1409 = sbr.rel (%p1406_p7) target bundleno = 3291 (0xcdb), region = 71  ;;  %p5207_p9 = scmp.ne.s32.totalorder (!%p1406_p7), %s5556_s30, 0 }
 0x130   : > { %s5338_s22 = smul.u32 (!%p1406_p7), 4480, %s1412_s20  ;;  %p1446_p8 = scmp.lt.s32.totalorder (!%p1406_p7), %s1445_s21, 209 }
 0x132   : > { %s6709_s10 = scalar_lea.vmem (!%p1406_p7), [#allocation3], %s5338_s22 }
 0x136   : > { %s7727_s21 = smov (!%p1446_p8, %s1445_s21), 209  ;;  %1456 = sbr.rel (%p5207_p9) target bundleno = 317 (0x13d), region = 79 }
 0x137   : > { %s5206_s23 = sshll.u32 %s7727_s21, 2  ;;  %v5492_v48 = vmov (!%p5207_p9), 0.0  }
 0x138   : > { %s6707_s26 = scalar_lea.vmem %s7714_s0, %s5206_s23  ;;  %1457 = vst [vmem:[#allocation2] sm:$0xff] (!%p5207_p9), %v5492_v48  ;;  %1458 = vst [vmem:[#allocation2 + $0x8] sm:$0xff] (!%p5207_p9), %v5492_v48 }
 0x13d PF: > { %v1497_v49 = vld [vmem:[%s6709_s10 + $0x8] sm:$0xff]  ;;  %v1499_v50 = vld [vmem:[%s6709_s10 + $0x18] sm:$0xff]  ;;  %v1496_v51 = vld [vmem:[%s6709_s10] sm:$0xff]  ;;  %p5278_p10 = scmp.ne.s32.totalorder %s5556_s30, 2 }
 0x13e   : > { %v2057_v52 = vunpack.c.l.s8.bf16 %v1497_v49  ;;  %v2127_v53 = vunpack.c.h.s8.bf16 %v1497_v49  ;;  %v2059_v54 = vunpack.c.l.s8.bf16 %v1499_v50  ;;  %v2129_v55 = vunpack.c.h.s8.bf16 %v1499_v50  ;;  %v1498_v56 = vld [vmem:[%s6709_s10 + $0x10] sm:$0xff]  ;;  %v1567_v59 = vld [vmem:[%s6709_s10 + $0x238] sm:$0xff]  ;;  %v1569_v60 = vld [vmem:[%s6709_s10 + $0x248] sm:$0xff] }
 0x13f   : > { %v2056_v57 = vunpack.c.l.s8.bf16 %v1496_v51  ;;  %v2058_v58 = vunpack.c.l.s8.bf16 %v1498_v56  ;;  %v2126_v61 = vunpack.c.h.s8.bf16 %v1496_v51  ;;  %v2128_v62 = vunpack.c.h.s8.bf16 %v1498_v56  ;;  %v1566_v1 = vld [vmem:[%s6709_s10 + $0x230] sm:$0xff]  ;;  %v1568_v2 = vld [vmem:[%s6709_s10 + $0x240] sm:$0xff]  ;;  %v6724_v4 = vld [vmem:[%s6707_s26 + $0x8] sm:$0xff] }
 0x140   : > { %3421 = vmatprep.subr.bf16.mxu0 %v2057_v52  ;;  %3462 = vmatprep.subr.bf16.mxu1 %v2059_v54  ;;  %v2197_v63 = vunpack.c.l.s8.bf16 %v1567_v59  ;;  %v2199_v0 = vunpack.c.l.s8.bf16 %v1569_v60  ;;  %v6721_v3 = vld [vmem:[%s6707_s26] sm:$0xff]  ;;  %v2196_v5 = vunpack.c.l.s8.bf16 %v1566_v1  ;;  %v2198_v6 = vunpack.c.l.s8.bf16 %v1568_v2  ;;  %v1637_v11 = vld [vmem:[%s6709_s10 + $0x468] sm:$0xff]  ;;  %v1639_v12 = vld [vmem:[%s6709_s10 + $0x478] sm:$0xff] }
 0x141   : > { %3422 = vmatpush1.bf16.xpose.msra.mxu0 %v2056_v57  ;;  %3463 = vmatpush1.bf16.xpose.msra.mxu1 %v2058_v58  ;;  %v2267_v7 = vunpack.c.h.s8.bf16 %v1567_v59  ;;  %v2269_v8 = vunpack.c.h.s8.bf16 %v1569_v60  ;;  %v5209_v9 = vcombine.high %v6721_v3, %v6721_v3  ;;  %v5211_v10 = vcombine.high %v6724_v4, %v6724_v4  ;;  %v1636_v17 = vld [vmem:[%s6709_s10 + $0x460] sm:$0xff]  ;;  %v1638_v18 = vld [vmem:[%s6709_s10 + $0x470] sm:$0xff]  ;;  %v1707_v23 = vld [vmem:[%s6709_s10 + $0x698] sm:$0xff] }
 0x142   : > { %3423 = vmatprep.subr.bf16.mxu0 %v2127_v53  ;;  %3464 = vmatprep.subr.bf16.mxu1 %v2129_v55  ;;  %v2266_v13 = vunpack.c.h.s8.bf16 %v1566_v1  ;;  %v2268_v14 = vunpack.c.h.s8.bf16 %v1568_v2  ;;  %v2337_v15 = vunpack.c.l.s8.bf16 %v1637_v11  ;;  %v2339_v16 = vunpack.c.l.s8.bf16 %v1639_v12  ;;  %v1709_v24 = vld [vmem:[%s6709_s10 + $0x6a8] sm:$0xff]  ;;  %v1706_v29 = vld [vmem:[%s6709_s10 + $0x690] sm:$0xff]  ;;  %v1708_v30 = vld [vmem:[%s6709_s10 + $0x6a0] sm:$0xff] }
 0x143   : > { %3453 = vmatprep.mubr.bf16.mxu0 %v5209_v9  ;;  %3494 = vmatprep.mubr.bf16.mxu1 %v5211_v10  ;;  %v2336_v19 = vunpack.c.l.s8.bf16 %v1636_v17  ;;  %v2338_v20 = vunpack.c.l.s8.bf16 %v1638_v18  ;;  %v2407_v21 = vunpack.c.h.s8.bf16 %v1637_v11  ;;  %v2409_v22 = vunpack.c.h.s8.bf16 %v1639_v12  ;;  %v1777_v35 = vld [vmem:[%s6709_s10 + $0x8c8] sm:$0xff]  ;;  %v1779_v36 = vld [vmem:[%s6709_s10 + $0x8d8] sm:$0xff]  ;;  %v1776_v41 = vld [vmem:[%s6709_s10 + $0x8c0] sm:$0xff] }
 0x144   : > { %v2406_v25 = vunpack.c.h.s8.bf16 %v1636_v17  ;;  %v2408_v26 = vunpack.c.h.s8.bf16 %v1638_v18  ;;  %v2477_v27 = vunpack.c.l.s8.bf16 %v1707_v23  ;;  %v2479_v28 = vunpack.c.l.s8.bf16 %v1709_v24  ;;  %v1778_v42 = vld [vmem:[%s6709_s10 + $0x8d0] sm:$0xff]  ;;  %v1847_v47 = vld [vmem:[%s6709_s10 + $0xaf8] sm:$0xff]  ;;  %v1849_v48 = vld [vmem:[%s6709_s10 + $0xb08] sm:$0xff] }
 0x145   : > { %v2476_v31 = vunpack.c.l.s8.bf16 %v1706_v29  ;;  %v2478_v32 = vunpack.c.l.s8.bf16 %v1708_v30  ;;  %v2547_v33 = vunpack.c.h.s8.bf16 %v1707_v23  ;;  %v2549_v34 = vunpack.c.h.s8.bf16 %v1709_v24  ;;  %v1846_v53 = vld [vmem:[%s6709_s10 + $0xaf0] sm:$0xff]  ;;  %v1848_v54 = vld [vmem:[%s6709_s10 + $0xb00] sm:$0xff]  ;;  %v1917_v59 = vld [vmem:[%s6709_s10 + $0xd28] sm:$0xff] }
 0x146   : > { %v2546_v37 = vunpack.c.h.s8.bf16 %v1706_v29  ;;  %v2548_v38 = vunpack.c.h.s8.bf16 %v1708_v30  ;;  %v2617_v39 = vunpack.c.l.s8.bf16 %v1777_v35  ;;  %v2619_v40 = vunpack.c.l.s8.bf16 %v1779_v36  ;;  %v1919_v60 = vld [vmem:[%s6709_s10 + $0xd38] sm:$0xff]  ;;  %v1916_v1 = vld [vmem:[%s6709_s10 + $0xd20] sm:$0xff]  ;;  %v1918_v2 = vld [vmem:[%s6709_s10 + $0xd30] sm:$0xff] }
 0x147   : > { %v2616_v43 = vunpack.c.l.s8.bf16 %v1776_v41  ;;  %v2618_v44 = vunpack.c.l.s8.bf16 %v1778_v42  ;;  %v2687_v45 = vunpack.c.h.s8.bf16 %v1777_v35  ;;  %v2689_v46 = vunpack.c.h.s8.bf16 %v1779_v36  ;;  %v1987_v9 = vld [vmem:[%s6709_s10 + $0xf58] sm:$0xff]  ;;  %v1989_v10 = vld [vmem:[%s6709_s10 + $0xf68] sm:$0xff] }
 0x148   : > { %v2686_v49 = vunpack.c.h.s8.bf16 %v1776_v41  ;;  %v2688_v50 = vunpack.c.h.s8.bf16 %v1778_v42  ;;  %v2757_v51 = vunpack.c.l.s8.bf16 %v1847_v47  ;;  %v2759_v52 = vunpack.c.l.s8.bf16 %v1849_v48  ;;  %v6766_v36 = vld [vmem:[%s6707_s26 + $0x18] sm:$0xff] }
 0x149   : > { %3424 = vmatpush1.bf16.xpose.msra.mxu0 %v2126_v61  ;;  %3465 = vmatpush1.bf16.xpose.msra.mxu1 %v2128_v62  ;;  %v2756_v55 = vunpack.c.l.s8.bf16 %v1846_v53  ;;  %v2758_v56 = vunpack.c.l.s8.bf16 %v1848_v54  ;;  %v2827_v57 = vunpack.c.h.s8.bf16 %v1847_v47  ;;  %v2829_v58 = vunpack.c.h.s8.bf16 %v1849_v48 }
 0x14a   : > { %3425 = vmatprep.subr.bf16.mxu0 %v2197_v63  ;;  %3466 = vmatprep.subr.bf16.mxu1 %v2199_v0  ;;  %v2826_v61 = vunpack.c.h.s8.bf16 %v1846_v53  ;;  %v2828_v62 = vunpack.c.h.s8.bf16 %v1848_v54  ;;  %v2897_v63 = vunpack.c.l.s8.bf16 %v1917_v59  ;;  %v2899_v0 = vunpack.c.l.s8.bf16 %v1919_v60 }
 0x14b   : > { %v2966_v11 = vunpack.c.h.s8.bf16 %v1916_v1  ;;  %v2968_v12 = vunpack.c.h.s8.bf16 %v1918_v2  ;;  %v5208_v29 = vcombine.low %v6721_v3, %v6721_v3  ;;  %v5210_v30 = vcombine.low %v6724_v4, %v6724_v4  ;;  %v1571_v3 = vld [vmem:[%s6709_s10 + $0x258] sm:$0xff]  ;;  %v1573_v4 = vld [vmem:[%s6709_s10 + $0x268] sm:$0xff] }
 0x14c   : > { %v2201_v41 = vunpack.c.l.s8.bf16 %v1571_v3  ;;  %v2203_v42 = vunpack.c.l.s8.bf16 %v1573_v4  ;;  %v2271_v47 = vunpack.c.h.s8.bf16 %v1571_v3  ;;  %v2273_v48 = vunpack.c.h.s8.bf16 %v1573_v4 }
 0x14d   : > { %vm5494_vm0 = vmmov (!%p5278_p10), 0  }
 0x151   : > { %3426 = vmatpush1.bf16.xpose.msra.mxu0 %v2196_v5  ;;  %3467 = vmatpush1.bf16.xpose.msra.mxu1 %v2198_v6  ;;  %v2896_v5 = vunpack.c.l.s8.bf16 %v1916_v1  ;;  %v2898_v6 = vunpack.c.l.s8.bf16 %v1918_v2 }
 0x152   : > { %3427 = vmatprep.subr.bf16.mxu0 %v2267_v7  ;;  %3468 = vmatprep.subr.bf16.mxu1 %v2269_v8  ;;  %v2967_v7 = vunpack.c.h.s8.bf16 %v1917_v59  ;;  %v2969_v8 = vunpack.c.h.s8.bf16 %v1919_v60 }
 0x159   : > { %3428 = vmatpush1.bf16.xpose.msra.mxu0 %v2266_v13  ;;  %3469 = vmatpush1.bf16.xpose.msra.mxu1 %v2268_v14  ;;  %v3037_v13 = vunpack.c.l.s8.bf16 %v1987_v9  ;;  %v3039_v14 = vunpack.c.l.s8.bf16 %v1989_v10 }
 0x15a   : > { %3429 = vmatprep.subr.bf16.mxu0 %v2337_v15  ;;  %3470 = vmatprep.subr.bf16.mxu1 %v2339_v16  ;;  %v1986_v15 = vld [vmem:[%s6709_s10 + $0xf50] sm:$0xff]  ;;  %v1988_v16 = vld [vmem:[%s6709_s10 + $0xf60] sm:$0xff] }
 0x15b   : > { %v3036_v17 = vunpack.c.l.s8.bf16 %v1986_v15  ;;  %v3038_v18 = vunpack.c.l.s8.bf16 %v1988_v16  ;;  %v3106_v23 = vunpack.c.h.s8.bf16 %v1986_v15  ;;  %v3108_v24 = vunpack.c.h.s8.bf16 %v1988_v16 }
 0x161   : > { %3430 = vmatpush1.bf16.xpose.msra.mxu0 %v2336_v19  ;;  %3471 = vmatpush1.bf16.xpose.msra.mxu1 %v2338_v20  ;;  %v3107_v19 = vunpack.c.h.s8.bf16 %v1987_v9  ;;  %v3109_v20 = vunpack.c.h.s8.bf16 %v1989_v10 }
 0x162   : > { %3431 = vmatprep.subr.bf16.mxu0 %v2407_v21  ;;  %3472 = vmatprep.subr.bf16.mxu1 %v2409_v22  ;;  %v1501_v21 = vld [vmem:[%s6709_s10 + $0x28] sm:$0xff]  ;;  %v1503_v22 = vld [vmem:[%s6709_s10 + $0x38] sm:$0xff] }
 0x163   : > { %v2133_v35 = vunpack.c.h.s8.bf16 %v1503_v22 }
 0x169   : > { %3432 = vmatpush1.bf16.xpose.msra.mxu0 %v2406_v25  ;;  %3473 = vmatpush1.bf16.xpose.msra.mxu1 %v2408_v26  ;;  %v2061_v25 = vunpack.c.l.s8.bf16 %v1501_v21  ;;  %v2063_v26 = vunpack.c.l.s8.bf16 %v1503_v22 }
 0x16a   : > { %3433 = vmatprep.subr.bf16.mxu0 %v2477_v27  ;;  %3474 = vmatprep.subr.bf16.mxu1 %v2479_v28  ;;  %v1500_v27 = vld [vmem:[%s6709_s10 + $0x20] sm:$0xff]  ;;  %v1502_v28 = vld [vmem:[%s6709_s10 + $0x30] sm:$0xff] }
 0x171   : > { %3434 = vmatpush1.bf16.xpose.msra.mxu0 %v2476_v31  ;;  %3475 = vmatpush1.bf16.xpose.msra.mxu1 %v2478_v32  ;;  %v6763_v31 = vld [vmem:[%s6707_s26 + $0x10] sm:$0xff]  ;;  %v2060_v32 = vunpack.c.l.s8.bf16 %v1500_v27 }
 0x172   : > { %3435 = vmatprep.subr.bf16.mxu0 %v2547_v33  ;;  %3476 = vmatprep.subr.bf16.mxu1 %v2549_v34  ;;  %v2062_v33 = vunpack.c.l.s8.bf16 %v1502_v28  ;;  %v2131_v34 = vunpack.c.h.s8.bf16 %v1501_v21 }
 0x179   : > { %3436 = vmatpush1.bf16.xpose.msra.mxu0 %v2546_v37  ;;  %3477 = vmatpush1.bf16.xpose.msra.mxu1 %v2548_v38  ;;  %v5213_v37 = vcombine.high %v6763_v31, %v6763_v31  ;;  %v5215_v38 = vcombine.high %v6766_v36, %v6766_v36 }
 0x17a   : > { %3437 = vmatprep.subr.bf16.mxu0 %v2617_v39  ;;  %3478 = vmatprep.subr.bf16.mxu1 %v2619_v40  ;;  %v2130_v39 = vunpack.c.h.s8.bf16 %v1500_v27  ;;  %v2132_v40 = vunpack.c.h.s8.bf16 %v1502_v28 }
 0x181   : > { %3438 = vmatpush1.bf16.xpose.msra.mxu0 %v2616_v43  ;;  %3479 = vmatpush1.bf16.xpose.msra.mxu1 %v2618_v44  ;;  %v1570_v43 = vld [vmem:[%s6709_s10 + $0x250] sm:$0xff]  ;;  %v1572_v44 = vld [vmem:[%s6709_s10 + $0x260] sm:$0xff] }
 0x182   : > { %3439 = vmatprep.subr.bf16.mxu0 %v2687_v45  ;;  %3480 = vmatprep.subr.bf16.mxu1 %v2689_v46  ;;  %v2200_v45 = vunpack.c.l.s8.bf16 %v1570_v43  ;;  %v2202_v46 = vunpack.c.l.s8.bf16 %v1572_v44 }
 0x189   : > { %3440 = vmatpush1.bf16.xpose.msra.mxu0 %v2686_v49  ;;  %3481 = vmatpush1.bf16.xpose.msra.mxu1 %v2688_v50  ;;  %v1641_v49 = vld [vmem:[%s6709_s10 + $0x488] sm:$0xff]  ;;  %v1643_v50 = vld [vmem:[%s6709_s10 + $0x498] sm:$0xff] }
 0x18a   : > { %3441 = vmatprep.subr.bf16.mxu0 %v2757_v51  ;;  %3482 = vmatprep.subr.bf16.mxu1 %v2759_v52  ;;  %v2270_v51 = vunpack.c.h.s8.bf16 %v1570_v43  ;;  %v2272_v52 = vunpack.c.h.s8.bf16 %v1572_v44  ;;  %v2341_v53 = vunpack.c.l.s8.bf16 %v1641_v49  ;;  %v2343_v54 = vunpack.c.l.s8.bf16 %v1643_v50 }
 0x18b   : > { %v2411_v59 = vunpack.c.h.s8.bf16 %v1641_v49  ;;  %v2413_v60 = vunpack.c.h.s8.bf16 %v1643_v50 }
 0x191   : > { %3442 = vmatpush1.bf16.xpose.msra.mxu0 %v2756_v55  ;;  %3483 = vmatpush1.bf16.xpose.msra.mxu1 %v2758_v56  ;;  %v1640_v55 = vld [vmem:[%s6709_s10 + $0x480] sm:$0xff]  ;;  %v1642_v56 = vld [vmem:[%s6709_s10 + $0x490] sm:$0xff] }
 0x192   : > { %3443 = vmatprep.subr.bf16.mxu0 %v2827_v57  ;;  %3484 = vmatprep.subr.bf16.mxu1 %v2829_v58  ;;  %v2340_v57 = vunpack.c.l.s8.bf16 %v1640_v55  ;;  %v2342_v58 = vunpack.c.l.s8.bf16 %v1642_v56 }
 0x199   : > { %3444 = vmatpush1.bf16.xpose.msra.mxu0 %v2826_v61  ;;  %3485 = vmatpush1.bf16.xpose.msra.mxu1 %v2828_v62  ;;  %v1711_v61 = vld [vmem:[%s6709_s10 + $0x6b8] sm:$0xff]  ;;  %v1713_v62 = vld [vmem:[%s6709_s10 + $0x6c8] sm:$0xff] }
 0x19a   : > { %3445 = vmatprep.subr.bf16.mxu0 %v2897_v63  ;;  %3486 = vmatprep.subr.bf16.mxu1 %v2899_v0  ;;  %v2410_v63 = vunpack.c.h.s8.bf16 %v1640_v55  ;;  %v2412_v0 = vunpack.c.h.s8.bf16 %v1642_v56  ;;  %v2481_v1 = vunpack.c.l.s8.bf16 %v1711_v61  ;;  %v2483_v2 = vunpack.c.l.s8.bf16 %v1713_v62 }
 0x19b   : > { %v2551_v9 = vunpack.c.h.s8.bf16 %v1711_v61  ;;  %v2553_v10 = vunpack.c.h.s8.bf16 %v1713_v62 }
 0x1a1   : > { %3446 = vmatpush1.bf16.xpose.msra.mxu0 %v2896_v5  ;;  %3487 = vmatpush1.bf16.xpose.msra.mxu1 %v2898_v6  ;;  %v1710_v5 = vld [vmem:[%s6709_s10 + $0x6b0] sm:$0xff]  ;;  %v1712_v6 = vld [vmem:[%s6709_s10 + $0x6c0] sm:$0xff] }
 0x1a2   : > { %3447 = vmatprep.subr.bf16.mxu0 %v2967_v7  ;;  %3488 = vmatprep.subr.bf16.mxu1 %v2969_v8  ;;  %v2480_v7 = vunpack.c.l.s8.bf16 %v1710_v5  ;;  %v2482_v8 = vunpack.c.l.s8.bf16 %v1712_v6 }
 0x1a9   : > { %3448 = vmatpush1.bf16.xpose.msra.mxu0 %v2966_v11  ;;  %3489 = vmatpush1.bf16.xpose.msra.mxu1 %v2968_v12  ;;  %v1781_v11 = vld [vmem:[%s6709_s10 + $0x8e8] sm:$0xff]  ;;  %v1783_v12 = vld [vmem:[%s6709_s10 + $0x8f8] sm:$0xff] }
 0x1aa   : > { %3449 = vmatprep.subr.bf16.mxu0 %v3037_v13  ;;  %3490 = vmatprep.subr.bf16.mxu1 %v3039_v14  ;;  %v2550_v13 = vunpack.c.h.s8.bf16 %v1710_v5  ;;  %v2552_v14 = vunpack.c.h.s8.bf16 %v1712_v6  ;;  %v2621_v15 = vunpack.c.l.s8.bf16 %v1781_v11  ;;  %v2623_v16 = vunpack.c.l.s8.bf16 %v1783_v12 }
 0x1ab   : > { %v2691_v21 = vunpack.c.h.s8.bf16 %v1781_v11  ;;  %v2693_v22 = vunpack.c.h.s8.bf16 %v1783_v12  ;;  %v5212_v5 = vcombine.low %v6763_v31, %v6763_v31  ;;  %v5214_v6 = vcombine.low %v6766_v36, %v6766_v36  ;;  %v6812_v12 = vld [vmem:[%s6707_s26 + $0x28] sm:$0xff]  ;;  %v1577_v36 = vld [vmem:[%s6709_s10 + $0x288] sm:$0xff] }
 0x1ac   : > { %v1575_v31 = vld [vmem:[%s6709_s10 + $0x278] sm:$0xff] }
 0x1b1   : > { %3450 = vmatpush1.bf16.xpose.msra.mxu0 %v3036_v17  ;;  %3491 = vmatpush1.bf16.xpose.msra.mxu1 %v3038_v18  ;;  %v1780_v17 = vld [vmem:[%s6709_s10 + $0x8e0] sm:$0xff]  ;;  %v1782_v18 = vld [vmem:[%s6709_s10 + $0x8f0] sm:$0xff] }
 0x1b2   : > { %3451 = vmatprep.subr.bf16.mxu0 %v3107_v19  ;;  %3492 = vmatprep.subr.bf16.mxu1 %v3109_v20  ;;  %v2620_v19 = vunpack.c.l.s8.bf16 %v1780_v17  ;;  %v2622_v20 = vunpack.c.l.s8.bf16 %v1782_v18 }
 0x1b9   : > { %3452 = vmatpush1.bf16.xpose.msra.mxu0 %v3106_v23  ;;  %3493 = vmatpush1.bf16.xpose.msra.mxu1 %v3108_v24  ;;  %v1851_v23 = vld [vmem:[%s6709_s10 + $0xb18] sm:$0xff]  ;;  %v1853_v24 = vld [vmem:[%s6709_s10 + $0xb28] sm:$0xff] }
 0x1ba   : > { %3503 = vmatprep.subr.bf16.mxu0 %v2061_v25  ;;  %3544 = vmatprep.subr.bf16.mxu1 %v2063_v26  ;;  %v2690_v25 = vunpack.c.h.s8.bf16 %v1780_v17  ;;  %v2692_v26 = vunpack.c.h.s8.bf16 %v1782_v18  ;;  %v2761_v27 = vunpack.c.l.s8.bf16 %v1851_v23  ;;  %v2763_v28 = vunpack.c.l.s8.bf16 %v1853_v24 }
 0x1bb   : > { %v2205_v17 = vunpack.c.l.s8.bf16 %v1575_v31  ;;  %v2207_v18 = vunpack.c.l.s8.bf16 %v1577_v36 }
 0x1c0   : > { %3454 = vmatmul.mubr.bf16.vlgmr.msra.gmra.mrb[0].mxu0 %v5208_v29  ;;  %3495 = vmatmul.mubr.bf16.vlgmr.msra.gmra.mrb[0].mxu1 %v5210_v30  ;;  %v1850_v29 = vld [vmem:[%s6709_s10 + $0xb10] sm:$0xff]  ;;  %v1852_v30 = vld [vmem:[%s6709_s10 + $0xb20] sm:$0xff] }
 0x1c1   : > { %3504 = vmatpush1.bf16.xpose.msra.mxu0 %v2060_v32  ;;  %3545 = vmatpush1.bf16.xpose.msra.mxu1 %v2062_v33  ;;  %v2760_v32 = vunpack.c.l.s8.bf16 %v1850_v29  ;;  %v2762_v33 = vunpack.c.l.s8.bf16 %v1852_v30  ;;  %v2830_v3 = vunpack.c.h.s8.bf16 %v1850_v29  ;;  %v2832_v4 = vunpack.c.h.s8.bf16 %v1852_v30 }
 0x1c2   : > { %3505 = vmatprep.subr.bf16.mxu0 %v2131_v34  ;;  %3546 = vmatprep.subr.bf16.mxu1 %v2133_v35  ;;  %v2831_v34 = vunpack.c.h.s8.bf16 %v1851_v23  ;;  %v2833_v35 = vunpack.c.h.s8.bf16 %v1853_v24  ;;  %v2275_v23 = vunpack.c.h.s8.bf16 %v1575_v31  ;;  %v2277_v24 = vunpack.c.h.s8.bf16 %v1577_v36  ;;  %v1925_v31 = vld [vmem:[%s6709_s10 + $0xd68] sm:$0xff]  ;;  %v1927_v36 = vld [vmem:[%s6709_s10 + $0xd78] sm:$0xff] }
 0x1c3   : > { %3535 = vmatprep.mubr.bf16.mxu0 %v5213_v37  ;;  %3576 = vmatprep.mubr.bf16.mxu1 %v5215_v38  ;;  %v1921_v37 = vld [vmem:[%s6709_s10 + $0xd48] sm:$0xff]  ;;  %v1923_v38 = vld [vmem:[%s6709_s10 + $0xd58] sm:$0xff] }
 0x1c9   : > { %3506 = vmatpush1.bf16.xpose.msra.mxu0 %v2130_v39  ;;  %3547 = vmatpush1.bf16.xpose.msra.mxu1 %v2132_v40  ;;  %v2901_v39 = vunpack.c.l.s8.bf16 %v1921_v37  ;;  %v2903_v40 = vunpack.c.l.s8.bf16 %v1923_v38 }
 0x1ca   : > { %3507 = vmatprep.subr.bf16.mxu0 %v2201_v41  ;;  %3548 = vmatprep.subr.bf16.mxu1 %v2203_v42  ;;  %v1920_v41 = vld [vmem:[%s6709_s10 + $0xd40] sm:$0xff]  ;;  %v1922_v42 = vld [vmem:[%s6709_s10 + $0xd50] sm:$0xff] }
 0x1cb   : > { %v2900_v43 = vunpack.c.l.s8.bf16 %v1920_v41  ;;  %v2902_v44 = vunpack.c.l.s8.bf16 %v1922_v42  ;;  %v2970_v49 = vunpack.c.h.s8.bf16 %v1920_v41  ;;  %v2972_v50 = vunpack.c.h.s8.bf16 %v1922_v42 }
 0x1d1   : > { %3508 = vmatpush1.bf16.xpose.msra.mxu0 %v2200_v45  ;;  %3549 = vmatpush1.bf16.xpose.msra.mxu1 %v2202_v46  ;;  %v2971_v45 = vunpack.c.h.s8.bf16 %v1921_v37  ;;  %v2973_v46 = vunpack.c.h.s8.bf16 %v1923_v38 }
 0x1d2   : > { %3509 = vmatprep.subr.bf16.mxu0 %v2271_v47  ;;  %3550 = vmatprep.subr.bf16.mxu1 %v2273_v48  ;;  %v1991_v47 = vld [vmem:[%s6709_s10 + $0xf78] sm:$0xff]  ;;  %v1993_v48 = vld [vmem:[%s6709_s10 + $0xf88] sm:$0xff] }
 0x1d9   : > { %3510 = vmatpush1.bf16.xpose.msra.mxu0 %v2270_v51  ;;  %3551 = vmatpush1.bf16.xpose.msra.mxu1 %v2272_v52  ;;  %v3041_v51 = vunpack.c.l.s8.bf16 %v1991_v47  ;;  %v3043_v52 = vunpack.c.l.s8.bf16 %v1993_v48 }
 0x1da   : > { %3511 = vmatprep.subr.bf16.mxu0 %v2341_v53  ;;  %3552 = vmatprep.subr.bf16.mxu1 %v2343_v54  ;;  %v1990_v53 = vld [vmem:[%s6709_s10 + $0xf70] sm:$0xff]  ;;  %v1992_v54 = vld [vmem:[%s6709_s10 + $0xf80] sm:$0xff] }
 0x1db   : > { %v3040_v55 = vunpack.c.l.s8.bf16 %v1990_v53  ;;  %v3042_v56 = vunpack.c.l.s8.bf16 %v1992_v54  ;;  %v3110_v61 = vunpack.c.h.s8.bf16 %v1990_v53  ;;  %v3112_v62 = vunpack.c.h.s8.bf16 %v1992_v54 }
 0x1e1   : > { %3512 = vmatpush1.bf16.xpose.msra.mxu0 %v2340_v57  ;;  %3553 = vmatpush1.bf16.xpose.msra.mxu1 %v2342_v58  ;;  %v3111_v57 = vunpack.c.h.s8.bf16 %v1991_v47  ;;  %v3113_v58 = vunpack.c.h.s8.bf16 %v1993_v48 }
 0x1e2   : > { %3513 = vmatprep.subr.bf16.mxu0 %v2411_v59  ;;  %3554 = vmatprep.subr.bf16.mxu1 %v2413_v60  ;;  %v1505_v59 = vld [vmem:[%s6709_s10 + $0x48] sm:$0xff]  ;;  %v1507_v60 = vld [vmem:[%s6709_s10 + $0x58] sm:$0xff] }
 0x1e3   : > { %v2137_v11 = vunpack.c.h.s8.bf16 %v1507_v60 }
 0x1e9   : > { %3514 = vmatpush1.bf16.xpose.msra.mxu0 %v2410_v63  ;;  %3555 = vmatpush1.bf16.xpose.msra.mxu1 %v2412_v0  ;;  %v2065_v63 = vunpack.c.l.s8.bf16 %v1505_v59  ;;  %v2067_v0 = vunpack.c.l.s8.bf16 %v1507_v60 }
 0x1ea   : > { %3515 = vmatprep.subr.bf16.mxu0 %v2481_v1  ;;  %3556 = vmatprep.subr.bf16.mxu1 %v2483_v2  ;;  %v1504_v1 = vld [vmem:[%s6709_s10 + $0x40] sm:$0xff]  ;;  %v1506_v2 = vld [vmem:[%s6709_s10 + $0x50] sm:$0xff] }
 0x1f1   : > { %3516 = vmatpush1.bf16.xpose.msra.mxu0 %v2480_v7  ;;  %3557 = vmatpush1.bf16.xpose.msra.mxu1 %v2482_v8  ;;  %v6809_v7 = vld [vmem:[%s6707_s26 + $0x20] sm:$0xff]  ;;  %v2064_v8 = vunpack.c.l.s8.bf16 %v1504_v1 }
 0x1f2   : > { %3517 = vmatprep.subr.bf16.mxu0 %v2551_v9  ;;  %3558 = vmatprep.subr.bf16.mxu1 %v2553_v10  ;;  %v2066_v9 = vunpack.c.l.s8.bf16 %v1506_v2  ;;  %v2135_v10 = vunpack.c.h.s8.bf16 %v1505_v59 }
 0x1f9   : > { %3518 = vmatpush1.bf16.xpose.msra.mxu0 %v2550_v13  ;;  %3559 = vmatpush1.bf16.xpose.msra.mxu1 %v2552_v14  ;;  %v5217_v13 = vcombine.high %v6809_v7, %v6809_v7  ;;  %v5219_v14 = vcombine.high %v6812_v12, %v6812_v12 }
 0x1fa   : > { %3519 = vmatprep.subr.bf16.mxu0 %v2621_v15  ;;  %3560 = vmatprep.subr.bf16.mxu1 %v2623_v16  ;;  %v2134_v15 = vunpack.c.h.s8.bf16 %v1504_v1  ;;  %v2136_v16 = vunpack.c.h.s8.bf16 %v1506_v2 }
 0x201   : > { %3520 = vmatpush1.bf16.xpose.msra.mxu0 %v2620_v19  ;;  %3561 = vmatpush1.bf16.xpose.msra.mxu1 %v2622_v20  ;;  %v1574_v19 = vld [vmem:[%s6709_s10 + $0x270] sm:$0xff]  ;;  %v1576_v20 = vld [vmem:[%s6709_s10 + $0x280] sm:$0xff] }
 0x202   : > { %3521 = vmatprep.subr.bf16.mxu0 %v2691_v21  ;;  %3562 = vmatprep.subr.bf16.mxu1 %v2693_v22  ;;  %v2204_v21 = vunpack.c.l.s8.bf16 %v1574_v19  ;;  %v2206_v22 = vunpack.c.l.s8.bf16 %v1576_v20 }
 0x209   : > { %3522 = vmatpush1.bf16.xpose.msra.mxu0 %v2690_v25  ;;  %3563 = vmatpush1.bf16.xpose.msra.mxu1 %v2692_v26  ;;  %v1645_v25 = vld [vmem:[%s6709_s10 + $0x4a8] sm:$0xff]  ;;  %v1647_v26 = vld [vmem:[%s6709_s10 + $0x4b8] sm:$0xff] }
 0x20a   : > { %3523 = vmatprep.subr.bf16.mxu0 %v2761_v27  ;;  %3564 = vmatprep.subr.bf16.mxu1 %v2763_v28  ;;  %v2274_v27 = vunpack.c.h.s8.bf16 %v1574_v19  ;;  %v2276_v28 = vunpack.c.h.s8.bf16 %v1576_v20  ;;  %v2345_v29 = vunpack.c.l.s8.bf16 %v1645_v25  ;;  %v2347_v30 = vunpack.c.l.s8.bf16 %v1647_v26 }
 0x20b   : > { %v2415_v37 = vunpack.c.h.s8.bf16 %v1645_v25  ;;  %v2417_v38 = vunpack.c.h.s8.bf16 %v1647_v26  ;;  %v2907_v25 = vunpack.c.l.s8.bf16 %v1927_v36 }
 0x211   : > { %3524 = vmatpush1.bf16.xpose.msra.mxu0 %v2760_v32  ;;  %3565 = vmatpush1.bf16.xpose.msra.mxu1 %v2762_v33  ;;  %v1644_v32 = vld [vmem:[%s6709_s10 + $0x4a0] sm:$0xff]  ;;  %v1646_v33 = vld [vmem:[%s6709_s10 + $0x4b0] sm:$0xff] }
 0x212   : > { %3525 = vmatprep.subr.bf16.mxu0 %v2831_v34  ;;  %3566 = vmatprep.subr.bf16.mxu1 %v2833_v35  ;;  %v2344_v34 = vunpack.c.l.s8.bf16 %v1644_v32  ;;  %v2346_v35 = vunpack.c.l.s8.bf16 %v1646_v33 }
 0x219   : > { %3526 = vmatpush1.bf16.xpose.msra.mxu0 %v2830_v3  ;;  %3567 = vmatpush1.bf16.xpose.msra.mxu1 %v2832_v4  ;;  %v1715_v3 = vld [vmem:[%s6709_s10 + $0x6d8] sm:$0xff]  ;;  %v1717_v4 = vld [vmem:[%s6709_s10 + $0x6e8] sm:$0xff] }
 0x21a   : > { %3527 = vmatprep.subr.bf16.mxu0 %v2901_v39  ;;  %3568 = vmatprep.subr.bf16.mxu1 %v2903_v40  ;;  %v2414_v39 = vunpack.c.h.s8.bf16 %v1644_v32  ;;  %v2416_v40 = vunpack.c.h.s8.bf16 %v1646_v33  ;;  %v2485_v41 = vunpack.c.l.s8.bf16 %v1715_v3  ;;  %v2487_v42 = vunpack.c.l.s8.bf16 %v1717_v4 }
 0x21b   : > { %v2555_v47 = vunpack.c.h.s8.bf16 %v1715_v3  ;;  %v2557_v48 = vunpack.c.h.s8.bf16 %v1717_v4  ;;  %v2975_v32 = vunpack.c.h.s8.bf16 %v1925_v31  ;;  %v2977_v33 = vunpack.c.h.s8.bf16 %v1927_v36 }
 0x221   : > { %3528 = vmatpush1.bf16.xpose.msra.mxu0 %v2900_v43  ;;  %3569 = vmatpush1.bf16.xpose.msra.mxu1 %v2902_v44  ;;  %v1714_v43 = vld [vmem:[%s6709_s10 + $0x6d0] sm:$0xff]  ;;  %v1716_v44 = vld [vmem:[%s6709_s10 + $0x6e0] sm:$0xff] }
 0x222   : > { %3529 = vmatprep.subr.bf16.mxu0 %v2971_v45  ;;  %3570 = vmatprep.subr.bf16.mxu1 %v2973_v46  ;;  %v2484_v45 = vunpack.c.l.s8.bf16 %v1714_v43  ;;  %v2486_v46 = vunpack.c.l.s8.bf16 %v1716_v44 }
 0x229   : > { %3530 = vmatpush1.bf16.xpose.msra.mxu0 %v2970_v49  ;;  %3571 = vmatpush1.bf16.xpose.msra.mxu1 %v2972_v50  ;;  %v1785_v49 = vld [vmem:[%s6709_s10 + $0x908] sm:$0xff]  ;;  %v1787_v50 = vld [vmem:[%s6709_s10 + $0x918] sm:$0xff] }
 0x22a   : > { %3531 = vmatprep.subr.bf16.mxu0 %v3041_v51  ;;  %3572 = vmatprep.subr.bf16.mxu1 %v3043_v52  ;;  %v2554_v51 = vunpack.c.h.s8.bf16 %v1714_v43  ;;  %v2556_v52 = vunpack.c.h.s8.bf16 %v1716_v44  ;;  %v2625_v53 = vunpack.c.l.s8.bf16 %v1785_v49  ;;  %v2627_v54 = vunpack.c.l.s8.bf16 %v1787_v50 }
 0x22b   : > { %v2695_v59 = vunpack.c.h.s8.bf16 %v1785_v49  ;;  %v2697_v60 = vunpack.c.h.s8.bf16 %v1787_v50 }
 0x231   : > { %3532 = vmatpush1.bf16.xpose.msra.mxu0 %v3040_v55  ;;  %3573 = vmatpush1.bf16.xpose.msra.mxu1 %v3042_v56  ;;  %v1784_v55 = vld [vmem:[%s6709_s10 + $0x900] sm:$0xff]  ;;  %v1786_v56 = vld [vmem:[%s6709_s10 + $0x910] sm:$0xff] }
 0x232   : > { %3533 = vmatprep.subr.bf16.mxu0 %v3111_v57  ;;  %3574 = vmatprep.subr.bf16.mxu1 %v3113_v58  ;;  %v2624_v57 = vunpack.c.l.s8.bf16 %v1784_v55  ;;  %v2626_v58 = vunpack.c.l.s8.bf16 %v1786_v56 }
 0x239   : > { %3534 = vmatpush1.bf16.xpose.msra.mxu0 %v3110_v61  ;;  %3575 = vmatpush1.bf16.xpose.msra.mxu1 %v3112_v62  ;;  %v1855_v61 = vld [vmem:[%s6709_s10 + $0xb38] sm:$0xff]  ;;  %v1857_v62 = vld [vmem:[%s6709_s10 + $0xb48] sm:$0xff] }
 0x23a   : > { %3585 = vmatprep.subr.bf16.mxu0 %v2065_v63  ;;  %3626 = vmatprep.subr.bf16.mxu1 %v2067_v0  ;;  %v2694_v63 = vunpack.c.h.s8.bf16 %v1784_v55  ;;  %v2696_v0 = vunpack.c.h.s8.bf16 %v1786_v56  ;;  %v2765_v1 = vunpack.c.l.s8.bf16 %v1855_v61  ;;  %v2767_v2 = vunpack.c.l.s8.bf16 %v1857_v62  ;;  %v6859_v55 = vld [vmem:[%s6707_s26 + $0x30] sm:$0xff] }
 0x240   : > { %3536 = vmatmul.mubr.bf16.vlgmr.msra.gmra.mrb[4].mxu0 %v5212_v5  ;;  %3577 = vmatmul.mubr.bf16.vlgmr.msra.gmra.mrb[4].mxu1 %v5214_v6  ;;  %v1854_v5 = vld [vmem:[%s6709_s10 + $0xb30] sm:$0xff]  ;;  %v1856_v6 = vld [vmem:[%s6709_s10 + $0xb40] sm:$0xff] }
 0x241   : > { %3586 = vmatpush1.bf16.xpose.msra.mxu0 %v2064_v8  ;;  %3627 = vmatpush1.bf16.xpose.msra.mxu1 %v2066_v9  ;;  %v2764_v8 = vunpack.c.l.s8.bf16 %v1854_v5  ;;  %v2766_v9 = vunpack.c.l.s8.bf16 %v1856_v6  ;;  %v2834_v20 = vunpack.c.h.s8.bf16 %v1854_v5  ;;  %v1578_v5 = vld [vmem:[%s6709_s10 + $0x290] sm:$0xff] }
 0x242   : > { %3587 = vmatprep.subr.bf16.mxu0 %v2135_v10  ;;  %3628 = vmatprep.subr.bf16.mxu1 %v2137_v11  ;;  %v2835_v10 = vunpack.c.h.s8.bf16 %v1855_v61  ;;  %v2837_v11 = vunpack.c.h.s8.bf16 %v1857_v62  ;;  %v5221_v61 = vcombine.high %v6859_v55, %v6859_v55 }
 0x243   : > { %3617 = vmatprep.mubr.bf16.mxu0 %v5217_v13  ;;  %3658 = vmatprep.mubr.bf16.mxu1 %v5219_v14 }
 0x249   : > { %3588 = vmatpush1.bf16.xpose.msra.mxu0 %v2134_v15  ;;  %3629 = vmatpush1.bf16.xpose.msra.mxu1 %v2136_v16 }
 0x24a   : > { %3589 = vmatprep.subr.bf16.mxu0 %v2205_v17  ;;  %3630 = vmatprep.subr.bf16.mxu1 %v2207_v18 }
 0x251   : > { %3590 = vmatpush1.bf16.xpose.msra.mxu0 %v2204_v21  ;;  %3631 = vmatpush1.bf16.xpose.msra.mxu1 %v2206_v22  ;;  %v2836_v21 = vunpack.c.h.s8.bf16 %v1856_v6  ;;  %v1580_v6 = vld [vmem:[%s6709_s10 + $0x2a0] sm:$0xff] }
 0x252   : > { %3591 = vmatprep.subr.bf16.mxu0 %v2275_v23  ;;  %3632 = vmatprep.subr.bf16.mxu1 %v2277_v24  ;;  %v2905_v24 = vunpack.c.l.s8.bf16 %v1925_v31  ;;  %v2278_v31 = vunpack.c.h.s8.bf16 %v1578_v5  ;;  %v2280_v36 = vunpack.c.h.s8.bf16 %v1580_v6 }
 0x259   : > { %3592 = vmatpush1.bf16.xpose.msra.mxu0 %v2274_v27  ;;  %3633 = vmatpush1.bf16.xpose.msra.mxu1 %v2276_v28  ;;  %v1924_v27 = vld [vmem:[%s6709_s10 + $0xd60] sm:$0xff]  ;;  %v1926_v28 = vld [vmem:[%s6709_s10 + $0xd70] sm:$0xff] }
 0x25a   : > { %3593 = vmatprep.subr.bf16.mxu0 %v2345_v29  ;;  %3634 = vmatprep.subr.bf16.mxu1 %v2347_v30  ;;  %v2904_v29 = vunpack.c.l.s8.bf16 %v1924_v27  ;;  %v2906_v30 = vunpack.c.l.s8.bf16 %v1926_v28 }
 0x261   : > { %3594 = vmatpush1.bf16.xpose.msra.mxu0 %v2344_v34  ;;  %3635 = vmatpush1.bf16.xpose.msra.mxu1 %v2346_v35  ;;  %v1995_v34 = vld [vmem:[%s6709_s10 + $0xf98] sm:$0xff]  ;;  %v1997_v35 = vld [vmem:[%s6709_s10 + $0xfa8] sm:$0xff] }
 0x262   : > { %3595 = vmatprep.subr.bf16.mxu0 %v2415_v37  ;;  %3636 = vmatprep.subr.bf16.mxu1 %v2417_v38  ;;  %v2974_v37 = vunpack.c.h.s8.bf16 %v1924_v27  ;;  %v2976_v38 = vunpack.c.h.s8.bf16 %v1926_v28  ;;  %v3045_v3 = vunpack.c.l.s8.bf16 %v1995_v34  ;;  %v3047_v4 = vunpack.c.l.s8.bf16 %v1997_v35 }
 0x263   : > { %v3115_v43 = vunpack.c.h.s8.bf16 %v1995_v34  ;;  %v3117_v44 = vunpack.c.h.s8.bf16 %v1997_v35 }
 0x269   : > { %3596 = vmatpush1.bf16.xpose.msra.mxu0 %v2414_v39  ;;  %3637 = vmatpush1.bf16.xpose.msra.mxu1 %v2416_v40  ;;  %v1994_v39 = vld [vmem:[%s6709_s10 + $0xf90] sm:$0xff]  ;;  %v1996_v40 = vld [vmem:[%s6709_s10 + $0xfa0] sm:$0xff] }
 0x26a   : > { %3597 = vmatprep.subr.bf16.mxu0 %v2485_v41  ;;  %3638 = vmatprep.subr.bf16.mxu1 %v2487_v42  ;;  %v3044_v41 = vunpack.c.l.s8.bf16 %v1994_v39  ;;  %v3046_v42 = vunpack.c.l.s8.bf16 %v1996_v40 }
 0x271   : > { %3598 = vmatpush1.bf16.xpose.msra.mxu0 %v2484_v45  ;;  %3639 = vmatpush1.bf16.xpose.msra.mxu1 %v2486_v46  ;;  %v1509_v45 = vld [vmem:[%s6709_s10 + $0x68] sm:$0xff]  ;;  %v1511_v46 = vld [vmem:[%s6709_s10 + $0x78] sm:$0xff] }
 0x272   : > { %3599 = vmatprep.subr.bf16.mxu0 %v2555_v47  ;;  %3640 = vmatprep.subr.bf16.mxu1 %v2557_v48  ;;  %v3114_v47 = vunpack.c.h.s8.bf16 %v1994_v39  ;;  %v3116_v48 = vunpack.c.h.s8.bf16 %v1996_v40  ;;  %v2069_v49 = vunpack.c.l.s8.bf16 %v1509_v45  ;;  %v2071_v50 = vunpack.c.l.s8.bf16 %v1511_v46 }
 0x279   : > { %3600 = vmatpush1.bf16.xpose.msra.mxu0 %v2554_v51  ;;  %3641 = vmatpush1.bf16.xpose.msra.mxu1 %v2556_v52  ;;  %v1508_v51 = vld [vmem:[%s6709_s10 + $0x60] sm:$0xff]  ;;  %v1510_v52 = vld [vmem:[%s6709_s10 + $0x70] sm:$0xff] }
 0x27a   : > { %3601 = vmatprep.subr.bf16.mxu0 %v2625_v53  ;;  %3642 = vmatprep.subr.bf16.mxu1 %v2627_v54  ;;  %v5216_v53 = vcombine.low %v6809_v7, %v6809_v7  ;;  %v5218_v54 = vcombine.low %v6812_v12, %v6812_v12  ;;  %v2068_v56 = vunpack.c.l.s8.bf16 %v1508_v51  ;;  %v1579_v7 = vld [vmem:[%s6709_s10 + $0x298] sm:$0xff]  ;;  %v1581_v12 = vld [vmem:[%s6709_s10 + $0x2a8] sm:$0xff] }
 0x281   : > { %3602 = vmatpush1.bf16.xpose.msra.mxu0 %v2624_v57  ;;  %3643 = vmatpush1.bf16.xpose.msra.mxu1 %v2626_v58  ;;  %v2070_v57 = vunpack.c.l.s8.bf16 %v1510_v52  ;;  %v2139_v58 = vunpack.c.h.s8.bf16 %v1509_v45 }
 0x282   : > { %3603 = vmatprep.subr.bf16.mxu0 %v2695_v59  ;;  %3644 = vmatprep.subr.bf16.mxu1 %v2697_v60  ;;  %v2141_v59 = vunpack.c.h.s8.bf16 %v1511_v46  ;;  %v6862_v60 = vld [vmem:[%s6707_s26 + $0x38] sm:$0xff] }
 0x283   : > { %v5223_v62 = vcombine.high %v6862_v60, %v6862_v60 }
 0x289   : > { %3604 = vmatpush1.bf16.xpose.msra.mxu0 %v2694_v63  ;;  %3645 = vmatpush1.bf16.xpose.msra.mxu1 %v2696_v0  ;;  %v2138_v63 = vunpack.c.h.s8.bf16 %v1508_v51  ;;  %v2140_v0 = vunpack.c.h.s8.bf16 %v1510_v52 }
 0x28a   : > { %3605 = vmatprep.subr.bf16.mxu0 %v2765_v1  ;;  %3646 = vmatprep.subr.bf16.mxu1 %v2767_v2  ;;  %v2209_v1 = vunpack.c.l.s8.bf16 %v1579_v7  ;;  %v2211_v2 = vunpack.c.l.s8.bf16 %v1581_v12 }
 0x291   : > { %3606 = vmatpush1.bf16.xpose.msra.mxu0 %v2764_v8  ;;  %3647 = vmatpush1.bf16.xpose.msra.mxu1 %v2766_v9  ;;  %v2208_v8 = vunpack.c.l.s8.bf16 %v1578_v5  ;;  %v2210_v9 = vunpack.c.l.s8.bf16 %v1580_v6 }
 0x292   : > { %3607 = vmatprep.subr.bf16.mxu0 %v2835_v10  ;;  %3648 = vmatprep.subr.bf16.mxu1 %v2837_v11  ;;  %v2279_v10 = vunpack.c.h.s8.bf16 %v1579_v7  ;;  %v2281_v11 = vunpack.c.h.s8.bf16 %v1581_v12 }
 0x293   : > { %v3455_v13 = vpop.f32.mrb[0].mxu0  ;;  %v3496_v14 = vpop.f32.mrb[0].mxu1 }
 0x294   : > { %v6840_v15 = vadd.f32 %v3496_v14, %v3455_v13  ;;  %v3457_v16 = vpop.f32.mrb[1].mxu0  ;;  %v3498_v17 = vpop.f32.mrb[1].mxu1  ;;  %v1649_v13 = vld [vmem:[%s6709_s10 + $0x4c8] sm:$0xff]  ;;  %v1651_v14 = vld [vmem:[%s6709_s10 + $0x4d8] sm:$0xff] }
 0x295   : > { %v6842_v18 = vadd.f32 %v3498_v17, %v3457_v16  ;;  %v3459_v19 = vpop.f32.mrb[2].mxu0  ;;  %v3500_v22 = vpop.f32.mrb[2].mxu1  ;;  %v2349_v16 = vunpack.c.l.s8.bf16 %v1649_v13  ;;  %v2351_v17 = vunpack.c.l.s8.bf16 %v1651_v14 }
 0x296   : > { %v3460_v23 = vpop.f32.mrb[3].mxu0  ;;  %v3501_v26 = vpop.f32.mrb[3].mxu1  ;;  %v1648_v19 = vld [vmem:[%s6709_s10 + $0x4c0] sm:$0xff] }
 0x297   : > { %v2419_v23 = vunpack.c.h.s8.bf16 %v1649_v13  ;;  %v1721_v26 = vld [vmem:[%s6709_s10 + $0x708] sm:$0xff]  ;;  %v2418_v27 = vunpack.c.h.s8.bf16 %v1648_v19 }
 0x299   : > { %3608 = vmatpush1.bf16.xpose.msra.mxu0 %v2834_v20  ;;  %3649 = vmatpush1.bf16.xpose.msra.mxu1 %v2836_v21  ;;  %v1650_v20 = vld [vmem:[%s6709_s10 + $0x4d0] sm:$0xff]  ;;  %v2348_v21 = vunpack.c.l.s8.bf16 %v1648_v19 }
 0x29a   : > { %3609 = vmatprep.subr.bf16.mxu0 %v2905_v24  ;;  %3650 = vmatprep.subr.bf16.mxu1 %v2907_v25  ;;  %v2350_v22 = vunpack.c.l.s8.bf16 %v1650_v20  ;;  %v2421_v24 = vunpack.c.h.s8.bf16 %v1651_v14  ;;  %v1719_v25 = vld [vmem:[%s6709_s10 + $0x6f8] sm:$0xff]  ;;  %v2420_v28 = vunpack.c.h.s8.bf16 %v1650_v20 }
 0x2a1   : > { %3610 = vmatpush1.bf16.xpose.msra.mxu0 %v2904_v29  ;;  %3651 = vmatpush1.bf16.xpose.msra.mxu1 %v2906_v30  ;;  %v2489_v29 = vunpack.c.l.s8.bf16 %v1719_v25  ;;  %v2491_v30 = vunpack.c.l.s8.bf16 %v1721_v26 }
 0x2a2   : > { %3611 = vmatprep.subr.bf16.mxu0 %v2975_v32  ;;  %3652 = vmatprep.subr.bf16.mxu1 %v2977_v33  ;;  %v1718_v32 = vld [vmem:[%s6709_s10 + $0x6f0] sm:$0xff]  ;;  %v1720_v33 = vld [vmem:[%s6709_s10 + $0x700] sm:$0xff] }
 0x2a3   : > { %v2488_v34 = vunpack.c.l.s8.bf16 %v1718_v32  ;;  %v2490_v35 = vunpack.c.l.s8.bf16 %v1720_v33  ;;  %v2558_v39 = vunpack.c.h.s8.bf16 %v1718_v32  ;;  %v2560_v40 = vunpack.c.h.s8.bf16 %v1720_v33 }
 0x2a9   : > { %3612 = vmatpush1.bf16.xpose.msra.mxu0 %v2974_v37  ;;  %3653 = vmatpush1.bf16.xpose.msra.mxu1 %v2976_v38  ;;  %v2559_v37 = vunpack.c.h.s8.bf16 %v1719_v25  ;;  %v2561_v38 = vunpack.c.h.s8.bf16 %v1721_v26 }
 0x2aa   : > { %3613 = vmatprep.subr.bf16.mxu0 %v3045_v3  ;;  %3654 = vmatprep.subr.bf16.mxu1 %v3047_v4  ;;  %v1789_v3 = vld [vmem:[%s6709_s10 + $0x928] sm:$0xff]  ;;  %v1791_v4 = vld [vmem:[%s6709_s10 + $0x938] sm:$0xff] }
 0x2b1   : > { %3614 = vmatpush1.bf16.xpose.msra.mxu0 %v3044_v41  ;;  %3655 = vmatpush1.bf16.xpose.msra.mxu1 %v3046_v42  ;;  %v2629_v41 = vunpack.c.l.s8.bf16 %v1789_v3  ;;  %v2631_v42 = vunpack.c.l.s8.bf16 %v1791_v4 }
 0x2b2   : > { %3615 = vmatprep.subr.bf16.mxu0 %v3115_v43  ;;  %3656 = vmatprep.subr.bf16.mxu1 %v3117_v44  ;;  %v1788_v43 = vld [vmem:[%s6709_s10 + $0x920] sm:$0xff]  ;;  %v1790_v44 = vld [vmem:[%s6709_s10 + $0x930] sm:$0xff] }
 0x2b3   : > { %v2628_v45 = vunpack.c.l.s8.bf16 %v1788_v43  ;;  %v2630_v46 = vunpack.c.l.s8.bf16 %v1790_v44  ;;  %v2698_v51 = vunpack.c.h.s8.bf16 %v1788_v43  ;;  %v2700_v52 = vunpack.c.h.s8.bf16 %v1790_v44 }
 0x2b4   : > { %v5220_v43 = vcombine.low %v6859_v55, %v6859_v55  ;;  %v5222_v44 = vcombine.low %v6862_v60, %v6862_v60  ;;  %v1583_v55 = vld [vmem:[%s6709_s10 + $0x2b8] sm:$0xff]  ;;  %v1585_v60 = vld [vmem:[%s6709_s10 + $0x2c8] sm:$0xff] }
 0x2b9   : > { %3616 = vmatpush1.bf16.xpose.msra.mxu0 %v3114_v47  ;;  %3657 = vmatpush1.bf16.xpose.msra.mxu1 %v3116_v48  ;;  %v2699_v47 = vunpack.c.h.s8.bf16 %v1789_v3  ;;  %v2701_v48 = vunpack.c.h.s8.bf16 %v1791_v4 }
 0x2ba   : > { %3667 = vmatprep.subr.bf16.mxu0 %v2069_v49  ;;  %3708 = vmatprep.subr.bf16.mxu1 %v2071_v50  ;;  %v1859_v49 = vld [vmem:[%s6709_s10 + $0xb58] sm:$0xff]  ;;  %v1861_v50 = vld [vmem:[%s6709_s10 + $0xb68] sm:$0xff] }
 0x2c0   : > { %3618 = vmatmul.mubr.bf16.vlgmr.msra.gmra.mrb[8].mxu0 %v5216_v53  ;;  %3659 = vmatmul.mubr.bf16.vlgmr.msra.gmra.mrb[8].mxu1 %v5218_v54  ;;  %v2769_v53 = vunpack.c.l.s8.bf16 %v1859_v49  ;;  %v2771_v54 = vunpack.c.l.s8.bf16 %v1861_v50 }
 0x2c1   : > { %3668 = vmatpush1.bf16.xpose.msra.mxu0 %v2068_v56  ;;  %3709 = vmatpush1.bf16.xpose.msra.mxu1 %v2070_v57  ;;  %v1858_v56 = vld [vmem:[%s6709_s10 + $0xb50] sm:$0xff]  ;;  %v1860_v57 = vld [vmem:[%s6709_s10 + $0xb60] sm:$0xff] }
 0x2c2   : > { %3669 = vmatprep.subr.bf16.mxu0 %v2139_v58  ;;  %3710 = vmatprep.subr.bf16.mxu1 %v2141_v59  ;;  %v2768_v58 = vunpack.c.l.s8.bf16 %v1858_v56  ;;  %v2770_v59 = vunpack.c.l.s8.bf16 %v1860_v57 }
 0x2c3   : > { %3699 = vmatprep.mubr.bf16.mxu0 %v5221_v61  ;;  %3740 = vmatprep.mubr.bf16.mxu1 %v5223_v62  ;;  %v2839_v61 = vunpack.c.h.s8.bf16 %v1859_v49  ;;  %v2841_v62 = vunpack.c.h.s8.bf16 %v1861_v50  ;;  %v6914_v50 = vld [vmem:[%s6707_s26 + $0x48] sm:$0xff] }
 0x2c9   : > { %3670 = vmatpush1.bf16.xpose.msra.mxu0 %v2138_v63  ;;  %3711 = vmatpush1.bf16.xpose.msra.mxu1 %v2140_v0  ;;  %v1929_v63 = vld [vmem:[%s6709_s10 + $0xd88] sm:$0xff]  ;;  %v1931_v0 = vld [vmem:[%s6709_s10 + $0xd98] sm:$0xff] }
 0x2ca   : > { %3671 = vmatprep.subr.bf16.mxu0 %v2209_v1  ;;  %3712 = vmatprep.subr.bf16.mxu1 %v2211_v2 }
 0x2d1   : > { %3672 = vmatpush1.bf16.xpose.msra.mxu0 %v2208_v8  ;;  %3713 = vmatpush1.bf16.xpose.msra.mxu1 %v2210_v9  ;;  %v2838_v9 = vunpack.c.h.s8.bf16 %v1858_v56  ;;  %v2213_v56 = vunpack.c.l.s8.bf16 %v1583_v55 }
 0x2d2   : > { %3673 = vmatprep.subr.bf16.mxu0 %v2279_v10  ;;  %3714 = vmatprep.subr.bf16.mxu1 %v2281_v11  ;;  %v2840_v10 = vunpack.c.h.s8.bf16 %v1860_v57  ;;  %v2215_v57 = vunpack.c.l.s8.bf16 %v1585_v60 }
 0x2d9   : > { %3674 = vmatpush1.bf16.xpose.msra.mxu0 %v2278_v31  ;;  %3715 = vmatpush1.bf16.xpose.msra.mxu1 %v2280_v36  ;;  %v2909_v31 = vunpack.c.l.s8.bf16 %v1929_v63  ;;  %v2911_v36 = vunpack.c.l.s8.bf16 %v1931_v0 }
 0x2da   : > { %3675 = vmatprep.subr.bf16.mxu0 %v2349_v16  ;;  %3716 = vmatprep.subr.bf16.mxu1 %v2351_v17 }
 0x2e1   : > { %3676 = vmatpush1.bf16.xpose.msra.mxu0 %v2348_v21  ;;  %3717 = vmatpush1.bf16.xpose.msra.mxu1 %v2350_v22  ;;  %v2979_v21 = vunpack.c.h.s8.bf16 %v1929_v63  ;;  %v2981_v22 = vunpack.c.h.s8.bf16 %v1931_v0  ;;  %v1653_v63 = vld [vmem:[%s6709_s10 + $0x4e8] sm:$0xff]  ;;  %v1655_v0 = vld [vmem:[%s6709_s10 + $0x4f8] sm:$0xff] }
 0x2e2   : > { %3677 = vmatprep.subr.bf16.mxu0 %v2419_v23  ;;  %3718 = vmatprep.subr.bf16.mxu1 %v2421_v24  ;;  %v1999_v23 = vld [vmem:[%s6709_s10 + $0xfb8] sm:$0xff]  ;;  %v2001_v24 = vld [vmem:[%s6709_s10 + $0xfc8] sm:$0xff] }
 0x2e9   : > { %3678 = vmatpush1.bf16.xpose.msra.mxu0 %v2418_v27  ;;  %3719 = vmatpush1.bf16.xpose.msra.mxu1 %v2420_v28  ;;  %v3049_v27 = vunpack.c.l.s8.bf16 %v1999_v23  ;;  %v3051_v28 = vunpack.c.l.s8.bf16 %v2001_v24 }
 0x2ea   : > { %3679 = vmatprep.subr.bf16.mxu0 %v2489_v29  ;;  %3720 = vmatprep.subr.bf16.mxu1 %v2491_v30  ;;  %v1998_v29 = vld [vmem:[%s6709_s10 + $0xfb0] sm:$0xff]  ;;  %v2000_v30 = vld [vmem:[%s6709_s10 + $0xfc0] sm:$0xff] }
 0x2eb   : > { %v3048_v32 = vunpack.c.l.s8.bf16 %v1998_v29  ;;  %v3050_v33 = vunpack.c.l.s8.bf16 %v2000_v30  ;;  %v3118_v3 = vunpack.c.h.s8.bf16 %v1998_v29  ;;  %v3120_v4 = vunpack.c.h.s8.bf16 %v2000_v30 }
 0x2f1   : > { %3680 = vmatpush1.bf16.xpose.msra.mxu0 %v2488_v34  ;;  %3721 = vmatpush1.bf16.xpose.msra.mxu1 %v2490_v35  ;;  %v3119_v34 = vunpack.c.h.s8.bf16 %v1999_v23  ;;  %v3121_v35 = vunpack.c.h.s8.bf16 %v2001_v24 }
 0x2f2   : > { %3681 = vmatprep.subr.bf16.mxu0 %v2559_v37  ;;  %3722 = vmatprep.subr.bf16.mxu1 %v2561_v38  ;;  %v1513_v37 = vld [vmem:[%s6709_s10 + $0x88] sm:$0xff]  ;;  %v1515_v38 = vld [vmem:[%s6709_s10 + $0x98] sm:$0xff] }
 0x2f3   : > { %v2145_v49 = vunpack.c.h.s8.bf16 %v1515_v38 }
 0x2f9   : > { %3682 = vmatpush1.bf16.xpose.msra.mxu0 %v2558_v39  ;;  %3723 = vmatpush1.bf16.xpose.msra.mxu1 %v2560_v40  ;;  %v2073_v39 = vunpack.c.l.s8.bf16 %v1513_v37  ;;  %v2075_v40 = vunpack.c.l.s8.bf16 %v1515_v38 }
 0x2fa   : > { %3683 = vmatprep.subr.bf16.mxu0 %v2629_v41  ;;  %3724 = vmatprep.subr.bf16.mxu1 %v2631_v42  ;;  %v1512_v41 = vld [vmem:[%s6709_s10 + $0x80] sm:$0xff]  ;;  %v1514_v42 = vld [vmem:[%s6709_s10 + $0x90] sm:$0xff] }
 0x301   : > { %3684 = vmatpush1.bf16.xpose.msra.mxu0 %v2628_v45  ;;  %3725 = vmatpush1.bf16.xpose.msra.mxu1 %v2630_v46  ;;  %v6911_v45 = vld [vmem:[%s6707_s26 + $0x40] sm:$0xff]  ;;  %v2072_v46 = vunpack.c.l.s8.bf16 %v1512_v41 }
 0x302   : > { %3685 = vmatprep.subr.bf16.mxu0 %v2699_v47  ;;  %3726 = vmatprep.subr.bf16.mxu1 %v2701_v48  ;;  %v2074_v47 = vunpack.c.l.s8.bf16 %v1514_v42  ;;  %v2143_v48 = vunpack.c.h.s8.bf16 %v1513_v37 }
 0x309   : > { %3686 = vmatpush1.bf16.xpose.msra.mxu0 %v2698_v51  ;;  %3727 = vmatpush1.bf16.xpose.msra.mxu1 %v2700_v52  ;;  %v5225_v51 = vcombine.high %v6911_v45, %v6911_v45  ;;  %v5227_v52 = vcombine.high %v6914_v50, %v6914_v50 }
 0x30a   : > { %3687 = vmatprep.subr.bf16.mxu0 %v2769_v53  ;;  %3728 = vmatprep.subr.bf16.mxu1 %v2771_v54  ;;  %v2142_v53 = vunpack.c.h.s8.bf16 %v1512_v41  ;;  %v2144_v54 = vunpack.c.h.s8.bf16 %v1514_v42 }
 0x311   : > { %3688 = vmatpush1.bf16.xpose.msra.mxu0 %v2768_v58  ;;  %3729 = vmatpush1.bf16.xpose.msra.mxu1 %v2770_v59  ;;  %v1582_v58 = vld [vmem:[%s6709_s10 + $0x2b0] sm:$0xff]  ;;  %v1584_v59 = vld [vmem:[%s6709_s10 + $0x2c0] sm:$0xff] }
 0x312   : > { %3689 = vmatprep.subr.bf16.mxu0 %v2839_v61  ;;  %3730 = vmatprep.subr.bf16.mxu1 %v2841_v62  ;;  %v2212_v61 = vunpack.c.l.s8.bf16 %v1582_v58  ;;  %v2214_v62 = vunpack.c.l.s8.bf16 %v1584_v59 }
 0x313   : > { %v3537_v7 = vpop.f32.mrb[4].mxu0  ;;  %v3578_v12 = vpop.f32.mrb[4].mxu1 }
 0x314   : > { %v3538_v1 = vadd.f32 %v3537_v7, %v6840_v15  ;;  %v3539_v2 = vpop.f32.mrb[5].mxu0  ;;  %v3580_v5 = vpop.f32.mrb[5].mxu1  ;;  %v1928_v15 = vld [vmem:[%s6709_s10 + $0xd80] sm:$0xff]  ;;  %v2283_v7 = vunpack.c.h.s8.bf16 %v1583_v55 }
 0x315   : > { %v3540_v6 = vadd.f32 %v3539_v2, %v6842_v18  ;;  %v3541_v8 = vpop.f32.mrb[6].mxu0  ;;  %v3582_v11 = vpop.f32.mrb[6].mxu1  ;;  %v1930_v18 = vld [vmem:[%s6709_s10 + $0xd90] sm:$0xff]  ;;  %v2908_v19 = vunpack.c.l.s8.bf16 %v1928_v15  ;;  %v2978_v25 = vunpack.c.h.s8.bf16 %v1928_v15  ;;  %v2284_v2 = vunpack.c.h.s8.bf16 %v1584_v59 }
 0x316   : > { %v6892_v13 = vadd.f32 %v3578_v12, %v3538_v1  ;;  %v3542_v14 = vpop.f32.mrb[7].mxu0  ;;  %v3583_v16 = vpop.f32.mrb[7].mxu1  ;;  %v2910_v20 = vunpack.c.l.s8.bf16 %v1930_v18  ;;  %v2980_v26 = vunpack.c.h.s8.bf16 %v1930_v18  ;;  %v2285_v12 = vunpack.c.h.s8.bf16 %v1585_v60  ;;  %v1652_v8 = vld [vmem:[%s6709_s10 + $0x4e0] sm:$0xff] }
 0x317   : > { %v6894_v17 = vadd.f32 %v3580_v5, %v3540_v6  ;;  %v2282_v1 = vunpack.c.h.s8.bf16 %v1582_v58  ;;  %v2353_v5 = vunpack.c.l.s8.bf16 %v1653_v63  ;;  %v2355_v6 = vunpack.c.l.s8.bf16 %v1655_v0  ;;  %v1725_v16 = vld [vmem:[%s6709_s10 + $0x728] sm:$0xff] }
 0x318   : > { %v2423_v14 = vunpack.c.h.s8.bf16 %v1653_v63  ;;  %v2422_v15 = vunpack.c.h.s8.bf16 %v1652_v8 }
 0x319   : > { %3690 = vmatpush1.bf16.xpose.msra.mxu0 %v2838_v9  ;;  %3731 = vmatpush1.bf16.xpose.msra.mxu1 %v2840_v10  ;;  %v1654_v9 = vld [vmem:[%s6709_s10 + $0x4f0] sm:$0xff]  ;;  %v2352_v10 = vunpack.c.l.s8.bf16 %v1652_v8 }
 0x31a   : > { %3691 = vmatprep.subr.bf16.mxu0 %v2909_v31  ;;  %3732 = vmatprep.subr.bf16.mxu1 %v2911_v36  ;;  %v2354_v11 = vunpack.c.l.s8.bf16 %v1654_v9  ;;  %v2425_v31 = vunpack.c.h.s8.bf16 %v1655_v0  ;;  %v1723_v36 = vld [vmem:[%s6709_s10 + $0x718] sm:$0xff]  ;;  %v2424_v18 = vunpack.c.h.s8.bf16 %v1654_v9 }
 0x321   : > { %3692 = vmatpush1.bf16.xpose.msra.mxu0 %v2908_v19  ;;  %3733 = vmatpush1.bf16.xpose.msra.mxu1 %v2910_v20  ;;  %v2493_v19 = vunpack.c.l.s8.bf16 %v1723_v36  ;;  %v2495_v20 = vunpack.c.l.s8.bf16 %v1725_v16 }
 0x322   : > { %3693 = vmatprep.subr.bf16.mxu0 %v2979_v21  ;;  %3734 = vmatprep.subr.bf16.mxu1 %v2981_v22  ;;  %v1722_v21 = vld [vmem:[%s6709_s10 + $0x710] sm:$0xff]  ;;  %v1724_v22 = vld [vmem:[%s6709_s10 + $0x720] sm:$0xff] }
 0x323   : > { %v2492_v23 = vunpack.c.l.s8.bf16 %v1722_v21  ;;  %v2494_v24 = vunpack.c.l.s8.bf16 %v1724_v22  ;;  %v2562_v29 = vunpack.c.h.s8.bf16 %v1722_v21  ;;  %v2564_v30 = vunpack.c.h.s8.bf16 %v1724_v22 }
 0x329   : > { %3694 = vmatpush1.bf16.xpose.msra.mxu0 %v2978_v25  ;;  %3735 = vmatpush1.bf16.xpose.msra.mxu1 %v2980_v26  ;;  %v2563_v25 = vunpack.c.h.s8.bf16 %v1723_v36  ;;  %v2565_v26 = vunpack.c.h.s8.bf16 %v1725_v16 }
 0x32a   : > { %3695 = vmatprep.subr.bf16.mxu0 %v3049_v27  ;;  %3736 = vmatprep.subr.bf16.mxu1 %v3051_v28  ;;  %v1793_v27 = vld [vmem:[%s6709_s10 + $0x948] sm:$0xff]  ;;  %v1795_v28 = vld [vmem:[%s6709_s10 + $0x958] sm:$0xff] }
 0x331   : > { %3696 = vmatpush1.bf16.xpose.msra.mxu0 %v3048_v32  ;;  %3737 = vmatpush1.bf16.xpose.msra.mxu1 %v3050_v33  ;;  %v2633_v32 = vunpack.c.l.s8.bf16 %v1793_v27  ;;  %v2635_v33 = vunpack.c.l.s8.bf16 %v1795_v28 }
 0x332   : > { %3697 = vmatprep.subr.bf16.mxu0 %v3119_v34  ;;  %3738 = vmatprep.subr.bf16.mxu1 %v3121_v35  ;;  %v1792_v34 = vld [vmem:[%s6709_s10 + $0x940] sm:$0xff]  ;;  %v1794_v35 = vld [vmem:[%s6709_s10 + $0x950] sm:$0xff] }
 0x333   : > { %v2632_v37 = vunpack.c.l.s8.bf16 %v1792_v34  ;;  %v2634_v38 = vunpack.c.l.s8.bf16 %v1794_v35  ;;  %v2702_v41 = vunpack.c.h.s8.bf16 %v1792_v34  ;;  %v2704_v42 = vunpack.c.h.s8.bf16 %v1794_v35 }
 0x334   : > { %v5224_v34 = vcombine.low %v6911_v45, %v6911_v45  ;;  %v5226_v35 = vcombine.low %v6914_v50, %v6914_v50  ;;  %v1587_v45 = vld [vmem:[%s6709_s10 + $0x2d8] sm:$0xff]  ;;  %v1589_v50 = vld [vmem:[%s6709_s10 + $0x2e8] sm:$0xff] }
 0x339   : > { %3698 = vmatpush1.bf16.xpose.msra.mxu0 %v3118_v3  ;;  %3739 = vmatpush1.bf16.xpose.msra.mxu1 %v3120_v4  ;;  %v2703_v3 = vunpack.c.h.s8.bf16 %v1793_v27  ;;  %v2705_v4 = vunpack.c.h.s8.bf16 %v1795_v28 }
 0x33a   : > { %3749 = vmatprep.subr.bf16.mxu0 %v2073_v39  ;;  %3790 = vmatprep.subr.bf16.mxu1 %v2075_v40  ;;  %v1863_v39 = vld [vmem:[%s6709_s10 + $0xb78] sm:$0xff]  ;;  %v1865_v40 = vld [vmem:[%s6709_s10 + $0xb88] sm:$0xff] }
 0x340   : > { %3700 = vmatmul.mubr.bf16.vlgmr.msra.gmra.mrb[12].mxu0 %v5220_v43  ;;  %3741 = vmatmul.mubr.bf16.vlgmr.msra.gmra.mrb[12].mxu1 %v5222_v44  ;;  %v2773_v43 = vunpack.c.l.s8.bf16 %v1863_v39  ;;  %v2775_v44 = vunpack.c.l.s8.bf16 %v1865_v40 }
 0x341   : > { %3750 = vmatpush1.bf16.xpose.msra.mxu0 %v2072_v46  ;;  %3791 = vmatpush1.bf16.xpose.msra.mxu1 %v2074_v47  ;;  %v1862_v46 = vld [vmem:[%s6709_s10 + $0xb70] sm:$0xff]  ;;  %v1864_v47 = vld [vmem:[%s6709_s10 + $0xb80] sm:$0xff] }
 0x342   : > { %3751 = vmatprep.subr.bf16.mxu0 %v2143_v48  ;;  %3792 = vmatprep.subr.bf16.mxu1 %v2145_v49  ;;  %v2772_v48 = vunpack.c.l.s8.bf16 %v1862_v46  ;;  %v2774_v49 = vunpack.c.l.s8.bf16 %v1864_v47 }
 0x343   : > { %3781 = vmatprep.mubr.bf16.mxu0 %v5225_v51  ;;  %3822 = vmatprep.mubr.bf16.mxu1 %v5227_v52  ;;  %v2843_v51 = vunpack.c.h.s8.bf16 %v1863_v39  ;;  %v2845_v52 = vunpack.c.h.s8.bf16 %v1865_v40  ;;  %v6966_v40 = vld [vmem:[%s6707_s26 + $0x58] sm:$0xff] }
 0x349   : > { %3752 = vmatpush1.bf16.xpose.msra.mxu0 %v2142_v53  ;;  %3793 = vmatpush1.bf16.xpose.msra.mxu1 %v2144_v54  ;;  %v1933_v53 = vld [vmem:[%s6709_s10 + $0xda8] sm:$0xff]  ;;  %v1935_v54 = vld [vmem:[%s6709_s10 + $0xdb8] sm:$0xff] }
 0x34a   : > { %3753 = vmatprep.subr.bf16.mxu0 %v2213_v56  ;;  %3794 = vmatprep.subr.bf16.mxu1 %v2215_v57 }
 0x351   : > { %3754 = vmatpush1.bf16.xpose.msra.mxu0 %v2212_v61  ;;  %3795 = vmatpush1.bf16.xpose.msra.mxu1 %v2214_v62  ;;  %v2842_v62 = vunpack.c.h.s8.bf16 %v1862_v46  ;;  %v2217_v46 = vunpack.c.l.s8.bf16 %v1587_v45 }
 0x352   : > { %3755 = vmatprep.subr.bf16.mxu0 %v2283_v7  ;;  %3796 = vmatprep.subr.bf16.mxu1 %v2285_v12  ;;  %v2844_v7 = vunpack.c.h.s8.bf16 %v1864_v47  ;;  %v2219_v47 = vunpack.c.l.s8.bf16 %v1589_v50 }
 0x359   : > { %3756 = vmatpush1.bf16.xpose.msra.mxu0 %v2282_v1  ;;  %3797 = vmatpush1.bf16.xpose.msra.mxu1 %v2284_v2  ;;  %v2913_v1 = vunpack.c.l.s8.bf16 %v1933_v53  ;;  %v2915_v2 = vunpack.c.l.s8.bf16 %v1935_v54 }
 0x35a   : > { %3757 = vmatprep.subr.bf16.mxu0 %v2353_v5  ;;  %3798 = vmatprep.subr.bf16.mxu1 %v2355_v6 }
 0x361   : > { %3758 = vmatpush1.bf16.xpose.msra.mxu0 %v2352_v10  ;;  %3799 = vmatpush1.bf16.xpose.msra.mxu1 %v2354_v11  ;;  %v2983_v10 = vunpack.c.h.s8.bf16 %v1933_v53  ;;  %v2985_v11 = vunpack.c.h.s8.bf16 %v1935_v54  ;;  %v1657_v53 = vld [vmem:[%s6709_s10 + $0x508] sm:$0xff]  ;;  %v1659_v54 = vld [vmem:[%s6709_s10 + $0x518] sm:$0xff] }
 0x362   : > { %3759 = vmatprep.subr.bf16.mxu0 %v2423_v14  ;;  %3800 = vmatprep.subr.bf16.mxu1 %v2425_v31  ;;  %v2003_v14 = vld [vmem:[%s6709_s10 + $0xfd8] sm:$0xff]  ;;  %v2005_v31 = vld [vmem:[%s6709_s10 + $0xfe8] sm:$0xff] }
 0x369   : > { %3760 = vmatpush1.bf16.xpose.msra.mxu0 %v2422_v15  ;;  %3801 = vmatpush1.bf16.xpose.msra.mxu1 %v2424_v18  ;;  %v3053_v15 = vunpack.c.l.s8.bf16 %v2003_v14  ;;  %v3055_v18 = vunpack.c.l.s8.bf16 %v2005_v31 }
 0x36a   : > { %3761 = vmatprep.subr.bf16.mxu0 %v2493_v19  ;;  %3802 = vmatprep.subr.bf16.mxu1 %v2495_v20  ;;  %v2002_v19 = vld [vmem:[%s6709_s10 + $0xfd0] sm:$0xff]  ;;  %v2004_v20 = vld [vmem:[%s6709_s10 + $0xfe0] sm:$0xff] }
 0x36b   : > { %v3052_v21 = vunpack.c.l.s8.bf16 %v2002_v19  ;;  %v3054_v22 = vunpack.c.l.s8.bf16 %v2004_v20  ;;  %v3122_v27 = vunpack.c.h.s8.bf16 %v2002_v19  ;;  %v3124_v28 = vunpack.c.h.s8.bf16 %v2004_v20 }
 0x371   : > { %3762 = vmatpush1.bf16.xpose.msra.mxu0 %v2492_v23  ;;  %3803 = vmatpush1.bf16.xpose.msra.mxu1 %v2494_v24  ;;  %v3123_v23 = vunpack.c.h.s8.bf16 %v2003_v14  ;;  %v3125_v24 = vunpack.c.h.s8.bf16 %v2005_v31 }
 0x372   : > { %3763 = vmatprep.subr.bf16.mxu0 %v2563_v25  ;;  %3804 = vmatprep.subr.bf16.mxu1 %v2565_v26  ;;  %v1517_v25 = vld [vmem:[%s6709_s10 + $0xa8] sm:$0xff]  ;;  %v1519_v26 = vld [vmem:[%s6709_s10 + $0xb8] sm:$0xff] }
 0x373   : > { %v2149_v39 = vunpack.c.h.s8.bf16 %v1519_v26 }
 0x379   : > { %3764 = vmatpush1.bf16.xpose.msra.mxu0 %v2562_v29  ;;  %3805 = vmatpush1.bf16.xpose.msra.mxu1 %v2564_v30  ;;  %v2077_v29 = vunpack.c.l.s8.bf16 %v1517_v25  ;;  %v2079_v30 = vunpack.c.l.s8.bf16 %v1519_v26 }
 0x37a   : > { %3765 = vmatprep.subr.bf16.mxu0 %v2633_v32  ;;  %3806 = vmatprep.subr.bf16.mxu1 %v2635_v33  ;;  %v1516_v32 = vld [vmem:[%s6709_s10 + $0xa0] sm:$0xff]  ;;  %v1518_v33 = vld [vmem:[%s6709_s10 + $0xb0] sm:$0xff] }
 0x381   : > { %3766 = vmatpush1.bf16.xpose.msra.mxu0 %v2632_v37  ;;  %3807 = vmatpush1.bf16.xpose.msra.mxu1 %v2634_v38  ;;  %v6963_v37 = vld [vmem:[%s6707_s26 + $0x50] sm:$0xff]  ;;  %v2076_v38 = vunpack.c.l.s8.bf16 %v1516_v32 }
 0x382   : > { %3767 = vmatprep.subr.bf16.mxu0 %v2703_v3  ;;  %3808 = vmatprep.subr.bf16.mxu1 %v2705_v4  ;;  %v2078_v3 = vunpack.c.l.s8.bf16 %v1518_v33  ;;  %v2147_v4 = vunpack.c.h.s8.bf16 %v1517_v25 }
 0x389   : > { %3768 = vmatpush1.bf16.xpose.msra.mxu0 %v2702_v41  ;;  %3809 = vmatpush1.bf16.xpose.msra.mxu1 %v2704_v42  ;;  %v5229_v41 = vcombine.high %v6963_v37, %v6963_v37  ;;  %v5231_v42 = vcombine.high %v6966_v40, %v6966_v40 }
 0x38a   : > { %3769 = vmatprep.subr.bf16.mxu0 %v2773_v43  ;;  %3810 = vmatprep.subr.bf16.mxu1 %v2775_v44  ;;  %v2146_v43 = vunpack.c.h.s8.bf16 %v1516_v32  ;;  %v2148_v44 = vunpack.c.h.s8.bf16 %v1518_v33 }
 0x391   : > { %3770 = vmatpush1.bf16.xpose.msra.mxu0 %v2772_v48  ;;  %3811 = vmatpush1.bf16.xpose.msra.mxu1 %v2774_v49  ;;  %v1586_v48 = vld [vmem:[%s6709_s10 + $0x2d0] sm:$0xff]  ;;  %v1588_v49 = vld [vmem:[%s6709_s10 + $0x2e0] sm:$0xff] }
 0x392   : > { %3771 = vmatprep.subr.bf16.mxu0 %v2843_v51  ;;  %3812 = vmatprep.subr.bf16.mxu1 %v2845_v52  ;;  %v2216_v51 = vunpack.c.l.s8.bf16 %v1586_v48  ;;  %v2218_v52 = vunpack.c.l.s8.bf16 %v1588_v49 }
 0x393   : > { %v3619_v55 = vpop.f32.mrb[8].mxu0  ;;  %v3660_v60 = vpop.f32.mrb[8].mxu1 }
 0x394   : > { %v3620_v56 = vadd.f32 %v3619_v55, %v6892_v13  ;;  %v3621_v57 = vpop.f32.mrb[9].mxu0  ;;  %v3662_v58 = vpop.f32.mrb[9].mxu1  ;;  %v1932_v13 = vld [vmem:[%s6709_s10 + $0xda0] sm:$0xff]  ;;  %v2287_v55 = vunpack.c.h.s8.bf16 %v1587_v45 }
 0x395   : > { %v3622_v59 = vadd.f32 %v3621_v57, %v6894_v17  ;;  %v3623_v61 = vpop.f32.mrb[10].mxu0  ;;  %v3664_v12 = vpop.f32.mrb[10].mxu1  ;;  %v1934_v17 = vld [vmem:[%s6709_s10 + $0xdb0] sm:$0xff]  ;;  %v2912_v8 = vunpack.c.l.s8.bf16 %v1932_v13  ;;  %v2982_v36 = vunpack.c.h.s8.bf16 %v1932_v13  ;;  %v2288_v57 = vunpack.c.h.s8.bf16 %v1588_v49 }
 0x396   : > { %v6944_v63 = vadd.f32 %v3660_v60, %v3620_v56  ;;  %v3624_v0 = vpop.f32.mrb[11].mxu0  ;;  %v3665_v5 = vpop.f32.mrb[11].mxu1  ;;  %v2914_v9 = vunpack.c.l.s8.bf16 %v1934_v17  ;;  %v2984_v16 = vunpack.c.h.s8.bf16 %v1934_v17  ;;  %v2289_v60 = vunpack.c.h.s8.bf16 %v1589_v50  ;;  %v1656_v61 = vld [vmem:[%s6709_s10 + $0x500] sm:$0xff] }
 0x397   : > { %v6946_v6 = vadd.f32 %v3662_v58, %v3622_v59  ;;  %v2286_v56 = vunpack.c.h.s8.bf16 %v1586_v48  ;;  %v2357_v58 = vunpack.c.l.s8.bf16 %v1657_v53  ;;  %v2359_v59 = vunpack.c.l.s8.bf16 %v1659_v54  ;;  %v1729_v5 = vld [vmem:[%s6709_s10 + $0x748] sm:$0xff] }
 0x398   : > { %v2427_v0 = vunpack.c.h.s8.bf16 %v1657_v53  ;;  %v2426_v13 = vunpack.c.h.s8.bf16 %v1656_v61 }
 0x399   : > { %3772 = vmatpush1.bf16.xpose.msra.mxu0 %v2842_v62  ;;  %3813 = vmatpush1.bf16.xpose.msra.mxu1 %v2844_v7  ;;  %v1658_v62 = vld [vmem:[%s6709_s10 + $0x510] sm:$0xff]  ;;  %v2356_v7 = vunpack.c.l.s8.bf16 %v1656_v61 }
 0x39a   : > { %3773 = vmatprep.subr.bf16.mxu0 %v2913_v1  ;;  %3814 = vmatprep.subr.bf16.mxu1 %v2915_v2  ;;  %v2358_v12 = vunpack.c.l.s8.bf16 %v1658_v62  ;;  %v2429_v1 = vunpack.c.h.s8.bf16 %v1659_v54  ;;  %v1727_v2 = vld [vmem:[%s6709_s10 + $0x738] sm:$0xff]  ;;  %v2428_v17 = vunpack.c.h.s8.bf16 %v1658_v62 }
 0x3a1   : > { %3774 = vmatpush1.bf16.xpose.msra.mxu0 %v2912_v8  ;;  %3815 = vmatpush1.bf16.xpose.msra.mxu1 %v2914_v9  ;;  %v2497_v8 = vunpack.c.l.s8.bf16 %v1727_v2  ;;  %v2499_v9 = vunpack.c.l.s8.bf16 %v1729_v5 }
 0x3a2   : > { %3775 = vmatprep.subr.bf16.mxu0 %v2983_v10  ;;  %3816 = vmatprep.subr.bf16.mxu1 %v2985_v11  ;;  %v1726_v10 = vld [vmem:[%s6709_s10 + $0x730] sm:$0xff]  ;;  %v1728_v11 = vld [vmem:[%s6709_s10 + $0x740] sm:$0xff] }
 0x3a3   : > { %v2496_v14 = vunpack.c.l.s8.bf16 %v1726_v10  ;;  %v2498_v31 = vunpack.c.l.s8.bf16 %v1728_v11  ;;  %v2566_v19 = vunpack.c.h.s8.bf16 %v1726_v10  ;;  %v2568_v20 = vunpack.c.h.s8.bf16 %v1728_v11 }
 0x3a9   : > { %3776 = vmatpush1.bf16.xpose.msra.mxu0 %v2982_v36  ;;  %3817 = vmatpush1.bf16.xpose.msra.mxu1 %v2984_v16  ;;  %v2567_v36 = vunpack.c.h.s8.bf16 %v1727_v2  ;;  %v2569_v16 = vunpack.c.h.s8.bf16 %v1729_v5 }
 0x3aa   : > { %3777 = vmatprep.subr.bf16.mxu0 %v3053_v15  ;;  %3818 = vmatprep.subr.bf16.mxu1 %v3055_v18  ;;  %v1797_v15 = vld [vmem:[%s6709_s10 + $0x968] sm:$0xff]  ;;  %v1799_v18 = vld [vmem:[%s6709_s10 + $0x978] sm:$0xff] }
 0x3b1   : > { %3778 = vmatpush1.bf16.xpose.msra.mxu0 %v3052_v21  ;;  %3819 = vmatpush1.bf16.xpose.msra.mxu1 %v3054_v22  ;;  %v2637_v21 = vunpack.c.l.s8.bf16 %v1797_v15  ;;  %v2639_v22 = vunpack.c.l.s8.bf16 %v1799_v18 }
 0x3b2   : > { %3779 = vmatprep.subr.bf16.mxu0 %v3123_v23  ;;  %3820 = vmatprep.subr.bf16.mxu1 %v3125_v24  ;;  %v1796_v23 = vld [vmem:[%s6709_s10 + $0x960] sm:$0xff]  ;;  %v1798_v24 = vld [vmem:[%s6709_s10 + $0x970] sm:$0xff] }
 0x3b3   : > { %v2636_v25 = vunpack.c.l.s8.bf16 %v1796_v23  ;;  %v2638_v26 = vunpack.c.l.s8.bf16 %v1798_v24  ;;  %v2706_v32 = vunpack.c.h.s8.bf16 %v1796_v23  ;;  %v2708_v33 = vunpack.c.h.s8.bf16 %v1798_v24 }
 0x3b4   : > { %v5228_v23 = vcombine.low %v6963_v37, %v6963_v37  ;;  %v5230_v24 = vcombine.low %v6966_v40, %v6966_v40  ;;  %v1591_v37 = vld [vmem:[%s6709_s10 + $0x2f8] sm:$0xff]  ;;  %v1593_v40 = vld [vmem:[%s6709_s10 + $0x308] sm:$0xff] }
 0x3b9   : > { %3780 = vmatpush1.bf16.xpose.msra.mxu0 %v3122_v27  ;;  %3821 = vmatpush1.bf16.xpose.msra.mxu1 %v3124_v28  ;;  %v2707_v27 = vunpack.c.h.s8.bf16 %v1797_v15  ;;  %v2709_v28 = vunpack.c.h.s8.bf16 %v1799_v18 }
 0x3ba   : > { %3831 = vmatprep.subr.bf16.mxu0 %v2077_v29  ;;  %3872 = vmatprep.subr.bf16.mxu1 %v2079_v30  ;;  %v1867_v29 = vld [vmem:[%s6709_s10 + $0xb98] sm:$0xff]  ;;  %v1869_v30 = vld [vmem:[%s6709_s10 + $0xba8] sm:$0xff] }
 0x3c0   : > { %3782 = vmatmul.mubr.bf16.vlgmr.msra.gmra.mrb[16].mxu0 %v5224_v34  ;;  %3823 = vmatmul.mubr.bf16.vlgmr.msra.gmra.mrb[16].mxu1 %v5226_v35  ;;  %v2777_v34 = vunpack.c.l.s8.bf16 %v1867_v29  ;;  %v2779_v35 = vunpack.c.l.s8.bf16 %v1869_v30 }
 0x3c1   : > { %3832 = vmatpush1.bf16.xpose.msra.mxu0 %v2076_v38  ;;  %3873 = vmatpush1.bf16.xpose.msra.mxu1 %v2078_v3  ;;  %v1866_v38 = vld [vmem:[%s6709_s10 + $0xb90] sm:$0xff]  ;;  %v1868_v3 = vld [vmem:[%s6709_s10 + $0xba0] sm:$0xff] }
 0x3c2   : > { %3833 = vmatprep.subr.bf16.mxu0 %v2147_v4  ;;  %3874 = vmatprep.subr.bf16.mxu1 %v2149_v39  ;;  %v2776_v4 = vunpack.c.l.s8.bf16 %v1866_v38  ;;  %v2778_v39 = vunpack.c.l.s8.bf16 %v1868_v3 }
 0x3c3   : > { %3863 = vmatprep.mubr.bf16.mxu0 %v5229_v41  ;;  %3904 = vmatprep.mubr.bf16.mxu1 %v5231_v42  ;;  %v2847_v41 = vunpack.c.h.s8.bf16 %v1867_v29  ;;  %v2849_v42 = vunpack.c.h.s8.bf16 %v1869_v30  ;;  %v7018_v30 = vld [vmem:[%s6707_s26 + $0x68] sm:$0xff] }
 0x3c9   : > { %3834 = vmatpush1.bf16.xpose.msra.mxu0 %v2146_v43  ;;  %3875 = vmatpush1.bf16.xpose.msra.mxu1 %v2148_v44  ;;  %v1937_v43 = vld [vmem:[%s6709_s10 + $0xdc8] sm:$0xff]  ;;  %v1939_v44 = vld [vmem:[%s6709_s10 + $0xdd8] sm:$0xff] }
 0x3ca   : > { %3835 = vmatprep.subr.bf16.mxu0 %v2217_v46  ;;  %3876 = vmatprep.subr.bf16.mxu1 %v2219_v47 }
 0x3d1   : > { %3836 = vmatpush1.bf16.xpose.msra.mxu0 %v2216_v51  ;;  %3877 = vmatpush1.bf16.xpose.msra.mxu1 %v2218_v52  ;;  %v2846_v52 = vunpack.c.h.s8.bf16 %v1866_v38  ;;  %v2221_v38 = vunpack.c.l.s8.bf16 %v1591_v37 }
 0x3d2   : > { %3837 = vmatprep.subr.bf16.mxu0 %v2287_v55  ;;  %3878 = vmatprep.subr.bf16.mxu1 %v2289_v60  ;;  %v2848_v55 = vunpack.c.h.s8.bf16 %v1868_v3  ;;  %v2223_v3 = vunpack.c.l.s8.bf16 %v1593_v40 }
 0x3d9   : > { %3838 = vmatpush1.bf16.xpose.msra.mxu0 %v2286_v56  ;;  %3879 = vmatpush1.bf16.xpose.msra.mxu1 %v2288_v57  ;;  %v2917_v56 = vunpack.c.l.s8.bf16 %v1937_v43  ;;  %v2919_v57 = vunpack.c.l.s8.bf16 %v1939_v44 }
 0x3da   : > { %3839 = vmatprep.subr.bf16.mxu0 %v2357_v58  ;;  %3880 = vmatprep.subr.bf16.mxu1 %v2359_v59 }
 0x3e1   : > { %3840 = vmatpush1.bf16.xpose.msra.mxu0 %v2356_v7  ;;  %3881 = vmatpush1.bf16.xpose.msra.mxu1 %v2358_v12  ;;  %v2987_v7 = vunpack.c.h.s8.bf16 %v1937_v43  ;;  %v2989_v12 = vunpack.c.h.s8.bf16 %v1939_v44  ;;  %v1661_v43 = vld [vmem:[%s6709_s10 + $0x528] sm:$0xff]  ;;  %v1663_v44 = vld [vmem:[%s6709_s10 + $0x538] sm:$0xff] }
 0x3e2   : > { %3841 = vmatprep.subr.bf16.mxu0 %v2427_v0  ;;  %3882 = vmatprep.subr.bf16.mxu1 %v2429_v1  ;;  %v2007_v0 = vld [vmem:[%s6709_s10 + $0xff8] sm:$0xff]  ;;  %v2009_v1 = vld [vmem:[%s6709_s10 + $0x1008] sm:$0xff] }
 0x3e9   : > { %3842 = vmatpush1.bf16.xpose.msra.mxu0 %v2426_v13  ;;  %3883 = vmatpush1.bf16.xpose.msra.mxu1 %v2428_v17  ;;  %v3057_v13 = vunpack.c.l.s8.bf16 %v2007_v0  ;;  %v3059_v17 = vunpack.c.l.s8.bf16 %v2009_v1 }
 0x3ea   : > { %3843 = vmatprep.subr.bf16.mxu0 %v2497_v8  ;;  %3884 = vmatprep.subr.bf16.mxu1 %v2499_v9  ;;  %v2006_v8 = vld [vmem:[%s6709_s10 + $0xff0] sm:$0xff]  ;;  %v2008_v9 = vld [vmem:[%s6709_s10 + $0x1000] sm:$0xff] }
 0x3eb   : > { %v3056_v10 = vunpack.c.l.s8.bf16 %v2006_v8  ;;  %v3058_v11 = vunpack.c.l.s8.bf16 %v2008_v9  ;;  %v3126_v15 = vunpack.c.h.s8.bf16 %v2006_v8  ;;  %v3128_v18 = vunpack.c.h.s8.bf16 %v2008_v9 }
 0x3f1   : > { %3844 = vmatpush1.bf16.xpose.msra.mxu0 %v2496_v14  ;;  %3885 = vmatpush1.bf16.xpose.msra.mxu1 %v2498_v31  ;;  %v3127_v14 = vunpack.c.h.s8.bf16 %v2007_v0  ;;  %v3129_v31 = vunpack.c.h.s8.bf16 %v2009_v1 }
 0x3f2   : > { %3845 = vmatprep.subr.bf16.mxu0 %v2567_v36  ;;  %3886 = vmatprep.subr.bf16.mxu1 %v2569_v16  ;;  %v1521_v36 = vld [vmem:[%s6709_s10 + $0xc8] sm:$0xff]  ;;  %v1523_v16 = vld [vmem:[%s6709_s10 + $0xd8] sm:$0xff] }
 0x3f3   : > { %v2153_v29 = vunpack.c.h.s8.bf16 %v1523_v16 }
 0x3f9   : > { %3846 = vmatpush1.bf16.xpose.msra.mxu0 %v2566_v19  ;;  %3887 = vmatpush1.bf16.xpose.msra.mxu1 %v2568_v20  ;;  %v2081_v19 = vunpack.c.l.s8.bf16 %v1521_v36  ;;  %v2083_v20 = vunpack.c.l.s8.bf16 %v1523_v16 }
 0x3fa   : > { %3847 = vmatprep.subr.bf16.mxu0 %v2637_v21  ;;  %3888 = vmatprep.subr.bf16.mxu1 %v2639_v22  ;;  %v1520_v21 = vld [vmem:[%s6709_s10 + $0xc0] sm:$0xff]  ;;  %v1522_v22 = vld [vmem:[%s6709_s10 + $0xd0] sm:$0xff] }
 0x401   : > { %3848 = vmatpush1.bf16.xpose.msra.mxu0 %v2636_v25  ;;  %3889 = vmatpush1.bf16.xpose.msra.mxu1 %v2638_v26  ;;  %v7015_v25 = vld [vmem:[%s6707_s26 + $0x60] sm:$0xff]  ;;  %v2080_v26 = vunpack.c.l.s8.bf16 %v1520_v21 }
 0x402   : > { %3849 = vmatprep.subr.bf16.mxu0 %v2707_v27  ;;  %3890 = vmatprep.subr.bf16.mxu1 %v2709_v28  ;;  %v2082_v27 = vunpack.c.l.s8.bf16 %v1522_v22  ;;  %v2151_v28 = vunpack.c.h.s8.bf16 %v1521_v36 }
 0x409   : > { %3850 = vmatpush1.bf16.xpose.msra.mxu0 %v2706_v32  ;;  %3891 = vmatpush1.bf16.xpose.msra.mxu1 %v2708_v33  ;;  %v5233_v32 = vcombine.high %v7015_v25, %v7015_v25  ;;  %v5235_v33 = vcombine.high %v7018_v30, %v7018_v30 }
 0x40a   : > { %3851 = vmatprep.subr.bf16.mxu0 %v2777_v34  ;;  %3892 = vmatprep.subr.bf16.mxu1 %v2779_v35  ;;  %v2150_v34 = vunpack.c.h.s8.bf16 %v1520_v21  ;;  %v2152_v35 = vunpack.c.h.s8.bf16 %v1522_v22 }
 0x411   : > { %3852 = vmatpush1.bf16.xpose.msra.mxu0 %v2776_v4  ;;  %3893 = vmatpush1.bf16.xpose.msra.mxu1 %v2778_v39  ;;  %v1590_v4 = vld [vmem:[%s6709_s10 + $0x2f0] sm:$0xff]  ;;  %v1592_v39 = vld [vmem:[%s6709_s10 + $0x300] sm:$0xff] }
 0x412   : > { %3853 = vmatprep.subr.bf16.mxu0 %v2847_v41  ;;  %3894 = vmatprep.subr.bf16.mxu1 %v2849_v42  ;;  %v2220_v41 = vunpack.c.l.s8.bf16 %v1590_v4  ;;  %v2222_v42 = vunpack.c.l.s8.bf16 %v1592_v39 }
 0x413   : > { %v3701_v45 = vpop.f32.mrb[12].mxu0  ;;  %v3742_v50 = vpop.f32.mrb[12].mxu1 }
 0x414   : > { %v3702_v46 = vadd.f32 %v3701_v45, %v6944_v63  ;;  %v3703_v47 = vpop.f32.mrb[13].mxu0  ;;  %v3744_v48 = vpop.f32.mrb[13].mxu1  ;;  %v1936_v63 = vld [vmem:[%s6709_s10 + $0xdc0] sm:$0xff]  ;;  %v2291_v45 = vunpack.c.h.s8.bf16 %v1591_v37 }
 0x415   : > { %v3704_v49 = vadd.f32 %v3703_v47, %v6946_v6  ;;  %v3705_v51 = vpop.f32.mrb[14].mxu0  ;;  %v3746_v60 = vpop.f32.mrb[14].mxu1  ;;  %v1938_v6 = vld [vmem:[%s6709_s10 + $0xdd0] sm:$0xff]  ;;  %v2916_v61 = vunpack.c.l.s8.bf16 %v1936_v63  ;;  %v2986_v2 = vunpack.c.h.s8.bf16 %v1936_v63  ;;  %v2292_v47 = vunpack.c.h.s8.bf16 %v1592_v39 }
 0x416   : > { %v6996_v53 = vadd.f32 %v3742_v50, %v3702_v46  ;;  %v3706_v54 = vpop.f32.mrb[15].mxu0  ;;  %v3747_v58 = vpop.f32.mrb[15].mxu1  ;;  %v2918_v62 = vunpack.c.l.s8.bf16 %v1938_v6  ;;  %v2988_v5 = vunpack.c.h.s8.bf16 %v1938_v6  ;;  %v2293_v50 = vunpack.c.h.s8.bf16 %v1593_v40  ;;  %v1660_v51 = vld [vmem:[%s6709_s10 + $0x520] sm:$0xff] }
 0x417   : > { %v6998_v59 = vadd.f32 %v3744_v48, %v3704_v49  ;;  %v2290_v46 = vunpack.c.h.s8.bf16 %v1590_v4  ;;  %v2361_v48 = vunpack.c.l.s8.bf16 %v1661_v43  ;;  %v2363_v49 = vunpack.c.l.s8.bf16 %v1663_v44  ;;  %v1733_v58 = vld [vmem:[%s6709_s10 + $0x768] sm:$0xff] }
 0x418   : > { %v2431_v54 = vunpack.c.h.s8.bf16 %v1661_v43  ;;  %v2430_v63 = vunpack.c.h.s8.bf16 %v1660_v51 }
 0x419   : > { %3854 = vmatpush1.bf16.xpose.msra.mxu0 %v2846_v52  ;;  %3895 = vmatpush1.bf16.xpose.msra.mxu1 %v2848_v55  ;;  %v1662_v52 = vld [vmem:[%s6709_s10 + $0x530] sm:$0xff]  ;;  %v2360_v55 = vunpack.c.l.s8.bf16 %v1660_v51 }
 0x41a   : > { %3855 = vmatprep.subr.bf16.mxu0 %v2917_v56  ;;  %3896 = vmatprep.subr.bf16.mxu1 %v2919_v57  ;;  %v2362_v60 = vunpack.c.l.s8.bf16 %v1662_v52  ;;  %v2433_v56 = vunpack.c.h.s8.bf16 %v1663_v44  ;;  %v1731_v57 = vld [vmem:[%s6709_s10 + $0x758] sm:$0xff]  ;;  %v2432_v6 = vunpack.c.h.s8.bf16 %v1662_v52 }
 0x421   : > { %3856 = vmatpush1.bf16.xpose.msra.mxu0 %v2916_v61  ;;  %3897 = vmatpush1.bf16.xpose.msra.mxu1 %v2918_v62  ;;  %v2501_v61 = vunpack.c.l.s8.bf16 %v1731_v57  ;;  %v2503_v62 = vunpack.c.l.s8.bf16 %v1733_v58 }
 0x422   : > { %3857 = vmatprep.subr.bf16.mxu0 %v2987_v7  ;;  %3898 = vmatprep.subr.bf16.mxu1 %v2989_v12  ;;  %v1730_v7 = vld [vmem:[%s6709_s10 + $0x750] sm:$0xff]  ;;  %v1732_v12 = vld [vmem:[%s6709_s10 + $0x760] sm:$0xff] }
 0x423   : > { %v2500_v0 = vunpack.c.l.s8.bf16 %v1730_v7  ;;  %v2502_v1 = vunpack.c.l.s8.bf16 %v1732_v12  ;;  %v2570_v8 = vunpack.c.h.s8.bf16 %v1730_v7  ;;  %v2572_v9 = vunpack.c.h.s8.bf16 %v1732_v12 }
 0x429   : > { %3858 = vmatpush1.bf16.xpose.msra.mxu0 %v2986_v2  ;;  %3899 = vmatpush1.bf16.xpose.msra.mxu1 %v2988_v5  ;;  %v2571_v2 = vunpack.c.h.s8.bf16 %v1731_v57  ;;  %v2573_v5 = vunpack.c.h.s8.bf16 %v1733_v58 }
 0x42a   : > { %3859 = vmatprep.subr.bf16.mxu0 %v3057_v13  ;;  %3900 = vmatprep.subr.bf16.mxu1 %v3059_v17  ;;  %v1801_v13 = vld [vmem:[%s6709_s10 + $0x988] sm:$0xff]  ;;  %v1803_v17 = vld [vmem:[%s6709_s10 + $0x998] sm:$0xff] }
 0x431   : > { %3860 = vmatpush1.bf16.xpose.msra.mxu0 %v3056_v10  ;;  %3901 = vmatpush1.bf16.xpose.msra.mxu1 %v3058_v11  ;;  %v2641_v10 = vunpack.c.l.s8.bf16 %v1801_v13  ;;  %v2643_v11 = vunpack.c.l.s8.bf16 %v1803_v17 }
 0x432   : > { %3861 = vmatprep.subr.bf16.mxu0 %v3127_v14  ;;  %3902 = vmatprep.subr.bf16.mxu1 %v3129_v31  ;;  %v1800_v14 = vld [vmem:[%s6709_s10 + $0x980] sm:$0xff]  ;;  %v1802_v31 = vld [vmem:[%s6709_s10 + $0x990] sm:$0xff] }
 0x433   : > { %v2640_v36 = vunpack.c.l.s8.bf16 %v1800_v14  ;;  %v2642_v16 = vunpack.c.l.s8.bf16 %v1802_v31  ;;  %v2710_v21 = vunpack.c.h.s8.bf16 %v1800_v14  ;;  %v2712_v22 = vunpack.c.h.s8.bf16 %v1802_v31 }
 0x434   : > { %v5232_v14 = vcombine.low %v7015_v25, %v7015_v25  ;;  %v5234_v31 = vcombine.low %v7018_v30, %v7018_v30  ;;  %v1595_v25 = vld [vmem:[%s6709_s10 + $0x318] sm:$0xff]  ;;  %v1597_v30 = vld [vmem:[%s6709_s10 + $0x328] sm:$0xff] }
 0x439   : > { %3862 = vmatpush1.bf16.xpose.msra.mxu0 %v3126_v15  ;;  %3903 = vmatpush1.bf16.xpose.msra.mxu1 %v3128_v18  ;;  %v2711_v15 = vunpack.c.h.s8.bf16 %v1801_v13  ;;  %v2713_v18 = vunpack.c.h.s8.bf16 %v1803_v17 }
 0x43a   : > { %3913 = vmatprep.subr.bf16.mxu0 %v2081_v19  ;;  %3954 = vmatprep.subr.bf16.mxu1 %v2083_v20  ;;  %v1871_v19 = vld [vmem:[%s6709_s10 + $0xbb8] sm:$0xff]  ;;  %v1873_v20 = vld [vmem:[%s6709_s10 + $0xbc8] sm:$0xff] }
 0x440   : > { %3864 = vmatmul.mubr.bf16.vlgmr.msra.gmra.mrb[20].mxu0 %v5228_v23  ;;  %3905 = vmatmul.mubr.bf16.vlgmr.msra.gmra.mrb[20].mxu1 %v5230_v24  ;;  %v2781_v23 = vunpack.c.l.s8.bf16 %v1871_v19  ;;  %v2783_v24 = vunpack.c.l.s8.bf16 %v1873_v20 }
 0x441   : > { %3914 = vmatpush1.bf16.xpose.msra.mxu0 %v2080_v26  ;;  %3955 = vmatpush1.bf16.xpose.msra.mxu1 %v2082_v27  ;;  %v1870_v26 = vld [vmem:[%s6709_s10 + $0xbb0] sm:$0xff]  ;;  %v1872_v27 = vld [vmem:[%s6709_s10 + $0xbc0] sm:$0xff] }
 0x442   : > { %3915 = vmatprep.subr.bf16.mxu0 %v2151_v28  ;;  %3956 = vmatprep.subr.bf16.mxu1 %v2153_v29  ;;  %v2780_v28 = vunpack.c.l.s8.bf16 %v1870_v26  ;;  %v2782_v29 = vunpack.c.l.s8.bf16 %v1872_v27 }
 0x443   : > { %3945 = vmatprep.mubr.bf16.mxu0 %v5233_v32  ;;  %3986 = vmatprep.mubr.bf16.mxu1 %v5235_v33  ;;  %v2851_v32 = vunpack.c.h.s8.bf16 %v1871_v19  ;;  %v2853_v33 = vunpack.c.h.s8.bf16 %v1873_v20  ;;  %v7070_v20 = vld [vmem:[%s6707_s26 + $0x78] sm:$0xff] }
 0x449   : > { %3916 = vmatpush1.bf16.xpose.msra.mxu0 %v2150_v34  ;;  %3957 = vmatpush1.bf16.xpose.msra.mxu1 %v2152_v35  ;;  %v1941_v34 = vld [vmem:[%s6709_s10 + $0xde8] sm:$0xff]  ;;  %v1943_v35 = vld [vmem:[%s6709_s10 + $0xdf8] sm:$0xff] }
 0x44a   : > { %3917 = vmatprep.subr.bf16.mxu0 %v2221_v38  ;;  %3958 = vmatprep.subr.bf16.mxu1 %v2223_v3 }
 0x451   : > { %3918 = vmatpush1.bf16.xpose.msra.mxu0 %v2220_v41  ;;  %3959 = vmatpush1.bf16.xpose.msra.mxu1 %v2222_v42  ;;  %v2850_v42 = vunpack.c.h.s8.bf16 %v1870_v26  ;;  %v2225_v26 = vunpack.c.l.s8.bf16 %v1595_v25 }
 0x452   : > { %3919 = vmatprep.subr.bf16.mxu0 %v2291_v45  ;;  %3960 = vmatprep.subr.bf16.mxu1 %v2293_v50  ;;  %v2852_v45 = vunpack.c.h.s8.bf16 %v1872_v27  ;;  %v2227_v27 = vunpack.c.l.s8.bf16 %v1597_v30 }
 0x459   : > { %3920 = vmatpush1.bf16.xpose.msra.mxu0 %v2290_v46  ;;  %3961 = vmatpush1.bf16.xpose.msra.mxu1 %v2292_v47  ;;  %v2921_v46 = vunpack.c.l.s8.bf16 %v1941_v34  ;;  %v2923_v47 = vunpack.c.l.s8.bf16 %v1943_v35 }
 0x45a   : > { %3921 = vmatprep.subr.bf16.mxu0 %v2361_v48  ;;  %3962 = vmatprep.subr.bf16.mxu1 %v2363_v49 }
 0x461   : > { %3922 = vmatpush1.bf16.xpose.msra.mxu0 %v2360_v55  ;;  %3963 = vmatpush1.bf16.xpose.msra.mxu1 %v2362_v60  ;;  %v2991_v55 = vunpack.c.h.s8.bf16 %v1941_v34  ;;  %v2993_v60 = vunpack.c.h.s8.bf16 %v1943_v35  ;;  %v1665_v34 = vld [vmem:[%s6709_s10 + $0x548] sm:$0xff]  ;;  %v1667_v35 = vld [vmem:[%s6709_s10 + $0x558] sm:$0xff] }
 0x462   : > { %3923 = vmatprep.subr.bf16.mxu0 %v2431_v54  ;;  %3964 = vmatprep.subr.bf16.mxu1 %v2433_v56  ;;  %v2011_v54 = vld [vmem:[%s6709_s10 + $0x1018] sm:$0xff]  ;;  %v2013_v56 = vld [vmem:[%s6709_s10 + $0x1028] sm:$0xff] }
 0x469   : > { %3924 = vmatpush1.bf16.xpose.msra.mxu0 %v2430_v63  ;;  %3965 = vmatpush1.bf16.xpose.msra.mxu1 %v2432_v6  ;;  %v3061_v63 = vunpack.c.l.s8.bf16 %v2011_v54  ;;  %v3063_v6 = vunpack.c.l.s8.bf16 %v2013_v56 }
 0x46a   : > { %3925 = vmatprep.subr.bf16.mxu0 %v2501_v61  ;;  %3966 = vmatprep.subr.bf16.mxu1 %v2503_v62  ;;  %v2010_v61 = vld [vmem:[%s6709_s10 + $0x1010] sm:$0xff]  ;;  %v2012_v62 = vld [vmem:[%s6709_s10 + $0x1020] sm:$0xff] }
 0x46b   : > { %v3060_v7 = vunpack.c.l.s8.bf16 %v2010_v61  ;;  %v3062_v12 = vunpack.c.l.s8.bf16 %v2012_v62  ;;  %v3130_v13 = vunpack.c.h.s8.bf16 %v2010_v61  ;;  %v3132_v17 = vunpack.c.h.s8.bf16 %v2012_v62 }
 0x471   : > { %3926 = vmatpush1.bf16.xpose.msra.mxu0 %v2500_v0  ;;  %3967 = vmatpush1.bf16.xpose.msra.mxu1 %v2502_v1  ;;  %v3131_v0 = vunpack.c.h.s8.bf16 %v2011_v54  ;;  %v3133_v1 = vunpack.c.h.s8.bf16 %v2013_v56 }
 0x472   : > { %3927 = vmatprep.subr.bf16.mxu0 %v2571_v2  ;;  %3968 = vmatprep.subr.bf16.mxu1 %v2573_v5  ;;  %v1525_v2 = vld [vmem:[%s6709_s10 + $0xe8] sm:$0xff]  ;;  %v1527_v5 = vld [vmem:[%s6709_s10 + $0xf8] sm:$0xff] }
 0x473   : > { %v2157_v19 = vunpack.c.h.s8.bf16 %v1527_v5 }
 0x479   : > { %3928 = vmatpush1.bf16.xpose.msra.mxu0 %v2570_v8  ;;  %3969 = vmatpush1.bf16.xpose.msra.mxu1 %v2572_v9  ;;  %v2085_v8 = vunpack.c.l.s8.bf16 %v1525_v2  ;;  %v2087_v9 = vunpack.c.l.s8.bf16 %v1527_v5 }
 0x47a   : > { %3929 = vmatprep.subr.bf16.mxu0 %v2641_v10  ;;  %3970 = vmatprep.subr.bf16.mxu1 %v2643_v11  ;;  %v1524_v10 = vld [vmem:[%s6709_s10 + $0xe0] sm:$0xff]  ;;  %v1526_v11 = vld [vmem:[%s6709_s10 + $0xf0] sm:$0xff] }
 0x481   : > { %3930 = vmatpush1.bf16.xpose.msra.mxu0 %v2640_v36  ;;  %3971 = vmatpush1.bf16.xpose.msra.mxu1 %v2642_v16  ;;  %v7067_v36 = vld [vmem:[%s6707_s26 + $0x70] sm:$0xff]  ;;  %v2084_v16 = vunpack.c.l.s8.bf16 %v1524_v10 }
 0x482   : > { %3931 = vmatprep.subr.bf16.mxu0 %v2711_v15  ;;  %3972 = vmatprep.subr.bf16.mxu1 %v2713_v18  ;;  %v2086_v15 = vunpack.c.l.s8.bf16 %v1526_v11  ;;  %v2155_v18 = vunpack.c.h.s8.bf16 %v1525_v2 }
 0x489   : > { %3932 = vmatpush1.bf16.xpose.msra.mxu0 %v2710_v21  ;;  %3973 = vmatpush1.bf16.xpose.msra.mxu1 %v2712_v22  ;;  %v5237_v21 = vcombine.high %v7067_v36, %v7067_v36  ;;  %v5239_v22 = vcombine.high %v7070_v20, %v7070_v20 }
 0x48a   : > { %3933 = vmatprep.subr.bf16.mxu0 %v2781_v23  ;;  %3974 = vmatprep.subr.bf16.mxu1 %v2783_v24  ;;  %v2154_v23 = vunpack.c.h.s8.bf16 %v1524_v10  ;;  %v2156_v24 = vunpack.c.h.s8.bf16 %v1526_v11 }
 0x491   : > { %3934 = vmatpush1.bf16.xpose.msra.mxu0 %v2780_v28  ;;  %3975 = vmatpush1.bf16.xpose.msra.mxu1 %v2782_v29  ;;  %v1594_v28 = vld [vmem:[%s6709_s10 + $0x310] sm:$0xff]  ;;  %v1596_v29 = vld [vmem:[%s6709_s10 + $0x320] sm:$0xff] }
 0x492   : > { %3935 = vmatprep.subr.bf16.mxu0 %v2851_v32  ;;  %3976 = vmatprep.subr.bf16.mxu1 %v2853_v33  ;;  %v2224_v32 = vunpack.c.l.s8.bf16 %v1594_v28  ;;  %v2226_v33 = vunpack.c.l.s8.bf16 %v1596_v29 }
 0x493   : > { %v3783_v37 = vpop.f32.mrb[16].mxu0  ;;  %v3824_v40 = vpop.f32.mrb[16].mxu1 }
 0x494   : > { %v3784_v38 = vadd.f32 %v3783_v37, %v6996_v53  ;;  %v3785_v3 = vpop.f32.mrb[17].mxu0  ;;  %v3826_v4 = vpop.f32.mrb[17].mxu1  ;;  %v1940_v53 = vld [vmem:[%s6709_s10 + $0xde0] sm:$0xff]  ;;  %v2295_v37 = vunpack.c.h.s8.bf16 %v1595_v25 }
 0x495   : > { %v3786_v39 = vadd.f32 %v3785_v3, %v6998_v59  ;;  %v3787_v41 = vpop.f32.mrb[18].mxu0  ;;  %v3828_v50 = vpop.f32.mrb[18].mxu1  ;;  %v1942_v59 = vld [vmem:[%s6709_s10 + $0xdf0] sm:$0xff]  ;;  %v2920_v51 = vunpack.c.l.s8.bf16 %v1940_v53  ;;  %v2990_v57 = vunpack.c.h.s8.bf16 %v1940_v53  ;;  %v2296_v3 = vunpack.c.h.s8.bf16 %v1596_v29 }
 0x496   : > { %v7048_v43 = vadd.f32 %v3824_v40, %v3784_v38  ;;  %v3788_v44 = vpop.f32.mrb[19].mxu0  ;;  %v3829_v48 = vpop.f32.mrb[19].mxu1  ;;  %v2922_v52 = vunpack.c.l.s8.bf16 %v1942_v59  ;;  %v2992_v58 = vunpack.c.h.s8.bf16 %v1942_v59  ;;  %v2297_v40 = vunpack.c.h.s8.bf16 %v1597_v30  ;;  %v1664_v41 = vld [vmem:[%s6709_s10 + $0x540] sm:$0xff] }
 0x497   : > { %v7050_v49 = vadd.f32 %v3826_v4, %v3786_v39  ;;  %v2294_v38 = vunpack.c.h.s8.bf16 %v1594_v28  ;;  %v2365_v4 = vunpack.c.l.s8.bf16 %v1665_v34  ;;  %v2367_v39 = vunpack.c.l.s8.bf16 %v1667_v35  ;;  %v1737_v48 = vld [vmem:[%s6709_s10 + $0x788] sm:$0xff] }
 0x498   : > { %v2435_v44 = vunpack.c.h.s8.bf16 %v1665_v34  ;;  %v2434_v53 = vunpack.c.h.s8.bf16 %v1664_v41 }
 0x499   : > { %3936 = vmatpush1.bf16.xpose.msra.mxu0 %v2850_v42  ;;  %3977 = vmatpush1.bf16.xpose.msra.mxu1 %v2852_v45  ;;  %v1666_v42 = vld [vmem:[%s6709_s10 + $0x550] sm:$0xff]  ;;  %v2364_v45 = vunpack.c.l.s8.bf16 %v1664_v41 }
 0x49a   : > { %3937 = vmatprep.subr.bf16.mxu0 %v2921_v46  ;;  %3978 = vmatprep.subr.bf16.mxu1 %v2923_v47  ;;  %v2366_v50 = vunpack.c.l.s8.bf16 %v1666_v42  ;;  %v2437_v46 = vunpack.c.h.s8.bf16 %v1667_v35  ;;  %v1735_v47 = vld [vmem:[%s6709_s10 + $0x778] sm:$0xff]  ;;  %v2436_v59 = vunpack.c.h.s8.bf16 %v1666_v42 }
 0x4a1   : > { %3938 = vmatpush1.bf16.xpose.msra.mxu0 %v2920_v51  ;;  %3979 = vmatpush1.bf16.xpose.msra.mxu1 %v2922_v52  ;;  %v2505_v51 = vunpack.c.l.s8.bf16 %v1735_v47  ;;  %v2507_v52 = vunpack.c.l.s8.bf16 %v1737_v48 }
 0x4a2   : > { %3939 = vmatprep.subr.bf16.mxu0 %v2991_v55  ;;  %3980 = vmatprep.subr.bf16.mxu1 %v2993_v60  ;;  %v1734_v55 = vld [vmem:[%s6709_s10 + $0x770] sm:$0xff]  ;;  %v1736_v60 = vld [vmem:[%s6709_s10 + $0x780] sm:$0xff] }
 0x4a3   : > { %v2504_v54 = vunpack.c.l.s8.bf16 %v1734_v55  ;;  %v2506_v56 = vunpack.c.l.s8.bf16 %v1736_v60  ;;  %v2574_v61 = vunpack.c.h.s8.bf16 %v1734_v55  ;;  %v2576_v62 = vunpack.c.h.s8.bf16 %v1736_v60 }
 0x4a9   : > { %3940 = vmatpush1.bf16.xpose.msra.mxu0 %v2990_v57  ;;  %3981 = vmatpush1.bf16.xpose.msra.mxu1 %v2992_v58  ;;  %v2575_v57 = vunpack.c.h.s8.bf16 %v1735_v47  ;;  %v2577_v58 = vunpack.c.h.s8.bf16 %v1737_v48 }
 0x4aa   : > { %3941 = vmatprep.subr.bf16.mxu0 %v3061_v63  ;;  %3982 = vmatprep.subr.bf16.mxu1 %v3063_v6  ;;  %v1805_v63 = vld [vmem:[%s6709_s10 + $0x9a8] sm:$0xff]  ;;  %v1807_v6 = vld [vmem:[%s6709_s10 + $0x9b8] sm:$0xff] }
 0x4b1   : > { %3942 = vmatpush1.bf16.xpose.msra.mxu0 %v3060_v7  ;;  %3983 = vmatpush1.bf16.xpose.msra.mxu1 %v3062_v12  ;;  %v2645_v7 = vunpack.c.l.s8.bf16 %v1805_v63  ;;  %v2647_v12 = vunpack.c.l.s8.bf16 %v1807_v6 }
 0x4b2   : > { %3943 = vmatprep.subr.bf16.mxu0 %v3131_v0  ;;  %3984 = vmatprep.subr.bf16.mxu1 %v3133_v1  ;;  %v1804_v0 = vld [vmem:[%s6709_s10 + $0x9a0] sm:$0xff]  ;;  %v1806_v1 = vld [vmem:[%s6709_s10 + $0x9b0] sm:$0xff] }
 0x4b3   : > { %v2644_v2 = vunpack.c.l.s8.bf16 %v1804_v0  ;;  %v2646_v5 = vunpack.c.l.s8.bf16 %v1806_v1  ;;  %v2714_v10 = vunpack.c.h.s8.bf16 %v1804_v0  ;;  %v2716_v11 = vunpack.c.h.s8.bf16 %v1806_v1 }
 0x4b4   : > { %v5236_v0 = vcombine.low %v7067_v36, %v7067_v36  ;;  %v5238_v1 = vcombine.low %v7070_v20, %v7070_v20  ;;  %v1599_v36 = vld [vmem:[%s6709_s10 + $0x338] sm:$0xff]  ;;  %v1601_v20 = vld [vmem:[%s6709_s10 + $0x348] sm:$0xff] }
 0x4b9   : > { %3944 = vmatpush1.bf16.xpose.msra.mxu0 %v3130_v13  ;;  %3985 = vmatpush1.bf16.xpose.msra.mxu1 %v3132_v17  ;;  %v2715_v13 = vunpack.c.h.s8.bf16 %v1805_v63  ;;  %v2717_v17 = vunpack.c.h.s8.bf16 %v1807_v6 }
 0x4ba   : > { %3995 = vmatprep.subr.bf16.mxu0 %v2085_v8  ;;  %4036 = vmatprep.subr.bf16.mxu1 %v2087_v9  ;;  %v1875_v8 = vld [vmem:[%s6709_s10 + $0xbd8] sm:$0xff]  ;;  %v1877_v9 = vld [vmem:[%s6709_s10 + $0xbe8] sm:$0xff] }
 0x4c0   : > { %3946 = vmatmul.mubr.bf16.vlgmr.msra.gmra.mrb[24].mxu0 %v5232_v14  ;;  %3987 = vmatmul.mubr.bf16.vlgmr.msra.gmra.mrb[24].mxu1 %v5234_v31  ;;  %v2785_v14 = vunpack.c.l.s8.bf16 %v1875_v8  ;;  %v2787_v31 = vunpack.c.l.s8.bf16 %v1877_v9 }
 0x4c1   : > { %3996 = vmatpush1.bf16.xpose.msra.mxu0 %v2084_v16  ;;  %4037 = vmatpush1.bf16.xpose.msra.mxu1 %v2086_v15  ;;  %v1874_v16 = vld [vmem:[%s6709_s10 + $0xbd0] sm:$0xff]  ;;  %v1876_v15 = vld [vmem:[%s6709_s10 + $0xbe0] sm:$0xff] }
 0x4c2   : > { %3997 = vmatprep.subr.bf16.mxu0 %v2155_v18  ;;  %4038 = vmatprep.subr.bf16.mxu1 %v2157_v19  ;;  %v2784_v18 = vunpack.c.l.s8.bf16 %v1874_v16  ;;  %v2786_v19 = vunpack.c.l.s8.bf16 %v1876_v15 }
 0x4c3   : > { %4027 = vmatprep.mubr.bf16.mxu0 %v5237_v21  ;;  %4068 = vmatprep.mubr.bf16.mxu1 %v5239_v22  ;;  %v2855_v21 = vunpack.c.h.s8.bf16 %v1875_v8  ;;  %v2857_v22 = vunpack.c.h.s8.bf16 %v1877_v9  ;;  %v7122_v9 = vld [vmem:[%s6707_s26 + $0x88] sm:$0xff] }
 0x4c9   : > { %3998 = vmatpush1.bf16.xpose.msra.mxu0 %v2154_v23  ;;  %4039 = vmatpush1.bf16.xpose.msra.mxu1 %v2156_v24  ;;  %v1945_v23 = vld [vmem:[%s6709_s10 + $0xe08] sm:$0xff]  ;;  %v1947_v24 = vld [vmem:[%s6709_s10 + $0xe18] sm:$0xff] }
 0x4ca   : > { %3999 = vmatprep.subr.bf16.mxu0 %v2225_v26  ;;  %4040 = vmatprep.subr.bf16.mxu1 %v2227_v27 }
 0x4d1   : > { %4000 = vmatpush1.bf16.xpose.msra.mxu0 %v2224_v32  ;;  %4041 = vmatpush1.bf16.xpose.msra.mxu1 %v2226_v33  ;;  %v2854_v33 = vunpack.c.h.s8.bf16 %v1874_v16  ;;  %v2229_v16 = vunpack.c.l.s8.bf16 %v1599_v36 }
 0x4d2   : > { %4001 = vmatprep.subr.bf16.mxu0 %v2295_v37  ;;  %4042 = vmatprep.subr.bf16.mxu1 %v2297_v40  ;;  %v2856_v37 = vunpack.c.h.s8.bf16 %v1876_v15  ;;  %v2231_v15 = vunpack.c.l.s8.bf16 %v1601_v20 }
 0x4d9   : > { %4002 = vmatpush1.bf16.xpose.msra.mxu0 %v2294_v38  ;;  %4043 = vmatpush1.bf16.xpose.msra.mxu1 %v2296_v3  ;;  %v2925_v38 = vunpack.c.l.s8.bf16 %v1945_v23  ;;  %v2927_v3 = vunpack.c.l.s8.bf16 %v1947_v24 }
 0x4da   : > { %4003 = vmatprep.subr.bf16.mxu0 %v2365_v4  ;;  %4044 = vmatprep.subr.bf16.mxu1 %v2367_v39 }
 0x4e1   : > { %4004 = vmatpush1.bf16.xpose.msra.mxu0 %v2364_v45  ;;  %4045 = vmatpush1.bf16.xpose.msra.mxu1 %v2366_v50  ;;  %v2995_v45 = vunpack.c.h.s8.bf16 %v1945_v23  ;;  %v2997_v50 = vunpack.c.h.s8.bf16 %v1947_v24  ;;  %v1669_v23 = vld [vmem:[%s6709_s10 + $0x568] sm:$0xff]  ;;  %v1671_v24 = vld [vmem:[%s6709_s10 + $0x578] sm:$0xff] }
 0x4e2   : > { %4005 = vmatprep.subr.bf16.mxu0 %v2435_v44  ;;  %4046 = vmatprep.subr.bf16.mxu1 %v2437_v46  ;;  %v2015_v44 = vld [vmem:[%s6709_s10 + $0x1038] sm:$0xff]  ;;  %v2017_v46 = vld [vmem:[%s6709_s10 + $0x1048] sm:$0xff] }
 0x4e9   : > { %4006 = vmatpush1.bf16.xpose.msra.mxu0 %v2434_v53  ;;  %4047 = vmatpush1.bf16.xpose.msra.mxu1 %v2436_v59  ;;  %v3065_v53 = vunpack.c.l.s8.bf16 %v2015_v44  ;;  %v3067_v59 = vunpack.c.l.s8.bf16 %v2017_v46 }
 0x4ea   : > { %4007 = vmatprep.subr.bf16.mxu0 %v2505_v51  ;;  %4048 = vmatprep.subr.bf16.mxu1 %v2507_v52  ;;  %v2014_v51 = vld [vmem:[%s6709_s10 + $0x1030] sm:$0xff]  ;;  %v2016_v52 = vld [vmem:[%s6709_s10 + $0x1040] sm:$0xff] }
 0x4eb   : > { %v3064_v55 = vunpack.c.l.s8.bf16 %v2014_v51  ;;  %v3066_v60 = vunpack.c.l.s8.bf16 %v2016_v52  ;;  %v3134_v63 = vunpack.c.h.s8.bf16 %v2014_v51  ;;  %v3136_v6 = vunpack.c.h.s8.bf16 %v2016_v52 }
 0x4f1   : > { %4008 = vmatpush1.bf16.xpose.msra.mxu0 %v2504_v54  ;;  %4049 = vmatpush1.bf16.xpose.msra.mxu1 %v2506_v56  ;;  %v3135_v54 = vunpack.c.h.s8.bf16 %v2015_v44  ;;  %v3137_v56 = vunpack.c.h.s8.bf16 %v2017_v46 }
 0x4f2   : > { %4009 = vmatprep.subr.bf16.mxu0 %v2575_v57  ;;  %4050 = vmatprep.subr.bf16.mxu1 %v2577_v58  ;;  %v1529_v57 = vld [vmem:[%s6709_s10 + $0x108] sm:$0xff]  ;;  %v1531_v58 = vld [vmem:[%s6709_s10 + $0x118] sm:$0xff] }
 0x4f3   : > { %v2161_v8 = vunpack.c.h.s8.bf16 %v1531_v58 }
 0x4f9   : > { %4010 = vmatpush1.bf16.xpose.msra.mxu0 %v2574_v61  ;;  %4051 = vmatpush1.bf16.xpose.msra.mxu1 %v2576_v62  ;;  %v2089_v61 = vunpack.c.l.s8.bf16 %v1529_v57  ;;  %v2091_v62 = vunpack.c.l.s8.bf16 %v1531_v58 }
 0x4fa   : > { %4011 = vmatprep.subr.bf16.mxu0 %v2645_v7  ;;  %4052 = vmatprep.subr.bf16.mxu1 %v2647_v12  ;;  %v1528_v7 = vld [vmem:[%s6709_s10 + $0x100] sm:$0xff]  ;;  %v1530_v12 = vld [vmem:[%s6709_s10 + $0x110] sm:$0xff] }
 0x501   : > { %4012 = vmatpush1.bf16.xpose.msra.mxu0 %v2644_v2  ;;  %4053 = vmatpush1.bf16.xpose.msra.mxu1 %v2646_v5  ;;  %v7119_v2 = vld [vmem:[%s6707_s26 + $0x80] sm:$0xff]  ;;  %v2088_v5 = vunpack.c.l.s8.bf16 %v1528_v7 }
 0x502   : > { %4013 = vmatprep.subr.bf16.mxu0 %v2715_v13  ;;  %4054 = vmatprep.subr.bf16.mxu1 %v2717_v17  ;;  %v2090_v13 = vunpack.c.l.s8.bf16 %v1530_v12  ;;  %v2159_v17 = vunpack.c.h.s8.bf16 %v1529_v57 }
 0x509   : > { %4014 = vmatpush1.bf16.xpose.msra.mxu0 %v2714_v10  ;;  %4055 = vmatpush1.bf16.xpose.msra.mxu1 %v2716_v11  ;;  %v5241_v10 = vcombine.high %v7119_v2, %v7119_v2  ;;  %v5243_v11 = vcombine.high %v7122_v9, %v7122_v9 }
 0x50a   : > { %4015 = vmatprep.subr.bf16.mxu0 %v2785_v14  ;;  %4056 = vmatprep.subr.bf16.mxu1 %v2787_v31  ;;  %v2158_v14 = vunpack.c.h.s8.bf16 %v1528_v7  ;;  %v2160_v31 = vunpack.c.h.s8.bf16 %v1530_v12 }
 0x511   : > { %4016 = vmatpush1.bf16.xpose.msra.mxu0 %v2784_v18  ;;  %4057 = vmatpush1.bf16.xpose.msra.mxu1 %v2786_v19  ;;  %v1598_v18 = vld [vmem:[%s6709_s10 + $0x330] sm:$0xff]  ;;  %v1600_v19 = vld [vmem:[%s6709_s10 + $0x340] sm:$0xff] }
 0x512   : > { %4017 = vmatprep.subr.bf16.mxu0 %v2855_v21  ;;  %4058 = vmatprep.subr.bf16.mxu1 %v2857_v22  ;;  %v2228_v21 = vunpack.c.l.s8.bf16 %v1598_v18  ;;  %v2230_v22 = vunpack.c.l.s8.bf16 %v1600_v19 }
 0x513   : > { %v3865_v25 = vpop.f32.mrb[20].mxu0  ;;  %v3906_v30 = vpop.f32.mrb[20].mxu1 }
 0x514   : > { %v3866_v26 = vadd.f32 %v3865_v25, %v7048_v43  ;;  %v3867_v27 = vpop.f32.mrb[21].mxu0  ;;  %v3908_v28 = vpop.f32.mrb[21].mxu1  ;;  %v1944_v43 = vld [vmem:[%s6709_s10 + $0xe00] sm:$0xff]  ;;  %v2299_v25 = vunpack.c.h.s8.bf16 %v1599_v36 }
 0x515   : > { %v3868_v29 = vadd.f32 %v3867_v27, %v7050_v49  ;;  %v3869_v32 = vpop.f32.mrb[22].mxu0  ;;  %v3910_v40 = vpop.f32.mrb[22].mxu1  ;;  %v1946_v49 = vld [vmem:[%s6709_s10 + $0xe10] sm:$0xff]  ;;  %v2924_v41 = vunpack.c.l.s8.bf16 %v1944_v43  ;;  %v2994_v47 = vunpack.c.h.s8.bf16 %v1944_v43  ;;  %v2300_v27 = vunpack.c.h.s8.bf16 %v1600_v19 }
 0x516   : > { %v7100_v34 = vadd.f32 %v3906_v30, %v3866_v26  ;;  %v3870_v35 = vpop.f32.mrb[23].mxu0  ;;  %v3911_v4 = vpop.f32.mrb[23].mxu1  ;;  %v2926_v42 = vunpack.c.l.s8.bf16 %v1946_v49  ;;  %v2996_v48 = vunpack.c.h.s8.bf16 %v1946_v49  ;;  %v2301_v30 = vunpack.c.h.s8.bf16 %v1601_v20  ;;  %v1668_v32 = vld [vmem:[%s6709_s10 + $0x560] sm:$0xff] }
 0x517   : > { %v7102_v39 = vadd.f32 %v3908_v28, %v3868_v29  ;;  %v2298_v26 = vunpack.c.h.s8.bf16 %v1598_v18  ;;  %v2369_v28 = vunpack.c.l.s8.bf16 %v1669_v23  ;;  %v2371_v29 = vunpack.c.l.s8.bf16 %v1671_v24  ;;  %v1741_v4 = vld [vmem:[%s6709_s10 + $0x7a8] sm:$0xff] }
 0x518   : > { %v2439_v35 = vunpack.c.h.s8.bf16 %v1669_v23  ;;  %v2438_v43 = vunpack.c.h.s8.bf16 %v1668_v32 }
 0x519   : > { %4018 = vmatpush1.bf16.xpose.msra.mxu0 %v2854_v33  ;;  %4059 = vmatpush1.bf16.xpose.msra.mxu1 %v2856_v37  ;;  %v1670_v33 = vld [vmem:[%s6709_s10 + $0x570] sm:$0xff]  ;;  %v2368_v37 = vunpack.c.l.s8.bf16 %v1668_v32 }
 0x51a   : > { %4019 = vmatprep.subr.bf16.mxu0 %v2925_v38  ;;  %4060 = vmatprep.subr.bf16.mxu1 %v2927_v3  ;;  %v2370_v40 = vunpack.c.l.s8.bf16 %v1670_v33  ;;  %v2441_v38 = vunpack.c.h.s8.bf16 %v1671_v24  ;;  %v1739_v3 = vld [vmem:[%s6709_s10 + $0x798] sm:$0xff]  ;;  %v2440_v49 = vunpack.c.h.s8.bf16 %v1670_v33 }
 0x521   : > { %4020 = vmatpush1.bf16.xpose.msra.mxu0 %v2924_v41  ;;  %4061 = vmatpush1.bf16.xpose.msra.mxu1 %v2926_v42  ;;  %v2509_v41 = vunpack.c.l.s8.bf16 %v1739_v3  ;;  %v2511_v42 = vunpack.c.l.s8.bf16 %v1741_v4 }
 0x522   : > { %4021 = vmatprep.subr.bf16.mxu0 %v2995_v45  ;;  %4062 = vmatprep.subr.bf16.mxu1 %v2997_v50  ;;  %v1738_v45 = vld [vmem:[%s6709_s10 + $0x790] sm:$0xff]  ;;  %v1740_v50 = vld [vmem:[%s6709_s10 + $0x7a0] sm:$0xff] }
 0x523   : > { %v2508_v44 = vunpack.c.l.s8.bf16 %v1738_v45  ;;  %v2510_v46 = vunpack.c.l.s8.bf16 %v1740_v50  ;;  %v2578_v51 = vunpack.c.h.s8.bf16 %v1738_v45  ;;  %v2580_v52 = vunpack.c.h.s8.bf16 %v1740_v50 }
 0x529   : > { %4022 = vmatpush1.bf16.xpose.msra.mxu0 %v2994_v47  ;;  %4063 = vmatpush1.bf16.xpose.msra.mxu1 %v2996_v48  ;;  %v2579_v47 = vunpack.c.h.s8.bf16 %v1739_v3  ;;  %v2581_v48 = vunpack.c.h.s8.bf16 %v1741_v4 }
 0x52a   : > { %4023 = vmatprep.subr.bf16.mxu0 %v3065_v53  ;;  %4064 = vmatprep.subr.bf16.mxu1 %v3067_v59  ;;  %v1809_v53 = vld [vmem:[%s6709_s10 + $0x9c8] sm:$0xff]  ;;  %v1811_v59 = vld [vmem:[%s6709_s10 + $0x9d8] sm:$0xff] }
 0x531   : > { %4024 = vmatpush1.bf16.xpose.msra.mxu0 %v3064_v55  ;;  %4065 = vmatpush1.bf16.xpose.msra.mxu1 %v3066_v60  ;;  %v2649_v55 = vunpack.c.l.s8.bf16 %v1809_v53  ;;  %v2651_v60 = vunpack.c.l.s8.bf16 %v1811_v59 }
 0x532   : > { %4025 = vmatprep.subr.bf16.mxu0 %v3135_v54  ;;  %4066 = vmatprep.subr.bf16.mxu1 %v3137_v56  ;;  %v1808_v54 = vld [vmem:[%s6709_s10 + $0x9c0] sm:$0xff]  ;;  %v1810_v56 = vld [vmem:[%s6709_s10 + $0x9d0] sm:$0xff] }
 0x533   : > { %v2648_v57 = vunpack.c.l.s8.bf16 %v1808_v54  ;;  %v2650_v58 = vunpack.c.l.s8.bf16 %v1810_v56  ;;  %v2718_v7 = vunpack.c.h.s8.bf16 %v1808_v54  ;;  %v2720_v12 = vunpack.c.h.s8.bf16 %v1810_v56 }
 0x534   : > { %v5240_v54 = vcombine.low %v7119_v2, %v7119_v2  ;;  %v5242_v56 = vcombine.low %v7122_v9, %v7122_v9  ;;  %v1603_v2 = vld [vmem:[%s6709_s10 + $0x358] sm:$0xff]  ;;  %v1605_v9 = vld [vmem:[%s6709_s10 + $0x368] sm:$0xff] }
 0x539   : > { %4026 = vmatpush1.bf16.xpose.msra.mxu0 %v3134_v63  ;;  %4067 = vmatpush1.bf16.xpose.msra.mxu1 %v3136_v6  ;;  %v2719_v63 = vunpack.c.h.s8.bf16 %v1809_v53  ;;  %v2721_v6 = vunpack.c.h.s8.bf16 %v1811_v59 }
 0x53a   : > { %4077 = vmatprep.subr.bf16.mxu0 %v2089_v61  ;;  %4118 = vmatprep.subr.bf16.mxu1 %v2091_v62  ;;  %v1879_v61 = vld [vmem:[%s6709_s10 + $0xbf8] sm:$0xff]  ;;  %v1881_v62 = vld [vmem:[%s6709_s10 + $0xc08] sm:$0xff] }
 0x540   : > { %4028 = vmatmul.mubr.bf16.vlgmr.msra.gmra.mrb[28].mxu0 %v5236_v0  ;;  %4069 = vmatmul.mubr.bf16.vlgmr.msra.gmra.mrb[28].mxu1 %v5238_v1  ;;  %v2789_v0 = vunpack.c.l.s8.bf16 %v1879_v61  ;;  %v2791_v1 = vunpack.c.l.s8.bf16 %v1881_v62 }
 0x541   : > { %4078 = vmatpush1.bf16.xpose.msra.mxu0 %v2088_v5  ;;  %4119 = vmatpush1.bf16.xpose.msra.mxu1 %v2090_v13  ;;  %v1878_v5 = vld [vmem:[%s6709_s10 + $0xbf0] sm:$0xff]  ;;  %v1880_v13 = vld [vmem:[%s6709_s10 + $0xc00] sm:$0xff] }
 0x542   : > { %4079 = vmatprep.subr.bf16.mxu0 %v2159_v17  ;;  %4120 = vmatprep.subr.bf16.mxu1 %v2161_v8  ;;  %v2788_v17 = vunpack.c.l.s8.bf16 %v1878_v5  ;;  %v2790_v8 = vunpack.c.l.s8.bf16 %v1880_v13 }
 0x543   : > { %4109 = vmatprep.mubr.bf16.mxu0 %v5241_v10  ;;  %4150 = vmatprep.mubr.bf16.mxu1 %v5243_v11  ;;  %v2859_v10 = vunpack.c.h.s8.bf16 %v1879_v61  ;;  %v2861_v11 = vunpack.c.h.s8.bf16 %v1881_v62  ;;  %v7174_v62 = vld [vmem:[%s6707_s26 + $0x98] sm:$0xff] }
 0x549   : > { %4080 = vmatpush1.bf16.xpose.msra.mxu0 %v2158_v14  ;;  %4121 = vmatpush1.bf16.xpose.msra.mxu1 %v2160_v31  ;;  %v1949_v14 = vld [vmem:[%s6709_s10 + $0xe28] sm:$0xff]  ;;  %v1951_v31 = vld [vmem:[%s6709_s10 + $0xe38] sm:$0xff] }
 0x54a   : > { %4081 = vmatprep.subr.bf16.mxu0 %v2229_v16  ;;  %4122 = vmatprep.subr.bf16.mxu1 %v2231_v15 }
 0x551   : > { %4082 = vmatpush1.bf16.xpose.msra.mxu0 %v2228_v21  ;;  %4123 = vmatpush1.bf16.xpose.msra.mxu1 %v2230_v22  ;;  %v2858_v22 = vunpack.c.h.s8.bf16 %v1878_v5  ;;  %v2233_v5 = vunpack.c.l.s8.bf16 %v1603_v2 }
 0x552   : > { %4083 = vmatprep.subr.bf16.mxu0 %v2299_v25  ;;  %4124 = vmatprep.subr.bf16.mxu1 %v2301_v30  ;;  %v2860_v25 = vunpack.c.h.s8.bf16 %v1880_v13  ;;  %v2235_v13 = vunpack.c.l.s8.bf16 %v1605_v9 }
 0x559   : > { %4084 = vmatpush1.bf16.xpose.msra.mxu0 %v2298_v26  ;;  %4125 = vmatpush1.bf16.xpose.msra.mxu1 %v2300_v27  ;;  %v2929_v26 = vunpack.c.l.s8.bf16 %v1949_v14  ;;  %v2931_v27 = vunpack.c.l.s8.bf16 %v1951_v31 }
 0x55a   : > { %4085 = vmatprep.subr.bf16.mxu0 %v2369_v28  ;;  %4126 = vmatprep.subr.bf16.mxu1 %v2371_v29 }
 0x561   : > { %4086 = vmatpush1.bf16.xpose.msra.mxu0 %v2368_v37  ;;  %4127 = vmatpush1.bf16.xpose.msra.mxu1 %v2370_v40  ;;  %v2999_v37 = vunpack.c.h.s8.bf16 %v1949_v14  ;;  %v3001_v40 = vunpack.c.h.s8.bf16 %v1951_v31  ;;  %v1673_v14 = vld [vmem:[%s6709_s10 + $0x588] sm:$0xff]  ;;  %v1675_v31 = vld [vmem:[%s6709_s10 + $0x598] sm:$0xff] }
 0x562   : > { %4087 = vmatprep.subr.bf16.mxu0 %v2439_v35  ;;  %4128 = vmatprep.subr.bf16.mxu1 %v2441_v38  ;;  %v2019_v35 = vld [vmem:[%s6709_s10 + $0x1058] sm:$0xff]  ;;  %v2021_v38 = vld [vmem:[%s6709_s10 + $0x1068] sm:$0xff] }
 0x569   : > { %4088 = vmatpush1.bf16.xpose.msra.mxu0 %v2438_v43  ;;  %4129 = vmatpush1.bf16.xpose.msra.mxu1 %v2440_v49  ;;  %v3069_v43 = vunpack.c.l.s8.bf16 %v2019_v35  ;;  %v3071_v49 = vunpack.c.l.s8.bf16 %v2021_v38 }
 0x56a   : > { %4089 = vmatprep.subr.bf16.mxu0 %v2509_v41  ;;  %4130 = vmatprep.subr.bf16.mxu1 %v2511_v42  ;;  %v2018_v41 = vld [vmem:[%s6709_s10 + $0x1050] sm:$0xff]  ;;  %v2020_v42 = vld [vmem:[%s6709_s10 + $0x1060] sm:$0xff] }
 0x56b   : > { %v3068_v45 = vunpack.c.l.s8.bf16 %v2018_v41  ;;  %v3070_v50 = vunpack.c.l.s8.bf16 %v2020_v42  ;;  %v3138_v53 = vunpack.c.h.s8.bf16 %v2018_v41  ;;  %v3140_v59 = vunpack.c.h.s8.bf16 %v2020_v42 }
 0x571   : > { %4090 = vmatpush1.bf16.xpose.msra.mxu0 %v2508_v44  ;;  %4131 = vmatpush1.bf16.xpose.msra.mxu1 %v2510_v46  ;;  %v3139_v44 = vunpack.c.h.s8.bf16 %v2019_v35  ;;  %v3141_v46 = vunpack.c.h.s8.bf16 %v2021_v38 }
 0x572   : > { %4091 = vmatprep.subr.bf16.mxu0 %v2579_v47  ;;  %4132 = vmatprep.subr.bf16.mxu1 %v2581_v48  ;;  %v1533_v47 = vld [vmem:[%s6709_s10 + $0x128] sm:$0xff]  ;;  %v1535_v48 = vld [vmem:[%s6709_s10 + $0x138] sm:$0xff] }
 0x573   : > { %v2165_v61 = vunpack.c.h.s8.bf16 %v1535_v48 }
 0x579   : > { %4092 = vmatpush1.bf16.xpose.msra.mxu0 %v2578_v51  ;;  %4133 = vmatpush1.bf16.xpose.msra.mxu1 %v2580_v52  ;;  %v2093_v51 = vunpack.c.l.s8.bf16 %v1533_v47  ;;  %v2095_v52 = vunpack.c.l.s8.bf16 %v1535_v48 }
 0x57a   : > { %4093 = vmatprep.subr.bf16.mxu0 %v2649_v55  ;;  %4134 = vmatprep.subr.bf16.mxu1 %v2651_v60  ;;  %v1532_v55 = vld [vmem:[%s6709_s10 + $0x120] sm:$0xff]  ;;  %v1534_v60 = vld [vmem:[%s6709_s10 + $0x130] sm:$0xff] }
 0x581   : > { %4094 = vmatpush1.bf16.xpose.msra.mxu0 %v2648_v57  ;;  %4135 = vmatpush1.bf16.xpose.msra.mxu1 %v2650_v58  ;;  %v7171_v57 = vld [vmem:[%s6707_s26 + $0x90] sm:$0xff]  ;;  %v2092_v58 = vunpack.c.l.s8.bf16 %v1532_v55 }
 0x582   : > { %4095 = vmatprep.subr.bf16.mxu0 %v2719_v63  ;;  %4136 = vmatprep.subr.bf16.mxu1 %v2721_v6  ;;  %v2094_v63 = vunpack.c.l.s8.bf16 %v1534_v60  ;;  %v2163_v6 = vunpack.c.h.s8.bf16 %v1533_v47 }
 0x589   : > { %4096 = vmatpush1.bf16.xpose.msra.mxu0 %v2718_v7  ;;  %4137 = vmatpush1.bf16.xpose.msra.mxu1 %v2720_v12  ;;  %v5245_v7 = vcombine.high %v7171_v57, %v7171_v57  ;;  %v5247_v12 = vcombine.high %v7174_v62, %v7174_v62 }
 0x58a   : > { %4097 = vmatprep.subr.bf16.mxu0 %v2789_v0  ;;  %4138 = vmatprep.subr.bf16.mxu1 %v2791_v1  ;;  %v2162_v0 = vunpack.c.h.s8.bf16 %v1532_v55  ;;  %v2164_v1 = vunpack.c.h.s8.bf16 %v1534_v60 }
 0x591   : > { %4098 = vmatpush1.bf16.xpose.msra.mxu0 %v2788_v17  ;;  %4139 = vmatpush1.bf16.xpose.msra.mxu1 %v2790_v8  ;;  %v1602_v17 = vld [vmem:[%s6709_s10 + $0x350] sm:$0xff]  ;;  %v1604_v8 = vld [vmem:[%s6709_s10 + $0x360] sm:$0xff] }
 0x592   : > { %4099 = vmatprep.subr.bf16.mxu0 %v2859_v10  ;;  %4140 = vmatprep.subr.bf16.mxu1 %v2861_v11  ;;  %v2232_v10 = vunpack.c.l.s8.bf16 %v1602_v17  ;;  %v2234_v11 = vunpack.c.l.s8.bf16 %v1604_v8 }
 0x593   : > { %v3947_v36 = vpop.f32.mrb[24].mxu0  ;;  %v3988_v20 = vpop.f32.mrb[24].mxu1 }
 0x594   : > { %v3948_v16 = vadd.f32 %v3947_v36, %v7100_v34  ;;  %v3949_v15 = vpop.f32.mrb[25].mxu0  ;;  %v3990_v18 = vpop.f32.mrb[25].mxu1  ;;  %v1948_v34 = vld [vmem:[%s6709_s10 + $0xe20] sm:$0xff]  ;;  %v2303_v36 = vunpack.c.h.s8.bf16 %v1603_v2 }
 0x595   : > { %v3950_v19 = vadd.f32 %v3949_v15, %v7102_v39  ;;  %v3951_v21 = vpop.f32.mrb[26].mxu0  ;;  %v3992_v30 = vpop.f32.mrb[26].mxu1  ;;  %v1950_v39 = vld [vmem:[%s6709_s10 + $0xe30] sm:$0xff]  ;;  %v2928_v32 = vunpack.c.l.s8.bf16 %v1948_v34  ;;  %v2998_v3 = vunpack.c.h.s8.bf16 %v1948_v34  ;;  %v2304_v15 = vunpack.c.h.s8.bf16 %v1604_v8 }
 0x596   : > { %v7152_v23 = vadd.f32 %v3988_v20, %v3948_v16  ;;  %v3952_v24 = vpop.f32.mrb[27].mxu0  ;;  %v3993_v28 = vpop.f32.mrb[27].mxu1  ;;  %v2930_v33 = vunpack.c.l.s8.bf16 %v1950_v39  ;;  %v3000_v4 = vunpack.c.h.s8.bf16 %v1950_v39  ;;  %v2305_v20 = vunpack.c.h.s8.bf16 %v1605_v9  ;;  %v1672_v21 = vld [vmem:[%s6709_s10 + $0x580] sm:$0xff] }
 0x597   : > { %v7154_v29 = vadd.f32 %v3990_v18, %v3950_v19  ;;  %v2302_v16 = vunpack.c.h.s8.bf16 %v1602_v17  ;;  %v2373_v18 = vunpack.c.l.s8.bf16 %v1673_v14  ;;  %v2375_v19 = vunpack.c.l.s8.bf16 %v1675_v31  ;;  %v1745_v28 = vld [vmem:[%s6709_s10 + $0x7c8] sm:$0xff] }
 0x598   : > { %v2443_v24 = vunpack.c.h.s8.bf16 %v1673_v14  ;;  %v2442_v34 = vunpack.c.h.s8.bf16 %v1672_v21 }
 0x599   : > { %4100 = vmatpush1.bf16.xpose.msra.mxu0 %v2858_v22  ;;  %4141 = vmatpush1.bf16.xpose.msra.mxu1 %v2860_v25  ;;  %v1674_v22 = vld [vmem:[%s6709_s10 + $0x590] sm:$0xff]  ;;  %v2372_v25 = vunpack.c.l.s8.bf16 %v1672_v21 }
 0x59a   : > { %4101 = vmatprep.subr.bf16.mxu0 %v2929_v26  ;;  %4142 = vmatprep.subr.bf16.mxu1 %v2931_v27  ;;  %v2374_v30 = vunpack.c.l.s8.bf16 %v1674_v22  ;;  %v2445_v26 = vunpack.c.h.s8.bf16 %v1675_v31  ;;  %v1743_v27 = vld [vmem:[%s6709_s10 + $0x7b8] sm:$0xff]  ;;  %v2444_v39 = vunpack.c.h.s8.bf16 %v1674_v22 }
 0x5a1   : > { %4102 = vmatpush1.bf16.xpose.msra.mxu0 %v2928_v32  ;;  %4143 = vmatpush1.bf16.xpose.msra.mxu1 %v2930_v33  ;;  %v2513_v32 = vunpack.c.l.s8.bf16 %v1743_v27  ;;  %v2515_v33 = vunpack.c.l.s8.bf16 %v1745_v28 }
 0x5a2   : > { %4103 = vmatprep.subr.bf16.mxu0 %v2999_v37  ;;  %4144 = vmatprep.subr.bf16.mxu1 %v3001_v40  ;;  %v1742_v37 = vld [vmem:[%s6709_s10 + $0x7b0] sm:$0xff]  ;;  %v1744_v40 = vld [vmem:[%s6709_s10 + $0x7c0] sm:$0xff] }
 0x5a3   : > { %v2512_v35 = vunpack.c.l.s8.bf16 %v1742_v37  ;;  %v2514_v38 = vunpack.c.l.s8.bf16 %v1744_v40  ;;  %v2582_v41 = vunpack.c.h.s8.bf16 %v1742_v37  ;;  %v2584_v42 = vunpack.c.h.s8.bf16 %v1744_v40 }
 0x5a9   : > { %4104 = vmatpush1.bf16.xpose.msra.mxu0 %v2998_v3  ;;  %4145 = vmatpush1.bf16.xpose.msra.mxu1 %v3000_v4  ;;  %v2583_v3 = vunpack.c.h.s8.bf16 %v1743_v27  ;;  %v2585_v4 = vunpack.c.h.s8.bf16 %v1745_v28 }
 0x5aa   : > { %4105 = vmatprep.subr.bf16.mxu0 %v3069_v43  ;;  %4146 = vmatprep.subr.bf16.mxu1 %v3071_v49  ;;  %v1813_v43 = vld [vmem:[%s6709_s10 + $0x9e8] sm:$0xff]  ;;  %v1815_v49 = vld [vmem:[%s6709_s10 + $0x9f8] sm:$0xff] }
 0x5b1   : > { %4106 = vmatpush1.bf16.xpose.msra.mxu0 %v3068_v45  ;;  %4147 = vmatpush1.bf16.xpose.msra.mxu1 %v3070_v50  ;;  %v2653_v45 = vunpack.c.l.s8.bf16 %v1813_v43  ;;  %v2655_v50 = vunpack.c.l.s8.bf16 %v1815_v49 }
 0x5b2   : > { %4107 = vmatprep.subr.bf16.mxu0 %v3139_v44  ;;  %4148 = vmatprep.subr.bf16.mxu1 %v3141_v46  ;;  %v1812_v44 = vld [vmem:[%s6709_s10 + $0x9e0] sm:$0xff]  ;;  %v1814_v46 = vld [vmem:[%s6709_s10 + $0x9f0] sm:$0xff] }
 0x5b3   : > { %v2652_v47 = vunpack.c.l.s8.bf16 %v1812_v44  ;;  %v2654_v48 = vunpack.c.l.s8.bf16 %v1814_v46  ;;  %v2722_v55 = vunpack.c.h.s8.bf16 %v1812_v44  ;;  %v2724_v60 = vunpack.c.h.s8.bf16 %v1814_v46 }
 0x5b4   : > { %v5244_v44 = vcombine.low %v7171_v57, %v7171_v57  ;;  %v5246_v46 = vcombine.low %v7174_v62, %v7174_v62  ;;  %v1607_v57 = vld [vmem:[%s6709_s10 + $0x378] sm:$0xff]  ;;  %v1609_v62 = vld [vmem:[%s6709_s10 + $0x388] sm:$0xff] }
 0x5b9   : > { %4108 = vmatpush1.bf16.xpose.msra.mxu0 %v3138_v53  ;;  %4149 = vmatpush1.bf16.xpose.msra.mxu1 %v3140_v59  ;;  %v2723_v53 = vunpack.c.h.s8.bf16 %v1813_v43  ;;  %v2725_v59 = vunpack.c.h.s8.bf16 %v1815_v49 }
 0x5ba   : > { %4159 = vmatprep.subr.bf16.mxu0 %v2093_v51  ;;  %4200 = vmatprep.subr.bf16.mxu1 %v2095_v52  ;;  %v1883_v51 = vld [vmem:[%s6709_s10 + $0xc18] sm:$0xff]  ;;  %v1885_v52 = vld [vmem:[%s6709_s10 + $0xc28] sm:$0xff] }
 0x5c0   : > { %4110 = vmatmul.mubr.bf16.vlgmr.msra.gmra.mrb[32].mxu0 %v5240_v54  ;;  %4151 = vmatmul.mubr.bf16.vlgmr.msra.gmra.mrb[32].mxu1 %v5242_v56  ;;  %v2793_v54 = vunpack.c.l.s8.bf16 %v1883_v51  ;;  %v2795_v56 = vunpack.c.l.s8.bf16 %v1885_v52 }
 0x5c1   : > { %4160 = vmatpush1.bf16.xpose.msra.mxu0 %v2092_v58  ;;  %4201 = vmatpush1.bf16.xpose.msra.mxu1 %v2094_v63  ;;  %v1882_v58 = vld [vmem:[%s6709_s10 + $0xc10] sm:$0xff]  ;;  %v1884_v63 = vld [vmem:[%s6709_s10 + $0xc20] sm:$0xff] }
 0x5c2   : > { %4161 = vmatprep.subr.bf16.mxu0 %v2163_v6  ;;  %4202 = vmatprep.subr.bf16.mxu1 %v2165_v61  ;;  %v2792_v6 = vunpack.c.l.s8.bf16 %v1882_v58  ;;  %v2794_v61 = vunpack.c.l.s8.bf16 %v1884_v63 }
 0x5c3   : > { %4191 = vmatprep.mubr.bf16.mxu0 %v5245_v7  ;;  %4232 = vmatprep.mubr.bf16.mxu1 %v5247_v12  ;;  %v2863_v7 = vunpack.c.h.s8.bf16 %v1883_v51  ;;  %v2865_v12 = vunpack.c.h.s8.bf16 %v1885_v52  ;;  %v7226_v52 = vld [vmem:[%s6707_s26 + $0xa8] sm:$0xff] }
 0x5c9   : > { %4162 = vmatpush1.bf16.xpose.msra.mxu0 %v2162_v0  ;;  %4203 = vmatpush1.bf16.xpose.msra.mxu1 %v2164_v1  ;;  %v1953_v0 = vld [vmem:[%s6709_s10 + $0xe48] sm:$0xff]  ;;  %v1955_v1 = vld [vmem:[%s6709_s10 + $0xe58] sm:$0xff] }
 0x5ca   : > { %4163 = vmatprep.subr.bf16.mxu0 %v2233_v5  ;;  %4204 = vmatprep.subr.bf16.mxu1 %v2235_v13 }
 0x5d1   : > { %4164 = vmatpush1.bf16.xpose.msra.mxu0 %v2232_v10  ;;  %4205 = vmatpush1.bf16.xpose.msra.mxu1 %v2234_v11  ;;  %v2862_v11 = vunpack.c.h.s8.bf16 %v1882_v58  ;;  %v2237_v58 = vunpack.c.l.s8.bf16 %v1607_v57 }
 0x5d2   : > { %4165 = vmatprep.subr.bf16.mxu0 %v2303_v36  ;;  %4206 = vmatprep.subr.bf16.mxu1 %v2305_v20  ;;  %v2864_v36 = vunpack.c.h.s8.bf16 %v1884_v63  ;;  %v2239_v63 = vunpack.c.l.s8.bf16 %v1609_v62 }
 0x5d9   : > { %4166 = vmatpush1.bf16.xpose.msra.mxu0 %v2302_v16  ;;  %4207 = vmatpush1.bf16.xpose.msra.mxu1 %v2304_v15  ;;  %v2933_v16 = vunpack.c.l.s8.bf16 %v1953_v0  ;;  %v2935_v15 = vunpack.c.l.s8.bf16 %v1955_v1 }
 0x5da   : > { %4167 = vmatprep.subr.bf16.mxu0 %v2373_v18  ;;  %4208 = vmatprep.subr.bf16.mxu1 %v2375_v19 }
 0x5e1   : > { %4168 = vmatpush1.bf16.xpose.msra.mxu0 %v2372_v25  ;;  %4209 = vmatpush1.bf16.xpose.msra.mxu1 %v2374_v30  ;;  %v3003_v25 = vunpack.c.h.s8.bf16 %v1953_v0  ;;  %v3005_v30 = vunpack.c.h.s8.bf16 %v1955_v1  ;;  %v1677_v0 = vld [vmem:[%s6709_s10 + $0x5a8] sm:$0xff]  ;;  %v1679_v1 = vld [vmem:[%s6709_s10 + $0x5b8] sm:$0xff] }
 0x5e2   : > { %4169 = vmatprep.subr.bf16.mxu0 %v2443_v24  ;;  %4210 = vmatprep.subr.bf16.mxu1 %v2445_v26  ;;  %v2023_v24 = vld [vmem:[%s6709_s10 + $0x1078] sm:$0xff]  ;;  %v2025_v26 = vld [vmem:[%s6709_s10 + $0x1088] sm:$0xff] }
 0x5e9   : > { %4170 = vmatpush1.bf16.xpose.msra.mxu0 %v2442_v34  ;;  %4211 = vmatpush1.bf16.xpose.msra.mxu1 %v2444_v39  ;;  %v3073_v34 = vunpack.c.l.s8.bf16 %v2023_v24  ;;  %v3075_v39 = vunpack.c.l.s8.bf16 %v2025_v26 }
 0x5ea   : > { %4171 = vmatprep.subr.bf16.mxu0 %v2513_v32  ;;  %4212 = vmatprep.subr.bf16.mxu1 %v2515_v33  ;;  %v2022_v32 = vld [vmem:[%s6709_s10 + $0x1070] sm:$0xff]  ;;  %v2024_v33 = vld [vmem:[%s6709_s10 + $0x1080] sm:$0xff] }
 0x5eb   : > { %v3072_v37 = vunpack.c.l.s8.bf16 %v2022_v32  ;;  %v3074_v40 = vunpack.c.l.s8.bf16 %v2024_v33  ;;  %v3142_v43 = vunpack.c.h.s8.bf16 %v2022_v32  ;;  %v3144_v49 = vunpack.c.h.s8.bf16 %v2024_v33 }
 0x5f1   : > { %4172 = vmatpush1.bf16.xpose.msra.mxu0 %v2512_v35  ;;  %4213 = vmatpush1.bf16.xpose.msra.mxu1 %v2514_v38  ;;  %v3143_v35 = vunpack.c.h.s8.bf16 %v2023_v24  ;;  %v3145_v38 = vunpack.c.h.s8.bf16 %v2025_v26 }
 0x5f2   : > { %4173 = vmatprep.subr.bf16.mxu0 %v2583_v3  ;;  %4214 = vmatprep.subr.bf16.mxu1 %v2585_v4  ;;  %v1537_v3 = vld [vmem:[%s6709_s10 + $0x148] sm:$0xff]  ;;  %v1539_v4 = vld [vmem:[%s6709_s10 + $0x158] sm:$0xff] }
 0x5f3   : > { %v2169_v51 = vunpack.c.h.s8.bf16 %v1539_v4 }
 0x5f9   : > { %4174 = vmatpush1.bf16.xpose.msra.mxu0 %v2582_v41  ;;  %4215 = vmatpush1.bf16.xpose.msra.mxu1 %v2584_v42  ;;  %v2097_v41 = vunpack.c.l.s8.bf16 %v1537_v3  ;;  %v2099_v42 = vunpack.c.l.s8.bf16 %v1539_v4 }
 0x5fa   : > { %4175 = vmatprep.subr.bf16.mxu0 %v2653_v45  ;;  %4216 = vmatprep.subr.bf16.mxu1 %v2655_v50  ;;  %v1536_v45 = vld [vmem:[%s6709_s10 + $0x140] sm:$0xff]  ;;  %v1538_v50 = vld [vmem:[%s6709_s10 + $0x150] sm:$0xff] }
 0x601   : > { %4176 = vmatpush1.bf16.xpose.msra.mxu0 %v2652_v47  ;;  %4217 = vmatpush1.bf16.xpose.msra.mxu1 %v2654_v48  ;;  %v7223_v47 = vld [vmem:[%s6707_s26 + $0xa0] sm:$0xff]  ;;  %v2096_v48 = vunpack.c.l.s8.bf16 %v1536_v45 }
 0x602   : > { %4177 = vmatprep.subr.bf16.mxu0 %v2723_v53  ;;  %4218 = vmatprep.subr.bf16.mxu1 %v2725_v59  ;;  %v2098_v53 = vunpack.c.l.s8.bf16 %v1538_v50  ;;  %v2167_v59 = vunpack.c.h.s8.bf16 %v1537_v3 }
 0x609   : > { %4178 = vmatpush1.bf16.xpose.msra.mxu0 %v2722_v55  ;;  %4219 = vmatpush1.bf16.xpose.msra.mxu1 %v2724_v60  ;;  %v5249_v55 = vcombine.high %v7223_v47, %v7223_v47  ;;  %v5251_v60 = vcombine.high %v7226_v52, %v7226_v52 }
 0x60a   : > { %4179 = vmatprep.subr.bf16.mxu0 %v2793_v54  ;;  %4220 = vmatprep.subr.bf16.mxu1 %v2795_v56  ;;  %v2166_v54 = vunpack.c.h.s8.bf16 %v1536_v45  ;;  %v2168_v56 = vunpack.c.h.s8.bf16 %v1538_v50 }
 0x611   : > { %4180 = vmatpush1.bf16.xpose.msra.mxu0 %v2792_v6  ;;  %4221 = vmatpush1.bf16.xpose.msra.mxu1 %v2794_v61  ;;  %v1606_v6 = vld [vmem:[%s6709_s10 + $0x370] sm:$0xff]  ;;  %v1608_v61 = vld [vmem:[%s6709_s10 + $0x380] sm:$0xff] }
 0x612   : > { %4181 = vmatprep.subr.bf16.mxu0 %v2863_v7  ;;  %4222 = vmatprep.subr.bf16.mxu1 %v2865_v12  ;;  %v2236_v7 = vunpack.c.l.s8.bf16 %v1606_v6  ;;  %v2238_v12 = vunpack.c.l.s8.bf16 %v1608_v61 }
 0x613   : > { %v4029_v2 = vpop.f32.mrb[28].mxu0  ;;  %v4070_v9 = vpop.f32.mrb[28].mxu1 }
 0x614   : > { %v4030_v5 = vadd.f32 %v4029_v2, %v7152_v23  ;;  %v4031_v13 = vpop.f32.mrb[29].mxu0  ;;  %v4072_v17 = vpop.f32.mrb[29].mxu1  ;;  %v1952_v23 = vld [vmem:[%s6709_s10 + $0xe40] sm:$0xff]  ;;  %v2307_v2 = vunpack.c.h.s8.bf16 %v1607_v57 }
 0x615   : > { %v4032_v8 = vadd.f32 %v4031_v13, %v7154_v29  ;;  %v4033_v10 = vpop.f32.mrb[30].mxu0  ;;  %v4074_v20 = vpop.f32.mrb[30].mxu1  ;;  %v1954_v29 = vld [vmem:[%s6709_s10 + $0xe50] sm:$0xff]  ;;  %v2932_v21 = vunpack.c.l.s8.bf16 %v1952_v23  ;;  %v3002_v27 = vunpack.c.h.s8.bf16 %v1952_v23  ;;  %v2308_v13 = vunpack.c.h.s8.bf16 %v1608_v61 }
 0x616   : > { %v7204_v14 = vadd.f32 %v4070_v9, %v4030_v5  ;;  %v4034_v31 = vpop.f32.mrb[31].mxu0  ;;  %v4075_v18 = vpop.f32.mrb[31].mxu1  ;;  %v2934_v22 = vunpack.c.l.s8.bf16 %v1954_v29  ;;  %v3004_v28 = vunpack.c.h.s8.bf16 %v1954_v29  ;;  %v2309_v9 = vunpack.c.h.s8.bf16 %v1609_v62  ;;  %v1676_v10 = vld [vmem:[%s6709_s10 + $0x5a0] sm:$0xff] }
 0x617   : > { %v7206_v19 = vadd.f32 %v4072_v17, %v4032_v8  ;;  %v2306_v5 = vunpack.c.h.s8.bf16 %v1606_v6  ;;  %v2377_v17 = vunpack.c.l.s8.bf16 %v1677_v0  ;;  %v2379_v8 = vunpack.c.l.s8.bf16 %v1679_v1  ;;  %v1749_v18 = vld [vmem:[%s6709_s10 + $0x7e8] sm:$0xff] }
 0x618   : > { %v2447_v31 = vunpack.c.h.s8.bf16 %v1677_v0  ;;  %v2446_v23 = vunpack.c.h.s8.bf16 %v1676_v10 }
 0x619   : > { %4182 = vmatpush1.bf16.xpose.msra.mxu0 %v2862_v11  ;;  %4223 = vmatpush1.bf16.xpose.msra.mxu1 %v2864_v36  ;;  %v1678_v11 = vld [vmem:[%s6709_s10 + $0x5b0] sm:$0xff]  ;;  %v2376_v36 = vunpack.c.l.s8.bf16 %v1676_v10 }
 0x61a   : > { %4183 = vmatprep.subr.bf16.mxu0 %v2933_v16  ;;  %4224 = vmatprep.subr.bf16.mxu1 %v2935_v15  ;;  %v2378_v20 = vunpack.c.l.s8.bf16 %v1678_v11  ;;  %v2449_v16 = vunpack.c.h.s8.bf16 %v1679_v1  ;;  %v1747_v15 = vld [vmem:[%s6709_s10 + $0x7d8] sm:$0xff]  ;;  %v2448_v29 = vunpack.c.h.s8.bf16 %v1678_v11 }
 0x621   : > { %4184 = vmatpush1.bf16.xpose.msra.mxu0 %v2932_v21  ;;  %4225 = vmatpush1.bf16.xpose.msra.mxu1 %v2934_v22  ;;  %v2517_v21 = vunpack.c.l.s8.bf16 %v1747_v15  ;;  %v2519_v22 = vunpack.c.l.s8.bf16 %v1749_v18 }
 0x622   : > { %4185 = vmatprep.subr.bf16.mxu0 %v3003_v25  ;;  %4226 = vmatprep.subr.bf16.mxu1 %v3005_v30  ;;  %v1746_v25 = vld [vmem:[%s6709_s10 + $0x7d0] sm:$0xff]  ;;  %v1748_v30 = vld [vmem:[%s6709_s10 + $0x7e0] sm:$0xff] }
 0x623   : > { %v2516_v24 = vunpack.c.l.s8.bf16 %v1746_v25  ;;  %v2518_v26 = vunpack.c.l.s8.bf16 %v1748_v30  ;;  %v2586_v32 = vunpack.c.h.s8.bf16 %v1746_v25  ;;  %v2588_v33 = vunpack.c.h.s8.bf16 %v1748_v30 }
 0x629   : > { %4186 = vmatpush1.bf16.xpose.msra.mxu0 %v3002_v27  ;;  %4227 = vmatpush1.bf16.xpose.msra.mxu1 %v3004_v28  ;;  %v2587_v27 = vunpack.c.h.s8.bf16 %v1747_v15  ;;  %v2589_v28 = vunpack.c.h.s8.bf16 %v1749_v18 }
 0x62a   : > { %4187 = vmatprep.subr.bf16.mxu0 %v3073_v34  ;;  %4228 = vmatprep.subr.bf16.mxu1 %v3075_v39  ;;  %v1817_v34 = vld [vmem:[%s6709_s10 + $0xa08] sm:$0xff]  ;;  %v1819_v39 = vld [vmem:[%s6709_s10 + $0xa18] sm:$0xff] }
 0x631   : > { %4188 = vmatpush1.bf16.xpose.msra.mxu0 %v3072_v37  ;;  %4229 = vmatpush1.bf16.xpose.msra.mxu1 %v3074_v40  ;;  %v2657_v37 = vunpack.c.l.s8.bf16 %v1817_v34  ;;  %v2659_v40 = vunpack.c.l.s8.bf16 %v1819_v39 }
 0x632   : > { %4189 = vmatprep.subr.bf16.mxu0 %v3143_v35  ;;  %4230 = vmatprep.subr.bf16.mxu1 %v3145_v38  ;;  %v1816_v35 = vld [vmem:[%s6709_s10 + $0xa00] sm:$0xff]  ;;  %v1818_v38 = vld [vmem:[%s6709_s10 + $0xa10] sm:$0xff] }
 0x633   : > { %v2656_v3 = vunpack.c.l.s8.bf16 %v1816_v35  ;;  %v2658_v4 = vunpack.c.l.s8.bf16 %v1818_v38  ;;  %v2726_v45 = vunpack.c.h.s8.bf16 %v1816_v35  ;;  %v2728_v50 = vunpack.c.h.s8.bf16 %v1818_v38 }
 0x634   : > { %v5248_v35 = vcombine.low %v7223_v47, %v7223_v47  ;;  %v5250_v38 = vcombine.low %v7226_v52, %v7226_v52  ;;  %v1611_v47 = vld [vmem:[%s6709_s10 + $0x398] sm:$0xff]  ;;  %v1613_v52 = vld [vmem:[%s6709_s10 + $0x3a8] sm:$0xff] }
 0x639   : > { %4190 = vmatpush1.bf16.xpose.msra.mxu0 %v3142_v43  ;;  %4231 = vmatpush1.bf16.xpose.msra.mxu1 %v3144_v49  ;;  %v2727_v43 = vunpack.c.h.s8.bf16 %v1817_v34  ;;  %v2729_v49 = vunpack.c.h.s8.bf16 %v1819_v39 }
 0x63a   : > { %4241 = vmatprep.subr.bf16.mxu0 %v2097_v41  ;;  %4282 = vmatprep.subr.bf16.mxu1 %v2099_v42  ;;  %v1887_v41 = vld [vmem:[%s6709_s10 + $0xc38] sm:$0xff]  ;;  %v1889_v42 = vld [vmem:[%s6709_s10 + $0xc48] sm:$0xff] }
 0x640   : > { %4192 = vmatmul.mubr.bf16.vlgmr.msra.gmra.mrb[36].mxu0 %v5244_v44  ;;  %4233 = vmatmul.mubr.bf16.vlgmr.msra.gmra.mrb[36].mxu1 %v5246_v46  ;;  %v2797_v44 = vunpack.c.l.s8.bf16 %v1887_v41  ;;  %v2799_v46 = vunpack.c.l.s8.bf16 %v1889_v42 }
 0x641   : > { %4242 = vmatpush1.bf16.xpose.msra.mxu0 %v2096_v48  ;;  %4283 = vmatpush1.bf16.xpose.msra.mxu1 %v2098_v53  ;;  %v1886_v48 = vld [vmem:[%s6709_s10 + $0xc30] sm:$0xff]  ;;  %v1888_v53 = vld [vmem:[%s6709_s10 + $0xc40] sm:$0xff] }
 0x642   : > { %4243 = vmatprep.subr.bf16.mxu0 %v2167_v59  ;;  %4284 = vmatprep.subr.bf16.mxu1 %v2169_v51  ;;  %v2796_v59 = vunpack.c.l.s8.bf16 %v1886_v48  ;;  %v2798_v51 = vunpack.c.l.s8.bf16 %v1888_v53 }
 0x643   : > { %4273 = vmatprep.mubr.bf16.mxu0 %v5249_v55  ;;  %4314 = vmatprep.mubr.bf16.mxu1 %v5251_v60  ;;  %v2867_v55 = vunpack.c.h.s8.bf16 %v1887_v41  ;;  %v2869_v60 = vunpack.c.h.s8.bf16 %v1889_v42  ;;  %v7278_v42 = vld [vmem:[%s6707_s26 + $0xb8] sm:$0xff] }
 0x649   : > { %4244 = vmatpush1.bf16.xpose.msra.mxu0 %v2166_v54  ;;  %4285 = vmatpush1.bf16.xpose.msra.mxu1 %v2168_v56  ;;  %v1957_v54 = vld [vmem:[%s6709_s10 + $0xe68] sm:$0xff]  ;;  %v1959_v56 = vld [vmem:[%s6709_s10 + $0xe78] sm:$0xff] }
 0x64a   : > { %4245 = vmatprep.subr.bf16.mxu0 %v2237_v58  ;;  %4286 = vmatprep.subr.bf16.mxu1 %v2239_v63 }
 0x651   : > { %4246 = vmatpush1.bf16.xpose.msra.mxu0 %v2236_v7  ;;  %4287 = vmatpush1.bf16.xpose.msra.mxu1 %v2238_v12  ;;  %v2866_v12 = vunpack.c.h.s8.bf16 %v1886_v48  ;;  %v2241_v48 = vunpack.c.l.s8.bf16 %v1611_v47 }
 0x652   : > { %4247 = vmatprep.subr.bf16.mxu0 %v2307_v2  ;;  %4288 = vmatprep.subr.bf16.mxu1 %v2309_v9  ;;  %v2868_v2 = vunpack.c.h.s8.bf16 %v1888_v53  ;;  %v2243_v53 = vunpack.c.l.s8.bf16 %v1613_v52 }
 0x659   : > { %4248 = vmatpush1.bf16.xpose.msra.mxu0 %v2306_v5  ;;  %4289 = vmatpush1.bf16.xpose.msra.mxu1 %v2308_v13  ;;  %v2937_v5 = vunpack.c.l.s8.bf16 %v1957_v54  ;;  %v2939_v13 = vunpack.c.l.s8.bf16 %v1959_v56 }
 0x65a   : > { %4249 = vmatprep.subr.bf16.mxu0 %v2377_v17  ;;  %4290 = vmatprep.subr.bf16.mxu1 %v2379_v8 }
 0x661   : > { %4250 = vmatpush1.bf16.xpose.msra.mxu0 %v2376_v36  ;;  %4291 = vmatpush1.bf16.xpose.msra.mxu1 %v2378_v20  ;;  %v3007_v36 = vunpack.c.h.s8.bf16 %v1957_v54  ;;  %v3009_v20 = vunpack.c.h.s8.bf16 %v1959_v56  ;;  %v1681_v54 = vld [vmem:[%s6709_s10 + $0x5c8] sm:$0xff]  ;;  %v1683_v56 = vld [vmem:[%s6709_s10 + $0x5d8] sm:$0xff] }
 0x662   : > { %4251 = vmatprep.subr.bf16.mxu0 %v2447_v31  ;;  %4292 = vmatprep.subr.bf16.mxu1 %v2449_v16  ;;  %v2027_v31 = vld [vmem:[%s6709_s10 + $0x1098] sm:$0xff]  ;;  %v2029_v16 = vld [vmem:[%s6709_s10 + $0x10a8] sm:$0xff] }
 0x669   : > { %4252 = vmatpush1.bf16.xpose.msra.mxu0 %v2446_v23  ;;  %4293 = vmatpush1.bf16.xpose.msra.mxu1 %v2448_v29  ;;  %v3077_v23 = vunpack.c.l.s8.bf16 %v2027_v31  ;;  %v3079_v29 = vunpack.c.l.s8.bf16 %v2029_v16 }
 0x66a   : > { %4253 = vmatprep.subr.bf16.mxu0 %v2517_v21  ;;  %4294 = vmatprep.subr.bf16.mxu1 %v2519_v22  ;;  %v2026_v21 = vld [vmem:[%s6709_s10 + $0x1090] sm:$0xff]  ;;  %v2028_v22 = vld [vmem:[%s6709_s10 + $0x10a0] sm:$0xff] }
 0x66b   : > { %v3076_v25 = vunpack.c.l.s8.bf16 %v2026_v21  ;;  %v3078_v30 = vunpack.c.l.s8.bf16 %v2028_v22  ;;  %v3146_v34 = vunpack.c.h.s8.bf16 %v2026_v21  ;;  %v3148_v39 = vunpack.c.h.s8.bf16 %v2028_v22 }
 0x671   : > { %4254 = vmatpush1.bf16.xpose.msra.mxu0 %v2516_v24  ;;  %4295 = vmatpush1.bf16.xpose.msra.mxu1 %v2518_v26  ;;  %v3147_v24 = vunpack.c.h.s8.bf16 %v2027_v31  ;;  %v3149_v26 = vunpack.c.h.s8.bf16 %v2029_v16 }
 0x672   : > { %4255 = vmatprep.subr.bf16.mxu0 %v2587_v27  ;;  %4296 = vmatprep.subr.bf16.mxu1 %v2589_v28  ;;  %v1541_v27 = vld [vmem:[%s6709_s10 + $0x168] sm:$0xff]  ;;  %v1543_v28 = vld [vmem:[%s6709_s10 + $0x178] sm:$0xff] }
 0x673   : > { %v2173_v41 = vunpack.c.h.s8.bf16 %v1543_v28 }
 0x679   : > { %4256 = vmatpush1.bf16.xpose.msra.mxu0 %v2586_v32  ;;  %4297 = vmatpush1.bf16.xpose.msra.mxu1 %v2588_v33  ;;  %v2101_v32 = vunpack.c.l.s8.bf16 %v1541_v27  ;;  %v2103_v33 = vunpack.c.l.s8.bf16 %v1543_v28 }
 0x67a   : > { %4257 = vmatprep.subr.bf16.mxu0 %v2657_v37  ;;  %4298 = vmatprep.subr.bf16.mxu1 %v2659_v40  ;;  %v1540_v37 = vld [vmem:[%s6709_s10 + $0x160] sm:$0xff]  ;;  %v1542_v40 = vld [vmem:[%s6709_s10 + $0x170] sm:$0xff] }
 0x681   : > { %4258 = vmatpush1.bf16.xpose.msra.mxu0 %v2656_v3  ;;  %4299 = vmatpush1.bf16.xpose.msra.mxu1 %v2658_v4  ;;  %v7275_v3 = vld [vmem:[%s6707_s26 + $0xb0] sm:$0xff]  ;;  %v2100_v4 = vunpack.c.l.s8.bf16 %v1540_v37 }
 0x682   : > { %4259 = vmatprep.subr.bf16.mxu0 %v2727_v43  ;;  %4300 = vmatprep.subr.bf16.mxu1 %v2729_v49  ;;  %v2102_v43 = vunpack.c.l.s8.bf16 %v1542_v40  ;;  %v2171_v49 = vunpack.c.h.s8.bf16 %v1541_v27 }
 0x689   : > { %4260 = vmatpush1.bf16.xpose.msra.mxu0 %v2726_v45  ;;  %4301 = vmatpush1.bf16.xpose.msra.mxu1 %v2728_v50  ;;  %v5253_v45 = vcombine.high %v7275_v3, %v7275_v3  ;;  %v5255_v50 = vcombine.high %v7278_v42, %v7278_v42 }
 0x68a   : > { %4261 = vmatprep.subr.bf16.mxu0 %v2797_v44  ;;  %4302 = vmatprep.subr.bf16.mxu1 %v2799_v46  ;;  %v2170_v44 = vunpack.c.h.s8.bf16 %v1540_v37  ;;  %v2172_v46 = vunpack.c.h.s8.bf16 %v1542_v40 }
 0x691   : > { %4262 = vmatpush1.bf16.xpose.msra.mxu0 %v2796_v59  ;;  %4303 = vmatpush1.bf16.xpose.msra.mxu1 %v2798_v51  ;;  %v1610_v59 = vld [vmem:[%s6709_s10 + $0x390] sm:$0xff]  ;;  %v1612_v51 = vld [vmem:[%s6709_s10 + $0x3a0] sm:$0xff] }
 0x692   : > { %4263 = vmatprep.subr.bf16.mxu0 %v2867_v55  ;;  %4304 = vmatprep.subr.bf16.mxu1 %v2869_v60  ;;  %v2240_v55 = vunpack.c.l.s8.bf16 %v1610_v59  ;;  %v2242_v60 = vunpack.c.l.s8.bf16 %v1612_v51 }
 0x693   : > { %v4111_v57 = vpop.f32.mrb[32].mxu0  ;;  %v4152_v62 = vpop.f32.mrb[32].mxu1 }
 0x694   : > { %v4112_v58 = vadd.f32 %v4111_v57, %v7204_v14  ;;  %v4113_v63 = vpop.f32.mrb[33].mxu0  ;;  %v4154_v6 = vpop.f32.mrb[33].mxu1  ;;  %v1956_v14 = vld [vmem:[%s6709_s10 + $0xe60] sm:$0xff]  ;;  %v2311_v57 = vunpack.c.h.s8.bf16 %v1611_v47 }
 0x695   : > { %v4114_v61 = vadd.f32 %v4113_v63, %v7206_v19  ;;  %v4115_v7 = vpop.f32.mrb[34].mxu0  ;;  %v4156_v9 = vpop.f32.mrb[34].mxu1  ;;  %v1958_v19 = vld [vmem:[%s6709_s10 + $0xe70] sm:$0xff]  ;;  %v2936_v10 = vunpack.c.l.s8.bf16 %v1956_v14  ;;  %v3006_v15 = vunpack.c.h.s8.bf16 %v1956_v14  ;;  %v2312_v63 = vunpack.c.h.s8.bf16 %v1612_v51 }
 0x696   : > { %v7256_v0 = vadd.f32 %v4152_v62, %v4112_v58  ;;  %v4116_v1 = vpop.f32.mrb[35].mxu0  ;;  %v4157_v17 = vpop.f32.mrb[35].mxu1  ;;  %v2938_v11 = vunpack.c.l.s8.bf16 %v1958_v19  ;;  %v3008_v18 = vunpack.c.h.s8.bf16 %v1958_v19  ;;  %v2313_v62 = vunpack.c.h.s8.bf16 %v1613_v52  ;;  %v1680_v7 = vld [vmem:[%s6709_s10 + $0x5c0] sm:$0xff] }
 0x697   : > { %v7258_v8 = vadd.f32 %v4154_v6, %v4114_v61  ;;  %v2310_v58 = vunpack.c.h.s8.bf16 %v1610_v59  ;;  %v2381_v6 = vunpack.c.l.s8.bf16 %v1681_v54  ;;  %v2383_v61 = vunpack.c.l.s8.bf16 %v1683_v56  ;;  %v1753_v17 = vld [vmem:[%s6709_s10 + $0x808] sm:$0xff] }
 0x698   : > { %v2451_v1 = vunpack.c.h.s8.bf16 %v1681_v54  ;;  %v2450_v14 = vunpack.c.h.s8.bf16 %v1680_v7 }
 0x699   : > { %4264 = vmatpush1.bf16.xpose.msra.mxu0 %v2866_v12  ;;  %4305 = vmatpush1.bf16.xpose.msra.mxu1 %v2868_v2  ;;  %v1682_v12 = vld [vmem:[%s6709_s10 + $0x5d0] sm:$0xff]  ;;  %v2380_v2 = vunpack.c.l.s8.bf16 %v1680_v7 }
 0x69a   : > { %4265 = vmatprep.subr.bf16.mxu0 %v2937_v5  ;;  %4306 = vmatprep.subr.bf16.mxu1 %v2939_v13  ;;  %v2382_v9 = vunpack.c.l.s8.bf16 %v1682_v12  ;;  %v2453_v5 = vunpack.c.h.s8.bf16 %v1683_v56  ;;  %v1751_v13 = vld [vmem:[%s6709_s10 + $0x7f8] sm:$0xff]  ;;  %v2452_v19 = vunpack.c.h.s8.bf16 %v1682_v12 }
 0x6a1   : > { %4266 = vmatpush1.bf16.xpose.msra.mxu0 %v2936_v10  ;;  %4307 = vmatpush1.bf16.xpose.msra.mxu1 %v2938_v11  ;;  %v2521_v10 = vunpack.c.l.s8.bf16 %v1751_v13  ;;  %v2523_v11 = vunpack.c.l.s8.bf16 %v1753_v17 }
 0x6a2   : > { %4267 = vmatprep.subr.bf16.mxu0 %v3007_v36  ;;  %4308 = vmatprep.subr.bf16.mxu1 %v3009_v20  ;;  %v1750_v36 = vld [vmem:[%s6709_s10 + $0x7f0] sm:$0xff]  ;;  %v1752_v20 = vld [vmem:[%s6709_s10 + $0x800] sm:$0xff] }
 0x6a3   : > { %v2520_v31 = vunpack.c.l.s8.bf16 %v1750_v36  ;;  %v2522_v16 = vunpack.c.l.s8.bf16 %v1752_v20  ;;  %v2590_v21 = vunpack.c.h.s8.bf16 %v1750_v36  ;;  %v2592_v22 = vunpack.c.h.s8.bf16 %v1752_v20 }
 0x6a9   : > { %4268 = vmatpush1.bf16.xpose.msra.mxu0 %v3006_v15  ;;  %4309 = vmatpush1.bf16.xpose.msra.mxu1 %v3008_v18  ;;  %v2591_v15 = vunpack.c.h.s8.bf16 %v1751_v13  ;;  %v2593_v18 = vunpack.c.h.s8.bf16 %v1753_v17 }
 0x6aa   : > { %4269 = vmatprep.subr.bf16.mxu0 %v3077_v23  ;;  %4310 = vmatprep.subr.bf16.mxu1 %v3079_v29  ;;  %v1821_v23 = vld [vmem:[%s6709_s10 + $0xa28] sm:$0xff]  ;;  %v1823_v29 = vld [vmem:[%s6709_s10 + $0xa38] sm:$0xff] }
 0x6b1   : > { %4270 = vmatpush1.bf16.xpose.msra.mxu0 %v3076_v25  ;;  %4311 = vmatpush1.bf16.xpose.msra.mxu1 %v3078_v30  ;;  %v2661_v25 = vunpack.c.l.s8.bf16 %v1821_v23  ;;  %v2663_v30 = vunpack.c.l.s8.bf16 %v1823_v29 }
 0x6b2   : > { %4271 = vmatprep.subr.bf16.mxu0 %v3147_v24  ;;  %4312 = vmatprep.subr.bf16.mxu1 %v3149_v26  ;;  %v1820_v24 = vld [vmem:[%s6709_s10 + $0xa20] sm:$0xff]  ;;  %v1822_v26 = vld [vmem:[%s6709_s10 + $0xa30] sm:$0xff] }
 0x6b3   : > { %v2660_v27 = vunpack.c.l.s8.bf16 %v1820_v24  ;;  %v2662_v28 = vunpack.c.l.s8.bf16 %v1822_v26  ;;  %v2730_v37 = vunpack.c.h.s8.bf16 %v1820_v24  ;;  %v2732_v40 = vunpack.c.h.s8.bf16 %v1822_v26 }
 0x6b4   : > { %v5252_v24 = vcombine.low %v7275_v3, %v7275_v3  ;;  %v5254_v26 = vcombine.low %v7278_v42, %v7278_v42  ;;  %v1615_v3 = vld [vmem:[%s6709_s10 + $0x3b8] sm:$0xff]  ;;  %v1617_v42 = vld [vmem:[%s6709_s10 + $0x3c8] sm:$0xff] }
 0x6b9   : > { %4272 = vmatpush1.bf16.xpose.msra.mxu0 %v3146_v34  ;;  %4313 = vmatpush1.bf16.xpose.msra.mxu1 %v3148_v39  ;;  %v2731_v34 = vunpack.c.h.s8.bf16 %v1821_v23  ;;  %v2733_v39 = vunpack.c.h.s8.bf16 %v1823_v29 }
 0x6ba   : > { %4323 = vmatprep.subr.bf16.mxu0 %v2101_v32  ;;  %4364 = vmatprep.subr.bf16.mxu1 %v2103_v33  ;;  %v1891_v32 = vld [vmem:[%s6709_s10 + $0xc58] sm:$0xff]  ;;  %v1893_v33 = vld [vmem:[%s6709_s10 + $0xc68] sm:$0xff] }
 0x6c0   : > { %4274 = vmatmul.mubr.bf16.vlgmr.msra.gmra.mrb[40].mxu0 %v5248_v35  ;;  %4315 = vmatmul.mubr.bf16.vlgmr.msra.gmra.mrb[40].mxu1 %v5250_v38  ;;  %v2801_v35 = vunpack.c.l.s8.bf16 %v1891_v32  ;;  %v2803_v38 = vunpack.c.l.s8.bf16 %v1893_v33 }
 0x6c1   : > { %4324 = vmatpush1.bf16.xpose.msra.mxu0 %v2100_v4  ;;  %4365 = vmatpush1.bf16.xpose.msra.mxu1 %v2102_v43  ;;  %v1890_v4 = vld [vmem:[%s6709_s10 + $0xc50] sm:$0xff]  ;;  %v1892_v43 = vld [vmem:[%s6709_s10 + $0xc60] sm:$0xff] }
 0x6c2   : > { %4325 = vmatprep.subr.bf16.mxu0 %v2171_v49  ;;  %4366 = vmatprep.subr.bf16.mxu1 %v2173_v41  ;;  %v2800_v49 = vunpack.c.l.s8.bf16 %v1890_v4  ;;  %v2802_v41 = vunpack.c.l.s8.bf16 %v1892_v43 }
 0x6c3   : > { %4355 = vmatprep.mubr.bf16.mxu0 %v5253_v45  ;;  %4396 = vmatprep.mubr.bf16.mxu1 %v5255_v50  ;;  %v2871_v45 = vunpack.c.h.s8.bf16 %v1891_v32  ;;  %v2873_v50 = vunpack.c.h.s8.bf16 %v1893_v33  ;;  %v7330_v33 = vld [vmem:[%s6707_s26 + $0xc8] sm:$0xff] }
 0x6c9   : > { %4326 = vmatpush1.bf16.xpose.msra.mxu0 %v2170_v44  ;;  %4367 = vmatpush1.bf16.xpose.msra.mxu1 %v2172_v46  ;;  %v1961_v44 = vld [vmem:[%s6709_s10 + $0xe88] sm:$0xff]  ;;  %v1963_v46 = vld [vmem:[%s6709_s10 + $0xe98] sm:$0xff] }
 0x6ca   : > { %4327 = vmatprep.subr.bf16.mxu0 %v2241_v48  ;;  %4368 = vmatprep.subr.bf16.mxu1 %v2243_v53 }
 0x6d1   : > { %4328 = vmatpush1.bf16.xpose.msra.mxu0 %v2240_v55  ;;  %4369 = vmatpush1.bf16.xpose.msra.mxu1 %v2242_v60  ;;  %v2870_v60 = vunpack.c.h.s8.bf16 %v1890_v4  ;;  %v2245_v4 = vunpack.c.l.s8.bf16 %v1615_v3 }
 0x6d2   : > { %4329 = vmatprep.subr.bf16.mxu0 %v2311_v57  ;;  %4370 = vmatprep.subr.bf16.mxu1 %v2313_v62  ;;  %v2872_v57 = vunpack.c.h.s8.bf16 %v1892_v43  ;;  %v2247_v43 = vunpack.c.l.s8.bf16 %v1617_v42 }
 0x6d9   : > { %4330 = vmatpush1.bf16.xpose.msra.mxu0 %v2310_v58  ;;  %4371 = vmatpush1.bf16.xpose.msra.mxu1 %v2312_v63  ;;  %v2941_v58 = vunpack.c.l.s8.bf16 %v1961_v44  ;;  %v2943_v63 = vunpack.c.l.s8.bf16 %v1963_v46 }
 0x6da   : > { %4331 = vmatprep.subr.bf16.mxu0 %v2381_v6  ;;  %4372 = vmatprep.subr.bf16.mxu1 %v2383_v61 }
 0x6e1   : > { %4332 = vmatpush1.bf16.xpose.msra.mxu0 %v2380_v2  ;;  %4373 = vmatpush1.bf16.xpose.msra.mxu1 %v2382_v9  ;;  %v3011_v2 = vunpack.c.h.s8.bf16 %v1961_v44  ;;  %v3013_v9 = vunpack.c.h.s8.bf16 %v1963_v46  ;;  %v1685_v44 = vld [vmem:[%s6709_s10 + $0x5e8] sm:$0xff]  ;;  %v1687_v46 = vld [vmem:[%s6709_s10 + $0x5f8] sm:$0xff] }
 0x6e2   : > { %4333 = vmatprep.subr.bf16.mxu0 %v2451_v1  ;;  %4374 = vmatprep.subr.bf16.mxu1 %v2453_v5  ;;  %v2031_v1 = vld [vmem:[%s6709_s10 + $0x10b8] sm:$0xff]  ;;  %v2033_v5 = vld [vmem:[%s6709_s10 + $0x10c8] sm:$0xff] }
 0x6e9   : > { %4334 = vmatpush1.bf16.xpose.msra.mxu0 %v2450_v14  ;;  %4375 = vmatpush1.bf16.xpose.msra.mxu1 %v2452_v19  ;;  %v3081_v14 = vunpack.c.l.s8.bf16 %v2031_v1  ;;  %v3083_v19 = vunpack.c.l.s8.bf16 %v2033_v5 }
 0x6ea   : > { %4335 = vmatprep.subr.bf16.mxu0 %v2521_v10  ;;  %4376 = vmatprep.subr.bf16.mxu1 %v2523_v11  ;;  %v2030_v10 = vld [vmem:[%s6709_s10 + $0x10b0] sm:$0xff]  ;;  %v2032_v11 = vld [vmem:[%s6709_s10 + $0x10c0] sm:$0xff] }
 0x6eb   : > { %v3080_v36 = vunpack.c.l.s8.bf16 %v2030_v10  ;;  %v3082_v20 = vunpack.c.l.s8.bf16 %v2032_v11  ;;  %v3150_v23 = vunpack.c.h.s8.bf16 %v2030_v10  ;;  %v3152_v29 = vunpack.c.h.s8.bf16 %v2032_v11 }
 0x6f1   : > { %4336 = vmatpush1.bf16.xpose.msra.mxu0 %v2520_v31  ;;  %4377 = vmatpush1.bf16.xpose.msra.mxu1 %v2522_v16  ;;  %v3151_v31 = vunpack.c.h.s8.bf16 %v2031_v1  ;;  %v3153_v16 = vunpack.c.h.s8.bf16 %v2033_v5 }
 0x6f2   : > { %4337 = vmatprep.subr.bf16.mxu0 %v2591_v15  ;;  %4378 = vmatprep.subr.bf16.mxu1 %v2593_v18  ;;  %v1545_v15 = vld [vmem:[%s6709_s10 + $0x188] sm:$0xff]  ;;  %v1547_v18 = vld [vmem:[%s6709_s10 + $0x198] sm:$0xff] }
 0x6f3   : > { %v2177_v32 = vunpack.c.h.s8.bf16 %v1547_v18 }
 0x6f9   : > { %4338 = vmatpush1.bf16.xpose.msra.mxu0 %v2590_v21  ;;  %4379 = vmatpush1.bf16.xpose.msra.mxu1 %v2592_v22  ;;  %v2105_v21 = vunpack.c.l.s8.bf16 %v1545_v15  ;;  %v2107_v22 = vunpack.c.l.s8.bf16 %v1547_v18 }
 0x6fa   : > { %4339 = vmatprep.subr.bf16.mxu0 %v2661_v25  ;;  %4380 = vmatprep.subr.bf16.mxu1 %v2663_v30  ;;  %v1544_v25 = vld [vmem:[%s6709_s10 + $0x180] sm:$0xff]  ;;  %v1546_v30 = vld [vmem:[%s6709_s10 + $0x190] sm:$0xff] }
 0x701   : > { %4340 = vmatpush1.bf16.xpose.msra.mxu0 %v2660_v27  ;;  %4381 = vmatpush1.bf16.xpose.msra.mxu1 %v2662_v28  ;;  %v7327_v27 = vld [vmem:[%s6707_s26 + $0xc0] sm:$0xff]  ;;  %v2104_v28 = vunpack.c.l.s8.bf16 %v1544_v25 }
 0x702   : > { %4341 = vmatprep.subr.bf16.mxu0 %v2731_v34  ;;  %4382 = vmatprep.subr.bf16.mxu1 %v2733_v39  ;;  %v2106_v34 = vunpack.c.l.s8.bf16 %v1546_v30  ;;  %v2175_v39 = vunpack.c.h.s8.bf16 %v1545_v15 }
 0x709   : > { %4342 = vmatpush1.bf16.xpose.msra.mxu0 %v2730_v37  ;;  %4383 = vmatpush1.bf16.xpose.msra.mxu1 %v2732_v40  ;;  %v5257_v37 = vcombine.high %v7327_v27, %v7327_v27  ;;  %v5259_v40 = vcombine.high %v7330_v33, %v7330_v33 }
 0x70a   : > { %4343 = vmatprep.subr.bf16.mxu0 %v2801_v35  ;;  %4384 = vmatprep.subr.bf16.mxu1 %v2803_v38  ;;  %v2174_v35 = vunpack.c.h.s8.bf16 %v1544_v25  ;;  %v2176_v38 = vunpack.c.h.s8.bf16 %v1546_v30 }
 0x711   : > { %4344 = vmatpush1.bf16.xpose.msra.mxu0 %v2800_v49  ;;  %4385 = vmatpush1.bf16.xpose.msra.mxu1 %v2802_v41  ;;  %v1614_v49 = vld [vmem:[%s6709_s10 + $0x3b0] sm:$0xff]  ;;  %v1616_v41 = vld [vmem:[%s6709_s10 + $0x3c0] sm:$0xff] }
 0x712   : > { %4345 = vmatprep.subr.bf16.mxu0 %v2871_v45  ;;  %4386 = vmatprep.subr.bf16.mxu1 %v2873_v50  ;;  %v2244_v45 = vunpack.c.l.s8.bf16 %v1614_v49  ;;  %v2246_v50 = vunpack.c.l.s8.bf16 %v1616_v41 }
 0x713   : > { %v4193_v47 = vpop.f32.mrb[36].mxu0  ;;  %v4234_v52 = vpop.f32.mrb[36].mxu1 }
 0x714   : > { %v4194_v48 = vadd.f32 %v4193_v47, %v7256_v0  ;;  %v4195_v53 = vpop.f32.mrb[37].mxu0  ;;  %v4236_v59 = vpop.f32.mrb[37].mxu1  ;;  %v1960_v0 = vld [vmem:[%s6709_s10 + $0xe80] sm:$0xff]  ;;  %v2315_v47 = vunpack.c.h.s8.bf16 %v1615_v3 }
 0x715   : > { %v4196_v51 = vadd.f32 %v4195_v53, %v7258_v8  ;;  %v4197_v55 = vpop.f32.mrb[38].mxu0  ;;  %v4238_v62 = vpop.f32.mrb[38].mxu1  ;;  %v1962_v8 = vld [vmem:[%s6709_s10 + $0xe90] sm:$0xff]  ;;  %v2940_v7 = vunpack.c.l.s8.bf16 %v1960_v0  ;;  %v3010_v13 = vunpack.c.h.s8.bf16 %v1960_v0  ;;  %v2316_v53 = vunpack.c.h.s8.bf16 %v1616_v41 }
 0x716   : > { %v7308_v54 = vadd.f32 %v4234_v52, %v4194_v48  ;;  %v4198_v56 = vpop.f32.mrb[39].mxu0  ;;  %v4239_v6 = vpop.f32.mrb[39].mxu1  ;;  %v2942_v12 = vunpack.c.l.s8.bf16 %v1962_v8  ;;  %v3012_v17 = vunpack.c.h.s8.bf16 %v1962_v8  ;;  %v2317_v52 = vunpack.c.h.s8.bf16 %v1617_v42  ;;  %v1684_v55 = vld [vmem:[%s6709_s10 + $0x5e0] sm:$0xff] }
 0x717   : > { %v7310_v61 = vadd.f32 %v4236_v59, %v4196_v51  ;;  %v2314_v48 = vunpack.c.h.s8.bf16 %v1614_v49  ;;  %v2385_v59 = vunpack.c.l.s8.bf16 %v1685_v44  ;;  %v2387_v51 = vunpack.c.l.s8.bf16 %v1687_v46  ;;  %v1757_v6 = vld [vmem:[%s6709_s10 + $0x828] sm:$0xff] }
 0x718   : > { %v2455_v56 = vunpack.c.h.s8.bf16 %v1685_v44  ;;  %v2454_v0 = vunpack.c.h.s8.bf16 %v1684_v55 }
 0x719   : > { %4346 = vmatpush1.bf16.xpose.msra.mxu0 %v2870_v60  ;;  %4387 = vmatpush1.bf16.xpose.msra.mxu1 %v2872_v57  ;;  %v1686_v60 = vld [vmem:[%s6709_s10 + $0x5f0] sm:$0xff]  ;;  %v2384_v57 = vunpack.c.l.s8.bf16 %v1684_v55 }
 0x71a   : > { %4347 = vmatprep.subr.bf16.mxu0 %v2941_v58  ;;  %4388 = vmatprep.subr.bf16.mxu1 %v2943_v63  ;;  %v2386_v62 = vunpack.c.l.s8.bf16 %v1686_v60  ;;  %v2457_v58 = vunpack.c.h.s8.bf16 %v1687_v46  ;;  %v1755_v63 = vld [vmem:[%s6709_s10 + $0x818] sm:$0xff]  ;;  %v2456_v8 = vunpack.c.h.s8.bf16 %v1686_v60 }
 0x721   : > { %4348 = vmatpush1.bf16.xpose.msra.mxu0 %v2940_v7  ;;  %4389 = vmatpush1.bf16.xpose.msra.mxu1 %v2942_v12  ;;  %v2525_v7 = vunpack.c.l.s8.bf16 %v1755_v63  ;;  %v2527_v12 = vunpack.c.l.s8.bf16 %v1757_v6 }
 0x722   : > { %4349 = vmatprep.subr.bf16.mxu0 %v3011_v2  ;;  %4390 = vmatprep.subr.bf16.mxu1 %v3013_v9  ;;  %v1754_v2 = vld [vmem:[%s6709_s10 + $0x810] sm:$0xff]  ;;  %v1756_v9 = vld [vmem:[%s6709_s10 + $0x820] sm:$0xff] }
 0x723   : > { %v2524_v1 = vunpack.c.l.s8.bf16 %v1754_v2  ;;  %v2526_v5 = vunpack.c.l.s8.bf16 %v1756_v9  ;;  %v2594_v10 = vunpack.c.h.s8.bf16 %v1754_v2  ;;  %v2596_v11 = vunpack.c.h.s8.bf16 %v1756_v9 }
 0x729   : > { %4350 = vmatpush1.bf16.xpose.msra.mxu0 %v3010_v13  ;;  %4391 = vmatpush1.bf16.xpose.msra.mxu1 %v3012_v17  ;;  %v2595_v13 = vunpack.c.h.s8.bf16 %v1755_v63  ;;  %v2597_v17 = vunpack.c.h.s8.bf16 %v1757_v6 }
 0x72a   : > { %4351 = vmatprep.subr.bf16.mxu0 %v3081_v14  ;;  %4392 = vmatprep.subr.bf16.mxu1 %v3083_v19  ;;  %v1825_v14 = vld [vmem:[%s6709_s10 + $0xa48] sm:$0xff]  ;;  %v1827_v19 = vld [vmem:[%s6709_s10 + $0xa58] sm:$0xff] }
 0x731   : > { %4352 = vmatpush1.bf16.xpose.msra.mxu0 %v3080_v36  ;;  %4393 = vmatpush1.bf16.xpose.msra.mxu1 %v3082_v20  ;;  %v2665_v36 = vunpack.c.l.s8.bf16 %v1825_v14  ;;  %v2667_v20 = vunpack.c.l.s8.bf16 %v1827_v19 }
 0x732   : > { %4353 = vmatprep.subr.bf16.mxu0 %v3151_v31  ;;  %4394 = vmatprep.subr.bf16.mxu1 %v3153_v16  ;;  %v1824_v31 = vld [vmem:[%s6709_s10 + $0xa40] sm:$0xff]  ;;  %v1826_v16 = vld [vmem:[%s6709_s10 + $0xa50] sm:$0xff] }
 0x733   : > { %v2664_v15 = vunpack.c.l.s8.bf16 %v1824_v31  ;;  %v2666_v18 = vunpack.c.l.s8.bf16 %v1826_v16  ;;  %v2734_v25 = vunpack.c.h.s8.bf16 %v1824_v31  ;;  %v2736_v30 = vunpack.c.h.s8.bf16 %v1826_v16 }
 0x734   : > { %v5256_v31 = vcombine.low %v7327_v27, %v7327_v27  ;;  %v5258_v16 = vcombine.low %v7330_v33, %v7330_v33  ;;  %v1619_v27 = vld [vmem:[%s6709_s10 + $0x3d8] sm:$0xff]  ;;  %v1621_v33 = vld [vmem:[%s6709_s10 + $0x3e8] sm:$0xff] }
 0x739   : > { %4354 = vmatpush1.bf16.xpose.msra.mxu0 %v3150_v23  ;;  %4395 = vmatpush1.bf16.xpose.msra.mxu1 %v3152_v29  ;;  %v2735_v23 = vunpack.c.h.s8.bf16 %v1825_v14  ;;  %v2737_v29 = vunpack.c.h.s8.bf16 %v1827_v19 }
 0x73a   : > { %4405 = vmatprep.subr.bf16.mxu0 %v2105_v21  ;;  %4446 = vmatprep.subr.bf16.mxu1 %v2107_v22  ;;  %v1895_v21 = vld [vmem:[%s6709_s10 + $0xc78] sm:$0xff]  ;;  %v1897_v22 = vld [vmem:[%s6709_s10 + $0xc88] sm:$0xff] }
 0x740   : > { %4356 = vmatmul.mubr.bf16.vlgmr.msra.gmra.mrb[44].mxu0 %v5252_v24  ;;  %4397 = vmatmul.mubr.bf16.vlgmr.msra.gmra.mrb[44].mxu1 %v5254_v26  ;;  %v2805_v24 = vunpack.c.l.s8.bf16 %v1895_v21  ;;  %v2807_v26 = vunpack.c.l.s8.bf16 %v1897_v22 }
 0x741   : > { %4406 = vmatpush1.bf16.xpose.msra.mxu0 %v2104_v28  ;;  %4447 = vmatpush1.bf16.xpose.msra.mxu1 %v2106_v34  ;;  %v1894_v28 = vld [vmem:[%s6709_s10 + $0xc70] sm:$0xff]  ;;  %v1896_v34 = vld [vmem:[%s6709_s10 + $0xc80] sm:$0xff] }
 0x742   : > { %4407 = vmatprep.subr.bf16.mxu0 %v2175_v39  ;;  %4448 = vmatprep.subr.bf16.mxu1 %v2177_v32  ;;  %v2804_v39 = vunpack.c.l.s8.bf16 %v1894_v28  ;;  %v2806_v32 = vunpack.c.l.s8.bf16 %v1896_v34 }
 0x743   : > { %4437 = vmatprep.mubr.bf16.mxu0 %v5257_v37  ;;  %4478 = vmatprep.mubr.bf16.mxu1 %v5259_v40  ;;  %v2875_v37 = vunpack.c.h.s8.bf16 %v1895_v21  ;;  %v2877_v40 = vunpack.c.h.s8.bf16 %v1897_v22  ;;  %v7382_v22 = vld [vmem:[%s6707_s26 + $0xd8] sm:$0xff] }
 0x749   : > { %4408 = vmatpush1.bf16.xpose.msra.mxu0 %v2174_v35  ;;  %4449 = vmatpush1.bf16.xpose.msra.mxu1 %v2176_v38  ;;  %v1965_v35 = vld [vmem:[%s6709_s10 + $0xea8] sm:$0xff]  ;;  %v1967_v38 = vld [vmem:[%s6709_s10 + $0xeb8] sm:$0xff] }
 0x74a   : > { %4409 = vmatprep.subr.bf16.mxu0 %v2245_v4  ;;  %4450 = vmatprep.subr.bf16.mxu1 %v2247_v43 }
 0x751   : > { %4410 = vmatpush1.bf16.xpose.msra.mxu0 %v2244_v45  ;;  %4451 = vmatpush1.bf16.xpose.msra.mxu1 %v2246_v50  ;;  %v2874_v50 = vunpack.c.h.s8.bf16 %v1894_v28  ;;  %v2249_v28 = vunpack.c.l.s8.bf16 %v1619_v27 }
 0x752   : > { %4411 = vmatprep.subr.bf16.mxu0 %v2315_v47  ;;  %4452 = vmatprep.subr.bf16.mxu1 %v2317_v52  ;;  %v2876_v47 = vunpack.c.h.s8.bf16 %v1896_v34  ;;  %v2251_v34 = vunpack.c.l.s8.bf16 %v1621_v33 }
 0x759   : > { %4412 = vmatpush1.bf16.xpose.msra.mxu0 %v2314_v48  ;;  %4453 = vmatpush1.bf16.xpose.msra.mxu1 %v2316_v53  ;;  %v2945_v48 = vunpack.c.l.s8.bf16 %v1965_v35  ;;  %v2947_v53 = vunpack.c.l.s8.bf16 %v1967_v38 }
 0x75a   : > { %4413 = vmatprep.subr.bf16.mxu0 %v2385_v59  ;;  %4454 = vmatprep.subr.bf16.mxu1 %v2387_v51 }
 0x761   : > { %4414 = vmatpush1.bf16.xpose.msra.mxu0 %v2384_v57  ;;  %4455 = vmatpush1.bf16.xpose.msra.mxu1 %v2386_v62  ;;  %v3015_v57 = vunpack.c.h.s8.bf16 %v1965_v35  ;;  %v3017_v62 = vunpack.c.h.s8.bf16 %v1967_v38  ;;  %v1689_v35 = vld [vmem:[%s6709_s10 + $0x608] sm:$0xff]  ;;  %v1691_v38 = vld [vmem:[%s6709_s10 + $0x618] sm:$0xff] }
 0x762   : > { %4415 = vmatprep.subr.bf16.mxu0 %v2455_v56  ;;  %4456 = vmatprep.subr.bf16.mxu1 %v2457_v58  ;;  %v2035_v56 = vld [vmem:[%s6709_s10 + $0x10d8] sm:$0xff]  ;;  %v2037_v58 = vld [vmem:[%s6709_s10 + $0x10e8] sm:$0xff] }
 0x769   : > { %4416 = vmatpush1.bf16.xpose.msra.mxu0 %v2454_v0  ;;  %4457 = vmatpush1.bf16.xpose.msra.mxu1 %v2456_v8  ;;  %v3085_v0 = vunpack.c.l.s8.bf16 %v2035_v56  ;;  %v3087_v8 = vunpack.c.l.s8.bf16 %v2037_v58 }
 0x76a   : > { %4417 = vmatprep.subr.bf16.mxu0 %v2525_v7  ;;  %4458 = vmatprep.subr.bf16.mxu1 %v2527_v12  ;;  %v2034_v7 = vld [vmem:[%s6709_s10 + $0x10d0] sm:$0xff]  ;;  %v2036_v12 = vld [vmem:[%s6709_s10 + $0x10e0] sm:$0xff] }
 0x76b   : > { %v3084_v2 = vunpack.c.l.s8.bf16 %v2034_v7  ;;  %v3086_v9 = vunpack.c.l.s8.bf16 %v2036_v12  ;;  %v3154_v14 = vunpack.c.h.s8.bf16 %v2034_v7  ;;  %v3156_v19 = vunpack.c.h.s8.bf16 %v2036_v12 }
 0x771   : > { %4418 = vmatpush1.bf16.xpose.msra.mxu0 %v2524_v1  ;;  %4459 = vmatpush1.bf16.xpose.msra.mxu1 %v2526_v5  ;;  %v3155_v1 = vunpack.c.h.s8.bf16 %v2035_v56  ;;  %v3157_v5 = vunpack.c.h.s8.bf16 %v2037_v58 }
 0x772   : > { %4419 = vmatprep.subr.bf16.mxu0 %v2595_v13  ;;  %4460 = vmatprep.subr.bf16.mxu1 %v2597_v17  ;;  %v1549_v13 = vld [vmem:[%s6709_s10 + $0x1a8] sm:$0xff]  ;;  %v1551_v17 = vld [vmem:[%s6709_s10 + $0x1b8] sm:$0xff] }
 0x773   : > { %v2181_v21 = vunpack.c.h.s8.bf16 %v1551_v17 }
 0x779   : > { %4420 = vmatpush1.bf16.xpose.msra.mxu0 %v2594_v10  ;;  %4461 = vmatpush1.bf16.xpose.msra.mxu1 %v2596_v11  ;;  %v2109_v10 = vunpack.c.l.s8.bf16 %v1549_v13  ;;  %v2111_v11 = vunpack.c.l.s8.bf16 %v1551_v17 }
 0x77a   : > { %4421 = vmatprep.subr.bf16.mxu0 %v2665_v36  ;;  %4462 = vmatprep.subr.bf16.mxu1 %v2667_v20  ;;  %v1548_v36 = vld [vmem:[%s6709_s10 + $0x1a0] sm:$0xff]  ;;  %v1550_v20 = vld [vmem:[%s6709_s10 + $0x1b0] sm:$0xff] }
 0x781   : > { %4422 = vmatpush1.bf16.xpose.msra.mxu0 %v2664_v15  ;;  %4463 = vmatpush1.bf16.xpose.msra.mxu1 %v2666_v18  ;;  %v7379_v15 = vld [vmem:[%s6707_s26 + $0xd0] sm:$0xff]  ;;  %v2108_v18 = vunpack.c.l.s8.bf16 %v1548_v36 }
 0x782   : > { %4423 = vmatprep.subr.bf16.mxu0 %v2735_v23  ;;  %4464 = vmatprep.subr.bf16.mxu1 %v2737_v29  ;;  %v2110_v23 = vunpack.c.l.s8.bf16 %v1550_v20  ;;  %v2179_v29 = vunpack.c.h.s8.bf16 %v1549_v13 }
 0x789   : > { %4424 = vmatpush1.bf16.xpose.msra.mxu0 %v2734_v25  ;;  %4465 = vmatpush1.bf16.xpose.msra.mxu1 %v2736_v30  ;;  %v5261_v25 = vcombine.high %v7379_v15, %v7379_v15  ;;  %v5263_v30 = vcombine.high %v7382_v22, %v7382_v22 }
 0x78a   : > { %4425 = vmatprep.subr.bf16.mxu0 %v2805_v24  ;;  %4466 = vmatprep.subr.bf16.mxu1 %v2807_v26  ;;  %v2178_v24 = vunpack.c.h.s8.bf16 %v1548_v36  ;;  %v2180_v26 = vunpack.c.h.s8.bf16 %v1550_v20 }
 0x791   : > { %4426 = vmatpush1.bf16.xpose.msra.mxu0 %v2804_v39  ;;  %4467 = vmatpush1.bf16.xpose.msra.mxu1 %v2806_v32  ;;  %v1618_v39 = vld [vmem:[%s6709_s10 + $0x3d0] sm:$0xff]  ;;  %v1620_v32 = vld [vmem:[%s6709_s10 + $0x3e0] sm:$0xff] }
 0x792   : > { %4427 = vmatprep.subr.bf16.mxu0 %v2875_v37  ;;  %4468 = vmatprep.subr.bf16.mxu1 %v2877_v40  ;;  %v2248_v37 = vunpack.c.l.s8.bf16 %v1618_v39  ;;  %v2250_v40 = vunpack.c.l.s8.bf16 %v1620_v32 }
 0x793   : > { %v4275_v3 = vpop.f32.mrb[40].mxu0  ;;  %v4316_v42 = vpop.f32.mrb[40].mxu1 }
 0x794   : > { %v4276_v4 = vadd.f32 %v4275_v3, %v7308_v54  ;;  %v4277_v43 = vpop.f32.mrb[41].mxu0  ;;  %v4318_v49 = vpop.f32.mrb[41].mxu1  ;;  %v1964_v54 = vld [vmem:[%s6709_s10 + $0xea0] sm:$0xff]  ;;  %v2319_v3 = vunpack.c.h.s8.bf16 %v1619_v27 }
 0x795   : > { %v4278_v41 = vadd.f32 %v4277_v43, %v7310_v61  ;;  %v4279_v45 = vpop.f32.mrb[42].mxu0  ;;  %v4320_v52 = vpop.f32.mrb[42].mxu1  ;;  %v1966_v61 = vld [vmem:[%s6709_s10 + $0xeb0] sm:$0xff]  ;;  %v2944_v55 = vunpack.c.l.s8.bf16 %v1964_v54  ;;  %v3014_v63 = vunpack.c.h.s8.bf16 %v1964_v54  ;;  %v2320_v43 = vunpack.c.h.s8.bf16 %v1620_v32 }
 0x796   : > { %v7360_v44 = vadd.f32 %v4316_v42, %v4276_v4  ;;  %v4280_v46 = vpop.f32.mrb[43].mxu0  ;;  %v4321_v59 = vpop.f32.mrb[43].mxu1  ;;  %v2946_v60 = vunpack.c.l.s8.bf16 %v1966_v61  ;;  %v3016_v6 = vunpack.c.h.s8.bf16 %v1966_v61  ;;  %v2321_v42 = vunpack.c.h.s8.bf16 %v1621_v33  ;;  %v1688_v45 = vld [vmem:[%s6709_s10 + $0x600] sm:$0xff] }
 0x797   : > { %v7362_v51 = vadd.f32 %v4318_v49, %v4278_v41  ;;  %v2318_v4 = vunpack.c.h.s8.bf16 %v1618_v39  ;;  %v2389_v49 = vunpack.c.l.s8.bf16 %v1689_v35  ;;  %v2391_v41 = vunpack.c.l.s8.bf16 %v1691_v38  ;;  %v1761_v59 = vld [vmem:[%s6709_s10 + $0x848] sm:$0xff] }
 0x798   : > { %v2459_v46 = vunpack.c.h.s8.bf16 %v1689_v35  ;;  %v2458_v54 = vunpack.c.h.s8.bf16 %v1688_v45 }
 0x799   : > { %4428 = vmatpush1.bf16.xpose.msra.mxu0 %v2874_v50  ;;  %4469 = vmatpush1.bf16.xpose.msra.mxu1 %v2876_v47  ;;  %v1690_v50 = vld [vmem:[%s6709_s10 + $0x610] sm:$0xff]  ;;  %v2388_v47 = vunpack.c.l.s8.bf16 %v1688_v45 }
 0x79a   : > { %4429 = vmatprep.subr.bf16.mxu0 %v2945_v48  ;;  %4470 = vmatprep.subr.bf16.mxu1 %v2947_v53  ;;  %v2390_v52 = vunpack.c.l.s8.bf16 %v1690_v50  ;;  %v2461_v48 = vunpack.c.h.s8.bf16 %v1691_v38  ;;  %v1759_v53 = vld [vmem:[%s6709_s10 + $0x838] sm:$0xff]  ;;  %v2460_v61 = vunpack.c.h.s8.bf16 %v1690_v50 }
 0x7a1   : > { %4430 = vmatpush1.bf16.xpose.msra.mxu0 %v2944_v55  ;;  %4471 = vmatpush1.bf16.xpose.msra.mxu1 %v2946_v60  ;;  %v2529_v55 = vunpack.c.l.s8.bf16 %v1759_v53  ;;  %v2531_v60 = vunpack.c.l.s8.bf16 %v1761_v59 }
 0x7a2   : > { %4431 = vmatprep.subr.bf16.mxu0 %v3015_v57  ;;  %4472 = vmatprep.subr.bf16.mxu1 %v3017_v62  ;;  %v1758_v57 = vld [vmem:[%s6709_s10 + $0x830] sm:$0xff]  ;;  %v1760_v62 = vld [vmem:[%s6709_s10 + $0x840] sm:$0xff] }
 0x7a3   : > { %v2528_v56 = vunpack.c.l.s8.bf16 %v1758_v57  ;;  %v2530_v58 = vunpack.c.l.s8.bf16 %v1760_v62  ;;  %v2598_v7 = vunpack.c.h.s8.bf16 %v1758_v57  ;;  %v2600_v12 = vunpack.c.h.s8.bf16 %v1760_v62 }
 0x7a9   : > { %4432 = vmatpush1.bf16.xpose.msra.mxu0 %v3014_v63  ;;  %4473 = vmatpush1.bf16.xpose.msra.mxu1 %v3016_v6  ;;  %v2599_v63 = vunpack.c.h.s8.bf16 %v1759_v53  ;;  %v2601_v6 = vunpack.c.h.s8.bf16 %v1761_v59 }
 0x7aa   : > { %4433 = vmatprep.subr.bf16.mxu0 %v3085_v0  ;;  %4474 = vmatprep.subr.bf16.mxu1 %v3087_v8  ;;  %v1829_v0 = vld [vmem:[%s6709_s10 + $0xa68] sm:$0xff]  ;;  %v1831_v8 = vld [vmem:[%s6709_s10 + $0xa78] sm:$0xff] }
 0x7b1   : > { %4434 = vmatpush1.bf16.xpose.msra.mxu0 %v3084_v2  ;;  %4475 = vmatpush1.bf16.xpose.msra.mxu1 %v3086_v9  ;;  %v2669_v2 = vunpack.c.l.s8.bf16 %v1829_v0  ;;  %v2671_v9 = vunpack.c.l.s8.bf16 %v1831_v8 }
 0x7b2   : > { %4435 = vmatprep.subr.bf16.mxu0 %v3155_v1  ;;  %4476 = vmatprep.subr.bf16.mxu1 %v3157_v5  ;;  %v1828_v1 = vld [vmem:[%s6709_s10 + $0xa60] sm:$0xff]  ;;  %v1830_v5 = vld [vmem:[%s6709_s10 + $0xa70] sm:$0xff] }
 0x7b3   : > { %v2668_v13 = vunpack.c.l.s8.bf16 %v1828_v1  ;;  %v2670_v17 = vunpack.c.l.s8.bf16 %v1830_v5  ;;  %v2738_v36 = vunpack.c.h.s8.bf16 %v1828_v1  ;;  %v2740_v20 = vunpack.c.h.s8.bf16 %v1830_v5 }
 0x7b4   : > { %v5260_v1 = vcombine.low %v7379_v15, %v7379_v15  ;;  %v5262_v5 = vcombine.low %v7382_v22, %v7382_v22  ;;  %v1623_v15 = vld [vmem:[%s6709_s10 + $0x3f8] sm:$0xff]  ;;  %v1625_v22 = vld [vmem:[%s6709_s10 + $0x408] sm:$0xff] }
 0x7b9   : > { %4436 = vmatpush1.bf16.xpose.msra.mxu0 %v3154_v14  ;;  %4477 = vmatpush1.bf16.xpose.msra.mxu1 %v3156_v19  ;;  %v2739_v14 = vunpack.c.h.s8.bf16 %v1829_v0  ;;  %v2741_v19 = vunpack.c.h.s8.bf16 %v1831_v8 }
 0x7ba   : > { %4487 = vmatprep.subr.bf16.mxu0 %v2109_v10  ;;  %4528 = vmatprep.subr.bf16.mxu1 %v2111_v11  ;;  %v1899_v10 = vld [vmem:[%s6709_s10 + $0xc98] sm:$0xff]  ;;  %v1901_v11 = vld [vmem:[%s6709_s10 + $0xca8] sm:$0xff] }
 0x7c0   : > { %4438 = vmatmul.mubr.bf16.vlgmr.msra.gmra.mrb[48].mxu0 %v5256_v31  ;;  %4479 = vmatmul.mubr.bf16.vlgmr.msra.gmra.mrb[48].mxu1 %v5258_v16  ;;  %v2809_v31 = vunpack.c.l.s8.bf16 %v1899_v10  ;;  %v2811_v16 = vunpack.c.l.s8.bf16 %v1901_v11 }
 0x7c1   : > { %4488 = vmatpush1.bf16.xpose.msra.mxu0 %v2108_v18  ;;  %4529 = vmatpush1.bf16.xpose.msra.mxu1 %v2110_v23  ;;  %v1898_v18 = vld [vmem:[%s6709_s10 + $0xc90] sm:$0xff]  ;;  %v1900_v23 = vld [vmem:[%s6709_s10 + $0xca0] sm:$0xff] }
 0x7c2   : > { %4489 = vmatprep.subr.bf16.mxu0 %v2179_v29  ;;  %4530 = vmatprep.subr.bf16.mxu1 %v2181_v21  ;;  %v2808_v29 = vunpack.c.l.s8.bf16 %v1898_v18  ;;  %v2810_v21 = vunpack.c.l.s8.bf16 %v1900_v23 }
 0x7c3   : > { %4519 = vmatprep.mubr.bf16.mxu0 %v5261_v25  ;;  %4560 = vmatprep.mubr.bf16.mxu1 %v5263_v30  ;;  %v2879_v25 = vunpack.c.h.s8.bf16 %v1899_v10  ;;  %v2881_v30 = vunpack.c.h.s8.bf16 %v1901_v11  ;;  %v7434_v11 = vld [vmem:[%s6707_s26 + $0xe8] sm:$0xff] }
 0x7c9   : > { %4490 = vmatpush1.bf16.xpose.msra.mxu0 %v2178_v24  ;;  %4531 = vmatpush1.bf16.xpose.msra.mxu1 %v2180_v26  ;;  %v1969_v24 = vld [vmem:[%s6709_s10 + $0xec8] sm:$0xff]  ;;  %v1971_v26 = vld [vmem:[%s6709_s10 + $0xed8] sm:$0xff] }
 0x7ca   : > { %4491 = vmatprep.subr.bf16.mxu0 %v2249_v28  ;;  %4532 = vmatprep.subr.bf16.mxu1 %v2251_v34 }
 0x7d1   : > { %4492 = vmatpush1.bf16.xpose.msra.mxu0 %v2248_v37  ;;  %4533 = vmatpush1.bf16.xpose.msra.mxu1 %v2250_v40  ;;  %v2878_v40 = vunpack.c.h.s8.bf16 %v1898_v18  ;;  %v2253_v18 = vunpack.c.l.s8.bf16 %v1623_v15 }
 0x7d2   : > { %4493 = vmatprep.subr.bf16.mxu0 %v2319_v3  ;;  %4534 = vmatprep.subr.bf16.mxu1 %v2321_v42  ;;  %v2880_v3 = vunpack.c.h.s8.bf16 %v1900_v23  ;;  %v2255_v23 = vunpack.c.l.s8.bf16 %v1625_v22 }
 0x7d9   : > { %4494 = vmatpush1.bf16.xpose.msra.mxu0 %v2318_v4  ;;  %4535 = vmatpush1.bf16.xpose.msra.mxu1 %v2320_v43  ;;  %v2949_v4 = vunpack.c.l.s8.bf16 %v1969_v24  ;;  %v2951_v43 = vunpack.c.l.s8.bf16 %v1971_v26 }
 0x7da   : > { %4495 = vmatprep.subr.bf16.mxu0 %v2389_v49  ;;  %4536 = vmatprep.subr.bf16.mxu1 %v2391_v41 }
 0x7e1   : > { %4496 = vmatpush1.bf16.xpose.msra.mxu0 %v2388_v47  ;;  %4537 = vmatpush1.bf16.xpose.msra.mxu1 %v2390_v52  ;;  %v3019_v47 = vunpack.c.h.s8.bf16 %v1969_v24  ;;  %v3021_v52 = vunpack.c.h.s8.bf16 %v1971_v26  ;;  %v1693_v24 = vld [vmem:[%s6709_s10 + $0x628] sm:$0xff]  ;;  %v1695_v26 = vld [vmem:[%s6709_s10 + $0x638] sm:$0xff] }
 0x7e2   : > { %4497 = vmatprep.subr.bf16.mxu0 %v2459_v46  ;;  %4538 = vmatprep.subr.bf16.mxu1 %v2461_v48  ;;  %v2039_v46 = vld [vmem:[%s6709_s10 + $0x10f8] sm:$0xff]  ;;  %v2041_v48 = vld [vmem:[%s6709_s10 + $0x1108] sm:$0xff] }
 0x7e9   : > { %4498 = vmatpush1.bf16.xpose.msra.mxu0 %v2458_v54  ;;  %4539 = vmatpush1.bf16.xpose.msra.mxu1 %v2460_v61  ;;  %v3089_v54 = vunpack.c.l.s8.bf16 %v2039_v46  ;;  %v3091_v61 = vunpack.c.l.s8.bf16 %v2041_v48 }
 0x7ea   : > { %4499 = vmatprep.subr.bf16.mxu0 %v2529_v55  ;;  %4540 = vmatprep.subr.bf16.mxu1 %v2531_v60  ;;  %v2038_v55 = vld [vmem:[%s6709_s10 + $0x10f0] sm:$0xff]  ;;  %v2040_v60 = vld [vmem:[%s6709_s10 + $0x1100] sm:$0xff] }
 0x7eb   : > { %v3088_v57 = vunpack.c.l.s8.bf16 %v2038_v55  ;;  %v3090_v62 = vunpack.c.l.s8.bf16 %v2040_v60  ;;  %v3158_v0 = vunpack.c.h.s8.bf16 %v2038_v55  ;;  %v3160_v8 = vunpack.c.h.s8.bf16 %v2040_v60 }
 0x7f1   : > { %4500 = vmatpush1.bf16.xpose.msra.mxu0 %v2528_v56  ;;  %4541 = vmatpush1.bf16.xpose.msra.mxu1 %v2530_v58  ;;  %v3159_v56 = vunpack.c.h.s8.bf16 %v2039_v46  ;;  %v3161_v58 = vunpack.c.h.s8.bf16 %v2041_v48 }
 0x7f2   : > { %4501 = vmatprep.subr.bf16.mxu0 %v2599_v63  ;;  %4542 = vmatprep.subr.bf16.mxu1 %v2601_v6  ;;  %v1553_v63 = vld [vmem:[%s6709_s10 + $0x1c8] sm:$0xff]  ;;  %v1555_v6 = vld [vmem:[%s6709_s10 + $0x1d8] sm:$0xff] }
 0x7f3   : > { %v2185_v10 = vunpack.c.h.s8.bf16 %v1555_v6 }
 0x7f9   : > { %4502 = vmatpush1.bf16.xpose.msra.mxu0 %v2598_v7  ;;  %4543 = vmatpush1.bf16.xpose.msra.mxu1 %v2600_v12  ;;  %v2113_v7 = vunpack.c.l.s8.bf16 %v1553_v63  ;;  %v2115_v12 = vunpack.c.l.s8.bf16 %v1555_v6 }
 0x7fa   : > { %4503 = vmatprep.subr.bf16.mxu0 %v2669_v2  ;;  %4544 = vmatprep.subr.bf16.mxu1 %v2671_v9  ;;  %v1552_v2 = vld [vmem:[%s6709_s10 + $0x1c0] sm:$0xff]  ;;  %v1554_v9 = vld [vmem:[%s6709_s10 + $0x1d0] sm:$0xff] }
 0x801   : > { %4504 = vmatpush1.bf16.xpose.msra.mxu0 %v2668_v13  ;;  %4545 = vmatpush1.bf16.xpose.msra.mxu1 %v2670_v17  ;;  %v7431_v13 = vld [vmem:[%s6707_s26 + $0xe0] sm:$0xff]  ;;  %v2112_v17 = vunpack.c.l.s8.bf16 %v1552_v2 }
 0x802   : > { %4505 = vmatprep.subr.bf16.mxu0 %v2739_v14  ;;  %4546 = vmatprep.subr.bf16.mxu1 %v2741_v19  ;;  %v2114_v14 = vunpack.c.l.s8.bf16 %v1554_v9  ;;  %v2183_v19 = vunpack.c.h.s8.bf16 %v1553_v63 }
 0x809   : > { %4506 = vmatpush1.bf16.xpose.msra.mxu0 %v2738_v36  ;;  %4547 = vmatpush1.bf16.xpose.msra.mxu1 %v2740_v20  ;;  %v5265_v36 = vcombine.high %v7431_v13, %v7431_v13  ;;  %v5267_v20 = vcombine.high %v7434_v11, %v7434_v11 }
 0x80a   : > { %4507 = vmatprep.subr.bf16.mxu0 %v2809_v31  ;;  %4548 = vmatprep.subr.bf16.mxu1 %v2811_v16  ;;  %v2182_v31 = vunpack.c.h.s8.bf16 %v1552_v2  ;;  %v2184_v16 = vunpack.c.h.s8.bf16 %v1554_v9 }
 0x811   : > { %4508 = vmatpush1.bf16.xpose.msra.mxu0 %v2808_v29  ;;  %4549 = vmatpush1.bf16.xpose.msra.mxu1 %v2810_v21  ;;  %v1622_v29 = vld [vmem:[%s6709_s10 + $0x3f0] sm:$0xff]  ;;  %v1624_v21 = vld [vmem:[%s6709_s10 + $0x400] sm:$0xff] }
 0x812   : > { %4509 = vmatprep.subr.bf16.mxu0 %v2879_v25  ;;  %4550 = vmatprep.subr.bf16.mxu1 %v2881_v30  ;;  %v2252_v25 = vunpack.c.l.s8.bf16 %v1622_v29  ;;  %v2254_v30 = vunpack.c.l.s8.bf16 %v1624_v21 }
 0x813   : > { %v4357_v27 = vpop.f32.mrb[44].mxu0  ;;  %v4398_v33 = vpop.f32.mrb[44].mxu1 }
 0x814   : > { %v4358_v28 = vadd.f32 %v4357_v27, %v7360_v44  ;;  %v4359_v34 = vpop.f32.mrb[45].mxu0  ;;  %v4400_v39 = vpop.f32.mrb[45].mxu1  ;;  %v1968_v44 = vld [vmem:[%s6709_s10 + $0xec0] sm:$0xff]  ;;  %v2323_v27 = vunpack.c.h.s8.bf16 %v1623_v15 }
 0x815   : > { %v4360_v32 = vadd.f32 %v4359_v34, %v7362_v51  ;;  %v4361_v37 = vpop.f32.mrb[46].mxu0  ;;  %v4402_v42 = vpop.f32.mrb[46].mxu1  ;;  %v1970_v51 = vld [vmem:[%s6709_s10 + $0xed0] sm:$0xff]  ;;  %v2948_v45 = vunpack.c.l.s8.bf16 %v1968_v44  ;;  %v3018_v53 = vunpack.c.h.s8.bf16 %v1968_v44  ;;  %v2324_v34 = vunpack.c.h.s8.bf16 %v1624_v21 }
 0x816   : > { %v7412_v35 = vadd.f32 %v4398_v33, %v4358_v28  ;;  %v4362_v38 = vpop.f32.mrb[47].mxu0  ;;  %v4403_v49 = vpop.f32.mrb[47].mxu1  ;;  %v2950_v50 = vunpack.c.l.s8.bf16 %v1970_v51  ;;  %v3020_v59 = vunpack.c.h.s8.bf16 %v1970_v51  ;;  %v2325_v33 = vunpack.c.h.s8.bf16 %v1625_v22  ;;  %v1692_v37 = vld [vmem:[%s6709_s10 + $0x620] sm:$0xff] }
 0x817   : > { %v7414_v41 = vadd.f32 %v4400_v39, %v4360_v32  ;;  %v2322_v28 = vunpack.c.h.s8.bf16 %v1622_v29  ;;  %v2393_v39 = vunpack.c.l.s8.bf16 %v1693_v24  ;;  %v2395_v32 = vunpack.c.l.s8.bf16 %v1695_v26  ;;  %v1765_v49 = vld [vmem:[%s6709_s10 + $0x868] sm:$0xff] }
 0x818   : > { %v2463_v38 = vunpack.c.h.s8.bf16 %v1693_v24  ;;  %v2462_v44 = vunpack.c.h.s8.bf16 %v1692_v37 }
 0x819   : > { %4510 = vmatpush1.bf16.xpose.msra.mxu0 %v2878_v40  ;;  %4551 = vmatpush1.bf16.xpose.msra.mxu1 %v2880_v3  ;;  %v1694_v40 = vld [vmem:[%s6709_s10 + $0x630] sm:$0xff]  ;;  %v2392_v3 = vunpack.c.l.s8.bf16 %v1692_v37 }
 0x81a   : > { %4511 = vmatprep.subr.bf16.mxu0 %v2949_v4  ;;  %4552 = vmatprep.subr.bf16.mxu1 %v2951_v43  ;;  %v2394_v42 = vunpack.c.l.s8.bf16 %v1694_v40  ;;  %v2465_v4 = vunpack.c.h.s8.bf16 %v1695_v26  ;;  %v1763_v43 = vld [vmem:[%s6709_s10 + $0x858] sm:$0xff]  ;;  %v2464_v51 = vunpack.c.h.s8.bf16 %v1694_v40 }
 0x821   : > { %4512 = vmatpush1.bf16.xpose.msra.mxu0 %v2948_v45  ;;  %4553 = vmatpush1.bf16.xpose.msra.mxu1 %v2950_v50  ;;  %v2533_v45 = vunpack.c.l.s8.bf16 %v1763_v43  ;;  %v2535_v50 = vunpack.c.l.s8.bf16 %v1765_v49 }
 0x822   : > { %4513 = vmatprep.subr.bf16.mxu0 %v3019_v47  ;;  %4554 = vmatprep.subr.bf16.mxu1 %v3021_v52  ;;  %v1762_v47 = vld [vmem:[%s6709_s10 + $0x850] sm:$0xff]  ;;  %v1764_v52 = vld [vmem:[%s6709_s10 + $0x860] sm:$0xff] }
 0x823   : > { %v2532_v46 = vunpack.c.l.s8.bf16 %v1762_v47  ;;  %v2534_v48 = vunpack.c.l.s8.bf16 %v1764_v52  ;;  %v2602_v55 = vunpack.c.h.s8.bf16 %v1762_v47  ;;  %v2604_v60 = vunpack.c.h.s8.bf16 %v1764_v52 }
 0x829   : > { %4514 = vmatpush1.bf16.xpose.msra.mxu0 %v3018_v53  ;;  %4555 = vmatpush1.bf16.xpose.msra.mxu1 %v3020_v59  ;;  %v2603_v53 = vunpack.c.h.s8.bf16 %v1763_v43  ;;  %v2605_v59 = vunpack.c.h.s8.bf16 %v1765_v49 }
 0x82a   : > { %4515 = vmatprep.subr.bf16.mxu0 %v3089_v54  ;;  %4556 = vmatprep.subr.bf16.mxu1 %v3091_v61  ;;  %v1833_v54 = vld [vmem:[%s6709_s10 + $0xa88] sm:$0xff]  ;;  %v1835_v61 = vld [vmem:[%s6709_s10 + $0xa98] sm:$0xff] }
 0x831   : > { %4516 = vmatpush1.bf16.xpose.msra.mxu0 %v3088_v57  ;;  %4557 = vmatpush1.bf16.xpose.msra.mxu1 %v3090_v62  ;;  %v2673_v57 = vunpack.c.l.s8.bf16 %v1833_v54  ;;  %v2675_v62 = vunpack.c.l.s8.bf16 %v1835_v61 }
 0x832   : > { %4517 = vmatprep.subr.bf16.mxu0 %v3159_v56  ;;  %4558 = vmatprep.subr.bf16.mxu1 %v3161_v58  ;;  %v1832_v56 = vld [vmem:[%s6709_s10 + $0xa80] sm:$0xff]  ;;  %v1834_v58 = vld [vmem:[%s6709_s10 + $0xa90] sm:$0xff] }
 0x833   : > { %v2672_v63 = vunpack.c.l.s8.bf16 %v1832_v56  ;;  %v2674_v6 = vunpack.c.l.s8.bf16 %v1834_v58  ;;  %v2742_v2 = vunpack.c.h.s8.bf16 %v1832_v56  ;;  %v2744_v9 = vunpack.c.h.s8.bf16 %v1834_v58 }
 0x834   : > { %v5264_v56 = vcombine.low %v7431_v13, %v7431_v13  ;;  %v5266_v58 = vcombine.low %v7434_v11, %v7434_v11  ;;  %v1627_v13 = vld [vmem:[%s6709_s10 + $0x418] sm:$0xff]  ;;  %v1629_v11 = vld [vmem:[%s6709_s10 + $0x428] sm:$0xff] }
 0x839   : > { %4518 = vmatpush1.bf16.xpose.msra.mxu0 %v3158_v0  ;;  %4559 = vmatpush1.bf16.xpose.msra.mxu1 %v3160_v8  ;;  %v2743_v0 = vunpack.c.h.s8.bf16 %v1833_v54  ;;  %v2745_v8 = vunpack.c.h.s8.bf16 %v1835_v61 }
 0x83a   : > { %4569 = vmatprep.subr.bf16.mxu0 %v2113_v7  ;;  %4610 = vmatprep.subr.bf16.mxu1 %v2115_v12  ;;  %v1903_v7 = vld [vmem:[%s6709_s10 + $0xcb8] sm:$0xff]  ;;  %v1905_v12 = vld [vmem:[%s6709_s10 + $0xcc8] sm:$0xff] }
 0x840   : > { %4520 = vmatmul.mubr.bf16.vlgmr.msra.gmra.mrb[52].mxu0 %v5260_v1  ;;  %4561 = vmatmul.mubr.bf16.vlgmr.msra.gmra.mrb[52].mxu1 %v5262_v5  ;;  %v2813_v1 = vunpack.c.l.s8.bf16 %v1903_v7  ;;  %v2815_v5 = vunpack.c.l.s8.bf16 %v1905_v12 }
 0x841   : > { %4570 = vmatpush1.bf16.xpose.msra.mxu0 %v2112_v17  ;;  %4611 = vmatpush1.bf16.xpose.msra.mxu1 %v2114_v14  ;;  %v1902_v17 = vld [vmem:[%s6709_s10 + $0xcb0] sm:$0xff]  ;;  %v1904_v14 = vld [vmem:[%s6709_s10 + $0xcc0] sm:$0xff] }
 0x842   : > { %4571 = vmatprep.subr.bf16.mxu0 %v2183_v19  ;;  %4612 = vmatprep.subr.bf16.mxu1 %v2185_v10  ;;  %v2812_v19 = vunpack.c.l.s8.bf16 %v1902_v17  ;;  %v2814_v10 = vunpack.c.l.s8.bf16 %v1904_v14 }
 0x843   : > { %4601 = vmatprep.mubr.bf16.mxu0 %v5265_v36  ;;  %4642 = vmatprep.mubr.bf16.mxu1 %v5267_v20  ;;  %v2883_v36 = vunpack.c.h.s8.bf16 %v1903_v7  ;;  %v2885_v20 = vunpack.c.h.s8.bf16 %v1905_v12  ;;  %v7486_v12 = vld [vmem:[%s6707_s26 + $0xf8] sm:$0xff] }
 0x849   : > { %4572 = vmatpush1.bf16.xpose.msra.mxu0 %v2182_v31  ;;  %4613 = vmatpush1.bf16.xpose.msra.mxu1 %v2184_v16  ;;  %v1973_v31 = vld [vmem:[%s6709_s10 + $0xee8] sm:$0xff]  ;;  %v1975_v16 = vld [vmem:[%s6709_s10 + $0xef8] sm:$0xff] }
 0x84a   : > { %4573 = vmatprep.subr.bf16.mxu0 %v2253_v18  ;;  %4614 = vmatprep.subr.bf16.mxu1 %v2255_v23 }
 0x851   : > { %4574 = vmatpush1.bf16.xpose.msra.mxu0 %v2252_v25  ;;  %4615 = vmatpush1.bf16.xpose.msra.mxu1 %v2254_v30  ;;  %v2882_v30 = vunpack.c.h.s8.bf16 %v1902_v17  ;;  %v2257_v17 = vunpack.c.l.s8.bf16 %v1627_v13 }
 0x852   : > { %4575 = vmatprep.subr.bf16.mxu0 %v2323_v27  ;;  %4616 = vmatprep.subr.bf16.mxu1 %v2325_v33  ;;  %v2884_v27 = vunpack.c.h.s8.bf16 %v1904_v14  ;;  %v2259_v14 = vunpack.c.l.s8.bf16 %v1629_v11 }
 0x859   : > { %4576 = vmatpush1.bf16.xpose.msra.mxu0 %v2322_v28  ;;  %4617 = vmatpush1.bf16.xpose.msra.mxu1 %v2324_v34  ;;  %v2953_v28 = vunpack.c.l.s8.bf16 %v1973_v31  ;;  %v2955_v34 = vunpack.c.l.s8.bf16 %v1975_v16 }
 0x85a   : > { %4577 = vmatprep.subr.bf16.mxu0 %v2393_v39  ;;  %4618 = vmatprep.subr.bf16.mxu1 %v2395_v32 }
 0x861   : > { %4578 = vmatpush1.bf16.xpose.msra.mxu0 %v2392_v3  ;;  %4619 = vmatpush1.bf16.xpose.msra.mxu1 %v2394_v42  ;;  %v3023_v3 = vunpack.c.h.s8.bf16 %v1973_v31  ;;  %v3025_v42 = vunpack.c.h.s8.bf16 %v1975_v16  ;;  %v1697_v31 = vld [vmem:[%s6709_s10 + $0x648] sm:$0xff]  ;;  %v1699_v16 = vld [vmem:[%s6709_s10 + $0x658] sm:$0xff] }
 0x862   : > { %4579 = vmatprep.subr.bf16.mxu0 %v2463_v38  ;;  %4620 = vmatprep.subr.bf16.mxu1 %v2465_v4  ;;  %v2043_v38 = vld [vmem:[%s6709_s10 + $0x1118] sm:$0xff]  ;;  %v2045_v4 = vld [vmem:[%s6709_s10 + $0x1128] sm:$0xff] }
 0x869   : > { %4580 = vmatpush1.bf16.xpose.msra.mxu0 %v2462_v44  ;;  %4621 = vmatpush1.bf16.xpose.msra.mxu1 %v2464_v51  ;;  %v3093_v44 = vunpack.c.l.s8.bf16 %v2043_v38  ;;  %v3095_v51 = vunpack.c.l.s8.bf16 %v2045_v4 }
 0x86a   : > { %4581 = vmatprep.subr.bf16.mxu0 %v2533_v45  ;;  %4622 = vmatprep.subr.bf16.mxu1 %v2535_v50  ;;  %v2042_v45 = vld [vmem:[%s6709_s10 + $0x1110] sm:$0xff]  ;;  %v2044_v50 = vld [vmem:[%s6709_s10 + $0x1120] sm:$0xff] }
 0x86b   : > { %v3092_v47 = vunpack.c.l.s8.bf16 %v2042_v45  ;;  %v3094_v52 = vunpack.c.l.s8.bf16 %v2044_v50  ;;  %v3162_v54 = vunpack.c.h.s8.bf16 %v2042_v45  ;;  %v3164_v61 = vunpack.c.h.s8.bf16 %v2044_v50 }
 0x871   : > { %4582 = vmatpush1.bf16.xpose.msra.mxu0 %v2532_v46  ;;  %4623 = vmatpush1.bf16.xpose.msra.mxu1 %v2534_v48  ;;  %v3163_v46 = vunpack.c.h.s8.bf16 %v2043_v38  ;;  %v3165_v48 = vunpack.c.h.s8.bf16 %v2045_v4 }
 0x872   : > { %4583 = vmatprep.subr.bf16.mxu0 %v2603_v53  ;;  %4624 = vmatprep.subr.bf16.mxu1 %v2605_v59  ;;  %v1557_v53 = vld [vmem:[%s6709_s10 + $0x1e8] sm:$0xff]  ;;  %v1559_v59 = vld [vmem:[%s6709_s10 + $0x1f8] sm:$0xff] }
 0x873   : > { %v2189_v7 = vunpack.c.h.s8.bf16 %v1559_v59 }
 0x879   : > { %4584 = vmatpush1.bf16.xpose.msra.mxu0 %v2602_v55  ;;  %4625 = vmatpush1.bf16.xpose.msra.mxu1 %v2604_v60  ;;  %v2117_v55 = vunpack.c.l.s8.bf16 %v1557_v53  ;;  %v2119_v60 = vunpack.c.l.s8.bf16 %v1559_v59 }
 0x87a   : > { %4585 = vmatprep.subr.bf16.mxu0 %v2673_v57  ;;  %4626 = vmatprep.subr.bf16.mxu1 %v2675_v62  ;;  %v1556_v57 = vld [vmem:[%s6709_s10 + $0x1e0] sm:$0xff]  ;;  %v1558_v62 = vld [vmem:[%s6709_s10 + $0x1f0] sm:$0xff] }
 0x881   : > { %4586 = vmatpush1.bf16.xpose.msra.mxu0 %v2672_v63  ;;  %4627 = vmatpush1.bf16.xpose.msra.mxu1 %v2674_v6  ;;  %v7483_v63 = vld [vmem:[%s6707_s26 + $0xf0] sm:$0xff]  ;;  %v2116_v6 = vunpack.c.l.s8.bf16 %v1556_v57 }
 0x882   : > { %4587 = vmatprep.subr.bf16.mxu0 %v2743_v0  ;;  %4628 = vmatprep.subr.bf16.mxu1 %v2745_v8  ;;  %v2118_v0 = vunpack.c.l.s8.bf16 %v1558_v62  ;;  %v2187_v8 = vunpack.c.h.s8.bf16 %v1557_v53 }
 0x889   : > { %4588 = vmatpush1.bf16.xpose.msra.mxu0 %v2742_v2  ;;  %4629 = vmatpush1.bf16.xpose.msra.mxu1 %v2744_v9  ;;  %v5269_v2 = vcombine.high %v7483_v63, %v7483_v63  ;;  %v5271_v9 = vcombine.high %v7486_v12, %v7486_v12 }
 0x88a   : > { %4589 = vmatprep.subr.bf16.mxu0 %v2813_v1  ;;  %4630 = vmatprep.subr.bf16.mxu1 %v2815_v5  ;;  %v2186_v1 = vunpack.c.h.s8.bf16 %v1556_v57  ;;  %v2188_v5 = vunpack.c.h.s8.bf16 %v1558_v62 }
 0x891   : > { %4590 = vmatpush1.bf16.xpose.msra.mxu0 %v2812_v19  ;;  %4631 = vmatpush1.bf16.xpose.msra.mxu1 %v2814_v10  ;;  %v1626_v19 = vld [vmem:[%s6709_s10 + $0x410] sm:$0xff]  ;;  %v1628_v10 = vld [vmem:[%s6709_s10 + $0x420] sm:$0xff] }
 0x892   : > { %4591 = vmatprep.subr.bf16.mxu0 %v2883_v36  ;;  %4632 = vmatprep.subr.bf16.mxu1 %v2885_v20  ;;  %v2256_v36 = vunpack.c.l.s8.bf16 %v1626_v19  ;;  %v2258_v20 = vunpack.c.l.s8.bf16 %v1628_v10 }
 0x893   : > { %v4439_v15 = vpop.f32.mrb[48].mxu0  ;;  %v4480_v22 = vpop.f32.mrb[48].mxu1 }
 0x894   : > { %v4440_v18 = vadd.f32 %v4439_v15, %v7412_v35  ;;  %v4441_v23 = vpop.f32.mrb[49].mxu0  ;;  %v4482_v29 = vpop.f32.mrb[49].mxu1  ;;  %v1972_v35 = vld [vmem:[%s6709_s10 + $0xee0] sm:$0xff]  ;;  %v2327_v15 = vunpack.c.h.s8.bf16 %v1627_v13 }
 0x895   : > { %v4442_v21 = vadd.f32 %v4441_v23, %v7414_v41  ;;  %v4443_v25 = vpop.f32.mrb[50].mxu0  ;;  %v4484_v33 = vpop.f32.mrb[50].mxu1  ;;  %v1974_v41 = vld [vmem:[%s6709_s10 + $0xef0] sm:$0xff]  ;;  %v2952_v37 = vunpack.c.l.s8.bf16 %v1972_v35  ;;  %v3022_v43 = vunpack.c.h.s8.bf16 %v1972_v35  ;;  %v2328_v23 = vunpack.c.h.s8.bf16 %v1628_v10 }
 0x896   : > { %v7464_v24 = vadd.f32 %v4480_v22, %v4440_v18  ;;  %v4444_v26 = vpop.f32.mrb[51].mxu0  ;;  %v4485_v39 = vpop.f32.mrb[51].mxu1  ;;  %v2954_v40 = vunpack.c.l.s8.bf16 %v1974_v41  ;;  %v3024_v49 = vunpack.c.h.s8.bf16 %v1974_v41  ;;  %v2329_v22 = vunpack.c.h.s8.bf16 %v1629_v11  ;;  %v1696_v25 = vld [vmem:[%s6709_s10 + $0x640] sm:$0xff] }
 0x897   : > { %v7466_v32 = vadd.f32 %v4482_v29, %v4442_v21  ;;  %v2326_v18 = vunpack.c.h.s8.bf16 %v1626_v19  ;;  %v2397_v29 = vunpack.c.l.s8.bf16 %v1697_v31  ;;  %v2399_v21 = vunpack.c.l.s8.bf16 %v1699_v16  ;;  %v1769_v39 = vld [vmem:[%s6709_s10 + $0x888] sm:$0xff] }
 0x898   : > { %v2467_v26 = vunpack.c.h.s8.bf16 %v1697_v31  ;;  %v2466_v35 = vunpack.c.h.s8.bf16 %v1696_v25 }
 0x899   : > { %4592 = vmatpush1.bf16.xpose.msra.mxu0 %v2882_v30  ;;  %4633 = vmatpush1.bf16.xpose.msra.mxu1 %v2884_v27  ;;  %v1698_v30 = vld [vmem:[%s6709_s10 + $0x650] sm:$0xff]  ;;  %v2396_v27 = vunpack.c.l.s8.bf16 %v1696_v25 }
 0x89a   : > { %4593 = vmatprep.subr.bf16.mxu0 %v2953_v28  ;;  %4634 = vmatprep.subr.bf16.mxu1 %v2955_v34  ;;  %v2398_v33 = vunpack.c.l.s8.bf16 %v1698_v30  ;;  %v2469_v28 = vunpack.c.h.s8.bf16 %v1699_v16  ;;  %v1767_v34 = vld [vmem:[%s6709_s10 + $0x878] sm:$0xff]  ;;  %v2468_v41 = vunpack.c.h.s8.bf16 %v1698_v30 }
 0x8a1   : > { %4594 = vmatpush1.bf16.xpose.msra.mxu0 %v2952_v37  ;;  %4635 = vmatpush1.bf16.xpose.msra.mxu1 %v2954_v40  ;;  %v2537_v37 = vunpack.c.l.s8.bf16 %v1767_v34  ;;  %v2539_v40 = vunpack.c.l.s8.bf16 %v1769_v39 }
 0x8a2   : > { %4595 = vmatprep.subr.bf16.mxu0 %v3023_v3  ;;  %4636 = vmatprep.subr.bf16.mxu1 %v3025_v42  ;;  %v1766_v3 = vld [vmem:[%s6709_s10 + $0x870] sm:$0xff]  ;;  %v1768_v42 = vld [vmem:[%s6709_s10 + $0x880] sm:$0xff] }
 0x8a3   : > { %v2536_v38 = vunpack.c.l.s8.bf16 %v1766_v3  ;;  %v2538_v4 = vunpack.c.l.s8.bf16 %v1768_v42  ;;  %v2606_v45 = vunpack.c.h.s8.bf16 %v1766_v3  ;;  %v2608_v50 = vunpack.c.h.s8.bf16 %v1768_v42 }
 0x8a9   : > { %4596 = vmatpush1.bf16.xpose.msra.mxu0 %v3022_v43  ;;  %4637 = vmatpush1.bf16.xpose.msra.mxu1 %v3024_v49  ;;  %v2607_v43 = vunpack.c.h.s8.bf16 %v1767_v34  ;;  %v2609_v49 = vunpack.c.h.s8.bf16 %v1769_v39 }
 0x8aa   : > { %4597 = vmatprep.subr.bf16.mxu0 %v3093_v44  ;;  %4638 = vmatprep.subr.bf16.mxu1 %v3095_v51  ;;  %v1837_v44 = vld [vmem:[%s6709_s10 + $0xaa8] sm:$0xff]  ;;  %v1839_v51 = vld [vmem:[%s6709_s10 + $0xab8] sm:$0xff] }
 0x8b1   : > { %4598 = vmatpush1.bf16.xpose.msra.mxu0 %v3092_v47  ;;  %4639 = vmatpush1.bf16.xpose.msra.mxu1 %v3094_v52  ;;  %v2677_v47 = vunpack.c.l.s8.bf16 %v1837_v44  ;;  %v2679_v52 = vunpack.c.l.s8.bf16 %v1839_v51 }
 0x8b2   : > { %4599 = vmatprep.subr.bf16.mxu0 %v3163_v46  ;;  %4640 = vmatprep.subr.bf16.mxu1 %v3165_v48  ;;  %v1836_v46 = vld [vmem:[%s6709_s10 + $0xaa0] sm:$0xff]  ;;  %v1838_v48 = vld [vmem:[%s6709_s10 + $0xab0] sm:$0xff] }
 0x8b3   : > { %v2676_v53 = vunpack.c.l.s8.bf16 %v1836_v46  ;;  %v2678_v59 = vunpack.c.l.s8.bf16 %v1838_v48  ;;  %v2746_v57 = vunpack.c.h.s8.bf16 %v1836_v46  ;;  %v2748_v62 = vunpack.c.h.s8.bf16 %v1838_v48 }
 0x8b4   : > { %v5268_v46 = vcombine.low %v7483_v63, %v7483_v63  ;;  %v5270_v48 = vcombine.low %v7486_v12, %v7486_v12  ;;  %v1631_v63 = vld [vmem:[%s6709_s10 + $0x438] sm:$0xff]  ;;  %v1633_v12 = vld [vmem:[%s6709_s10 + $0x448] sm:$0xff] }
 0x8b9   : > { %4600 = vmatpush1.bf16.xpose.msra.mxu0 %v3162_v54  ;;  %4641 = vmatpush1.bf16.xpose.msra.mxu1 %v3164_v61  ;;  %v2747_v54 = vunpack.c.h.s8.bf16 %v1837_v44  ;;  %v2749_v61 = vunpack.c.h.s8.bf16 %v1839_v51 }
 0x8ba   : > { %4651 = vmatprep.subr.bf16.mxu0 %v2117_v55  ;;  %4692 = vmatprep.subr.bf16.mxu1 %v2119_v60  ;;  %v1907_v55 = vld [vmem:[%s6709_s10 + $0xcd8] sm:$0xff]  ;;  %v1909_v60 = vld [vmem:[%s6709_s10 + $0xce8] sm:$0xff] }
 0x8c0   : > { %4602 = vmatmul.mubr.bf16.vlgmr.msra.gmra.mrb[56].mxu0 %v5264_v56  ;;  %4643 = vmatmul.mubr.bf16.vlgmr.msra.gmra.mrb[56].mxu1 %v5266_v58  ;;  %v2817_v56 = vunpack.c.l.s8.bf16 %v1907_v55  ;;  %v2819_v58 = vunpack.c.l.s8.bf16 %v1909_v60 }
 0x8c1   : > { %4652 = vmatpush1.bf16.xpose.msra.mxu0 %v2116_v6  ;;  %4693 = vmatpush1.bf16.xpose.msra.mxu1 %v2118_v0  ;;  %v1906_v6 = vld [vmem:[%s6709_s10 + $0xcd0] sm:$0xff]  ;;  %v1908_v0 = vld [vmem:[%s6709_s10 + $0xce0] sm:$0xff] }
 0x8c2   : > { %4653 = vmatprep.subr.bf16.mxu0 %v2187_v8  ;;  %4694 = vmatprep.subr.bf16.mxu1 %v2189_v7  ;;  %v2816_v8 = vunpack.c.l.s8.bf16 %v1906_v6  ;;  %v2818_v7 = vunpack.c.l.s8.bf16 %v1908_v0 }
 0x8c3   : > { %4683 = vmatprep.mubr.bf16.mxu0 %v5269_v2  ;;  %4724 = vmatprep.mubr.bf16.mxu1 %v5271_v9  ;;  %v2887_v2 = vunpack.c.h.s8.bf16 %v1907_v55  ;;  %v2889_v9 = vunpack.c.h.s8.bf16 %v1909_v60  ;;  %v7538_v60 = vld [vmem:[%s6707_s26 + $0x108] sm:$0xff] }
 0x8c9   : > { %4654 = vmatpush1.bf16.xpose.msra.mxu0 %v2186_v1  ;;  %4695 = vmatpush1.bf16.xpose.msra.mxu1 %v2188_v5  ;;  %v1977_v1 = vld [vmem:[%s6709_s10 + $0xf08] sm:$0xff]  ;;  %v1979_v5 = vld [vmem:[%s6709_s10 + $0xf18] sm:$0xff] }
 0x8ca   : > { %4655 = vmatprep.subr.bf16.mxu0 %v2257_v17  ;;  %4696 = vmatprep.subr.bf16.mxu1 %v2259_v14 }
 0x8d1   : > { %4656 = vmatpush1.bf16.xpose.msra.mxu0 %v2256_v36  ;;  %4697 = vmatpush1.bf16.xpose.msra.mxu1 %v2258_v20  ;;  %v2886_v20 = vunpack.c.h.s8.bf16 %v1906_v6  ;;  %v2261_v6 = vunpack.c.l.s8.bf16 %v1631_v63 }
 0x8d2   : > { %4657 = vmatprep.subr.bf16.mxu0 %v2327_v15  ;;  %4698 = vmatprep.subr.bf16.mxu1 %v2329_v22  ;;  %v2888_v15 = vunpack.c.h.s8.bf16 %v1908_v0  ;;  %v2263_v0 = vunpack.c.l.s8.bf16 %v1633_v12 }
 0x8d9   : > { %4658 = vmatpush1.bf16.xpose.msra.mxu0 %v2326_v18  ;;  %4699 = vmatpush1.bf16.xpose.msra.mxu1 %v2328_v23  ;;  %v2957_v18 = vunpack.c.l.s8.bf16 %v1977_v1  ;;  %v2959_v23 = vunpack.c.l.s8.bf16 %v1979_v5 }
 0x8da   : > { %4659 = vmatprep.subr.bf16.mxu0 %v2397_v29  ;;  %4700 = vmatprep.subr.bf16.mxu1 %v2399_v21 }
 0x8e1   : > { %4660 = vmatpush1.bf16.xpose.msra.mxu0 %v2396_v27  ;;  %4701 = vmatpush1.bf16.xpose.msra.mxu1 %v2398_v33  ;;  %v3027_v27 = vunpack.c.h.s8.bf16 %v1977_v1  ;;  %v3029_v33 = vunpack.c.h.s8.bf16 %v1979_v5  ;;  %v1701_v1 = vld [vmem:[%s6709_s10 + $0x668] sm:$0xff]  ;;  %v1703_v5 = vld [vmem:[%s6709_s10 + $0x678] sm:$0xff] }
 0x8e2   : > { %4661 = vmatprep.subr.bf16.mxu0 %v2467_v26  ;;  %4702 = vmatprep.subr.bf16.mxu1 %v2469_v28  ;;  %v2047_v26 = vld [vmem:[%s6709_s10 + $0x1138] sm:$0xff]  ;;  %v2049_v28 = vld [vmem:[%s6709_s10 + $0x1148] sm:$0xff] }
 0x8e9   : > { %4662 = vmatpush1.bf16.xpose.msra.mxu0 %v2466_v35  ;;  %4703 = vmatpush1.bf16.xpose.msra.mxu1 %v2468_v41  ;;  %v3097_v35 = vunpack.c.l.s8.bf16 %v2047_v26  ;;  %v3099_v41 = vunpack.c.l.s8.bf16 %v2049_v28 }
 0x8ea   : > { %4663 = vmatprep.subr.bf16.mxu0 %v2537_v37  ;;  %4704 = vmatprep.subr.bf16.mxu1 %v2539_v40  ;;  %v2046_v37 = vld [vmem:[%s6709_s10 + $0x1130] sm:$0xff]  ;;  %v2048_v40 = vld [vmem:[%s6709_s10 + $0x1140] sm:$0xff] }
 0x8eb   : > { %v3096_v3 = vunpack.c.l.s8.bf16 %v2046_v37  ;;  %v3098_v42 = vunpack.c.l.s8.bf16 %v2048_v40  ;;  %v3166_v44 = vunpack.c.h.s8.bf16 %v2046_v37  ;;  %v3168_v51 = vunpack.c.h.s8.bf16 %v2048_v40 }
 0x8f1   : > { %4664 = vmatpush1.bf16.xpose.msra.mxu0 %v2536_v38  ;;  %4705 = vmatpush1.bf16.xpose.msra.mxu1 %v2538_v4  ;;  %v3167_v38 = vunpack.c.h.s8.bf16 %v2047_v26  ;;  %v3169_v4 = vunpack.c.h.s8.bf16 %v2049_v28 }
 0x8f2   : > { %4665 = vmatprep.subr.bf16.mxu0 %v2607_v43  ;;  %4706 = vmatprep.subr.bf16.mxu1 %v2609_v49  ;;  %v1561_v43 = vld [vmem:[%s6709_s10 + $0x208] sm:$0xff]  ;;  %v1563_v49 = vld [vmem:[%s6709_s10 + $0x218] sm:$0xff] }
 0x8f3   : > { %v2193_v55 = vunpack.c.h.s8.bf16 %v1563_v49 }
 0x8f9   : > { %4666 = vmatpush1.bf16.xpose.msra.mxu0 %v2606_v45  ;;  %4707 = vmatpush1.bf16.xpose.msra.mxu1 %v2608_v50  ;;  %v2121_v45 = vunpack.c.l.s8.bf16 %v1561_v43  ;;  %v2123_v50 = vunpack.c.l.s8.bf16 %v1563_v49 }
 0x8fa   : > { %4667 = vmatprep.subr.bf16.mxu0 %v2677_v47  ;;  %4708 = vmatprep.subr.bf16.mxu1 %v2679_v52  ;;  %v1560_v47 = vld [vmem:[%s6709_s10 + $0x200] sm:$0xff]  ;;  %v1562_v52 = vld [vmem:[%s6709_s10 + $0x210] sm:$0xff] }
 0x901   : > { %4668 = vmatpush1.bf16.xpose.msra.mxu0 %v2676_v53  ;;  %4709 = vmatpush1.bf16.xpose.msra.mxu1 %v2678_v59  ;;  %v7535_v53 = vld [vmem:[%s6707_s26 + $0x100] sm:$0xff]  ;;  %v2120_v59 = vunpack.c.l.s8.bf16 %v1560_v47 }
 0x902   : > { %4669 = vmatprep.subr.bf16.mxu0 %v2747_v54  ;;  %4710 = vmatprep.subr.bf16.mxu1 %v2749_v61  ;;  %v2122_v54 = vunpack.c.l.s8.bf16 %v1562_v52  ;;  %v2191_v61 = vunpack.c.h.s8.bf16 %v1561_v43 }
 0x909   : > { %4670 = vmatpush1.bf16.xpose.msra.mxu0 %v2746_v57  ;;  %4711 = vmatpush1.bf16.xpose.msra.mxu1 %v2748_v62  ;;  %v5273_v57 = vcombine.high %v7535_v53, %v7535_v53  ;;  %v5275_v62 = vcombine.high %v7538_v60, %v7538_v60 }
 0x90a   : > { %4671 = vmatprep.subr.bf16.mxu0 %v2817_v56  ;;  %4712 = vmatprep.subr.bf16.mxu1 %v2819_v58  ;;  %v2190_v56 = vunpack.c.h.s8.bf16 %v1560_v47  ;;  %v2192_v58 = vunpack.c.h.s8.bf16 %v1562_v52 }
 0x911   : > { %4672 = vmatpush1.bf16.xpose.msra.mxu0 %v2816_v8  ;;  %4713 = vmatpush1.bf16.xpose.msra.mxu1 %v2818_v7  ;;  %v1630_v8 = vld [vmem:[%s6709_s10 + $0x430] sm:$0xff]  ;;  %v1632_v7 = vld [vmem:[%s6709_s10 + $0x440] sm:$0xff] }
 0x912   : > { %4673 = vmatprep.subr.bf16.mxu0 %v2887_v2  ;;  %4714 = vmatprep.subr.bf16.mxu1 %v2889_v9  ;;  %v2260_v2 = vunpack.c.l.s8.bf16 %v1630_v8  ;;  %v2262_v9 = vunpack.c.l.s8.bf16 %v1632_v7 }
 0x913   : > { %v4521_v13 = vpop.f32.mrb[52].mxu0  ;;  %v4562_v11 = vpop.f32.mrb[52].mxu1 }
 0x914   : > { %v4522_v17 = vadd.f32 %v4521_v13, %v7464_v24  ;;  %v4523_v14 = vpop.f32.mrb[53].mxu0  ;;  %v4564_v19 = vpop.f32.mrb[53].mxu1  ;;  %v1976_v24 = vld [vmem:[%s6709_s10 + $0xf00] sm:$0xff]  ;;  %v2331_v13 = vunpack.c.h.s8.bf16 %v1631_v63 }
 0x915   : > { %v4524_v10 = vadd.f32 %v4523_v14, %v7466_v32  ;;  %v4525_v36 = vpop.f32.mrb[54].mxu0  ;;  %v4566_v22 = vpop.f32.mrb[54].mxu1  ;;  %v1978_v32 = vld [vmem:[%s6709_s10 + $0xf10] sm:$0xff]  ;;  %v2956_v25 = vunpack.c.l.s8.bf16 %v1976_v24  ;;  %v3026_v34 = vunpack.c.h.s8.bf16 %v1976_v24  ;;  %v2332_v14 = vunpack.c.h.s8.bf16 %v1632_v7 }
 0x916   : > { %v7516_v31 = vadd.f32 %v4562_v11, %v4522_v17  ;;  %v4526_v16 = vpop.f32.mrb[55].mxu0  ;;  %v4567_v29 = vpop.f32.mrb[55].mxu1  ;;  %v2958_v30 = vunpack.c.l.s8.bf16 %v1978_v32  ;;  %v3028_v39 = vunpack.c.h.s8.bf16 %v1978_v32  ;;  %v2333_v11 = vunpack.c.h.s8.bf16 %v1633_v12  ;;  %v1700_v36 = vld [vmem:[%s6709_s10 + $0x660] sm:$0xff] }
 0x917   : > { %v7518_v21 = vadd.f32 %v4564_v19, %v4524_v10  ;;  %v2330_v17 = vunpack.c.h.s8.bf16 %v1630_v8  ;;  %v2401_v19 = vunpack.c.l.s8.bf16 %v1701_v1  ;;  %v2403_v10 = vunpack.c.l.s8.bf16 %v1703_v5  ;;  %v1773_v29 = vld [vmem:[%s6709_s10 + $0x8a8] sm:$0xff] }
 0x918   : > { %v2471_v16 = vunpack.c.h.s8.bf16 %v1701_v1  ;;  %v2470_v24 = vunpack.c.h.s8.bf16 %v1700_v36 }
 0x919   : > { %4674 = vmatpush1.bf16.xpose.msra.mxu0 %v2886_v20  ;;  %4715 = vmatpush1.bf16.xpose.msra.mxu1 %v2888_v15  ;;  %v1702_v20 = vld [vmem:[%s6709_s10 + $0x670] sm:$0xff]  ;;  %v2400_v15 = vunpack.c.l.s8.bf16 %v1700_v36 }
 0x91a   : > { %4675 = vmatprep.subr.bf16.mxu0 %v2957_v18  ;;  %4716 = vmatprep.subr.bf16.mxu1 %v2959_v23  ;;  %v2402_v22 = vunpack.c.l.s8.bf16 %v1702_v20  ;;  %v2473_v18 = vunpack.c.h.s8.bf16 %v1703_v5  ;;  %v1771_v23 = vld [vmem:[%s6709_s10 + $0x898] sm:$0xff]  ;;  %v2472_v32 = vunpack.c.h.s8.bf16 %v1702_v20 }
 0x921   : > { %4676 = vmatpush1.bf16.xpose.msra.mxu0 %v2956_v25  ;;  %4717 = vmatpush1.bf16.xpose.msra.mxu1 %v2958_v30  ;;  %v2541_v25 = vunpack.c.l.s8.bf16 %v1771_v23  ;;  %v2543_v30 = vunpack.c.l.s8.bf16 %v1773_v29 }
 0x922   : > { %4677 = vmatprep.subr.bf16.mxu0 %v3027_v27  ;;  %4718 = vmatprep.subr.bf16.mxu1 %v3029_v33  ;;  %v1770_v27 = vld [vmem:[%s6709_s10 + $0x890] sm:$0xff]  ;;  %v1772_v33 = vld [vmem:[%s6709_s10 + $0x8a0] sm:$0xff] }
 0x923   : > { %v2540_v26 = vunpack.c.l.s8.bf16 %v1770_v27  ;;  %v2542_v28 = vunpack.c.l.s8.bf16 %v1772_v33  ;;  %v2610_v37 = vunpack.c.h.s8.bf16 %v1770_v27  ;;  %v2612_v40 = vunpack.c.h.s8.bf16 %v1772_v33 }
 0x929   : > { %4678 = vmatpush1.bf16.xpose.msra.mxu0 %v3026_v34  ;;  %4719 = vmatpush1.bf16.xpose.msra.mxu1 %v3028_v39  ;;  %v2611_v34 = vunpack.c.h.s8.bf16 %v1771_v23  ;;  %v2613_v39 = vunpack.c.h.s8.bf16 %v1773_v29 }
 0x92a   : > { %4679 = vmatprep.subr.bf16.mxu0 %v3097_v35  ;;  %4720 = vmatprep.subr.bf16.mxu1 %v3099_v41  ;;  %v1841_v35 = vld [vmem:[%s6709_s10 + $0xac8] sm:$0xff]  ;;  %v1843_v41 = vld [vmem:[%s6709_s10 + $0xad8] sm:$0xff] }
 0x931   : > { %4680 = vmatpush1.bf16.xpose.msra.mxu0 %v3096_v3  ;;  %4721 = vmatpush1.bf16.xpose.msra.mxu1 %v3098_v42  ;;  %v2681_v3 = vunpack.c.l.s8.bf16 %v1841_v35  ;;  %v2683_v42 = vunpack.c.l.s8.bf16 %v1843_v41 }
 0x932   : > { %4681 = vmatprep.subr.bf16.mxu0 %v3167_v38  ;;  %4722 = vmatprep.subr.bf16.mxu1 %v3169_v4  ;;  %v1840_v38 = vld [vmem:[%s6709_s10 + $0xac0] sm:$0xff]  ;;  %v1842_v4 = vld [vmem:[%s6709_s10 + $0xad0] sm:$0xff] }
 0x933   : > { %v2680_v43 = vunpack.c.l.s8.bf16 %v1840_v38  ;;  %v2682_v49 = vunpack.c.l.s8.bf16 %v1842_v4  ;;  %v2750_v47 = vunpack.c.h.s8.bf16 %v1840_v38  ;;  %v2752_v52 = vunpack.c.h.s8.bf16 %v1842_v4 }
 0x939   : > { %4682 = vmatpush1.bf16.xpose.msra.mxu0 %v3166_v44  ;;  %4723 = vmatpush1.bf16.xpose.msra.mxu1 %v3168_v51  ;;  %v2751_v44 = vunpack.c.h.s8.bf16 %v1841_v35  ;;  %v2753_v51 = vunpack.c.h.s8.bf16 %v1843_v41 }
 0x93a   : > { %4733 = vmatprep.subr.bf16.mxu0 %v2121_v45  ;;  %4774 = vmatprep.subr.bf16.mxu1 %v2123_v50  ;;  %v1911_v45 = vld [vmem:[%s6709_s10 + $0xcf8] sm:$0xff]  ;;  %v1913_v50 = vld [vmem:[%s6709_s10 + $0xd08] sm:$0xff] }
 0x940   : > { %4684 = vmatmul.mubr.bf16.vlgmr.msra.gmra.mrb[60].mxu0 %v5268_v46  ;;  %4725 = vmatmul.mubr.bf16.vlgmr.msra.gmra.mrb[60].mxu1 %v5270_v48  ;;  %v2821_v46 = vunpack.c.l.s8.bf16 %v1911_v45  ;;  %v2823_v48 = vunpack.c.l.s8.bf16 %v1913_v50 }
 0x941   : > { %4734 = vmatpush1.bf16.xpose.msra.mxu0 %v2120_v59  ;;  %4775 = vmatpush1.bf16.xpose.msra.mxu1 %v2122_v54  ;;  %v1910_v59 = vld [vmem:[%s6709_s10 + $0xcf0] sm:$0xff]  ;;  %v1912_v54 = vld [vmem:[%s6709_s10 + $0xd00] sm:$0xff] }
 0x942   : > { %4735 = vmatprep.subr.bf16.mxu0 %v2191_v61  ;;  %4776 = vmatprep.subr.bf16.mxu1 %v2193_v55  ;;  %v2820_v61 = vunpack.c.l.s8.bf16 %v1910_v59  ;;  %v2822_v55 = vunpack.c.l.s8.bf16 %v1912_v54 }
 0x943   : > { %4765 = vmatprep.mubr.bf16.mxu0 %v5273_v57  ;;  %4806 = vmatprep.mubr.bf16.mxu1 %v5275_v62  ;;  %v2891_v57 = vunpack.c.h.s8.bf16 %v1911_v45  ;;  %v2893_v62 = vunpack.c.h.s8.bf16 %v1913_v50  ;;  %v1705_v50 = vld [vmem:[%s6709_s10 + $0x688] sm:$0xff] }
 0x949   : > { %4736 = vmatpush1.bf16.xpose.msra.mxu0 %v2190_v56  ;;  %4777 = vmatpush1.bf16.xpose.msra.mxu1 %v2192_v58  ;;  %v1981_v56 = vld [vmem:[%s6709_s10 + $0xf28] sm:$0xff]  ;;  %v1983_v58 = vld [vmem:[%s6709_s10 + $0xf38] sm:$0xff] }
 0x94a   : > { %4737 = vmatprep.subr.bf16.mxu0 %v2261_v6  ;;  %4778 = vmatprep.subr.bf16.mxu1 %v2263_v0 }
 0x951   : > { %4738 = vmatpush1.bf16.xpose.msra.mxu0 %v2260_v2  ;;  %4779 = vmatpush1.bf16.xpose.msra.mxu1 %v2262_v9  ;;  %v2890_v9 = vunpack.c.h.s8.bf16 %v1910_v59  ;;  %v2475_v59 = vunpack.c.h.s8.bf16 %v1705_v50 }
 0x952   : > { %4739 = vmatprep.subr.bf16.mxu0 %v2331_v13  ;;  %4780 = vmatprep.subr.bf16.mxu1 %v2333_v11  ;;  %v2892_v13 = vunpack.c.h.s8.bf16 %v1912_v54  ;;  %v1775_v54 = vld [vmem:[%s6709_s10 + $0x8b8] sm:$0xff] }
 0x959   : > { %4740 = vmatpush1.bf16.xpose.msra.mxu0 %v2330_v17  ;;  %4781 = vmatpush1.bf16.xpose.msra.mxu1 %v2332_v14  ;;  %v2961_v17 = vunpack.c.l.s8.bf16 %v1981_v56  ;;  %v2963_v14 = vunpack.c.l.s8.bf16 %v1983_v58 }
 0x95a   : > { %4741 = vmatprep.subr.bf16.mxu0 %v2401_v19  ;;  %4782 = vmatprep.subr.bf16.mxu1 %v2403_v10 }
 0x961   : > { %4742 = vmatpush1.bf16.xpose.msra.mxu0 %v2400_v15  ;;  %4783 = vmatpush1.bf16.xpose.msra.mxu1 %v2402_v22  ;;  %v3031_v15 = vunpack.c.h.s8.bf16 %v1981_v56  ;;  %v3033_v22 = vunpack.c.h.s8.bf16 %v1983_v58 }
 0x962   : > { %4743 = vmatprep.subr.bf16.mxu0 %v2471_v16  ;;  %4784 = vmatprep.subr.bf16.mxu1 %v2473_v18  ;;  %v2051_v16 = vld [vmem:[%s6709_s10 + $0x1158] sm:$0xff]  ;;  %v2053_v18 = vld [vmem:[%s6709_s10 + $0x1168] sm:$0xff] }
 0x969   : > { %4744 = vmatpush1.bf16.xpose.msra.mxu0 %v2470_v24  ;;  %4785 = vmatpush1.bf16.xpose.msra.mxu1 %v2472_v32  ;;  %v3101_v24 = vunpack.c.l.s8.bf16 %v2051_v16  ;;  %v3103_v32 = vunpack.c.l.s8.bf16 %v2053_v18 }
 0x96a   : > { %4745 = vmatprep.subr.bf16.mxu0 %v2541_v25  ;;  %4786 = vmatprep.subr.bf16.mxu1 %v2543_v30  ;;  %v2050_v25 = vld [vmem:[%s6709_s10 + $0x1150] sm:$0xff]  ;;  %v2052_v30 = vld [vmem:[%s6709_s10 + $0x1160] sm:$0xff] }
 0x96b   : > { %v3100_v27 = vunpack.c.l.s8.bf16 %v2050_v25  ;;  %v3102_v33 = vunpack.c.l.s8.bf16 %v2052_v30  ;;  %v3172_v35 = vunpack.c.h.s8.bf16 %v2052_v30 }
 0x971   : > { %4746 = vmatpush1.bf16.xpose.msra.mxu0 %v2540_v26  ;;  %4787 = vmatpush1.bf16.xpose.msra.mxu1 %v2542_v28  ;;  %v3171_v26 = vunpack.c.h.s8.bf16 %v2051_v16  ;;  %v3173_v28 = vunpack.c.h.s8.bf16 %v2053_v18 }
 0x972   : > { %4747 = vmatprep.subr.bf16.mxu0 %v2611_v34  ;;  %4788 = vmatprep.subr.bf16.mxu1 %v2613_v39  ;;  %v1565_v34 = vld [vmem:[%s6709_s10 + $0x228] sm:$0xff]  ;;  %v3170_v39 = vunpack.c.h.s8.bf16 %v2050_v25  ;;  %v1984_v25 = vld [vmem:[%s6709_s10 + $0xf40] sm:$0xff] }
 0x973   : > { %v2125_v41 = vunpack.c.l.s8.bf16 %v1565_v34  ;;  %v2964_v30 = vunpack.c.l.s8.bf16 %v1984_v25 }
 0x979   : > { %4748 = vmatpush1.bf16.xpose.msra.mxu0 %v2610_v37  ;;  %4789 = vmatpush1.bf16.xpose.msra.mxu1 %v2612_v40  ;;  %v1564_v37 = vld [vmem:[%s6709_s10 + $0x220] sm:$0xff] }
 0x97a   : > { %4749 = vmatprep.subr.bf16.mxu0 %v2681_v3  ;;  %4790 = vmatprep.subr.bf16.mxu1 %v2683_v42  ;;  %v7581_v40 = vld [vmem:[%s6707_s26 + $0x110] sm:$0xff]  ;;  %v5272_v3 = vcombine.low %v7535_v53, %v7535_v53  ;;  %v5274_v42 = vcombine.low %v7538_v60, %v7538_v60  ;;  %v2124_v38 = vunpack.c.l.s8.bf16 %v1564_v37  ;;  %v1634_v53 = vld [vmem:[%s6709_s10 + $0x450] sm:$0xff] }
 0x97b   : > { %v5277_v4 = vcombine.high %v7581_v40, %v7581_v40  ;;  %v2264_v60 = vunpack.c.l.s8.bf16 %v1634_v53 }
 0x981   : > { %4750 = vmatpush1.bf16.xpose.msra.mxu0 %v2680_v43  ;;  %4791 = vmatpush1.bf16.xpose.msra.mxu1 %v2682_v49  ;;  %v2195_v43 = vunpack.c.h.s8.bf16 %v1565_v34  ;;  %v1635_v49 = vld [vmem:[%s6709_s10 + $0x458] sm:$0xff] }
 0x982   : > { %4751 = vmatprep.subr.bf16.mxu0 %v2751_v44  ;;  %4792 = vmatprep.subr.bf16.mxu1 %v2753_v51  ;;  %v2194_v44 = vunpack.c.h.s8.bf16 %v1564_v37  ;;  %v2265_v51 = vunpack.c.l.s8.bf16 %v1635_v49  ;;  %v2335_v45 = vunpack.c.h.s8.bf16 %v1635_v49 }
 0x989   : > { %4752 = vmatpush1.bf16.xpose.msra.mxu0 %v2750_v47  ;;  %4793 = vmatpush1.bf16.xpose.msra.mxu1 %v2752_v52  ;;  %v2334_v47 = vunpack.c.h.s8.bf16 %v1634_v53  ;;  %v2405_v52 = vunpack.c.l.s8.bf16 %v1705_v50 }
 0x98a   : > { %4753 = vmatprep.subr.bf16.mxu0 %v2821_v46  ;;  %4794 = vmatprep.subr.bf16.mxu1 %v2823_v48  ;;  %v1704_v46 = vld [vmem:[%s6709_s10 + $0x680] sm:$0xff] }
 0x98b   : > { %v2404_v48 = vunpack.c.l.s8.bf16 %v1704_v46 }
 0x991   : > { %4754 = vmatpush1.bf16.xpose.msra.mxu0 %v2820_v61  ;;  %4795 = vmatpush1.bf16.xpose.msra.mxu1 %v2822_v55  ;;  %v2474_v61 = vunpack.c.h.s8.bf16 %v1704_v46  ;;  %v2545_v55 = vunpack.c.l.s8.bf16 %v1775_v54 }
 0x992   : > { %4755 = vmatprep.subr.bf16.mxu0 %v2891_v57  ;;  %4796 = vmatprep.subr.bf16.mxu1 %v2893_v62  ;;  %v1774_v57 = vld [vmem:[%s6709_s10 + $0x8b0] sm:$0xff] }
 0x993   : > { %v4603_v63 = vpop.f32.mrb[56].mxu0  ;;  %v4644_v12 = vpop.f32.mrb[56].mxu1  ;;  %v2544_v62 = vunpack.c.l.s8.bf16 %v1774_v57  ;;  %v2614_v56 = vunpack.c.h.s8.bf16 %v1774_v57  ;;  %v4868_v57 = vlaneseq (!%p5278_p10) }
 0x994   : > { %v4604_v6 = vadd.f32 %v4603_v63, %v7516_v31  ;;  %v4605_v0 = vpop.f32.mrb[57].mxu0  ;;  %v4646_v8 = vpop.f32.mrb[57].mxu1  ;;  %v1980_v31 = vld [vmem:[%s6709_s10 + $0xf20] sm:$0xff]  ;;  %v2615_v63 = vunpack.c.h.s8.bf16 %v1775_v54 }
 0x995   : > { %v4606_v7 = vadd.f32 %v4605_v0, %v7518_v21  ;;  %v4607_v2 = vpop.f32.mrb[58].mxu0  ;;  %v4648_v11 = vpop.f32.mrb[58].mxu1  ;;  %v1982_v21 = vld [vmem:[%s6709_s10 + $0xf30] sm:$0xff]  ;;  %v2960_v36 = vunpack.c.l.s8.bf16 %v1980_v31  ;;  %v3030_v23 = vunpack.c.h.s8.bf16 %v1980_v31 }
 0x996   : > { %v7568_v1 = vadd.f32 %v4644_v12, %v4604_v6  ;;  %v4608_v5 = vpop.f32.mrb[59].mxu0  ;;  %v4649_v19 = vpop.f32.mrb[59].mxu1  ;;  %v2962_v20 = vunpack.c.l.s8.bf16 %v1982_v21  ;;  %v3032_v29 = vunpack.c.h.s8.bf16 %v1982_v21  ;;  %v1845_v12 = vld [vmem:[%s6709_s10 + $0xae8] sm:$0xff]  ;;  %v1844_v6 = vld [vmem:[%s6709_s10 + $0xae0] sm:$0xff] }
 0x997   : > { %v7570_v10 = vadd.f32 %v4646_v8, %v4606_v7  ;;  %v2685_v58 = vunpack.c.l.s8.bf16 %v1845_v12  ;;  %v2684_v0 = vunpack.c.l.s8.bf16 %v1844_v6  ;;  %v2755_v8 = vunpack.c.h.s8.bf16 %v1845_v12  ;;  %v1915_v7 = vld [vmem:[%s6709_s10 + $0xd18] sm:$0xff]  ;;  %v1985_v19 = vld [vmem:[%s6709_s10 + $0xf48] sm:$0xff] }
 0x998   : > { %v2754_v2 = vunpack.c.h.s8.bf16 %v1844_v6  ;;  %v2895_v5 = vunpack.c.h.s8.bf16 %v1915_v7  ;;  %v5439_v12 = vld [vmem:[%s7718_s4 + $0x14] ss:$8 sps:$4 sm:$0xff] (!%p5278_p10)   ;;  %v5442_v6 = vld [vmem:[%s7718_s4 + $0x24] ss:$8 sps:$4 sm:$0xff] (!%p5278_p10)  }
 0x999   : > { %4756 = vmatpush1.bf16.xpose.msra.mxu0 %v2890_v9  ;;  %4797 = vmatpush1.bf16.xpose.msra.mxu1 %v2892_v13  ;;  %v2825_v9 = vunpack.c.l.s8.bf16 %v1915_v7  ;;  %v1914_v13 = vld [vmem:[%s6709_s10 + $0xd10] sm:$0xff] }
 0x99a   : > { %4757 = vmatprep.subr.bf16.mxu0 %v2961_v17  ;;  %4798 = vmatprep.subr.bf16.mxu1 %v2963_v14  ;;  %v2824_v11 = vunpack.c.l.s8.bf16 %v1914_v13  ;;  %v4866_v7 = vld [vmem:[%s7716_s2] sm:$0x3] (!%p5278_p10) }
 0x9a1   : > { %4758 = vmatpush1.bf16.xpose.msra.mxu0 %v2960_v36  ;;  %4799 = vmatpush1.bf16.xpose.msra.mxu1 %v2962_v20 }
 0x9a2   : > { %4759 = vmatprep.subr.bf16.mxu0 %v3031_v15  ;;  %4800 = vmatprep.subr.bf16.mxu1 %v3033_v22  ;;  %v2894_v22 = vunpack.c.h.s8.bf16 %v1914_v13 }
 0x9a9   : > { %4760 = vmatpush1.bf16.xpose.msra.mxu0 %v3030_v23  ;;  %4801 = vmatpush1.bf16.xpose.msra.mxu1 %v3032_v29  ;;  %v2965_v29 = vunpack.c.l.s8.bf16 %v1985_v19 }
 0x9aa   : > { %4761 = vmatprep.subr.bf16.mxu0 %v3101_v24  ;;  %4802 = vmatprep.subr.bf16.mxu1 %v3103_v32 }
 0x9b1   : > { %4762 = vmatpush1.bf16.xpose.msra.mxu0 %v3100_v27  ;;  %4803 = vmatpush1.bf16.xpose.msra.mxu1 %v3102_v33  ;;  %v3035_v27 = vunpack.c.h.s8.bf16 %v1985_v19  ;;  %v3034_v33 = vunpack.c.h.s8.bf16 %v1984_v25  ;;  %v5464_v25 = vld [vmem:[%s7720_s6 + $0x20] sm:$0xff] (!%p5278_p10)  }
 0x9b2   : > { %4763 = vmatprep.subr.bf16.mxu0 %v3171_v26  ;;  %4804 = vmatprep.subr.bf16.mxu1 %v3173_v28  ;;  %v2054_v26 = vld [vmem:[%s6709_s10 + $0x1170] sm:$0xff] }
 0x9b3   : > { %v3104_v28 = vunpack.c.l.s8.bf16 %v2054_v26 }
 0x9b9   : > { %4764 = vmatpush1.bf16.xpose.msra.mxu0 %v3170_v39  ;;  %4805 = vmatpush1.bf16.xpose.msra.mxu1 %v3172_v35  ;;  %v3174_v39 = vunpack.c.h.s8.bf16 %v2054_v26  ;;  %v5276_v35 = vcombine.low %v7581_v40, %v7581_v40 }
 0x9ba   : > { %4815 = vmatprep.subr.bf16.mxu0 %v2125_v41 }
 0x9c0   : > { %4766 = vmatmul.mubr.bf16.vlgmr.msra.gmra.mrb[64].mxu0 %v5272_v3  ;;  %4807 = vmatmul.mubr.bf16.vlgmr.msra.gmra.mrb[64].mxu1 %v5274_v42 }
 0x9c1   : > { %4816 = vmatpush1.bf16.xpose.msra.mxu0 %v2124_v38  ;;  %4847 = vmatprep.mubr.bf16.mxu0 %v5277_v4 }
 0x9c2   : > { %4817 = vmatprep.subr.bf16.mxu0 %v2195_v43 }
 0x9c9   : > { %4818 = vmatpush1.bf16.xpose.msra.mxu0 %v2194_v44 }
 0x9ca   : > { %4819 = vmatprep.subr.bf16.mxu0 %v2265_v51 }
 0x9d1   : > { %4820 = vmatpush1.bf16.xpose.msra.mxu0 %v2264_v60 }
 0x9d2   : > { %4821 = vmatprep.subr.bf16.mxu0 %v2335_v45  ;;  %v1459_v45 = vld [vmem:[#allocation2] sm:$0xff] }
 0x9d9   : > { %4822 = vmatpush1.bf16.xpose.msra.mxu0 %v2334_v47 }
 0x9da   : > { %4823 = vmatprep.subr.bf16.mxu0 %v2405_v52  ;;  %v1460_v52 = vld [vmem:[#allocation2 + $0x8] sm:$0xff] }
 0x9e1   : > { %4824 = vmatpush1.bf16.xpose.msra.mxu0 %v2404_v48 }
 0x9e2   : > { %4825 = vmatprep.subr.bf16.mxu0 %v2475_v59 }
 0x9e9   : > { %4826 = vmatpush1.bf16.xpose.msra.mxu0 %v2474_v61 }
 0x9ea   : > { %4827 = vmatprep.subr.bf16.mxu0 %v2545_v55  ;;  %v5436_v55 = vld [vmem:[%s7718_s4 + $0x4] ss:$8 sps:$4 sm:$0xff] (!%p5278_p10)  }
 0x9f1   : > { %4828 = vmatpush1.bf16.xpose.msra.mxu0 %v2544_v62  ;;  %v5438_v62 = vld [vmem:[%s7718_s4] ss:$8 sps:$4 sm:$0xff] (!%p5278_p10)  }
 0x9f2   : > { %4829 = vmatprep.subr.bf16.mxu0 %v2615_v63  ;;  %v5493_v63 = vmov (!%p5278_p10), 0.0  }
 0x9f3   : > { %5317 = vmatprep.subr.bf16.mxu1 (!%p5278_p10), %v5493_v63  ;;  %5333 = vmatprep.mubr.msk.bf16.mxu1 (!%p5278_p10), %vm5494_vm0, %v5493_v63 }
 0x9f9   : > { %4830 = vmatpush1.bf16.xpose.msra.mxu0 %v2614_v56  ;;  %v4869_v56 = vshrl.u32 (!%p5278_p10), %v4868_v57, 7 }
 0x9fa   : > { %4831 = vmatprep.subr.bf16.mxu0 %v2685_v58  ;;  %v5441_v58 = vld [vmem:[%s7718_s4 + $0x10] ss:$8 sps:$4 sm:$0xff] (!%p5278_p10)  }
 0xa01   : > { %4832 = vmatpush1.bf16.xpose.msra.mxu0 %v2684_v0  ;;  %v4874_v0 = vsub.s32 (!%p5278_p10), 1, %v4869_v56 }
 0xa02   : > { %4833 = vmatprep.subr.bf16.mxu0 %v2755_v8 }
 0xa09   : > { %4834 = vmatpush1.bf16.xpose.msra.mxu0 %v2754_v2  ;;  %v4880_v2 = vld [vmem:[%s7717_s3] sm:$0x3] (!%p5278_p10) }
 0xa0a   : > { %4835 = vmatprep.subr.bf16.mxu0 %v2825_v9  ;;  %v4875_v9 = vrot.slane (!%p5278_p10), %v4866_v7, %v4874_v0  ;;  %v4889_v13 = vrot.slane (!%p5278_p10), %v4880_v2, %v4874_v0 }
 0xa11   : > { %4836 = vmatpush1.bf16.xpose.msra.mxu0 %v2824_v11  ;;  %v5460_v11 = vld [vmem:[%s7720_s6] sm:$0xff] (!%p5278_p10)  }
 0xa12   : > { %4837 = vmatprep.subr.bf16.mxu0 %v2895_v5  ;;  %5318 = vmatpush3.bf16.xpose.msra.mxu1 (!%p5278_p10), %v5460_v11 }
 0xa13   : > { %v4685_v17 = vpop.f32.mrb[60].mxu0  ;;  %v4726_v14 = vpop.f32.mrb[60].mxu1  ;;  %5319 = vmatprep.subr.bf16.mxu1 (!%p5278_p10), %v5493_v63 }
 0xa14   : > { %v4686_v31 = vadd.f32 %v4685_v17, %v7568_v1  ;;  %v4687_v21 = vpop.f32.mrb[61].mxu0  ;;  %v4728_v36 = vpop.f32.mrb[61].mxu1  ;;  %v2055_v1 = vld [vmem:[%s6709_s10 + $0x1178] sm:$0xff] }
 0xa15   : > { %v4688_v20 = vadd.f32 %v4687_v21, %v7570_v10  ;;  %v4689_v15 = vpop.f32.mrb[62].mxu0  ;;  %v4730_v16 = vpop.f32.mrb[62].mxu1  ;;  %v3105_v10 = vunpack.c.l.s8.bf16 %v2055_v1  ;;  %v3175_v34 = vunpack.c.h.s8.bf16 %v2055_v1  ;;  %v5444_v17 = vld [vmem:[%s7718_s4 + $0x20] ss:$8 sps:$4 sm:$0xff] (!%p5278_p10)  }
 0xa16   : > { %v4727_v18 = vadd.f32 %v4726_v14, %v4686_v31  ;;  %v4690_v23 = vpop.f32.mrb[63].mxu0  ;;  %v4731_v24 = vpop.f32.mrb[63].mxu1  ;;  %v5445_v14 = vld [vmem:[%s7718_s4 + $0x34] ss:$8 sps:$4 sm:$0xff] (!%p5278_p10)   ;;  %v5461_v21 = vld [vmem:[%s7720_s6 + $0x8] sm:$0xff] (!%p5278_p10)  }
 0xa17   : > { %v4729_v32 = vadd.f32 %v4728_v36, %v4688_v20  ;;  %v5447_v20 = vld [vmem:[%s7718_s4 + $0x30] ss:$8 sps:$4 sm:$0xff] (!%p5278_p10)   ;;  %v5448_v15 = vld [vmem:[%s7718_s4 + $0x44] ss:$8 sps:$4 sm:$0xff] (!%p5278_p10)   ;;  %v5450_v16 = vld [vmem:[%s7718_s4 + $0x40] ss:$8 sps:$4 sm:$0xff] (!%p5278_p10)  }
 0xa18   : > { %v5463_v23 = vld [vmem:[%s7720_s6 + $0x18] sm:$0xff] (!%p5278_p10)   ;;  %v5454_v24 = vld [vmem:[%s7718_s4 + $0x64] ss:$8 sps:$4 sm:$0xff] (!%p5278_p10)  }
 0xa19   : > { %4838 = vmatpush1.bf16.xpose.msra.mxu0 %v2894_v22  ;;  %v5462_v22 = vld [vmem:[%s7720_s6 + $0x10] sm:$0xff] (!%p5278_p10)  }
 0xa1a   : > { %4839 = vmatprep.subr.bf16.mxu0 %v2965_v29  ;;  %5320 = vmatpush3.bf16.xpose.msra.mxu1 (!%p5278_p10), %v5461_v21  ;;  %v5453_v29 = vld [vmem:[%s7718_s4 + $0x50] ss:$8 sps:$4 sm:$0xff] (!%p5278_p10)  }
 0xa1b   : > { %5321 = vmatprep.subr.bf16.mxu1 (!%p5278_p10), %v5493_v63 }
 0xa21   : > { %4840 = vmatpush1.bf16.xpose.msra.mxu0 %v2964_v30 }
 0xa22   : > { %4841 = vmatprep.subr.bf16.mxu0 %v3035_v27  ;;  %5322 = vmatpush3.bf16.xpose.msra.mxu1 (!%p5278_p10), %v5462_v22  ;;  %v5456_v27 = vld [vmem:[%s7718_s4 + $0x60] ss:$8 sps:$4 sm:$0xff] (!%p5278_p10)  }
 0xa23   : > { %5323 = vmatprep.subr.bf16.mxu1 (!%p5278_p10), %v5493_v63 }
 0xa29   : > { %4842 = vmatpush1.bf16.xpose.msra.mxu0 %v3034_v33  ;;  %v5457_v33 = vld [vmem:[%s7718_s4 + $0x74] ss:$8 sps:$4 sm:$0xff] (!%p5278_p10)  }
 0xa2a   : > { %4843 = vmatprep.subr.bf16.mxu0 %v3105_v10  ;;  %5324 = vmatpush3.bf16.xpose.msra.mxu1 (!%p5278_p10), %v5463_v23 }
 0xa2b   : > { %5325 = vmatprep.subr.bf16.mxu1 (!%p5278_p10), %v5493_v63 }
 0xa31   : > { %4844 = vmatpush1.bf16.xpose.msra.mxu0 %v3104_v28  ;;  %v5465_v28 = vld [vmem:[%s7720_s6 + $0x28] sm:$0xff] (!%p5278_p10)  }
 0xa32   : > { %4845 = vmatprep.subr.bf16.mxu0 %v3175_v34  ;;  %5326 = vmatpush3.bf16.xpose.msra.mxu1 (!%p5278_p10), %v5464_v25 }
 0xa33   : > { %5327 = vmatprep.subr.bf16.mxu1 (!%p5278_p10), %v5493_v63 }
 0xa39   : > { %4846 = vmatpush1.bf16.xpose.msra.mxu0 %v3174_v39  ;;  %v5459_v39 = vld [vmem:[%s7718_s4 + $0x70] ss:$8 sps:$4 sm:$0xff] (!%p5278_p10)  }
 0xa3a   : > { %5001 = vmatprep.subr.bf16.mxu0 (!%p5278_p10), %v5436_v55  ;;  %5328 = vmatpush3.bf16.xpose.msra.mxu1 (!%p5278_p10), %v5465_v28 }
 0xa3b   : > { %5329 = vmatprep.subr.bf16.mxu1 (!%p5278_p10), %v5493_v63 }
 0xa40   : > { %4848 = vmatmul.mubr.bf16.vlgmr.msra.gmra.mrb[68].mxu0 %v5276_v35 }
 0xa41   : > { %5002 = vmatpush1.bf16.xpose.msra.mxu0 (!%p5278_p10), %v5438_v62 }
 0xa42   : > { %5003 = vmatprep.subr.bf16.mxu0 (!%p5278_p10), %v5439_v12 }
 0xa49   : > { %5004 = vmatpush1.bf16.xpose.msra.mxu0 (!%p5278_p10), %v5441_v58 }
 0xa4a   : > { %5005 = vmatprep.subr.bf16.mxu0 (!%p5278_p10), %v5442_v6 }
 0xa51   : > { %5006 = vmatpush1.bf16.xpose.msra.mxu0 (!%p5278_p10), %v5444_v17 }
 0xa52   : > { %5007 = vmatprep.subr.bf16.mxu0 (!%p5278_p10), %v5445_v14 }
 0xa59   : > { %5008 = vmatpush1.bf16.xpose.msra.mxu0 (!%p5278_p10), %v5447_v20 }
 0xa5a   : > { %5009 = vmatprep.subr.bf16.mxu0 (!%p5278_p10), %v5448_v15 }
 0xa61   : > { %5010 = vmatpush1.bf16.xpose.msra.mxu0 (!%p5278_p10), %v5450_v16 }
 0xa93   : > { %v4767_v41 = vpop.f32.mrb[64].mxu0  ;;  %v4808_v37 = vpop.f32.mrb[64].mxu1 }
 0xa94   : > { %v4768_v3 = vadd.f32 %v4767_v41, %v4727_v18  ;;  %v4769_v42 = vpop.f32.mrb[65].mxu0  ;;  %v4810_v38 = vpop.f32.mrb[65].mxu1  ;;  %v5451_v18 = vld [vmem:[%s7718_s4 + $0x54] ss:$8 sps:$4 sm:$0xff] (!%p5278_p10)  }
 0xa95   : > { %v4770_v4 = vadd.f32 %v4769_v42, %v4729_v32  ;;  %v4771_v43 = vpop.f32.mrb[66].mxu0  ;;  %v4812_v49 = vpop.f32.mrb[66].mxu1  ;;  %5011 = vmatprep.subr.bf16.mxu0 (!%p5278_p10), %v5451_v18  ;;  %v4870_v32 = vsub.s32 (!%p5278_p10), 0, %v4869_v56  ;;  %v5466_v41 = vld [vmem:[%s7720_s6 + $0x30] sm:$0xff] (!%p5278_p10)   ;;  %v5279_v42 = vld [vmem:[%s7719_s5] ss:$0 sm:$0xff] (!%p5278_p10) }
 0xa96   : > { %v4809_v44 = vadd.f32 %v4808_v37, %v4768_v3  ;;  %v4772_v51 = vpop.f32.mrb[67].mxu0  ;;  %v4813_v53 = vpop.f32.mrb[67].mxu1  ;;  %5012 = vmatpush1.bf16.xpose.msra.mxu0 (!%p5278_p10), %v5453_v29  ;;  %5330 = vmatpush3.bf16.xpose.msra.mxu1 (!%p5278_p10), %v5466_v41  ;;  %v5467_v3 = vld [vmem:[%s7720_s6 + $0x38] sm:$0xff] (!%p5278_p10)  }
 0xa97   : > { %v4811_v60 = vadd.f32 %v4810_v38, %v4770_v4  ;;  %5013 = vmatprep.subr.bf16.mxu0 (!%p5278_p10), %v5454_v24  ;;  %v4871_v30 = vrot.slane (!%p5278_p10), %v4866_v7, %v4870_v32  ;;  %v4885_v10 = vrot.slane (!%p5278_p10), %v4880_v2, %v4870_v32  ;;  %5331 = vmatprep.subr.bf16.mxu1 (!%p5278_p10), %v5493_v63 }
 0xa9e   : > { %5014 = vmatpush1.bf16.xpose.msra.mxu0 (!%p5278_p10), %v5456_v27  ;;  %5332 = vmatpush3.bf16.xpose.msra.mxu1 (!%p5278_p10), %v5467_v3 }
 0xa9f   : > { %5015 = vmatprep.subr.bf16.mxu0 (!%p5278_p10), %v5457_v33 }
 0xaa6   : > { %5016 = vmatpush1.bf16.xpose.msra.mxu0 (!%p5278_p10), %v5459_v39 }
 0xb13   : > { %v4849_v50 = vpop.f32.mrb[68].mxu0  ;;  %4863 = sbr.rel (%p5278_p10) target bundleno = 3291 (0xcdb), region = 83 }
 0xb14   : > { %v4850_v47 = vadd.f32 %v4849_v50, %v4809_v44  ;;  %v4851_v46 = vpop.f32.mrb[69].mxu0 }
 0xb15   : > { %v4852_v48 = vadd.f32 %v4851_v46, %v4811_v60  ;;  %v4853_v40 = vpop.f32.mrb[70].mxu0  ;;  %v5296_v60 = vld [vmem:[%s7721_s7] ss:$0 sm:$0xff] (!%p5278_p10) }
 0xb16   : > { %v4856_v59 = vadd.f32 %v4850_v47, %v1459_v45  ;;  %v4854_v54 = vpop.f32.mrb[71].mxu0 }
 0xb17   : > { %v4857_v61 = vadd.f32 %v4852_v48, %v1460_v52 }
 0xb18   : > { %4858 = vst [vmem:[#allocation2] sm:$0xff] %v4856_v59 }
 0xb19   : > { %4859 = vst [vmem:[#allocation2 + $0x8] sm:$0xff] %v4857_v61 }
 0xb1f   : > { %v4864_v1 = vld [vmem:[#allocation2] sm:$0xff] }
 0xb20   : > { %v4865_v8 = vld [vmem:[#allocation2 + $0x8] sm:$0xff]  ;;  %v4878_v26 = vmul.f32 %v4871_v30, %v4864_v1 }
 0xb21   : > { %v4879_v5 = vmul.f32 %v4875_v9, %v4865_v8 }
 0xb22   : > { %v4892_v34 = vadd.f32 %v4885_v10, %v4878_v26 }
 0xb23   : > { %v4893_v19 = vadd.f32 %v4889_v13, %v4879_v5 }
 0xb24   : > { %v4894_v35 = vmax.f32 %v4892_v34, 0.0 }
 0xb25   : > { %v4895_v31 = vmax.f32 %v4893_v19, 0.0 }
 0xb26   : > { %v4896_v37 = vpack.c.bf16 %v4894_v35, %v4894_v35 }
 0xb27   : > { %v4897_v36 = vpack.c.bf16 %v4895_v31, %v4895_v31 }
 0xb29   : > { %5033 = vmatprep.mubr.bf16.mxu0 %v4897_v36 }
 0xb2a   : > { %5034 = vmatmul.mubr.bf16.vlgmr.msra.gmra.mrb[0].mxu0 %v4896_v37 }
 0xbfd   : > { %v5035_v38 = vpop.f32.mrb[0].mxu0 }
 0xbfe   : > { %v5036_v4 = vadd.f32 %v5279_v42, %v5035_v38  ;;  %v5037_v43 = vpop.f32.mrb[1].mxu0 }
 0xbff   : > { %v5038_v49 = vpop.f32.mrb[2].mxu0 }
 0xc00   : > { %v5041_v44 = vmax.f32 %v5036_v4, 0.0  ;;  %v5039_v51 = vpop.f32.mrb[3].mxu0 }
 0xc02   : > { %v5042_v53 = vpack.c.bf16 %v5041_v44, %v5041_v44 }
 0xc04   : > { %5334 = vmatmul.mubr.bf16.vlgmr.msra.gmra.mrb[0].mxu1 %v5042_v53 }
 0xcd7   : > { %v5148_v45 = vpop.f32.mrb[0].mxu1 }
 0xcd8   : > { %v5149_v50 = vadd.f32 %v5296_v60, %v5148_v45  ;;  %v5335_v47 = vpop.f32.mrb[1].mxu1 }
 0xcd9   : > { %v5151_v52 = vpop.f32.mrb[2].mxu1 }
 0xcda   : > { %5154 = vst [vmem:[%s7722_s8] sm:$0xff] %v5149_v50  ;;  %v5336_v46 = vpop.f32.mrb[3].mxu1 }
 0xcdb PF: > { %p15_p11 = scmp.ge.s32.totalorder %s5559_s9, 5   ;;  %s7723_s27 = smov %s5486_s28 }
 0xcdc   : > { %s7724_s28 = smov %s5568_s12  ;;  %s7725_s29 = smov %s5559_s9 }
 0xcdd   :  { %17 = sbr.rel (!%p15_p11) target bundleno = 2 (0x2), region = 117 }

</bundles_post_ra>
